<compile_context>
chip_gen: v6e
topology: v6e:2x2x1
jax: 0.10.0
libtpu: 0.0.40
codegen_flags: <defaults>
</compile_context>

<pallas_src>
import functools
import math

import jax
import jax.numpy as jnp
from jax import lax
from jax.experimental import pallas as pl
from jax.experimental.pallas import tpu as pltpu

EPS = 1e-15
BALL_EPS = 1e-5
ATANH_CLAMP = 1.0 - 1e-6


# ----------------------- Poincare-ball math (reference / wrapper precompute)
def _artanh(x):
    x = jnp.clip(x, -ATANH_CLAMP, ATANH_CLAMP)
    return 0.5 * jnp.log((1.0 + x) / (1.0 - x))


def _norm(x):
    return jnp.sqrt(jnp.maximum(jnp.sum(x * x, axis=-1, keepdims=True), EPS))


def _proj(x, c):
    maxnorm = (1.0 - BALL_EPS) / math.sqrt(c)
    n = _norm(x)
    return jnp.where(n > maxnorm, x / n * maxnorm, x)


def _logmap0(p, c):
    sqrt_c = math.sqrt(c)
    n = _norm(p)
    return p / n / sqrt_c * _artanh(sqrt_c * n)


def _expmap0(u, c):
    sqrt_c = math.sqrt(c)
    n = _norm(u)
    return _proj(jnp.tanh(sqrt_c * n) * u / (sqrt_c * n), c)


def _mobius_add(x, y, c):
    x2 = jnp.sum(x * x, axis=-1, keepdims=True)
    y2 = jnp.sum(y * y, axis=-1, keepdims=True)
    xy = jnp.sum(x * y, axis=-1, keepdims=True)
    num = (1.0 + 2.0 * c * xy + c * y2) * x + (1.0 - c * x2) * y
    den = 1.0 + 2.0 * c * xy + c * c * x2 * y2
    return num / jnp.maximum(den, EPS)


def _logmap(p, x, c):  # log_p(x)  (reference only)
    sub = _mobius_add(-p, x, c)
    sub_n = _norm(sub)
    lam = 2.0 / (1.0 - c * jnp.sum(p * p, axis=-1, keepdims=True))
    sqrt_c = math.sqrt(c)
    return 2.0 / (sqrt_c * lam) * _artanh(sqrt_c * sub_n) * sub / sub_n


def _expmap(u, p, c):  # exp_p(u)  (reference only)
    u_n = _norm(u)
    lam = 2.0 / (1.0 - c * jnp.sum(p * p, axis=-1, keepdims=True))
    sqrt_c = math.sqrt(c)
    second = jnp.tanh(sqrt_c * lam * u_n / 2.0) * u / (sqrt_c * u_n)
    return _proj(_mobius_add(p, second, c), c)


# ----------------- kernel-side helpers: narrow-reciprocal / scale-then-multiply forms
def _k_proj(x, c):
    maxnorm = (1.0 - BALL_EPS) / math.sqrt(c)
    n = _norm(x)                                                   # narrow
    factor = jnp.where(n > maxnorm, maxnorm / n, 1.0)              # narrow divide
    return x * factor


def _k_logmap0(p, c):
    sqrt_c = math.sqrt(c)
    n = _norm(p)
    scale = _artanh(sqrt_c * n) / (sqrt_c * n)                     # narrow divide
    return p * scale


def _k_expmap0(u, c):
    sqrt_c = math.sqrt(c)
    n = _norm(u)
    scale = jnp.tanh(sqrt_c * n) / (sqrt_c * n)                    # narrow divide
    return _k_proj(u * scale, c)


def _k_mobius_add(x, y, c):
    x2 = jnp.sum(x * x, axis=-1, keepdims=True)
    y2 = jnp.sum(y * y, axis=-1, keepdims=True)
    xy = jnp.sum(x * y, axis=-1, keepdims=True)
    num = (1.0 + 2.0 * c * xy + c * y2) * x + (1.0 - c * x2) * y
    inv_den = 1.0 / jnp.maximum(1.0 + 2.0 * c * xy + c * c * x2 * y2, EPS)  # narrow
    return num * inv_den


def _softmax_over_s(score):
    """softmax over axis 1 of [R, S, 1]; the max-shift keeps the denominator >= 1,
    so the approximate EUP reciprocal is safe here (exact 1/x is used elsewhere)."""
    score = score - jnp.max(score, axis=1, keepdims=True)
    e = jnp.exp(score)
    return e * pl.reciprocal(jnp.sum(e, axis=1, keepdims=True), approx=True)


def _aggregate_at_base(p, p2, ngh, att, c):
    """exp_p( sum_s att[:,s] * log_p(ngh[:,s]) ) for stacked rows.
    p:[R,D], p2:[R,1], ngh:[R,S,D], att:[R,S,1].  All divides happen on narrow
    keepdims arrays; wide tensors only see multiplies."""
    sqrt_c = math.sqrt(c)
    p3 = p[:, None, :]                                             # [R, 1, D]
    p2_3 = p2[:, None, :]                                          # [R, 1, 1]
    one_m_cp2 = 1.0 - c * p2_3                                     # [R, 1, 1]
    x2 = jnp.sum(ngh * ngh, axis=-1, keepdims=True)                # [R, S, 1]
    pdx = jnp.sum(p3 * ngh, axis=-1, keepdims=True)                # [R, S, 1]
    # mobius_add(-p, ngh, c)
    num_a = 1.0 - 2.0 * c * pdx + c * x2                           # [R, S, 1]
    inv_den = 1.0 / jnp.maximum(1.0 - 2.0 * c * pdx + c * c * p2_3 * x2, EPS)
    sub = (num_a * (-p3) + one_m_cp2 * ngh) * inv_den              # [R, S, D]
    sub_n = jnp.sqrt(jnp.maximum(jnp.sum(sub * sub, axis=-1, keepdims=True), EPS))
    # log_p(ngh) scale and attention weight folded into one narrow factor.
    log_scale = one_m_cp2 * (_artanh(sqrt_c * sub_n) / (sqrt_c * sub_n))   # [R, S, 1]
    agg = jnp.sum((att * log_scale) * sub, axis=1)                 # [R, D]
    # exp_p(agg)
    u_n = jnp.sqrt(jnp.maximum(jnp.sum(agg * agg, axis=-1, keepdims=True), EPS))
    lam_p = 2.0 / (1.0 - c * p2)                                   # [R, 1]
    exp_scale = jnp.tanh(0.5 * sqrt_c * lam_p * u_n) / (sqrt_c * u_n)      # [R, 1]
    return _k_proj(_k_mobius_add(p, exp_scale * agg, c), c)


# --------------------------------------------------------------- fused Pallas kernel
def _kg_fused_kernel(self_ref, item_ref, nghu_ref, nghe_ref, wr_ref,
                     wui_ref, wlin_ref, bhyp_ref, out_ref, *, c, S, D):
    f32 = jnp.float32
    bf16 = jnp.bfloat16
    sqrt_c = math.sqrt(c)
    T = self_ref.shape[0]

    sv = self_ref[...]                                             # [T, D] hyperbolic self
    it = item_ref[...]                                             # [T, D] hyperbolic item
    nghu = nghu_ref[...]                                           # [T, S, D]
    nghe = nghe_ref[...]                                           # [T, S, D]

    # --- stacked tangent maps (entity rows first, then user rows): the narrow
    #     [.,.,1] reduce / artanh chains run once at 2x vreg occupancy.
    base = jnp.concatenate([sv, it], axis=0)                       # [2T, D]
    ngh = jnp.concatenate([nghe, nghu], axis=0)                    # [2T, S, D]
    base_log = _k_logmap0(base, c)                                 # [2T, D]
    ngh_log = _k_logmap0(ngh, c)                                   # [2T, S, D]
    sv_log, it_log = base_log[:T], base_log[T:]
    nghe_log, nghu_log = ngh_log[:T], ngh_log[T:]

    # --- entity-side attention logits.  Wr streams as bf16; the j-contraction runs on
    #     the MXU with f32 accumulation.  The [T*S, 1, D] batched form keeps the i-axis
    #     (=D) on lanes, so no lane->sublane relayout of smw is needed.
    wr3 = wr_ref[...].reshape(T * S, D, D)                         # free leading-dim merge
    svb = jnp.broadcast_to(sv_log[:, None, :], (T, S, D)).reshape(T * S, D).astype(bf16)
    smw = jnp.einsum('bqd,bkd->bqk', svb[:, None, :], wr3,
                     preferred_element_type=f32)                   # [T*S, 1, D]
    smw = smw.reshape(T, S, D)                                     # lane axis unchanged
    score_e = jnp.sum(smw * nghe_log, axis=-1, keepdims=True)      # [T, S, 1]

    # --- user-side attention logits (shared W_ui): it_log @ W_ui.T on the MXU.
    m = lax.dot_general(it_log, wui_ref[...], (((1,), (1,)), ((), ())),
                        preferred_element_type=f32)                # [T, D]
    score_u = jnp.sum(m[:, None, :] * nghu_log, axis=-1, keepdims=True)    # [T, S, 1]

    # --- stacked softmax + attention-weighted tangent aggregation + expmap at the
    #     stacked base points (entity base = sv, user base = it).
    att = _softmax_over_s(jnp.concatenate([score_e, score_u], axis=0))     # [2T, S, 1]
    base2 = jnp.sum(base * base, axis=-1, keepdims=True)                   # [2T, 1]
    agg = _aggregate_at_base(base, base2, ngh, att, c)                     # [2T, D]
    kg_agg, usr_agg = agg[:T], agg[T:]

    # --- 'sum' aggregation + Hyp_Linear (mobius matvec + hyperbolic bias) + tangent ReLU
    h = _k_mobius_add(sv, kg_agg, c)
    h = _k_mobius_add(h, usr_agg, c)                               # [T, D]
    h_n = _norm(h)
    mx = lax.dot_general(h, wlin_ref[...], (((1,), (1,)), ((), ())),
                         preferred_element_type=f32)               # h @ W_lin.T
    mx_n = _norm(mx)
    scale = jnp.tanh(mx_n / h_n * _artanh(sqrt_c * h_n)) / (mx_n * sqrt_c)  # narrow
    res = mx * scale
    # exact-zero guard of the reference (essentially inert with reduced-precision Wr).
    res = jnp.where(jnp.sum(jnp.abs(mx), axis=-1, keepdims=True) == 0.0, 0.0, res)
    res = _k_proj(res, c)
    res = _k_proj(_k_mobius_add(res, bhyp_ref[...], c), c)         # hyperbolic bias (precomputed)
    t = jnp.maximum(_k_logmap0(res, c), 0.0)                       # TODO(synk): act_f fixed to ReLU
    out_ref[...] = _k_expmap0(t, c)


# -------------------------------------------------------------------------- wrapper
def _choose_block_b(B, S, D, wr_itemsize, block_b):
    """Batch tile: keep the double-buffered Wr block under ~10 MiB (safe for v5e's
    16 MiB default scoped VMEM, huge headroom on v6e/v7x) and keep >= 4 grid steps
    when B allows so prologue/epilogue DMAs stay hidden and the parallel axis splits
    across both v7x TensorCores."""
    wr_row_bytes = S * D * D * wr_itemsize
    tb = min(block_b, max(1, (5 * 1024 * 1024) // wr_row_bytes), B)
    if B >= 32:
        tb = min(tb, B // 4)
    tb = max(tb, 1)
    while B % tb:
        tb -= 1
    return tb


def kg_aggregator_forward(self_vectors, ngh_user_vectors, ngh_entity_vectors,
                          item_embeddings, Wr, W_ui, W_lin, b_lin, *, c,
                          block_b=8, wr_dtype=jnp.bfloat16):
    B, N, D = self_vectors.shape
    S = ngh_user_vectors.shape[1]
    assert N == 1, "item-layer 'sum' path requires the non-sample axis to be 1"
    f32 = jnp.float32

    sv2 = self_vectors.reshape(B, D).astype(f32)
    it2 = item_embeddings.reshape(B, D).astype(f32)
    nghu = ngh_user_vectors.astype(f32)                            # [B, S, D]
    nghe = ngh_entity_vectors.reshape(B, S, D).astype(f32)
    # Wr dominates HBM traffic: stream it narrow (no-op if already bf16); the MXU
    # accumulates in f32 inside the kernel.
    wr = Wr.reshape(B, S, D, D).astype(wr_dtype)
    # Hyperbolic bias of Hyp_Linear is a pure function of b_lin -> compute once here.
    b_hyp = _proj(_expmap0(b_lin.reshape(1, D).astype(f32), c), c)

    wr_itemsize = jnp.dtype(wr_dtype).itemsize
    tb = _choose_block_b(B, S, D, wr_itemsize, block_b)
    grid = (B // tb,)

    # Advisory cost hint: runtime is set by the Wr HBM stream.
    cost = pl.CostEstimate(
        flops=2 * B * S * D * D + 4 * B * D * D + 16 * B * S * D,
        transcendentals=B * (8 * S + 32),
        bytes_accessed=B * S * D * D * wr_itemsize
        + 2 * B * S * D * 4 + 3 * B * D * 4 + 2 * D * D * 4)

    out = pl.pallas_call(
        functools.partial(_kg_fused_kernel, c=c, S=S, D=D),
        out_shape=jax.ShapeDtypeStruct((B, D), f32),
        grid_spec=pltpu.PrefetchScalarGridSpec(
            num_scalar_prefetch=0,
            grid=grid,
            in_specs=[
                pl.BlockSpec((tb, D), lambda i: (i, 0)),            # self vectors
                pl.BlockSpec((tb, D), lambda i: (i, 0)),            # item embeddings
                pl.BlockSpec((tb, S, D), lambda i: (i, 0, 0)),      # user neighbors
                pl.BlockSpec((tb, S, D), lambda i: (i, 0, 0)),      # entity neighbors
                pl.BlockSpec((tb, S, D, D), lambda i: (i, 0, 0, 0)),  # Wr (bf16 stream)
                pl.BlockSpec((D, D), lambda i: (0, 0)),             # W_ui   (resident)
                pl.BlockSpec((D, D), lambda i: (0, 0)),             # W_lin  (resident)
                pl.BlockSpec((1, D), lambda i: (0, 0)),             # hyperbolic bias (resident)
            ],
            out_specs=pl.BlockSpec((tb, D), lambda i: (i, 0)),      # lane-dense [B, D] slab
        ),
        compiler_params=pltpu.CompilerParams(
            dimension_semantics=("parallel",)),
        cost_estimate=cost,
    )(sv2, it2, nghu, nghe, wr, W_ui.astype(f32), W_lin.astype(f32), b_hyp)

    return out.reshape(B, N, D)


# ------------------------------------------------------------------- pure-JAX reference
def kg_aggregator_reference(self_vectors, ngh_user_vectors, ngh_entity_vectors,
                            item_embeddings, Wr, W_ui, W_lin, b_lin, *, c):
    """Pure-JAX mirror of the PyTorch forward (f32 math, for verification)."""
    B, N, D = self_vectors.shape
    hi = lax.Precision.HIGHEST
    Wr = Wr.astype(jnp.float32)

    # aggregate_entity_ngh
    sv = self_vectors
    sv_log = _logmap0(sv, c)
    ngh_log = _logmap0(ngh_entity_vectors, c)
    smw = jnp.sum(Wr * sv_log[:, :, None, None, :], axis=-1)
    att = jax.nn.softmax(jnp.sum(smw * ngh_log, axis=-1), axis=-1)
    base = jnp.broadcast_to(sv[:, :, None, :], ngh_entity_vectors.shape)
    ngh_tan = _logmap(base, ngh_entity_vectors, c)
    kg_agg = jnp.sum(att[..., None] * ngh_tan, axis=2, keepdims=True)
    kg_agg = _expmap(kg_agg, sv[:, :, None, :], c)[:, :, 0, :]

    # aggregate_user_ngh
    it = item_embeddings[:, None, :]
    it_log = _logmap0(it, c)
    u_log = _logmap0(ngh_user_vectors, c)
    m = jnp.einsum('bj,ij->bi', it_log[:, 0, :], W_ui, precision=hi)
    att_u = jax.nn.softmax(jnp.sum(m[:, None, :] * u_log, axis=-1), axis=-1)
    base_u = jnp.broadcast_to(it, ngh_user_vectors.shape)
    u_tan = _logmap(base_u, ngh_user_vectors, c)
    usr_agg = jnp.sum(att_u[..., None] * u_tan, axis=1, keepdims=True)
    usr_agg = _expmap(usr_agg, it, c).reshape(B, N, D)

    # 'sum' aggregation + Hyp_Linear + tangent relu
    h = _mobius_add(sv, kg_agg, c)
    h = _mobius_add(h, usr_agg, c).reshape(-1, D)
    h_n = _norm(h)
    mx = jnp.einsum('md,nd->mn', h, W_lin, precision=hi)
    mx_n = _norm(mx)
    sqrt_c = math.sqrt(c)
    res = jnp.tanh(mx_n / h_n * _artanh(sqrt_c * h_n)) * mx / (mx_n * sqrt_c)
    res = jnp.where(jnp.sum(jnp.abs(mx), axis=-1, keepdims=True) == 0.0, 0.0, res)
    res = _proj(res, c)
    hyp_bias = _proj(_expmap0(b_lin, c), c)
    res = _proj(_mobius_add(res, hyp_bias, c), c)
    t = jnp.maximum(_logmap0(res, c), 0.0)
    return _expmap0(t, c).reshape(B, N, D)


if __name__ == "__main__":
    B, N, S, D = 32, 1, 8, 128    # batch, entities-per-item, sample_size, dim (lane-dense D)
    c = 1.0
    f32 = jnp.float32
    key = jax.random.PRNGKey(0)
    ks = jax.random.split(key, 8)

    # hyperbolic inputs (valid Poincare-ball points) and deterministic params
    self_vectors = _expmap0(0.05 * jax.random.normal(ks[0], (B, N, D), f32), c)
    ngh_user = _expmap0(0.05 * jax.random.normal(ks[1], (B, S, D), f32), c)
    ngh_entity = _expmap0(0.05 * jax.random.normal(ks[2], (B, N, S, D), f32), c)
    item_emb = _expmap0(0.05 * jax.random.normal(ks[3], (B, D), f32), c)
    # Wr kept in bf16 (the kernel streams it as-is; the reference upcasts to f32)
    Wr = (0.05 * jax.random.normal(ks[4], (B, N, S, D, D), f32)).astype(jnp.bfloat16)
    W_ui = 0.05 * jax.random.normal(ks[5], (D, D), f32)
    W_lin = 0.05 * jax.random.normal(ks[6], (D, D), f32)   # Hyp_Linear weight
    b_lin = 0.05 * jax.random.normal(ks[7], (1, D), f32)   # Hyp_Linear bias

    fwd = jax.jit(functools.partial(kg_aggregator_forward, c=c))
    out = jax.block_until_ready(fwd(self_vectors, ngh_user, ngh_entity, item_emb,
                                    Wr, W_ui, W_lin, b_lin))

    ref = kg_aggregator_reference(self_vectors, ngh_user, ngh_entity, item_emb,
                                  Wr, W_ui, W_lin, b_lin, c=c)
    assert out.shape == (B, N, D)
    assert bool(jnp.all(jnp.isfinite(out)))
    max_err = float(jnp.max(jnp.abs(out - ref)))
    assert bool(jnp.allclose(out, ref, atol=3e-3, rtol=3e-3)), max_err
    print("KERNEL_OK")
</pallas_src>

<mosaic_0001>
module attributes {stable_mosaic.version = 11 : i64} {
  func.func @_kg_fused_kernel(%arg0: i32, %arg1: memref<8x128xf32, #tpu.memory_space<vmem>>, %arg2: memref<8x128xf32, #tpu.memory_space<vmem>>, %arg3: memref<8x8x128xf32, #tpu.memory_space<vmem>>, %arg4: memref<8x8x128xf32, #tpu.memory_space<vmem>>, %arg5: memref<8x8x128x128xbf16, #tpu.memory_space<vmem>>, %arg6: memref<128x128xf32, #tpu.memory_space<vmem>>, %arg7: memref<128x128xf32, #tpu.memory_space<vmem>>, %arg8: memref<1x128xf32, #tpu.memory_space<vmem>>, %arg9: memref<8x128xf32, #tpu.memory_space<vmem>>) attributes {dimension_semantics = [#tpu.dimension_semantics<parallel>], iteration_bounds = array<i64: 4>, scalar_prefetch = 0 : i64, scratch_operands = 0 : i64, tpu.core_type = #tpu.core_type<tc>, window_params = [{transform_indices = @transform_0, window_bounds = array<i64: 8, 128>}, {transform_indices = @transform_1, window_bounds = array<i64: 8, 128>}, {transform_indices = @transform_2, window_bounds = array<i64: 8, 8, 128>}, {transform_indices = @transform_3, window_bounds = array<i64: 8, 8, 128>}, {transform_indices = @transform_4, window_bounds = array<i64: 8, 8, 128, 128>}, {pipeline_mode = #tpu.pipeline_mode<synchronous>, transform_indices = @transform_5, window_bounds = array<i64: 128, 128>}, {pipeline_mode = #tpu.pipeline_mode<synchronous>, transform_indices = @transform_6, window_bounds = array<i64: 128, 128>}, {pipeline_mode = #tpu.pipeline_mode<synchronous>, transform_indices = @transform_7, window_bounds = array<i64: 1, 128>}, {transform_indices = @transform_8, window_bounds = array<i64: 8, 128>}]} {
    %c0 = arith.constant 0 : index
    %c0_0 = arith.constant 0 : index
    %0 = vector.load %arg1[%c0, %c0_0] : memref<8x128xf32, #tpu.memory_space<vmem>>, vector<8x128xf32>
    %c0_1 = arith.constant 0 : index
    %c0_2 = arith.constant 0 : index
    %1 = vector.load %arg2[%c0_1, %c0_2] : memref<8x128xf32, #tpu.memory_space<vmem>>, vector<8x128xf32>
    %c0_3 = arith.constant 0 : index
    %c0_4 = arith.constant 0 : index
    %c0_5 = arith.constant 0 : index
    %2 = vector.load %arg3[%c0_3, %c0_4, %c0_5] : memref<8x8x128xf32, #tpu.memory_space<vmem>>, vector<8x8x128xf32>
    %c0_6 = arith.constant 0 : index
    %c0_7 = arith.constant 0 : index
    %c0_8 = arith.constant 0 : index
    %3 = vector.load %arg4[%c0_6, %c0_7, %c0_8] : memref<8x8x128xf32, #tpu.memory_space<vmem>>, vector<8x8x128xf32>
    %4 = tpu.concatenate %0, %1 in 0 : vector<8x128xf32>, vector<8x128xf32> -> vector<16x128xf32>
    %5 = tpu.concatenate %3, %2 in 0 : vector<8x8x128xf32>, vector<8x8x128xf32> -> vector<16x8x128xf32>
    %6 = arith.mulf %4, %4 : vector<16x128xf32>
    %cst = arith.constant dense<0.000000e+00> : vector<16xf32>
    %7 = vector.multi_reduction <add>, %6, %cst [1] : vector<16x128xf32> to vector<16xf32>
    %8 = vector.shape_cast %7 : vector<16xf32> to vector<16x1xf32>
    %cst_9 = arith.constant 1.000000e-15 : f32
    %9 = vector.broadcast %cst_9 : f32 to vector<16x1xf32>
    %10 = arith.maximumf %8, %9 : vector<16x1xf32>
    %11 = math.sqrt %10 : vector<16x1xf32>
    %cst_10 = arith.constant 1.000000e+00 : f32
    %12 = vector.broadcast %cst_10 : f32 to vector<16x1xf32>
    %13 = arith.mulf %12, %11 : vector<16x1xf32>
    %cst_11 = arith.constant -0.999998986 : f32
    %cst_12 = arith.constant 0.999998986 : f32
    %14 = vector.broadcast %cst_11 : f32 to vector<16x1xf32>
    %15 = arith.maximumf %14, %13 : vector<16x1xf32>
    %16 = vector.broadcast %cst_12 : f32 to vector<16x1xf32>
    %17 = arith.minimumf %16, %15 : vector<16x1xf32>
    %cst_13 = arith.constant 1.000000e+00 : f32
    %18 = vector.broadcast %cst_13 : f32 to vector<16x1xf32>
    %19 = arith.addf %18, %17 : vector<16x1xf32>
    %cst_14 = arith.constant 1.000000e+00 : f32
    %20 = vector.broadcast %cst_14 : f32 to vector<16x1xf32>
    %21 = arith.subf %20, %17 : vector<16x1xf32>
    %22 = arith.divf %19, %21 : vector<16x1xf32>
    %23 = math.log %22 : vector<16x1xf32>
    %cst_15 = arith.constant 5.000000e-01 : f32
    %24 = vector.broadcast %cst_15 : f32 to vector<16x1xf32>
    %25 = arith.mulf %24, %23 : vector<16x1xf32>
    %cst_16 = arith.constant 1.000000e+00 : f32
    %26 = vector.broadcast %cst_16 : f32 to vector<16x1xf32>
    %27 = arith.mulf %26, %11 : vector<16x1xf32>
    %28 = arith.divf %25, %27 : vector<16x1xf32>
    %29 = vector.broadcast %28 : vector<16x1xf32> to vector<16x128xf32>
    %30 = arith.mulf %4, %29 : vector<16x128xf32>
    %31 = arith.mulf %5, %5 : vector<16x8x128xf32>
    %cst_17 = arith.constant dense<0.000000e+00> : vector<16x8xf32>
    %32 = vector.multi_reduction <add>, %31, %cst_17 [2] : vector<16x8x128xf32> to vector<16x8xf32>
    %33 = vector.shape_cast %32 : vector<16x8xf32> to vector<16x8x1xf32>
    %cst_18 = arith.constant 1.000000e-15 : f32
    %34 = vector.broadcast %cst_18 : f32 to vector<16x8x1xf32>
    %35 = arith.maximumf %33, %34 : vector<16x8x1xf32>
    %36 = math.sqrt %35 : vector<16x8x1xf32>
    %cst_19 = arith.constant 1.000000e+00 : f32
    %37 = vector.broadcast %cst_19 : f32 to vector<16x8x1xf32>
    %38 = arith.mulf %37, %36 : vector<16x8x1xf32>
    %cst_20 = arith.constant -0.999998986 : f32
    %cst_21 = arith.constant 0.999998986 : f32
    %39 = vector.broadcast %cst_20 : f32 to vector<16x8x1xf32>
    %40 = arith.maximumf %39, %38 : vector<16x8x1xf32>
    %41 = vector.broadcast %cst_21 : f32 to vector<16x8x1xf32>
    %42 = arith.minimumf %41, %40 : vector<16x8x1xf32>
    %cst_22 = arith.constant 1.000000e+00 : f32
    %43 = vector.broadcast %cst_22 : f32 to vector<16x8x1xf32>
    %44 = arith.addf %43, %42 : vector<16x8x1xf32>
    %cst_23 = arith.constant 1.000000e+00 : f32
    %45 = vector.broadcast %cst_23 : f32 to vector<16x8x1xf32>
    %46 = arith.subf %45, %42 : vector<16x8x1xf32>
    %47 = arith.divf %44, %46 : vector<16x8x1xf32>
    %48 = math.log %47 : vector<16x8x1xf32>
    %cst_24 = arith.constant 5.000000e-01 : f32
    %49 = vector.broadcast %cst_24 : f32 to vector<16x8x1xf32>
    %50 = arith.mulf %49, %48 : vector<16x8x1xf32>
    %cst_25 = arith.constant 1.000000e+00 : f32
    %51 = vector.broadcast %cst_25 : f32 to vector<16x8x1xf32>
    %52 = arith.mulf %51, %36 : vector<16x8x1xf32>
    %53 = arith.divf %50, %52 : vector<16x8x1xf32>
    %54 = vector.broadcast %53 : vector<16x8x1xf32> to vector<16x8x128xf32>
    %55 = arith.mulf %5, %54 : vector<16x8x128xf32>
    %56 = vector.extract_strided_slice %30 {offsets = [0, 0], sizes = [8, 128], strides = [1, 1]} : vector<16x128xf32> to vector<8x128xf32>
    %57 = vector.extract_strided_slice %30 {offsets = [8, 0], sizes = [8, 128], strides = [1, 1]} : vector<16x128xf32> to vector<8x128xf32>
    %58 = vector.extract_strided_slice %55 {offsets = [0, 0, 0], sizes = [8, 8, 128], strides = [1, 1, 1]} : vector<16x8x128xf32> to vector<8x8x128xf32>
    %59 = vector.extract_strided_slice %55 {offsets = [8, 0, 0], sizes = [8, 8, 128], strides = [1, 1, 1]} : vector<16x8x128xf32> to vector<8x8x128xf32>
    %c0_26 = arith.constant 0 : index
    %c0_27 = arith.constant 0 : index
    %c0_28 = arith.constant 0 : index
    %c0_29 = arith.constant 0 : index
    %60 = vector.load %arg5[%c0_26, %c0_27, %c0_28, %c0_29] : memref<8x8x128x128xbf16, #tpu.memory_space<vmem>>, vector<8x8x128x128xbf16>
    %61 = vector.shape_cast %60 : vector<8x8x128x128xbf16> to vector<64x128x128xbf16>
    %62 = vector.shape_cast %56 : vector<8x128xf32> to vector<8x1x128xf32>
    %63 = vector.shape_cast %62 : vector<8x1x128xf32> to vector<8x1x128xf32>
    %64 = vector.broadcast %63 : vector<8x1x128xf32> to vector<8x8x128xf32>
    %65 = vector.shape_cast %64 : vector<8x8x128xf32> to vector<64x128xf32>
    %66 = arith.truncf %65 : vector<64x128xf32> to vector<64x128xbf16>
    %67 = vector.shape_cast %66 : vector<64x128xbf16> to vector<64x1x128xbf16>
    "tpu.trace_start"() <{level = 10 : i32, message = "bqd,bkd->bqk"}> : () -> ()
    %cst_30 = arith.constant dense<0.000000e+00> : vector<64x1x128xf32>
    %68 = tpu.matmul %67, %61, %cst_30 {dimension_numbers = #tpu.dot_dimension_numbers<[2], [2], [1], [1], [0, 0, 0, 1, 1, 1], [0], [0]>} : vector<64x1x128xbf16>, vector<64x128x128xbf16>, vector<64x1x128xf32> -> vector<64x1x128xf32>
    "tpu.trace_stop"() : () -> ()
    %69 = vector.shape_cast %68 : vector<64x1x128xf32> to vector<8x8x128xf32>
    %70 = arith.mulf %69, %58 : vector<8x8x128xf32>
    %cst_31 = arith.constant dense<0.000000e+00> : vector<8x8xf32>
    %71 = vector.multi_reduction <add>, %70, %cst_31 [2] : vector<8x8x128xf32> to vector<8x8xf32>
    %72 = vector.shape_cast %71 : vector<8x8xf32> to vector<8x8x1xf32>
    %c0_32 = arith.constant 0 : index
    %c0_33 = arith.constant 0 : index
    %73 = vector.load %arg6[%c0_32, %c0_33] : memref<128x128xf32, #tpu.memory_space<vmem>>, vector<128x128xf32>
    %cst_34 = arith.constant dense<0.000000e+00> : vector<8x128xf32>
    %74 = tpu.matmul %57, %73, %cst_34 {dimension_numbers = #tpu.dot_dimension_numbers<[1], [1], [0], [0], [0, 0, 1, 0], [], []>} : vector<8x128xf32>, vector<128x128xf32>, vector<8x128xf32> -> vector<8x128xf32>
    %75 = vector.shape_cast %74 : vector<8x128xf32> to vector<8x1x128xf32>
    %76 = vector.broadcast %75 : vector<8x1x128xf32> to vector<8x8x128xf32>
    %77 = arith.mulf %76, %59 : vector<8x8x128xf32>
    %cst_35 = arith.constant dense<0.000000e+00> : vector<8x8xf32>
    %78 = vector.multi_reduction <add>, %77, %cst_35 [2] : vector<8x8x128xf32> to vector<8x8xf32>
    %79 = vector.shape_cast %78 : vector<8x8xf32> to vector<8x8x1xf32>
    %80 = tpu.concatenate %72, %79 in 0 : vector<8x8x1xf32>, vector<8x8x1xf32> -> vector<16x8x1xf32>
    %cst_36 = arith.constant dense<0xFF800000> : vector<16x1xf32>
    %81 = vector.multi_reduction <maximumf>, %80, %cst_36 [1] : vector<16x8x1xf32> to vector<16x1xf32>
    %82 = vector.shape_cast %81 : vector<16x1xf32> to vector<16x1x1xf32>
    %83 = vector.broadcast %82 : vector<16x1x1xf32> to vector<16x8x1xf32>
    %84 = arith.subf %80, %83 : vector<16x8x1xf32>
    %85 = math.exp %84 : vector<16x8x1xf32>
    %cst_37 = arith.constant dense<0.000000e+00> : vector<16x1xf32>
    %86 = vector.multi_reduction <add>, %85, %cst_37 [1] : vector<16x8x1xf32> to vector<16x1xf32>
    %87 = vector.shape_cast %86 : vector<16x1xf32> to vector<16x1x1xf32>
    %88 = tpu.reciprocal %87 {approx = true} : vector<16x1x1xf32> -> vector<16x1x1xf32>
    %89 = vector.broadcast %88 : vector<16x1x1xf32> to vector<16x8x1xf32>
    %90 = arith.mulf %85, %89 : vector<16x8x1xf32>
    %91 = arith.mulf %4, %4 : vector<16x128xf32>
    %cst_38 = arith.constant dense<0.000000e+00> : vector<16xf32>
    %92 = vector.multi_reduction <add>, %91, %cst_38 [1] : vector<16x128xf32> to vector<16xf32>
    %93 = vector.shape_cast %92 : vector<16xf32> to vector<16x1xf32>
    %94 = vector.shape_cast %4 : vector<16x128xf32> to vector<16x1x128xf32>
    %95 = vector.shape_cast %93 : vector<16x1xf32> to vector<16x1x1xf32>
    %cst_39 = arith.constant 1.000000e+00 : f32
    %96 = vector.broadcast %cst_39 : f32 to vector<16x1x1xf32>
    %97 = arith.mulf %96, %95 : vector<16x1x1xf32>
    %cst_40 = arith.constant 1.000000e+00 : f32
    %98 = vector.broadcast %cst_40 : f32 to vector<16x1x1xf32>
    %99 = arith.subf %98, %97 : vector<16x1x1xf32>
    %100 = arith.mulf %5, %5 : vector<16x8x128xf32>
    %cst_41 = arith.constant dense<0.000000e+00> : vector<16x8xf32>
    %101 = vector.multi_reduction <add>, %100, %cst_41 [2] : vector<16x8x128xf32> to vector<16x8xf32>
    %102 = vector.shape_cast %101 : vector<16x8xf32> to vector<16x8x1xf32>
    %103 = vector.broadcast %94 : vector<16x1x128xf32> to vector<16x8x128xf32>
    %104 = arith.mulf %103, %5 : vector<16x8x128xf32>
    %cst_42 = arith.constant dense<0.000000e+00> : vector<16x8xf32>
    %105 = vector.multi_reduction <add>, %104, %cst_42 [2] : vector<16x8x128xf32> to vector<16x8xf32>
    %106 = vector.shape_cast %105 : vector<16x8xf32> to vector<16x8x1xf32>
    %cst_43 = arith.constant 2.000000e+00 : f32
    %107 = vector.broadcast %cst_43 : f32 to vector<16x8x1xf32>
    %108 = arith.mulf %107, %106 : vector<16x8x1xf32>
    %cst_44 = arith.constant 1.000000e+00 : f32
    %109 = vector.broadcast %cst_44 : f32 to vector<16x8x1xf32>
    %110 = arith.subf %109, %108 : vector<16x8x1xf32>
    %cst_45 = arith.constant 1.000000e+00 : f32
    %111 = vector.broadcast %cst_45 : f32 to vector<16x8x1xf32>
    %112 = arith.mulf %111, %102 : vector<16x8x1xf32>
    %113 = arith.addf %110, %112 : vector<16x8x1xf32>
    %cst_46 = arith.constant 2.000000e+00 : f32
    %114 = vector.broadcast %cst_46 : f32 to vector<16x8x1xf32>
    %115 = arith.mulf %114, %106 : vector<16x8x1xf32>
    %cst_47 = arith.constant 1.000000e+00 : f32
    %116 = vector.broadcast %cst_47 : f32 to vector<16x8x1xf32>
    %117 = arith.subf %116, %115 : vector<16x8x1xf32>
    %cst_48 = arith.constant 1.000000e+00 : f32
    %118 = vector.broadcast %cst_48 : f32 to vector<16x1x1xf32>
    %119 = arith.mulf %118, %95 : vector<16x1x1xf32>
    %120 = vector.broadcast %119 : vector<16x1x1xf32> to vector<16x8x1xf32>
    %121 = arith.mulf %120, %102 : vector<16x8x1xf32>
    %122 = arith.addf %117, %121 : vector<16x8x1xf32>
    %cst_49 = arith.constant 1.000000e-15 : f32
    %123 = vector.broadcast %cst_49 : f32 to vector<16x8x1xf32>
    %124 = arith.maximumf %122, %123 : vector<16x8x1xf32>
    %cst_50 = arith.constant 1.000000e+00 : f32
    %125 = vector.broadcast %cst_50 : f32 to vector<16x8x1xf32>
    %126 = arith.divf %125, %124 : vector<16x8x1xf32>
    %cst_51 = arith.constant 0.000000e+00 : f32
    %127 = vector.broadcast %cst_51 : f32 to vector<16x1x128xf32>
    %128 = arith.subf %127, %94 : vector<16x1x128xf32>
    %129 = vector.broadcast %113 : vector<16x8x1xf32> to vector<16x8x128xf32>
    %130 = vector.broadcast %128 : vector<16x1x128xf32> to vector<16x8x128xf32>
    %131 = arith.mulf %129, %130 : vector<16x8x128xf32>
    %132 = vector.broadcast %99 : vector<16x1x1xf32> to vector<16x8x128xf32>
    %133 = arith.mulf %132, %5 : vector<16x8x128xf32>
    %134 = arith.addf %131, %133 : vector<16x8x128xf32>
    %135 = vector.broadcast %126 : vector<16x8x1xf32> to vector<16x8x128xf32>
    %136 = arith.mulf %134, %135 : vector<16x8x128xf32>
    %137 = arith.mulf %136, %136 : vector<16x8x128xf32>
    %cst_52 = arith.constant dense<0.000000e+00> : vector<16x8xf32>
    %138 = vector.multi_reduction <add>, %137, %cst_52 [2] : vector<16x8x128xf32> to vector<16x8xf32>
    %139 = vector.shape_cast %138 : vector<16x8xf32> to vector<16x8x1xf32>
    %cst_53 = arith.constant 1.000000e-15 : f32
    %140 = vector.broadcast %cst_53 : f32 to vector<16x8x1xf32>
    %141 = arith.maximumf %139, %140 : vector<16x8x1xf32>
    %142 = math.sqrt %141 : vector<16x8x1xf32>
    %cst_54 = arith.constant 1.000000e+00 : f32
    %143 = vector.broadcast %cst_54 : f32 to vector<16x8x1xf32>
    %144 = arith.mulf %143, %142 : vector<16x8x1xf32>
    %cst_55 = arith.constant -0.999998986 : f32
    %cst_56 = arith.constant 0.999998986 : f32
    %145 = vector.broadcast %cst_55 : f32 to vector<16x8x1xf32>
    %146 = arith.maximumf %145, %144 : vector<16x8x1xf32>
    %147 = vector.broadcast %cst_56 : f32 to vector<16x8x1xf32>
    %148 = arith.minimumf %147, %146 : vector<16x8x1xf32>
    %cst_57 = arith.constant 1.000000e+00 : f32
    %149 = vector.broadcast %cst_57 : f32 to vector<16x8x1xf32>
    %150 = arith.addf %149, %148 : vector<16x8x1xf32>
    %cst_58 = arith.constant 1.000000e+00 : f32
    %151 = vector.broadcast %cst_58 : f32 to vector<16x8x1xf32>
    %152 = arith.subf %151, %148 : vector<16x8x1xf32>
    %153 = arith.divf %150, %152 : vector<16x8x1xf32>
    %154 = math.log %153 : vector<16x8x1xf32>
    %cst_59 = arith.constant 5.000000e-01 : f32
    %155 = vector.broadcast %cst_59 : f32 to vector<16x8x1xf32>
    %156 = arith.mulf %155, %154 : vector<16x8x1xf32>
    %cst_60 = arith.constant 1.000000e+00 : f32
    %157 = vector.broadcast %cst_60 : f32 to vector<16x8x1xf32>
    %158 = arith.mulf %157, %142 : vector<16x8x1xf32>
    %159 = arith.divf %156, %158 : vector<16x8x1xf32>
    %160 = vector.broadcast %99 : vector<16x1x1xf32> to vector<16x8x1xf32>
    %161 = arith.mulf %160, %159 : vector<16x8x1xf32>
    %162 = arith.mulf %90, %161 : vector<16x8x1xf32>
    %163 = vector.broadcast %162 : vector<16x8x1xf32> to vector<16x8x128xf32>
    %164 = arith.mulf %163, %136 : vector<16x8x128xf32>
    %cst_61 = arith.constant dense<0.000000e+00> : vector<16x128xf32>
    %165 = vector.multi_reduction <add>, %164, %cst_61 [1] : vector<16x8x128xf32> to vector<16x128xf32>
    %166 = arith.mulf %165, %165 : vector<16x128xf32>
    %cst_62 = arith.constant dense<0.000000e+00> : vector<16xf32>
    %167 = vector.multi_reduction <add>, %166, %cst_62 [1] : vector<16x128xf32> to vector<16xf32>
    %168 = vector.shape_cast %167 : vector<16xf32> to vector<16x1xf32>
    %cst_63 = arith.constant 1.000000e-15 : f32
    %169 = vector.broadcast %cst_63 : f32 to vector<16x1xf32>
    %170 = arith.maximumf %168, %169 : vector<16x1xf32>
    %171 = math.sqrt %170 : vector<16x1xf32>
    %cst_64 = arith.constant 1.000000e+00 : f32
    %172 = vector.broadcast %cst_64 : f32 to vector<16x1xf32>
    %173 = arith.mulf %172, %93 : vector<16x1xf32>
    %cst_65 = arith.constant 1.000000e+00 : f32
    %174 = vector.broadcast %cst_65 : f32 to vector<16x1xf32>
    %175 = arith.subf %174, %173 : vector<16x1xf32>
    %cst_66 = arith.constant 2.000000e+00 : f32
    %176 = vector.broadcast %cst_66 : f32 to vector<16x1xf32>
    %177 = arith.divf %176, %175 : vector<16x1xf32>
    %cst_67 = arith.constant 5.000000e-01 : f32
    %178 = vector.broadcast %cst_67 : f32 to vector<16x1xf32>
    %179 = arith.mulf %178, %177 : vector<16x1xf32>
    %180 = arith.mulf %179, %171 : vector<16x1xf32>
    %181 = math.tanh %180 : vector<16x1xf32>
    %cst_68 = arith.constant 1.000000e+00 : f32
    %182 = vector.broadcast %cst_68 : f32 to vector<16x1xf32>
    %183 = arith.mulf %182, %171 : vector<16x1xf32>
    %184 = arith.divf %181, %183 : vector<16x1xf32>
    %185 = vector.broadcast %184 : vector<16x1xf32> to vector<16x128xf32>
    %186 = arith.mulf %185, %165 : vector<16x128xf32>
    %187 = arith.mulf %4, %4 : vector<16x128xf32>
    %cst_69 = arith.constant dense<0.000000e+00> : vector<16xf32>
    %188 = vector.multi_reduction <add>, %187, %cst_69 [1] : vector<16x128xf32> to vector<16xf32>
    %189 = vector.shape_cast %188 : vector<16xf32> to vector<16x1xf32>
    %190 = arith.mulf %186, %186 : vector<16x128xf32>
    %cst_70 = arith.constant dense<0.000000e+00> : vector<16xf32>
    %191 = vector.multi_reduction <add>, %190, %cst_70 [1] : vector<16x128xf32> to vector<16xf32>
    %192 = vector.shape_cast %191 : vector<16xf32> to vector<16x1xf32>
    %193 = arith.mulf %4, %186 : vector<16x128xf32>
    %cst_71 = arith.constant dense<0.000000e+00> : vector<16xf32>
    %194 = vector.multi_reduction <add>, %193, %cst_71 [1] : vector<16x128xf32> to vector<16xf32>
    %195 = vector.shape_cast %194 : vector<16xf32> to vector<16x1xf32>
    %cst_72 = arith.constant 2.000000e+00 : f32
    %196 = vector.broadcast %cst_72 : f32 to vector<16x1xf32>
    %197 = arith.mulf %196, %195 : vector<16x1xf32>
    %cst_73 = arith.constant 1.000000e+00 : f32
    %198 = vector.broadcast %cst_73 : f32 to vector<16x1xf32>
    %199 = arith.addf %198, %197 : vector<16x1xf32>
    %cst_74 = arith.constant 1.000000e+00 : f32
    %200 = vector.broadcast %cst_74 : f32 to vector<16x1xf32>
    %201 = arith.mulf %200, %192 : vector<16x1xf32>
    %202 = arith.addf %199, %201 : vector<16x1xf32>
    %203 = vector.broadcast %202 : vector<16x1xf32> to vector<16x128xf32>
    %204 = arith.mulf %203, %4 : vector<16x128xf32>
    %cst_75 = arith.constant 1.000000e+00 : f32
    %205 = vector.broadcast %cst_75 : f32 to vector<16x1xf32>
    %206 = arith.mulf %205, %189 : vector<16x1xf32>
    %cst_76 = arith.constant 1.000000e+00 : f32
    %207 = vector.broadcast %cst_76 : f32 to vector<16x1xf32>
    %208 = arith.subf %207, %206 : vector<16x1xf32>
    %209 = vector.broadcast %208 : vector<16x1xf32> to vector<16x128xf32>
    %210 = arith.mulf %209, %186 : vector<16x128xf32>
    %211 = arith.addf %204, %210 : vector<16x128xf32>
    %cst_77 = arith.constant 2.000000e+00 : f32
    %212 = vector.broadcast %cst_77 : f32 to vector<16x1xf32>
    %213 = arith.mulf %212, %195 : vector<16x1xf32>
    %cst_78 = arith.constant 1.000000e+00 : f32
    %214 = vector.broadcast %cst_78 : f32 to vector<16x1xf32>
    %215 = arith.addf %214, %213 : vector<16x1xf32>
    %cst_79 = arith.constant 1.000000e+00 : f32
    %216 = vector.broadcast %cst_79 : f32 to vector<16x1xf32>
    %217 = arith.mulf %216, %189 : vector<16x1xf32>
    %218 = arith.mulf %217, %192 : vector<16x1xf32>
    %219 = arith.addf %215, %218 : vector<16x1xf32>
    %cst_80 = arith.constant 1.000000e-15 : f32
    %220 = vector.broadcast %cst_80 : f32 to vector<16x1xf32>
    %221 = arith.maximumf %219, %220 : vector<16x1xf32>
    %cst_81 = arith.constant 1.000000e+00 : f32
    %222 = vector.broadcast %cst_81 : f32 to vector<16x1xf32>
    %223 = arith.divf %222, %221 : vector<16x1xf32>
    %224 = vector.broadcast %223 : vector<16x1xf32> to vector<16x128xf32>
    %225 = arith.mulf %211, %224 : vector<16x128xf32>
    %226 = arith.mulf %225, %225 : vector<16x128xf32>
    %cst_82 = arith.constant dense<0.000000e+00> : vector<16xf32>
    %227 = vector.multi_reduction <add>, %226, %cst_82 [1] : vector<16x128xf32> to vector<16xf32>
    %228 = vector.shape_cast %227 : vector<16xf32> to vector<16x1xf32>
    %cst_83 = arith.constant 1.000000e-15 : f32
    %229 = vector.broadcast %cst_83 : f32 to vector<16x1xf32>
    %230 = arith.maximumf %228, %229 : vector<16x1xf32>
    %231 = math.sqrt %230 : vector<16x1xf32>
    %cst_84 = arith.constant 0.999989986 : f32
    %232 = vector.broadcast %cst_84 : f32 to vector<16x1xf32>
    %233 = arith.cmpf ogt, %231, %232 : vector<16x1xf32>
    %cst_85 = arith.constant 0.999989986 : f32
    %234 = vector.broadcast %cst_85 : f32 to vector<16x1xf32>
    %235 = arith.divf %234, %231 : vector<16x1xf32>
    %cst_86 = arith.constant 1.000000e+00 : f32
    %236 = vector.broadcast %cst_86 : f32 to vector<16x1xf32>
    %237 = arith.select %233, %235, %236 : vector<16x1xi1>, vector<16x1xf32>
    %238 = vector.broadcast %237 : vector<16x1xf32> to vector<16x128xf32>
    %239 = arith.mulf %225, %238 : vector<16x128xf32>
    %240 = vector.extract_strided_slice %239 {offsets = [0, 0], sizes = [8, 128], strides = [1, 1]} : vector<16x128xf32> to vector<8x128xf32>
    %241 = vector.extract_strided_slice %239 {offsets = [8, 0], sizes = [8, 128], strides = [1, 1]} : vector<16x128xf32> to vector<8x128xf32>
    %242 = arith.mulf %0, %0 : vector<8x128xf32>
    %cst_87 = arith.constant dense<0.000000e+00> : vector<8xf32>
    %243 = vector.multi_reduction <add>, %242, %cst_87 [1] : vector<8x128xf32> to vector<8xf32>
    %244 = vector.shape_cast %243 : vector<8xf32> to vector<8x1xf32>
    %245 = arith.mulf %240, %240 : vector<8x128xf32>
    %cst_88 = arith.constant dense<0.000000e+00> : vector<8xf32>
    %246 = vector.multi_reduction <add>, %245, %cst_88 [1] : vector<8x128xf32> to vector<8xf32>
    %247 = vector.shape_cast %246 : vector<8xf32> to vector<8x1xf32>
    %248 = arith.mulf %0, %240 : vector<8x128xf32>
    %cst_89 = arith.constant dense<0.000000e+00> : vector<8xf32>
    %249 = vector.multi_reduction <add>, %248, %cst_89 [1] : vector<8x128xf32> to vector<8xf32>
    %250 = vector.shape_cast %249 : vector<8xf32> to vector<8x1xf32>
    %cst_90 = arith.constant 2.000000e+00 : f32
    %251 = vector.broadcast %cst_90 : f32 to vector<8x1xf32>
    %252 = arith.mulf %251, %250 : vector<8x1xf32>
    %cst_91 = arith.constant 1.000000e+00 : f32
    %253 = vector.broadcast %cst_91 : f32 to vector<8x1xf32>
    %254 = arith.addf %253, %252 : vector<8x1xf32>
    %cst_92 = arith.constant 1.000000e+00 : f32
    %255 = vector.broadcast %cst_92 : f32 to vector<8x1xf32>
    %256 = arith.mulf %255, %247 : vector<8x1xf32>
    %257 = arith.addf %254, %256 : vector<8x1xf32>
    %258 = vector.broadcast %257 : vector<8x1xf32> to vector<8x128xf32>
    %259 = arith.mulf %258, %0 : vector<8x128xf32>
    %cst_93 = arith.constant 1.000000e+00 : f32
    %260 = vector.broadcast %cst_93 : f32 to vector<8x1xf32>
    %261 = arith.mulf %260, %244 : vector<8x1xf32>
    %cst_94 = arith.constant 1.000000e+00 : f32
    %262 = vector.broadcast %cst_94 : f32 to vector<8x1xf32>
    %263 = arith.subf %262, %261 : vector<8x1xf32>
    %264 = vector.broadcast %263 : vector<8x1xf32> to vector<8x128xf32>
    %265 = arith.mulf %264, %240 : vector<8x128xf32>
    %266 = arith.addf %259, %265 : vector<8x128xf32>
    %cst_95 = arith.constant 2.000000e+00 : f32
    %267 = vector.broadcast %cst_95 : f32 to vector<8x1xf32>
    %268 = arith.mulf %267, %250 : vector<8x1xf32>
    %cst_96 = arith.constant 1.000000e+00 : f32
    %269 = vector.broadcast %cst_96 : f32 to vector<8x1xf32>
    %270 = arith.addf %269, %268 : vector<8x1xf32>
    %cst_97 = arith.constant 1.000000e+00 : f32
    %271 = vector.broadcast %cst_97 : f32 to vector<8x1xf32>
    %272 = arith.mulf %271, %244 : vector<8x1xf32>
    %273 = arith.mulf %272, %247 : vector<8x1xf32>
    %274 = arith.addf %270, %273 : vector<8x1xf32>
    %cst_98 = arith.constant 1.000000e-15 : f32
    %275 = vector.broadcast %cst_98 : f32 to vector<8x1xf32>
    %276 = arith.maximumf %274, %275 : vector<8x1xf32>
    %cst_99 = arith.constant 1.000000e+00 : f32
    %277 = vector.broadcast %cst_99 : f32 to vector<8x1xf32>
    %278 = arith.divf %277, %276 : vector<8x1xf32>
    %279 = vector.broadcast %278 : vector<8x1xf32> to vector<8x128xf32>
    %280 = arith.mulf %266, %279 : vector<8x128xf32>
    %281 = arith.mulf %280, %280 : vector<8x128xf32>
    %cst_100 = arith.constant dense<0.000000e+00> : vector<8xf32>
    %282 = vector.multi_reduction <add>, %281, %cst_100 [1] : vector<8x128xf32> to vector<8xf32>
    %283 = vector.shape_cast %282 : vector<8xf32> to vector<8x1xf32>
    %284 = arith.mulf %241, %241 : vector<8x128xf32>
    %cst_101 = arith.constant dense<0.000000e+00> : vector<8xf32>
    %285 = vector.multi_reduction <add>, %284, %cst_101 [1] : vector<8x128xf32> to vector<8xf32>
    %286 = vector.shape_cast %285 : vector<8xf32> to vector<8x1xf32>
    %287 = arith.mulf %280, %241 : vector<8x128xf32>
    %cst_102 = arith.constant dense<0.000000e+00> : vector<8xf32>
    %288 = vector.multi_reduction <add>, %287, %cst_102 [1] : vector<8x128xf32> to vector<8xf32>
    %289 = vector.shape_cast %288 : vector<8xf32> to vector<8x1xf32>
    %cst_103 = arith.constant 2.000000e+00 : f32
    %290 = vector.broadcast %cst_103 : f32 to vector<8x1xf32>
    %291 = arith.mulf %290, %289 : vector<8x1xf32>
    %cst_104 = arith.constant 1.000000e+00 : f32
    %292 = vector.broadcast %cst_104 : f32 to vector<8x1xf32>
    %293 = arith.addf %292, %291 : vector<8x1xf32>
    %cst_105 = arith.constant 1.000000e+00 : f32
    %294 = vector.broadcast %cst_105 : f32 to vector<8x1xf32>
    %295 = arith.mulf %294, %286 : vector<8x1xf32>
    %296 = arith.addf %293, %295 : vector<8x1xf32>
    %297 = vector.broadcast %296 : vector<8x1xf32> to vector<8x128xf32>
    %298 = arith.mulf %297, %280 : vector<8x128xf32>
    %cst_106 = arith.constant 1.000000e+00 : f32
    %299 = vector.broadcast %cst_106 : f32 to vector<8x1xf32>
    %300 = arith.mulf %299, %283 : vector<8x1xf32>
    %cst_107 = arith.constant 1.000000e+00 : f32
    %301 = vector.broadcast %cst_107 : f32 to vector<8x1xf32>
    %302 = arith.subf %301, %300 : vector<8x1xf32>
    %303 = vector.broadcast %302 : vector<8x1xf32> to vector<8x128xf32>
    %304 = arith.mulf %303, %241 : vector<8x128xf32>
    %305 = arith.addf %298, %304 : vector<8x128xf32>
    %cst_108 = arith.constant 2.000000e+00 : f32
    %306 = vector.broadcast %cst_108 : f32 to vector<8x1xf32>
    %307 = arith.mulf %306, %289 : vector<8x1xf32>
    %cst_109 = arith.constant 1.000000e+00 : f32
    %308 = vector.broadcast %cst_109 : f32 to vector<8x1xf32>
    %309 = arith.addf %308, %307 : vector<8x1xf32>
    %cst_110 = arith.constant 1.000000e+00 : f32
    %310 = vector.broadcast %cst_110 : f32 to vector<8x1xf32>
    %311 = arith.mulf %310, %283 : vector<8x1xf32>
    %312 = arith.mulf %311, %286 : vector<8x1xf32>
    %313 = arith.addf %309, %312 : vector<8x1xf32>
    %cst_111 = arith.constant 1.000000e-15 : f32
    %314 = vector.broadcast %cst_111 : f32 to vector<8x1xf32>
    %315 = arith.maximumf %313, %314 : vector<8x1xf32>
    %cst_112 = arith.constant 1.000000e+00 : f32
    %316 = vector.broadcast %cst_112 : f32 to vector<8x1xf32>
    %317 = arith.divf %316, %315 : vector<8x1xf32>
    %318 = vector.broadcast %317 : vector<8x1xf32> to vector<8x128xf32>
    %319 = arith.mulf %305, %318 : vector<8x128xf32>
    %320 = arith.mulf %319, %319 : vector<8x128xf32>
    %cst_113 = arith.constant dense<0.000000e+00> : vector<8xf32>
    %321 = vector.multi_reduction <add>, %320, %cst_113 [1] : vector<8x128xf32> to vector<8xf32>
    %322 = vector.shape_cast %321 : vector<8xf32> to vector<8x1xf32>
    %cst_114 = arith.constant 1.000000e-15 : f32
    %323 = vector.broadcast %cst_114 : f32 to vector<8x1xf32>
    %324 = arith.maximumf %322, %323 : vector<8x1xf32>
    %325 = math.sqrt %324 : vector<8x1xf32>
    %c0_115 = arith.constant 0 : index
    %c0_116 = arith.constant 0 : index
    %326 = vector.load %arg7[%c0_115, %c0_116] : memref<128x128xf32, #tpu.memory_space<vmem>>, vector<128x128xf32>
    %cst_117 = arith.constant dense<0.000000e+00> : vector<8x128xf32>
    %327 = tpu.matmul %319, %326, %cst_117 {dimension_numbers = #tpu.dot_dimension_numbers<[1], [1], [0], [0], [0, 0, 1, 0], [], []>} : vector<8x128xf32>, vector<128x128xf32>, vector<8x128xf32> -> vector<8x128xf32>
    %328 = arith.mulf %327, %327 : vector<8x128xf32>
    %cst_118 = arith.constant dense<0.000000e+00> : vector<8xf32>
    %329 = vector.multi_reduction <add>, %328, %cst_118 [1] : vector<8x128xf32> to vector<8xf32>
    %330 = vector.shape_cast %329 : vector<8xf32> to vector<8x1xf32>
    %cst_119 = arith.constant 1.000000e-15 : f32
    %331 = vector.broadcast %cst_119 : f32 to vector<8x1xf32>
    %332 = arith.maximumf %330, %331 : vector<8x1xf32>
    %333 = math.sqrt %332 : vector<8x1xf32>
    %334 = arith.divf %333, %325 : vector<8x1xf32>
    %cst_120 = arith.constant 1.000000e+00 : f32
    %335 = vector.broadcast %cst_120 : f32 to vector<8x1xf32>
    %336 = arith.mulf %335, %325 : vector<8x1xf32>
    %cst_121 = arith.constant -0.999998986 : f32
    %cst_122 = arith.constant 0.999998986 : f32
    %337 = vector.broadcast %cst_121 : f32 to vector<8x1xf32>
    %338 = arith.maximumf %337, %336 : vector<8x1xf32>
    %339 = vector.broadcast %cst_122 : f32 to vector<8x1xf32>
    %340 = arith.minimumf %339, %338 : vector<8x1xf32>
    %cst_123 = arith.constant 1.000000e+00 : f32
    %341 = vector.broadcast %cst_123 : f32 to vector<8x1xf32>
    %342 = arith.addf %341, %340 : vector<8x1xf32>
    %cst_124 = arith.constant 1.000000e+00 : f32
    %343 = vector.broadcast %cst_124 : f32 to vector<8x1xf32>
    %344 = arith.subf %343, %340 : vector<8x1xf32>
    %345 = arith.divf %342, %344 : vector<8x1xf32>
    %346 = math.log %345 : vector<8x1xf32>
    %cst_125 = arith.constant 5.000000e-01 : f32
    %347 = vector.broadcast %cst_125 : f32 to vector<8x1xf32>
    %348 = arith.mulf %347, %346 : vector<8x1xf32>
    %349 = arith.mulf %334, %348 : vector<8x1xf32>
    %350 = math.tanh %349 : vector<8x1xf32>
    %cst_126 = arith.constant 1.000000e+00 : f32
    %351 = vector.broadcast %cst_126 : f32 to vector<8x1xf32>
    %352 = arith.mulf %333, %351 : vector<8x1xf32>
    %353 = arith.divf %350, %352 : vector<8x1xf32>
    %354 = vector.broadcast %353 : vector<8x1xf32> to vector<8x128xf32>
    %355 = arith.mulf %327, %354 : vector<8x128xf32>
    %356 = math.absf %327 : vector<8x128xf32>
    %cst_127 = arith.constant dense<0.000000e+00> : vector<8xf32>
    %357 = vector.multi_reduction <add>, %356, %cst_127 [1] : vector<8x128xf32> to vector<8xf32>
    %358 = vector.shape_cast %357 : vector<8xf32> to vector<8x1xf32>
    %cst_128 = arith.constant 0.000000e+00 : f32
    %359 = vector.broadcast %cst_128 : f32 to vector<8x1xf32>
    %360 = arith.cmpf oeq, %358, %359 : vector<8x1xf32>
    %cst_129 = arith.constant 0.000000e+00 : f32
    %361 = vector.shape_cast %360 : vector<8x1xi1> to vector<8x1xi1>
    %362 = vector.broadcast %361 : vector<8x1xi1> to vector<8x128xi1>
    %363 = vector.broadcast %cst_129 : f32 to vector<8x128xf32>
    %364 = arith.select %362, %363, %355 : vector<8x128xi1>, vector<8x128xf32>
    %365 = arith.mulf %364, %364 : vector<8x128xf32>
    %cst_130 = arith.constant dense<0.000000e+00> : vector<8xf32>
    %366 = vector.multi_reduction <add>, %365, %cst_130 [1] : vector<8x128xf32> to vector<8xf32>
    %367 = vector.shape_cast %366 : vector<8xf32> to vector<8x1xf32>
    %cst_131 = arith.constant 1.000000e-15 : f32
    %368 = vector.broadcast %cst_131 : f32 to vector<8x1xf32>
    %369 = arith.maximumf %367, %368 : vector<8x1xf32>
    %370 = math.sqrt %369 : vector<8x1xf32>
    %cst_132 = arith.constant 0.999989986 : f32
    %371 = vector.broadcast %cst_132 : f32 to vector<8x1xf32>
    %372 = arith.cmpf ogt, %370, %371 : vector<8x1xf32>
    %cst_133 = arith.constant 0.999989986 : f32
    %373 = vector.broadcast %cst_133 : f32 to vector<8x1xf32>
    %374 = arith.divf %373, %370 : vector<8x1xf32>
    %cst_134 = arith.constant 1.000000e+00 : f32
    %375 = vector.broadcast %cst_134 : f32 to vector<8x1xf32>
    %376 = arith.select %372, %374, %375 : vector<8x1xi1>, vector<8x1xf32>
    %377 = vector.broadcast %376 : vector<8x1xf32> to vector<8x128xf32>
    %378 = arith.mulf %364, %377 : vector<8x128xf32>
    %c0_135 = arith.constant 0 : index
    %c0_136 = arith.constant 0 : index
    %379 = vector.load %arg8[%c0_135, %c0_136] : memref<1x128xf32, #tpu.memory_space<vmem>>, vector<1x128xf32>
    %380 = arith.mulf %378, %378 : vector<8x128xf32>
    %cst_137 = arith.constant dense<0.000000e+00> : vector<8xf32>
    %381 = vector.multi_reduction <add>, %380, %cst_137 [1] : vector<8x128xf32> to vector<8xf32>
    %382 = vector.shape_cast %381 : vector<8xf32> to vector<8x1xf32>
    %383 = arith.mulf %379, %379 : vector<1x128xf32>
    %cst_138 = arith.constant dense<0.000000e+00> : vector<1xf32>
    %384 = vector.multi_reduction <add>, %383, %cst_138 [1] : vector<1x128xf32> to vector<1xf32>
    %385 = vector.shape_cast %384 : vector<1xf32> to vector<1x1xf32>
    %386 = vector.broadcast %379 : vector<1x128xf32> to vector<8x128xf32>
    %387 = arith.mulf %378, %386 : vector<8x128xf32>
    %cst_139 = arith.constant dense<0.000000e+00> : vector<8xf32>
    %388 = vector.multi_reduction <add>, %387, %cst_139 [1] : vector<8x128xf32> to vector<8xf32>
    %389 = vector.shape_cast %388 : vector<8xf32> to vector<8x1xf32>
    %cst_140 = arith.constant 2.000000e+00 : f32
    %390 = vector.broadcast %cst_140 : f32 to vector<8x1xf32>
    %391 = arith.mulf %390, %389 : vector<8x1xf32>
    %cst_141 = arith.constant 1.000000e+00 : f32
    %392 = vector.broadcast %cst_141 : f32 to vector<8x1xf32>
    %393 = arith.addf %392, %391 : vector<8x1xf32>
    %cst_142 = arith.constant 1.000000e+00 : f32
    %394 = vector.broadcast %cst_142 : f32 to vector<1x1xf32>
    %395 = arith.mulf %394, %385 : vector<1x1xf32>
    %396 = vector.broadcast %395 : vector<1x1xf32> to vector<8x1xf32>
    %397 = arith.addf %393, %396 : vector<8x1xf32>
    %398 = vector.broadcast %397 : vector<8x1xf32> to vector<8x128xf32>
    %399 = arith.mulf %398, %378 : vector<8x128xf32>
    %cst_143 = arith.constant 1.000000e+00 : f32
    %400 = vector.broadcast %cst_143 : f32 to vector<8x1xf32>
    %401 = arith.mulf %400, %382 : vector<8x1xf32>
    %cst_144 = arith.constant 1.000000e+00 : f32
    %402 = vector.broadcast %cst_144 : f32 to vector<8x1xf32>
    %403 = arith.subf %402, %401 : vector<8x1xf32>
    %404 = vector.broadcast %403 : vector<8x1xf32> to vector<8x128xf32>
    %405 = vector.broadcast %379 : vector<1x128xf32> to vector<8x128xf32>
    %406 = arith.mulf %404, %405 : vector<8x128xf32>
    %407 = arith.addf %399, %406 : vector<8x128xf32>
    %cst_145 = arith.constant 2.000000e+00 : f32
    %408 = vector.broadcast %cst_145 : f32 to vector<8x1xf32>
    %409 = arith.mulf %408, %389 : vector<8x1xf32>
    %cst_146 = arith.constant 1.000000e+00 : f32
    %410 = vector.broadcast %cst_146 : f32 to vector<8x1xf32>
    %411 = arith.addf %410, %409 : vector<8x1xf32>
    %cst_147 = arith.constant 1.000000e+00 : f32
    %412 = vector.broadcast %cst_147 : f32 to vector<8x1xf32>
    %413 = arith.mulf %412, %382 : vector<8x1xf32>
    %414 = vector.broadcast %385 : vector<1x1xf32> to vector<8x1xf32>
    %415 = arith.mulf %413, %414 : vector<8x1xf32>
    %416 = arith.addf %411, %415 : vector<8x1xf32>
    %cst_148 = arith.constant 1.000000e-15 : f32
    %417 = vector.broadcast %cst_148 : f32 to vector<8x1xf32>
    %418 = arith.maximumf %416, %417 : vector<8x1xf32>
    %cst_149 = arith.constant 1.000000e+00 : f32
    %419 = vector.broadcast %cst_149 : f32 to vector<8x1xf32>
    %420 = arith.divf %419, %418 : vector<8x1xf32>
    %421 = vector.broadcast %420 : vector<8x1xf32> to vector<8x128xf32>
    %422 = arith.mulf %407, %421 : vector<8x128xf32>
    %423 = arith.mulf %422, %422 : vector<8x128xf32>
    %cst_150 = arith.constant dense<0.000000e+00> : vector<8xf32>
    %424 = vector.multi_reduction <add>, %423, %cst_150 [1] : vector<8x128xf32> to vector<8xf32>
    %425 = vector.shape_cast %424 : vector<8xf32> to vector<8x1xf32>
    %cst_151 = arith.constant 1.000000e-15 : f32
    %426 = vector.broadcast %cst_151 : f32 to vector<8x1xf32>
    %427 = arith.maximumf %425, %426 : vector<8x1xf32>
    %428 = math.sqrt %427 : vector<8x1xf32>
    %cst_152 = arith.constant 0.999989986 : f32
    %429 = vector.broadcast %cst_152 : f32 to vector<8x1xf32>
    %430 = arith.cmpf ogt, %428, %429 : vector<8x1xf32>
    %cst_153 = arith.constant 0.999989986 : f32
    %431 = vector.broadcast %cst_153 : f32 to vector<8x1xf32>
    %432 = arith.divf %431, %428 : vector<8x1xf32>
    %cst_154 = arith.constant 1.000000e+00 : f32
    %433 = vector.broadcast %cst_154 : f32 to vector<8x1xf32>
    %434 = arith.select %430, %432, %433 : vector<8x1xi1>, vector<8x1xf32>
    %435 = vector.broadcast %434 : vector<8x1xf32> to vector<8x128xf32>
    %436 = arith.mulf %422, %435 : vector<8x128xf32>
    %437 = arith.mulf %436, %436 : vector<8x128xf32>
    %cst_155 = arith.constant dense<0.000000e+00> : vector<8xf32>
    %438 = vector.multi_reduction <add>, %437, %cst_155 [1] : vector<8x128xf32> to vector<8xf32>
    %439 = vector.shape_cast %438 : vector<8xf32> to vector<8x1xf32>
    %cst_156 = arith.constant 1.000000e-15 : f32
    %440 = vector.broadcast %cst_156 : f32 to vector<8x1xf32>
    %441 = arith.maximumf %439, %440 : vector<8x1xf32>
    %442 = math.sqrt %441 : vector<8x1xf32>
    %cst_157 = arith.constant 1.000000e+00 : f32
    %443 = vector.broadcast %cst_157 : f32 to vector<8x1xf32>
    %444 = arith.mulf %443, %442 : vector<8x1xf32>
    %cst_158 = arith.constant -0.999998986 : f32
    %cst_159 = arith.constant 0.999998986 : f32
    %445 = vector.broadcast %cst_158 : f32 to vector<8x1xf32>
    %446 = arith.maximumf %445, %444 : vector<8x1xf32>
    %447 = vector.broadcast %cst_159 : f32 to vector<8x1xf32>
    %448 = arith.minimumf %447, %446 : vector<8x1xf32>
    %cst_160 = arith.constant 1.000000e+00 : f32
    %449 = vector.broadcast %cst_160 : f32 to vector<8x1xf32>
    %450 = arith.addf %449, %448 : vector<8x1xf32>
    %cst_161 = arith.constant 1.000000e+00 : f32
    %451 = vector.broadcast %cst_161 : f32 to vector<8x1xf32>
    %452 = arith.subf %451, %448 : vector<8x1xf32>
    %453 = arith.divf %450, %452 : vector<8x1xf32>
    %454 = math.log %453 : vector<8x1xf32>
    %cst_162 = arith.constant 5.000000e-01 : f32
    %455 = vector.broadcast %cst_162 : f32 to vector<8x1xf32>
    %456 = arith.mulf %455, %454 : vector<8x1xf32>
    %cst_163 = arith.constant 1.000000e+00 : f32
    %457 = vector.broadcast %cst_163 : f32 to vector<8x1xf32>
    %458 = arith.mulf %457, %442 : vector<8x1xf32>
    %459 = arith.divf %456, %458 : vector<8x1xf32>
    %460 = vector.broadcast %459 : vector<8x1xf32> to vector<8x128xf32>
    %461 = arith.mulf %436, %460 : vector<8x128xf32>
    %cst_164 = arith.constant 0.000000e+00 : f32
    %462 = vector.broadcast %cst_164 : f32 to vector<8x128xf32>
    %463 = arith.maximumf %461, %462 : vector<8x128xf32>
    %464 = arith.mulf %463, %463 : vector<8x128xf32>
    %cst_165 = arith.constant dense<0.000000e+00> : vector<8xf32>
    %465 = vector.multi_reduction <add>, %464, %cst_165 [1] : vector<8x128xf32> to vector<8xf32>
    %466 = vector.shape_cast %465 : vector<8xf32> to vector<8x1xf32>
    %cst_166 = arith.constant 1.000000e-15 : f32
    %467 = vector.broadcast %cst_166 : f32 to vector<8x1xf32>
    %468 = arith.maximumf %466, %467 : vector<8x1xf32>
    %469 = math.sqrt %468 : vector<8x1xf32>
    %cst_167 = arith.constant 1.000000e+00 : f32
    %470 = vector.broadcast %cst_167 : f32 to vector<8x1xf32>
    %471 = arith.mulf %470, %469 : vector<8x1xf32>
    %472 = math.tanh %471 : vector<8x1xf32>
    %cst_168 = arith.constant 1.000000e+00 : f32
    %473 = vector.broadcast %cst_168 : f32 to vector<8x1xf32>
    %474 = arith.mulf %473, %469 : vector<8x1xf32>
    %475 = arith.divf %472, %474 : vector<8x1xf32>
    %476 = vector.broadcast %475 : vector<8x1xf32> to vector<8x128xf32>
    %477 = arith.mulf %463, %476 : vector<8x128xf32>
    %478 = arith.mulf %477, %477 : vector<8x128xf32>
    %cst_169 = arith.constant dense<0.000000e+00> : vector<8xf32>
    %479 = vector.multi_reduction <add>, %478, %cst_169 [1] : vector<8x128xf32> to vector<8xf32>
    %480 = vector.shape_cast %479 : vector<8xf32> to vector<8x1xf32>
    %cst_170 = arith.constant 1.000000e-15 : f32
    %481 = vector.broadcast %cst_170 : f32 to vector<8x1xf32>
    %482 = arith.maximumf %480, %481 : vector<8x1xf32>
    %483 = math.sqrt %482 : vector<8x1xf32>
    %cst_171 = arith.constant 0.999989986 : f32
    %484 = vector.broadcast %cst_171 : f32 to vector<8x1xf32>
    %485 = arith.cmpf ogt, %483, %484 : vector<8x1xf32>
    %cst_172 = arith.constant 0.999989986 : f32
    %486 = vector.broadcast %cst_172 : f32 to vector<8x1xf32>
    %487 = arith.divf %486, %483 : vector<8x1xf32>
    %cst_173 = arith.constant 1.000000e+00 : f32
    %488 = vector.broadcast %cst_173 : f32 to vector<8x1xf32>
    %489 = arith.select %485, %487, %488 : vector<8x1xi1>, vector<8x1xf32>
    %490 = vector.broadcast %489 : vector<8x1xf32> to vector<8x128xf32>
    %491 = arith.mulf %477, %490 : vector<8x128xf32>
    %c0_174 = arith.constant 0 : index
    %c0_175 = arith.constant 0 : index
    %492 = vector.load %arg9[%c0_174, %c0_175] : memref<8x128xf32, #tpu.memory_space<vmem>>, vector<8x128xf32>
    tpu.vector_store %arg9[%c0_174, %c0_175], %491 {strides = array<i32>} : memref<8x128xf32, #tpu.memory_space<vmem>>, vector<8x128xf32>,
    return
  }
  func.func @transform_0(%arg0: i32) -> (i32, i32) {
    %c0_i32 = arith.constant 0 : i32
    %c0_i32_0 = arith.constant 0 : i32
    return %arg0, %c0_i32 : i32, i32
  }
  func.func @transform_1(%arg0: i32) -> (i32, i32) {
    %c0_i32 = arith.constant 0 : i32
    %c0_i32_0 = arith.constant 0 : i32
    return %arg0, %c0_i32 : i32, i32
  }
  func.func @transform_2(%arg0: i32) -> (i32, i32, i32) {
    %c0_i32 = arith.constant 0 : i32
    %c0_i32_0 = arith.constant 0 : i32
    %c0_i32_1 = arith.constant 0 : i32
    return %arg0, %c0_i32, %c0_i32_0 : i32, i32, i32
  }
  func.func @transform_3(%arg0: i32) -> (i32, i32, i32) {
    %c0_i32 = arith.constant 0 : i32
    %c0_i32_0 = arith.constant 0 : i32
    %c0_i32_1 = arith.constant 0 : i32
    return %arg0, %c0_i32, %c0_i32_0 : i32, i32, i32
  }
  func.func @transform_4(%arg0: i32) -> (i32, i32, i32, i32) {
    %c0_i32 = arith.constant 0 : i32
    %c0_i32_0 = arith.constant 0 : i32
    %c0_i32_1 = arith.constant 0 : i32
    %c0_i32_2 = arith.constant 0 : i32
    return %arg0, %c0_i32, %c0_i32_0, %c0_i32_1 : i32, i32, i32, i32
  }
  func.func @transform_5(%arg0: i32) -> (i32, i32) {
    %c0_i32 = arith.constant 0 : i32
    %c0_i32_0 = arith.constant 0 : i32
    %c0_i32_1 = arith.constant 0 : i32
    return %c0_i32, %c0_i32_0 : i32, i32
  }
  func.func @transform_6(%arg0: i32) -> (i32, i32) {
    %c0_i32 = arith.constant 0 : i32
    %c0_i32_0 = arith.constant 0 : i32
    %c0_i32_1 = arith.constant 0 : i32
    return %c0_i32, %c0_i32_0 : i32, i32
  }
  func.func @transform_7(%arg0: i32) -> (i32, i32) {
    %c0_i32 = arith.constant 0 : i32
    %c0_i32_0 = arith.constant 0 : i32
    %c0_i32_1 = arith.constant 0 : i32
    return %c0_i32, %c0_i32_0 : i32, i32
  }
  func.func @transform_8(%arg0: i32) -> (i32, i32) {
    %c0_i32 = arith.constant 0 : i32
    %c0_i32_0 = arith.constant 0 : i32
    return %arg0, %c0_i32 : i32, i32
  }
}

</mosaic_0001>

<bundles_post_ra>
// kernel: kg_aggregator_forward.1
= control target key start
LH: loop header
LB: loop body
LE: loop exit
PB: predicated region body
PF: predicated region fallthrough
CT: control target
= control target key end

     0   :  { %s18556_s0 = inlined_call_operand.hbm [shape: f32[32,128], index: 0, kind: input, shape index: {}]   ;;  %s18557_s1 = inlined_call_operand.hbm [shape: f32[32,128], index: 1, kind: input, shape index: {}]   ;;  %s18558_s2 = inlined_call_operand.hbm [shape: f32[32,8,128], index: 2, kind: input, shape index: {}]   ;;  %s18559_s3 = inlined_call_operand.hbm [shape: f32[32,8,128], index: 3, kind: input, shape index: {}]   ;;  %s18560_s4 = inlined_call_operand.hbm [shape: bf16[32,8,128,128], index: 4, kind: input, shape index: {}]   ;;  %s18561_s5 = inlined_call_operand.hbm [shape: f32[128,128], index: 5, kind: input, shape index: {}]   ;;  %s18562_s6 = inlined_call_operand.hbm [shape: f32[128,128], index: 6, kind: input, shape index: {}]   ;;  %s18563_s7 = inlined_call_operand.vmem [shape: f32[1,128], index: 7, kind: input, shape index: {}]   ;;  %s18564_s8 = inlined_call_operand.hbm [shape: f32[32,128], index: 8, kind: output, shape index: {}]  }
   0x1   :  { %18647 = sst [smem:[#allocation60_spill]] %s18557_s1 }
   0x2   :  { %18648 = sst [smem:[#allocation61_spill]] %s18559_s3 }
   0x3   :  { %18649 = sst [smem:[#allocation62_spill]] %s18561_s5 }
   0x4   :  { %18650 = sst [smem:[#allocation63_spill]] %s18562_s6 }
   0x5   :  { %18651 = sst [smem:[#allocation64_spill]] %s18564_s8 }
   0x6   :  { %13 = vsyncpa [#allocation3], 0 }
   0x7   :  { %15 = vsyncpa [#allocation3 + $0x1], 0 }
   0x8   :  { %16 = vsyncpa [#allocation6], 0 }
   0x9   :  { %18 = vsyncpa [#allocation6 + $0x1], 0 }
   0xa   :  { %19 = vsyncpa [#allocation9], 0 }
   0xb   :  { %21 = vsyncpa [#allocation9 + $0x1], 0 }
   0xc   :  { %22 = vsyncpa [#allocation12], 0 }
   0xd   :  { %23 = vsyncpa [#allocation4], 0 }
   0xe   :  { %25 = vsyncpa [#allocation4 + $0x1], 0  ;;  %s15129_s27 = smov 0   ;;  %s15131_s28 = smov 0  }
   0xf   :  { %s15133_s29 = smov 0   ;;  %s15135_s30 = smov 0  }
  0x10 LB: > { %18652 = sst [smem:[#allocation20_spill]] %s15054_s27  ;;  %s15150_s9 = sadd.s32 4294967295, %s15066_s30   ;;  %s15066_s30 = sphi %s15135_s30, %s18801_s30   ;;  %s15062_s29 = sphi %s15133_s29, %s18803_s29   ;;  %s15058_s28 = sphi %s15131_s28, %s18805_s28   ;;  %s15054_s27 = sphi %s15129_s27, %s18804_s27  }
  0x11   : > { %18653 = sst [smem:[#allocation21_spill]] %s15062_s29  ;;  %s11131_s10 = sadd.s32 4294967294, %s15066_s30  }
  0x12   : > { %p51_p0 = scmp.ne.s32.totalorder %s15058_s28, %s15054_s27  ;;  %p18572_p1 = scmp.eq.s32.totalorder %s15150_s9, 0 }
  0x13   : > { %p242_p2 = scmp.eq.s32.totalorder %s15150_s9, 3  ;;  %p248_p3 = scmp.eq.s32.totalorder %s11131_s10, 3 }
  0x14   : > { %p15159_p4 = por %p18572_p1, %p51_p0  ;;  %p11132_p5 = scmp.ge.s32.totalorder %s15066_s30, 1 }
  0x15   : > { %p15164_p6 = por %p248_p3, %p51_p0  ;;  %p255_p7 = scmp.lt.s32.totalorder %s15066_s30, 5 }
  0x16   : > { %s18654_s11 = scalar_select %p15159_p4, 1, 0 }
  0x17   : > { %s18655_s12 = scalar_select %p15164_p6, 1, 0 }
  0x18   : > { %p15169_p8 = pnand %p11132_p5, %p255_p7  ;;  %s15068_s14 = smov [#allocation11]  }
  0x19   : > { %18656 = sst [smem:[#allocation22_spill]] %s18655_s12  ;;  %s267_s15 = sshll.u32 %s15068_s14, 4  ;;  %s268_s15 = int_to_ptr.vmem [resolvable:$true] %s267_s15 }
  0x1a   : > { %s18657_s13 = scalar_select %p15169_p8, 1, 0 }
  0x1b   : > { %p13731_p9 = pneg %p15169_p8  ;;  %s15182_s17 = sadd.s32 1, %s15066_s30  }
  0x1c   : > { %18659 = sst [smem:[#allocation23_spill]] %s15182_s17  ;;  %s38_s18 = sadd.s32 1, %s15062_s29 }
  0x1d   : > { %p15177_p10 = pnand %p13731_p9, %p18572_p1  ;;  %s35_s19 = ssub.s32 %s15066_s30, %s15182_s17 }
  0x1e   : > { %s14809_s20 = scalar_lea.vmem %s268_s15, 2048  ;;  %p14817_p3 = scmp.lt.s32.totalorder %s268_s15, %s268_s15 }
  0x1f   : > { %s18658_s16 = scalar_select %p15177_p10, 1, 0 }
  0x20   : > { %p18573_p11 = pneg %p15177_p10  ;;  %p14810_p12 = scmp.ne.s32.totalorder %s268_s15, %s14809_s20 }
  0x21   : > { %p14818_p5 = scmp.lt.s32.totalorder %s14809_s20, %s14809_s20 }
  0x22   : > { %p14812_p13 = pnand %p14810_p12, %p18573_p11 }
  0x23   : > { %p14819_p7 = por %p14818_p5, %p14817_p3 }
  0x24   : > { %p14813_p0 = pneg %p14812_p13 }
  0x26   : > { %p14820_p9 = pnand %p14819_p7, %p14813_p0 }
  0x28   : > { %14823 = shalt.err (!%p14820_p9)
}
  0x29   : > { %s18565_s21 = smov 128   ;;  %s18567_s22 = smov 8  }
  0x2a   : > { %s18660_s5 = sld [smem:[#allocation62_spill]]  ;;  %p36_p12 = scmp.eq.s32.totalorder %s35_s19, 0 }
  0x2b   : > { %p45_p13 = scmp.ne.s32.totalorder %s15062_s29, %s15058_s28  ;;  %p46_p0 = scmp.eq.s32.totalorder %s15066_s30, 0 }
  0x2c   : > { %p13760_p3 = scmp.lt.s32.totalorder %s15066_s30, 4  ;;  %s15214_s10 = sand.u32 1, %s15062_s29  }
  0x2d   : > { %s15205_s25 = scalar_select %p36_p12, %s15062_s29, %s38_s18  }
  0x2e   : > { %p47_p5 = por %p46_p0, %p45_p13  ;;  %p15209_p7 = por %p242_p2, %p45_p13 }
  0x2f   : > { %18661 = sst [smem:[#allocation24_spill]] %s15205_s25  ;;  %s18571_s14 = sshll.u32 %s15066_s30, 7 }
  0x30   : > { %13734 = dma.hbm_to_vmem [thread:$0]  (!%p15177_p10), %s18660_s5, 2048, %s268_s15, [#allocation12], %s18565_s21, %s18565_s21, %s18567_s22  }
  0x31   : > { %s18662_s26 = scalar_select %p15209_p7, 1, 0 }
  0x32   : > { %s18570_s20 = sshll.u32 %s15214_s10, 3  ;;  %p15218_p9 = pnand %p13760_p3, %p47_p5 }
  0x33   : > { %18663 = sst [smem:[#allocation25_spill]] %s18662_s26  ;;  %s18574_s19 = sand.u32 1, %s15066_s30  }
  0x34   : > { %s18665_s1 = sld [smem:[#allocation60_spill]]  ;;  %s319_s21 = scalar_lea.vmem [#allocation5], %s18570_s20 }
  0x35   : > { %s326_s22 = sshll.u32 %s319_s21, 4  ;;  %s15234_s5 = scalar_lea.sflag [#allocation6], %s18574_s19  ;;  %s327_s22 = int_to_ptr.vmem [resolvable:$true] %s326_s22 }
  0x36   : > { %p15240_p12 = pneg %p15218_p9 }
  0x3a   : > { %s15228_s24 = scalar_lea.hbm %s18665_s1, %s18571_s14  ;;  %s14829_s20 = scalar_lea.hbm %s18665_s1, 512 }
  0x3b   : > { %s14824_s25 = scalar_lea.hbm %s15228_s24, 128  ;;  %p14830_p3 = scmp.lt.s32.totalorder %s15228_s24, %s18665_s1 }
  0x3c   : > { %p14825_p2 = scmp.ne.s32.totalorder %s15228_s24, %s14824_s25  ;;  %p14831_p5 = scmp.lt.s32.totalorder %s14829_s20, %s14824_s25 }
  0x3e   : > { %p14827_p13 = pnand %p15240_p12, %p14825_p2  ;;  %p14832_p1 = por %p14831_p5, %p14830_p3 }
  0x40   : > { %p14828_p0 = pneg %p14827_p13 }
  0x42   : > { %p14833_p11 = pnand %p14832_p1, %p14828_p0 }
  0x44   : > { %14836 = shalt.err (!%p14833_p11)
}
  0x45   : > { %s14837_s19 = scalar_lea.vmem %s327_s22, 128  ;;  %s15071_s17 = smov [#allocation5]  }
  0x46   : > { %p14838_p6 = scmp.ne.s32.totalorder %s327_s22, %s14837_s19  ;;  %s14842_s12 = sshll.u32 %s15071_s17, 4  ;;  %s14843_s12 = int_to_ptr.vmem [resolvable:$false] %s14842_s12 }
  0x47   : > { %s14844_s27 = scalar_lea.vmem %s14843_s12, 256  ;;  %p14845_p2 = scmp.lt.s32.totalorder %s327_s22, %s14843_s12 }
  0x48   : > { %p14840_p7 = pnand %p14838_p6, %p15240_p12  ;;  %p14846_p13 = scmp.lt.s32.totalorder %s14844_s27, %s14837_s19 }
  0x4a   : > { %p14841_p4 = pneg %p14840_p7  ;;  %p14847_p8 = por %p14846_p13, %p14845_p2 }
  0x4c   : > { %p14848_p10 = pnand %p14847_p8, %p14841_p4 }
  0x4e   : > { %14851 = shalt.err (!%p14848_p10)
}
  0x4f   : > { %13744 = dma.hbm_to_vmem [thread:$0]  (!%p15218_p9), %s15228_s24, 128, %s327_s22, %s15234_s5  }
  0x50   : > { %s11140_s25 = sshll.u32 %s15214_s10, 6  ;;  %s11747_s14 = sshll.u32 %s15066_s30, 10 }
  0x51   : > { %s15264_s18 = scalar_lea.hbm %s18558_s2, %s11747_s14  ;;  %s337_s27 = scalar_lea.vmem [#allocation7], %s11140_s25 }
  0x52   : > { %s344_s12 = sshll.u32 %s337_s27, 4  ;;  %s18667_s3 = sld [smem:[#allocation61_spill]]  ;;  %s15266_s12 = int_to_ptr.vmem [resolvable:$true] %s344_s12 }
  0x53   : > { %s358_s22 = scalar_lea.vmem [#allocation8], %s11140_s25  ;;  %s15072_s1 = smov [#allocation13]  }
  0x54   : > { %s365_s24 = sshll.u32 %s358_s22, 4  ;;  %s15275_s20 = sshll.u32 %s15072_s1, 4  ;;  %s15273_s24 = int_to_ptr.vmem [resolvable:$true] %s365_s24  ;;  %s281_s20 = int_to_ptr.vmem [resolvable:$true] %s15275_s20 }
  0x55   : > { %s18668_s17 = sand.u32 1, %s15066_s30  }
  0x56   : > { %s15279_s8 = scalar_lea.sflag [#allocation9], %s18668_s17 }
  0x58   : > { %s15271_s21 = scalar_lea.hbm %s18667_s3, %s11747_s14  ;;  %s14857_s23 = scalar_lea.hbm %s18667_s3, 4096 }
  0x59   : > { %s14852_s27 = scalar_lea.hbm %s15271_s21, 1024  ;;  %p14858_p8 = scmp.lt.s32.totalorder %s15271_s21, %s18667_s3 }
  0x5a   : > { %p14853_p1 = scmp.ne.s32.totalorder %s15271_s21, %s14852_s27  ;;  %p14859_p10 = scmp.lt.s32.totalorder %s14857_s23, %s14852_s27 }
  0x5c   : > { %p14855_p4 = pnand %p14853_p1, %p15240_p12  ;;  %p14860_p11 = por %p14859_p10, %p14858_p8 }
  0x5e   : > { %p14856_p6 = pneg %p14855_p4 }
  0x60   : > { %p14861_p7 = pnand %p14860_p11, %p14856_p6 }
  0x62   : > { %14864 = shalt.err (!%p14861_p7)
}
  0x63   : > { %s14865_s1 = scalar_lea.vmem %s15273_s24, 1024  ;;  %s15073_s22 = smov [#allocation8]  }
  0x64   : > { %p14866_p0 = scmp.ne.s32.totalorder %s15273_s24, %s14865_s1  ;;  %s14870_s17 = sshll.u32 %s15073_s22, 4  ;;  %s14871_s17 = int_to_ptr.vmem [resolvable:$false] %s14870_s17 }
  0x65   : > { %s14872_s14 = scalar_lea.vmem %s14871_s17, 2048  ;;  %p14873_p2 = scmp.lt.s32.totalorder %s15273_s24, %s14871_s17 }
  0x66   : > { %p14868_p3 = pnand %p14866_p0, %p15240_p12  ;;  %p14874_p13 = scmp.lt.s32.totalorder %s14872_s14, %s14865_s1 }
  0x68   : > { %p14869_p5 = pneg %p14868_p3  ;;  %p14875_p1 = por %p14874_p13, %p14873_p2 }
  0x6a   : > { %p14876_p4 = pnand %p14875_p1, %p14869_p5 }
  0x6c   : > { %14879 = shalt.err (!%p14876_p4)
}
  0x6d   : > { %s18669_s26 = smov 8   ;;  %s18670_s27 = smov 128  }
  0x6e   : > { %13750 = dma.hbm_to_vmem [thread:$0]  (!%p15218_p9), %s15271_s21, 1024, %s15273_s24, %s15279_s8, %s18670_s27, %s18670_s27, %s18669_s26  }
  0x6f   : > { %s14891_s19 = scalar_lea.vmem %s281_s20, 2048  ;;  %p18671_p8 = scmp.ne.s32.totalorder %s18658_s16, 0 }
  0x70   : > { %p14892_p6 = scmp.ne.s32.totalorder %s281_s20, %s14891_s19  ;;  %p14899_p0 = scmp.lt.s32.totalorder %s281_s20, %s281_s20 }
  0x71   : > { %p18672_p10 = pneg %p18671_p8  ;;  %p14900_p3 = scmp.lt.s32.totalorder %s14891_s19, %s14891_s19 }
  0x73   : > { %p14894_p11 = pnand %p14892_p6, %p18672_p10  ;;  %p14901_p5 = por %p14900_p3, %p14899_p0 }
  0x75   : > { %p14895_p7 = pneg %p14894_p11 }
  0x77   : > { %p14902_p2 = pnand %p14901_p5, %p14895_p7 }
  0x79   : > { %14905 = shalt.err (!%p14902_p2)
}
  0x7a   : > { %s18673_s6 = sld [smem:[#allocation63_spill]]  ;;  %s18674_s21 = sshll.u32 %s15066_s30, 7 }
  0x7b   : > { %s15322_s22 = scalar_lea.hbm %s18556_s0, %s18674_s21  ;;  %s18675_s17 = sshll.u32 %s15214_s10, 3 }
  0x7c   : > { %s301_s16 = scalar_lea.vmem [#allocation2], %s18675_s17  ;;  %s298_s23 = scalar_lea.sflag [#allocation3], %s15214_s10 }
  0x7d   : > { %s308_s14 = sshll.u32 %s301_s16, 4  ;;  %s14906_s25 = scalar_lea.hbm %s15322_s22, 128  ;;  %s309_s14 = int_to_ptr.vmem [resolvable:$true] %s308_s14 }
  0x7e   : > { %p14907_p13 = scmp.ne.s32.totalorder %s15322_s22, %s14906_s25  ;;  %s14911_s24 = scalar_lea.hbm %s18556_s0, 512 }
  0x7f   : > { %p14912_p6 = scmp.lt.s32.totalorder %s15322_s22, %s18556_s0 }
  0x80   : > { %13737 = dma.hbm_to_vmem [thread:$0]  (!%p18671_p8), %s18673_s6, 2048, %s281_s20, [#allocation12], %s18670_s27, %s18670_s27, %s18669_s26  }
  0x81   : > { %p14909_p1 = pnand %p14907_p13, %p15240_p12  ;;  %p14913_p8 = scmp.lt.s32.totalorder %s14911_s24, %s14906_s25 }
  0x83   : > { %p14910_p4 = pneg %p14909_p1  ;;  %p14914_p10 = por %p14913_p8, %p14912_p6 }
  0x85   : > { %p14915_p11 = pnand %p14914_p10, %p14910_p4 }
  0x87   : > { %14918 = shalt.err (!%p14915_p11)
}
  0x88   : > { %s14919_s17 = scalar_lea.vmem %s309_s14, 128  ;;  %s15074_s16 = smov [#allocation2]  }
  0x89   : > { %p14920_p7 = scmp.ne.s32.totalorder %s309_s14, %s14919_s17  ;;  %s14924_s19 = sshll.u32 %s15074_s16, 4  ;;  %s14925_s19 = int_to_ptr.vmem [resolvable:$false] %s14924_s19 }
  0x8a   : > { %s14926_s6 = scalar_lea.vmem %s14925_s19, 256  ;;  %p14927_p5 = scmp.lt.s32.totalorder %s309_s14, %s14925_s19 }
  0x8b   : > { %p14922_p0 = pnand %p14920_p7, %p15240_p12  ;;  %p14928_p2 = scmp.lt.s32.totalorder %s14926_s6, %s14919_s17 }
  0x8d   : > { %p14923_p3 = pneg %p14922_p0  ;;  %p14929_p13 = por %p14928_p2, %p14927_p5 }
  0x8f   : > { %p14930_p1 = pnand %p14929_p13, %p14923_p3 }
  0x91   : > { %14933 = shalt.err (!%p14930_p1)
}
  0x92   : > { %13741 = dma.hbm_to_vmem [thread:$0]  (!%p15218_p9), %s15322_s22, 128, %s309_s14, %s298_s23  }
  0x93   : > { %s14934_s3 = scalar_lea.hbm %s15264_s18, 1024  ;;  %s14939_s6 = scalar_lea.hbm %s18558_s2, 4096 }
  0x94   : > { %p14935_p4 = scmp.ne.s32.totalorder %s15264_s18, %s14934_s3  ;;  %p14940_p10 = scmp.lt.s32.totalorder %s15264_s18, %s18558_s2 }
  0x95   : > { %p14941_p11 = scmp.lt.s32.totalorder %s14939_s6, %s14934_s3 }
  0x96   : > { %p14937_p6 = pnand %p14935_p4, %p15240_p12 }
  0x97   : > { %p14942_p7 = por %p14941_p11, %p14940_p10 }
  0x98   : > { %p14938_p8 = pneg %p14937_p6 }
  0x9a   : > { %p14943_p0 = pnand %p14942_p7, %p14938_p8 }
  0x9c   : > { %14946 = shalt.err (!%p14943_p0)
}
  0x9d   : > { %s14947_s22 = scalar_lea.vmem %s15266_s12, 1024  ;;  %s15075_s14 = smov [#allocation7]  }
  0x9e   : > { %p14948_p3 = scmp.ne.s32.totalorder %s15266_s12, %s14947_s22  ;;  %s14952_s23 = sshll.u32 %s15075_s14, 4  ;;  %s14953_s23 = int_to_ptr.vmem [resolvable:$false] %s14952_s23 }
  0x9f   : > { %s14954_s21 = scalar_lea.vmem %s14953_s23, 2048  ;;  %p14955_p13 = scmp.lt.s32.totalorder %s15266_s12, %s14953_s23 }
  0xa0   : > { %p14950_p5 = pnand %p14948_p3, %p15240_p12  ;;  %p14956_p1 = scmp.lt.s32.totalorder %s14954_s21, %s14947_s22 }
  0xa2   : > { %p14951_p2 = pneg %p14950_p5  ;;  %p14957_p4 = por %p14956_p1, %p14955_p13 }
  0xa4   : > { %p14958_p6 = pnand %p14957_p4, %p14951_p2 }
  0xa6   : > { %14961 = shalt.err (!%p14958_p6)
}
  0xa7   : > { %13747 = dma.hbm_to_vmem [thread:$0]  (!%p15218_p9), %s15264_s18, 1024, %s15266_s12, %s15234_s5, %s18670_s27, %s18670_s27, %s18669_s26  }
  0xa8   : > { %s11750_s1 = sshll.u32 %s15066_s30, 16  ;;  %s18676_s17 = sshll.u32 %s15214_s10, 12 }
  0xa9   : > { %s379_s16 = scalar_lea.vmem [#allocation10], %s18676_s17  ;;  %s15374_s6 = scalar_lea.hbm %s18560_s4, %s11750_s1 }
  0xaa   : > { %s387_s3 = sshll.u32 %s379_s16, 4  ;;  %s14962_s19 = scalar_lea.hbm %s15374_s6, 65536  ;;  %s15376_s3 = int_to_ptr.vmem [resolvable:$true] %s387_s3 }
  0xab   : > { %p14963_p8 = scmp.ne.s32.totalorder %s15374_s6, %s14962_s19  ;;  %s14967_s10 = scalar_lea.hbm %s18560_s4, 262144 }
  0xac   : > { %p14968_p7 = scmp.lt.s32.totalorder %s15374_s6, %s18560_s4  ;;  %p14969_p0 = scmp.lt.s32.totalorder %s14967_s10, %s14962_s19 }
  0xad   : > { %p14965_p10 = pnand %p14963_p8, %p15240_p12 }
  0xae   : > { %p14970_p3 = por %p14969_p0, %p14968_p7 }
  0xaf   : > { %p14966_p11 = pneg %p14965_p10 }
  0xb1   : > { %p14971_p5 = pnand %p14970_p3, %p14966_p11 }
  0xb3   : > { %14974 = shalt.err (!%p14971_p5)
}
  0xb4   : > { %s14975_s27 = scalar_lea.vmem %s15376_s3, 65536  ;;  %s15076_s24 = smov [#allocation10]  }
  0xb5   : > { %p14976_p2 = scmp.ne.s32.totalorder %s15376_s3, %s14975_s27  ;;  %s14980_s22 = sshll.u32 %s15076_s24, 4  ;;  %s14981_s22 = int_to_ptr.vmem [resolvable:$false] %s14980_s22 }
  0xb6   : > { %s14982_s14 = scalar_lea.vmem %s14981_s22, 131072  ;;  %p14983_p4 = scmp.lt.s32.totalorder %s15376_s3, %s14981_s22 }
  0xb7   : > { %p14978_p13 = pnand %p14976_p2, %p15240_p12  ;;  %p14984_p6 = scmp.lt.s32.totalorder %s14982_s14, %s14975_s27 }
  0xb9   : > { %p14979_p1 = pneg %p14978_p13  ;;  %p14985_p8 = por %p14984_p6, %p14983_p4 }
  0xbb   : > { %p14986_p10 = pnand %p14985_p8, %p14979_p1 }
  0xbd   : > { %14989 = shalt.err (!%p14986_p10)
}
  0xbe   : > { %s15077_s23 = smov 64   ;;  %s15078_s21 = smov 4  }
  0xbf   : > { %13753 = dma.hbm_to_vmem [thread:$0]  (!%p15218_p9), %s15374_s6, 65536, %s15376_s3, %s15279_s8, %s15077_s23, %s15077_s23, %s15078_s21  }
  0xc0   : > { %p18677_p12 = scmp.ne.s32.totalorder %s18657_s13, 0 }
  0xc2   : > { %399 = sbr.rel (%p18677_p12) target bundleno = 5312 (0x14c0), region = 52 }
  0xc7   : > { %s15402_s29 = sand.u32 1, %s15058_s28   ;;  %p18678_p11 = scmp.ne.s32.totalorder %s18654_s11, 0 }
  0xc8   : > { %s15405_s1 = sshll.u32 %s15402_s29, 3  ;;  %s402_s17 = scalar_lea.sflag [#allocation3], %s15402_s29 }
  0xc9   : > { %s15409_s16 = scalar_lea.vmem [#allocation2], %s15405_s1 }
  0xca   : > { %15033 = dma.done.wait (%p18678_p11), %s402_s17, 128  }
  0xcb   : > { %15035 = vsyncadd (%p18678_p11), %s402_s17, 4294967168  ;;  %s410_s8 = sand.u32 1, %s15150_s9   ;;  %s15417_s15 = scalar_lea.vmem [#allocation5], %s15405_s1 }
  0xcc   : > { %s411_s13 = scalar_lea.sflag [#allocation6], %s410_s8 }
  0xcd   : > { %15037 = dma.done.wait (%p18678_p11), %s411_s13, 1152  }
  0xce   : > { %15039 = vsyncadd (%p18678_p11), %s411_s13, 4294966144  ;;  %s11153_s3 = sshll.u32 %s15402_s29, 6  ;;  %s429_s20 = scalar_lea.sflag [#allocation9], %s410_s8 }
  0xcf   : > { %s15424_s25 = scalar_lea.vmem [#allocation7], %s11153_s3  ;;  %s15426_s6 = scalar_lea.vmem [#allocation8], %s11153_s3 }
  0xd0   : > { %15041 = dma.done.wait (%p18678_p11), %s429_s20, 66560  }
  0xd1   : > { %15043 = vsyncadd (%p18678_p11), %s429_s20, 4294900736  ;;  %s11155_s19 = sshll.u32 %s15402_s29, 12  ;;  %p18679_p9 = scmp.eq.s32.totalorder %s15150_s9, 0 }
  0xd2   : > { %s15433_s5 = scalar_lea.vmem [#allocation10], %s11155_s19 }
  0xd3   : > { %15045 = dma.done.wait (%p18679_p9), [#allocation12], 4096   ;;  %p18680_p7 = pmov %p18679_p9 }
  0xd4   : > { %v1967_v0 = vlaneseq  ;;  %v15079_v1 = vmov 1966171168   ;;  %v516_v6 = vld [vmem:[%s15426_s6] sm:$0xff]  ;;  %v517_v8 = vld [vmem:[%s15426_s6 + $0x8] sm:$0xff]  ;;  %v15448_v11 = vld [vmem:[%s15417_s15] sm:$0xff]  ;;  %v18591_v55 = vmov 0.0  }
  0xd5   : > { %15047 = vsyncadd (%p18680_p7), [#allocation12], 4294963200  ;;  %v1965_v2 = vunpack.c.l.s4 %v15079_v1  ;;  %v506_v7 = vld [vmem:[%s15409_s16] sm:$0xff]  ;;  %v570_v9 = vmul.f32 %v516_v6, %v516_v6  ;;  %v519_v12 = vld [vmem:[%s15426_s6 + $0x18] sm:$0xff]  ;;  %v571_v13 = vmul.f32 %v517_v8, %v517_v8  ;;  %v525_v14 = vmul.f32 %v15448_v11, %v15448_v11  ;;  %12361 = vmatprep.subr.bf16.mxu0 %v18591_v55  ;;  %12381 = vmatprep.subr.bf16.mxu1 %v18591_v55  ;;  %s18795_s10 = sld [smem:[#allocation25_spill]]  ;;  %s11744_s12 = sshll.u32 %s15150_s9, 7 }
  0xd6   : > { %v15439_v3 = vshrl.u32 %v1967_v0, 7  ;;  %v524_v10 = vmul.f32 %v506_v7, %v506_v7  ;;  %v518_v15 = vld [vmem:[%s15426_s6 + $0x10] sm:$0xff]  ;;  %v521_v17 = vld [vmem:[%s15426_s6 + $0x28] sm:$0xff]  ;;  %v573_v18 = vmul.f32 %v519_v12, %v519_v12  ;;  %v520_v19 = vld [vmem:[%s15426_s6 + $0x20] sm:$0xff]  ;;  %v9242_v22 = vcombine.high %v506_v7, %v506_v7  ;;  %s501_s26 = scalar_lea.vmem [#allocation14], %s15405_s1  ;;  %s18796_s14 = sld [smem:[#allocation64_spill]] }
  0xd7   : > { %v1966_v4 = vunpack.c.0.s8 %v1965_v2  ;;  %586 = vadd.xlane.f32.xlu1 %v570_v9  ;;  %v572_v20 = vmul.f32 %v518_v15, %v518_v15  ;;  %v575_v23 = vmul.f32 %v521_v17, %v521_v17  ;;  %v523_v24 = vld [vmem:[%s15426_s6 + $0x38] sm:$0xff]  ;;  %v574_v27 = vmul.f32 %v520_v19, %v520_v19  ;;  %v522_v28 = vld [vmem:[%s15426_s6 + $0x30] sm:$0xff]  ;;  %v508_v56 = vld [vmem:[%s15424_s25] sm:$0xff]  ;;  %s10956_s27 = sshll.u32 %s501_s26, 4  ;;  %s10943_s21 = scalar_lea.sflag [#allocation4], %s15402_s29  ;;  %s10957_s27 = int_to_ptr.vmem [resolvable:$true] %s10956_s27 }
  0xd8   : > { %526 = vadd.xlane.f32.xlu0 %v524_v10  ;;  %v15459_v25 = vsub.s32 0, %v15439_v3  ;;  %v577_v31 = vmul.f32 %v523_v24, %v523_v24  ;;  %v576_v32 = vmul.f32 %v522_v28, %v522_v28  ;;  %v13809_v54 = vld [vmem:[%s15433_s5 + $0x38] sm:$0xff]   ;;  %v509_v58 = vld [vmem:[%s15424_s25 + $0x8] sm:$0xff]  ;;  %v578_v61 = vmul.f32 %v508_v56, %v508_v56  ;;  %v510_v63 = vld [vmem:[%s15424_s25 + $0x10] sm:$0xff]  ;;  %s14990_s17 = scalar_lea.vmem %s10957_s27, 128 }
  0xd9   : > { %v15442_v5 = vsub.s32 %v1966_v4, %v15439_v3  ;;  %12362 = vmatpush3.bf16.xpose.msra.mxu0 %v13809_v54  ;;  %v13810_v57 = vld [vmem:[%s15433_s5 + $0x78] sm:$0xff]   ;;  %v579_v62 = vmul.f32 %v509_v58, %v509_v58  ;;  %v512_v0 = vld [vmem:[%s15424_s25 + $0x20] sm:$0xff]  ;;  %v580_v1 = vmul.f32 %v510_v63, %v510_v63  ;;  %vm15081_vm0 = vmmov 0   ;;  %p14991_p0 = scmp.ne.s32.totalorder %s10957_s27, %s14990_s17 }
  0xda   : > { %18682 = vst [vmem:[#allocation27_spill] sm:$0xff] %v15459_v25  ;;  %12382 = vmatpush3.bf16.xpose.msra.mxu1 %v13810_v57  ;;  %12363 = vmatprep.subr.bf16.mxu0 %v18591_v55  ;;  %v582_v2 = vmul.f32 %v512_v0, %v512_v0  ;;  %v13817_v54 = vld [vmem:[%s15433_s5 + $0x60] sm:$0xff]   ;;  %vm8593_vm5 = vcmask 1041409   ;;  %vm8596_vm6 = vcmask 1042434   ;;  %vm8599_vm7 = vcmask 1043459  }
  0xdb   : > { %18681 = vst [vmem:[#allocation26_spill] sm:$0xff] %v15442_v5  ;;  %v9249_v16 = vrot.slane %v506_v7, %v15442_v5  ;;  %588 = vadd.xlane.f32.xlu1 %v571_v13  ;;  %v9256_v30 = vrot.slane %v9242_v22, %v15442_v5  ;;  %12383 = vmatprep.subr.bf16.mxu1 %v18591_v55  ;;  %v514_v7 = vld [vmem:[%s15424_s25 + $0x30] sm:$0xff]  ;;  %vm8602_vm10 = vcmask 1044484   ;;  %vm8605_vm11 = vcmask 1045509   ;;  %p18797_p3 = scmp.ne.s32.totalorder %s18795_s10, 0 }
  0xdc   : > { %528 = vadd.xlane.f32.xlu0 %v525_v14  ;;  %v9298_v4 = vrot.slane %v15448_v11, %v15442_v5  ;;  %v584_v9 = vmul.f32 %v514_v7, %v514_v7  ;;  %v513_v14 = vld [vmem:[%s15424_s25 + $0x28] sm:$0xff]  ;;  %v9291_v22 = vcombine.high %v15448_v11, %v15448_v11  ;;  %12377 = vmatprep.mubr.msk.bf16.mxu0 %vm15081_vm0, %v18591_v55  ;;  %vm8608_vm12 = vcmask 1046534   ;;  %s10954_s23 = scalar_lea.hbm %s18796_s14, %s11744_s12 }
  0xdd   : > { %v9257_v21 = vcombine.high %v9249_v16, %v9249_v16  ;;  %v15462_v26 = vrot.slane %v9249_v16, %v15442_v5  ;;  %v9258_v37 = vcombine.high %v9256_v30, %v9256_v30  ;;  %v15484_v40 = vrot.slane %v9256_v30, %v15442_v5  ;;  %12397 = vmatprep.mubr.msk.bf16.mxu1 %vm15081_vm0, %v18591_v55  ;;  %p14992_p5 = pnand %p14991_p0, %p18797_p3 }
  0xde   : > { %v15522_v10 = vrot.slane %v9298_v4, %v15442_v5  ;;  %v583_v16 = vmul.f32 %v513_v14, %v513_v14  ;;  %v9305_v30 = vrot.slane %v9291_v22, %v15442_v5  ;;  %vm8611_vm13 = vcmask 1047559  }
  0xdf   : > { %592 = vadd.xlane.f32.xlu1 %v573_v18  ;;  %v15466_v29 = vrot.slane %v9257_v21, %v15442_v5  ;;  %v9457_v33 = vrot.slane %v15462_v26, %v15459_v25  ;;  %v15473_v34 = vcombine.high %v15462_v26, %v15462_v26  ;;  %v15489_v43 = vrot.slane %v9258_v37, %v15442_v5  ;;  %p14993_p2 = pneg %p14992_p5 }
  0xe0   : > { %590 = vadd.xlane.f32.xlu0 %v572_v20  ;;  %v9473_v45 = vrot.slane %v15484_v40, %v15459_v25  ;;  %v15495_v46 = vcombine.high %v15484_v40, %v15484_v40  ;;  %v9489_v13 = vrot.slane %v15522_v10, %v15459_v25  ;;  %v15531_v18 = vcombine.high %v15522_v10, %v15522_v10 }
  0xe1   : > { %v9461_v35 = vrot.slane %v15466_v29, %v15459_v25  ;;  %v15479_v36 = vcombine.high %v15466_v29, %v15466_v29  ;;  %v9534_v38 = vmul.f32 %v9457_v33, %v516_v6  ;;  %v9465_v39 = vrot.slane %v15473_v34, %v15459_v25  ;;  %v511_v6 = vld [vmem:[%s15424_s25 + $0x18] sm:$0xff] }
  0xe2   : > { %v9477_v48 = vrot.slane %v15489_v43, %v15459_v25  ;;  %v15501_v49 = vcombine.high %v15489_v43, %v15489_v43  ;;  %v9538_v50 = vmul.f32 %v9473_v45, %v520_v19  ;;  %v9481_v53 = vrot.slane %v15495_v46, %v15459_v25 }
  0xe3   : > { %596 = vadd.xlane.f32.xlu1 %v575_v23  ;;  %v9535_v41 = vmul.f32 %v9461_v35, %v517_v8  ;;  %v9469_v42 = vrot.slane %v15479_v36, %v15459_v25  ;;  %v9536_v44 = vmul.f32 %v9465_v39, %v518_v15  ;;  %v581_v8 = vmul.f32 %v511_v6, %v511_v6  ;;  %v13812_v15 = vld [vmem:[%s15433_s5 + $0x70] sm:$0xff]   ;;  %v515_v23 = vld [vmem:[%s15424_s25 + $0x38] sm:$0xff]  ;;  %v13814_v35 = vld [vmem:[%s15433_s5 + $0x68] sm:$0xff]  }
  0xe4   : > { %594 = vadd.xlane.f32.xlu0 %v574_v27  ;;  %v9539_v51 = vmul.f32 %v9477_v48, %v521_v17  ;;  %v9485_v52 = vrot.slane %v15501_v49, %v15459_v25  ;;  %v9540_v60 = vmul.f32 %v9481_v53, %v522_v28  ;;  %v9542_v17 = vmul.f32 %v9489_v13, %v508_v56 }
  0xe5   : > { %v9537_v47 = vmul.f32 %v9469_v42, %v519_v12  ;;  %v13811_v12 = vld [vmem:[%s15433_s5 + $0x30] sm:$0xff]   ;;  %v9306_v19 = vcombine.high %v9298_v4, %v9298_v4  ;;  %12384 = vmatpush3.bf16.xpose.msra.mxu1 %v13812_v15  ;;  %v9497_v20 = vrot.slane %v15531_v18, %v15459_v25  ;;  %v9307_v33 = vcombine.high %v9305_v30, %v9305_v30 }
  0xe6   : > { %v9541_v59 = vmul.f32 %v9485_v52, %v523_v24  ;;  %12364 = vmatpush3.bf16.xpose.msra.mxu0 %v13811_v12  ;;  %12385 = vmatprep.subr.bf16.mxu1 %v18591_v55  ;;  %v585_v24 = vmul.f32 %v515_v23, %v515_v23  ;;  %v9712_v22 = vsub.f32 0.0, %v15473_v34 }
  0xe7   : > { %600 = vadd.xlane.f32.xlu1 %v577_v31  ;;  %12365 = vmatprep.subr.bf16.mxu0 %v18591_v55  ;;  %v15537_v21 = vrot.slane %v9306_v19, %v15442_v5  ;;  %v9544_v27 = vmul.f32 %v9497_v20, %v510_v63  ;;  %v13813_v31 = vld [vmem:[%s15433_s5 + $0x28] sm:$0xff]   ;;  %v18590_v19 = vsub.s32 1, %v15439_v3 }
  0xe8   : > { %598 = vadd.xlane.f32.xlu0 %v576_v32  ;;  %v13823_v63 = vld [vmem:[%s15433_s5 + $0x48] sm:$0xff]  }
  0xe9   : > { %v15545_v28 = vcombine.high %v15537_v21, %v15537_v21  ;;  %v9493_v32 = vrot.slane %v15537_v21, %v15459_v25 }
  0xeb   : > { %9552 = vadd.xlane.f32.xlu1 %v9535_v41  ;;  %v9501_v11 = vrot.slane %v15545_v28, %v15459_v25  ;;  %v9543_v37 = vmul.f32 %v9493_v32, %v509_v58  ;;  %v15558_v41 = vrot.slane %v9307_v33, %v15442_v5  ;;  %v13818_v58 = vld [vmem:[%s15433_s5 + $0x18] sm:$0xff]   ;;  %v18588_v33 = vsub.s32 3, %v15439_v3 }
  0xec   : > { %9550 = vadd.xlane.f32.xlu0 %v9534_v38  ;;  %v15555_v38 = vrot.slane %v9305_v30, %v15442_v5 }
  0xed   : > { %v9545_v39 = vmul.f32 %v9501_v11, %v511_v6  ;;  %12386 = vmatpush3.bf16.xpose.msra.mxu1 %v13814_v35 }
  0xee   : > { %12366 = vmatpush3.bf16.xpose.msra.mxu0 %v13813_v31  ;;  %v9505_v42 = vrot.slane %v15555_v38, %v15459_v25  ;;  %12387 = vmatprep.subr.bf16.mxu1 %v18591_v55 }
  0xef   : > { %9556 = vadd.xlane.f32.xlu1 %v9537_v47  ;;  %12367 = vmatprep.subr.bf16.mxu0 %v18591_v55  ;;  %v15568_v47 = vcombine.high %v15555_v38, %v15555_v38 }
  0xf0   : > { %9554 = vadd.xlane.f32.xlu0 %v9536_v44  ;;  %v9509_v44 = vrot.slane %v15558_v41, %v15459_v25  ;;  %v9546_v45 = vmul.f32 %v9505_v42, %v512_v0  ;;  %v13824_v0 = vld [vmem:[%s15433_s5] sm:$0xff]  }
  0xf1   : > { %v9513_v52 = vrot.slane %v15568_v47, %v15459_v25 }
  0xf2   : > { %v9547_v48 = vmul.f32 %v9509_v44, %v513_v14 }
  0xf3   : > { %9560 = vadd.xlane.f32.xlu1 %v9539_v51  ;;  %v13816_v51 = vld [vmem:[%s15433_s5 + $0x20] sm:$0xff]   ;;  %v9548_v56 = vmul.f32 %v9513_v52, %v514_v7  ;;  %v9711_v52 = vsub.f32 0.0, %v15466_v29 }
  0xf4   : > { %9558 = vadd.xlane.f32.xlu0 %v9538_v50  ;;  %v15572_v50 = vcombine.high %v15558_v41, %v15558_v41 }
  0xf5   : > { %12388 = vmatpush3.bf16.xpose.msra.mxu1 %v13817_v54 }
  0xf6   : > { %v9517_v53 = vrot.slane %v15572_v50, %v15459_v25  ;;  %12368 = vmatpush3.bf16.xpose.msra.mxu0 %v13816_v51  ;;  %12389 = vmatprep.subr.bf16.mxu1 %v18591_v55  ;;  %v18593_v51 = vsub.s32 5, %v15439_v3 }
  0xf7   : > { %9564 = vadd.xlane.f32.xlu1 %v9541_v59  ;;  %12369 = vmatprep.subr.bf16.mxu0 %v18591_v55  ;;  %v13819_v59 = vld [vmem:[%s15433_s5 + $0x58] sm:$0xff]  }
  0xf8   : > { %9562 = vadd.xlane.f32.xlu0 %v9540_v60  ;;  %v9549_v57 = vmul.f32 %v9517_v53, %v515_v23  ;;  %v13820_v60 = vld [vmem:[%s15433_s5 + $0x10] sm:$0xff]   ;;  %v9713_v23 = vsub.f32 0.0, %v15479_v36 }
  0xfb   : > { %604 = vadd.xlane.f32.xlu1 %v579_v62  ;;  %v13822_v62 = vld [vmem:[%s15433_s5 + $0x8] sm:$0xff]  }
  0xfc   : > { %602 = vadd.xlane.f32.xlu0 %v578_v61  ;;  %v13821_v61 = vld [vmem:[%s15433_s5 + $0x50] sm:$0xff]  }
  0xfd   : > { %12390 = vmatpush3.bf16.xpose.msra.mxu1 %v13819_v59  ;;  %v9715_v59 = vsub.f32 0.0, %v15489_v43 }
  0xfe   : > { %12370 = vmatpush3.bf16.xpose.msra.mxu0 %v13818_v58  ;;  %12391 = vmatprep.subr.bf16.mxu1 %v18591_v55  ;;  %v9710_v58 = vsub.f32 0.0, %v15462_v26 }
  0xff   : > { %608 = vadd.xlane.f32.xlu1 %v581_v8  ;;  %12371 = vmatprep.subr.bf16.mxu0 %v18591_v55 }
 0x100   : > { %606 = vadd.xlane.f32.xlu0 %v580_v1  ;;  %v13825_v1 = vld [vmem:[%s15433_s5 + $0x40] sm:$0xff]  }
 0x103   : > { %612 = vadd.xlane.f32.xlu1 %v583_v16 }
 0x104   : > { %610 = vadd.xlane.f32.xlu0 %v582_v2 }
 0x105   : > { %12392 = vmatpush3.bf16.xpose.msra.mxu1 %v13821_v61 }
 0x106   : > { %12372 = vmatpush3.bf16.xpose.msra.mxu0 %v13820_v60  ;;  %12393 = vmatprep.subr.bf16.mxu1 %v18591_v55 }
 0x107   : > { %616 = vadd.xlane.f32.xlu1 %v585_v24  ;;  %12373 = vmatprep.subr.bf16.mxu0 %v18591_v55  ;;  %v18589_v24 = vsub.s32 2, %v15439_v3 }
 0x108   : > { %614 = vadd.xlane.f32.xlu0 %v584_v9 }
 0x10b   : > { %9568 = vadd.xlane.f32.xlu1 %v9543_v37  ;;  %v9717_v37 = vsub.f32 0.0, %v15501_v49 }
 0x10c   : > { %9566 = vadd.xlane.f32.xlu0 %v9542_v17 }
 0x10d   : > { %12394 = vmatpush3.bf16.xpose.msra.mxu1 %v13823_v63 }
 0x10e   : > { %12374 = vmatpush3.bf16.xpose.msra.mxu0 %v13822_v62  ;;  %12395 = vmatprep.subr.bf16.mxu1 %v18591_v55 }
 0x10f   : > { %9574 = vadd.xlane.f32.xlu1 %v9546_v45  ;;  %12375 = vmatprep.subr.bf16.mxu0 %v18591_v55 }
 0x110   : > { %9570 = vadd.xlane.f32.xlu0 %v9544_v27  ;;  %v9716_v27 = vsub.f32 0.0, %v15495_v46 }
 0x113   : > { %9578 = vadd.xlane.f32.xlu1 %v9548_v56  ;;  %v18594_v56 = vsub.s32 7, %v15439_v3 }
 0x114   : > { %9572 = vadd.xlane.f32.xlu0 %v9545_v39  ;;  %v18587_v39 = vsub.s32 4, %v15439_v3 }
 0x115   : > { %12396 = vmatpush3.bf16.xpose.msra.mxu1 %v13825_v1 }
 0x116   : > { %12376 = vmatpush3.bf16.xpose.msra.mxu0 %v13824_v0  ;;  %12421 = vmatprep.subr.bf16.mxu1 %v18591_v55  ;;  %v9714_v0 = vsub.f32 0.0, %v15484_v40 }
 0x117   : > { %12401 = vmatprep.subr.bf16.mxu0 %v18591_v55 }
 0x118   : > { %9576 = vadd.xlane.f32.xlu0 %v9547_v48  ;;  %v18595_v48 = vsub.s32 6, %v15439_v3 }
 0x11c   : > { %9580 = vadd.xlane.f32.xlu0 %v9549_v57 }
 0x160   : > { %v15602_v2 = vpop.xlane.xlu1 %586 }
 0x161   : > { %v15604_v4 = vpop.xlane.xlu0 %526 }
 0x162   : > { %18683 = vst [vmem:[#allocation28_spill] sm:$0xff] %v15604_v4  ;;  %v15634_v11 = vrot.slane %v15604_v4, %v18590_v19  ;;  %v15642_v42 = vrot.slane %v15604_v4, %v15459_v25  ;;  %v15649_v45 = vrot.slane %v15604_v4, %v18589_v24  ;;  %v15661_v60 = vmax.f32 %v15604_v4, 1e-15 }
 0x163   : > { %v15666_v61 = vrot.slane %v15604_v4, %v18588_v33  ;;  %v15671_v29 = vrot.slane %v15604_v4, %v18587_v39 }
 0x164   : > { %v15606_v6 = vpop.xlane.xlu1 %588  ;;  %18685 = vst [vmem:[#allocation30_spill] sm:$0xff] %v15634_v11  ;;  %18686 = vst [vmem:[#allocation31_spill] sm:$0xff] %v15642_v42  ;;  %v9630_v62 = vmul.f32 %v15642_v42, %v15602_v2  ;;  %14322 = vrsqrt.f32 %v15661_v60  ;;  %vm534_vm1 = vcmp.eq.f32.partialorder %v15661_v60, inf  ;;  %vm536_vm2 = vcmp.eq.f32.partialorder %v15661_v60, 0.0 }
 0x165   : > { %v15608_v7 = vpop.xlane.xlu0 %528  ;;  %v9631_v44 = vmul.f32 %v15634_v11, %v15606_v6  ;;  %18687 = vst [vmem:[#allocation32_spill] sm:$0xff] %v15649_v45  ;;  %18688 = vst [vmem:[#allocation33_spill] sm:$0xff] %v15666_v61  ;;  %v18599_v36 = vsub.f32 1.0, %v15666_v61 }
 0x166   : > { %18684 = vst [vmem:[#allocation29_spill] sm:$0xff] %v15608_v7  ;;  %18689 = vst [vmem:[#allocation34_spill] sm:$0xff] %v15671_v29 }
 0x168   : > { %v15610_v8 = vpop.xlane.xlu1 %592 }
 0x169   : > { %v15612_v9 = vpop.xlane.xlu0 %590  ;;  %v9633_v1 = vmul.f32 %v15666_v61, %v15610_v8 }
 0x16a   : > { %v9632_v40 = vmul.f32 %v15649_v45, %v15612_v9 }
 0x16c   : > { %v15614_v12 = vpop.xlane.xlu1 %596 }
 0x16d   : > { %v15616_v13 = vpop.xlane.xlu0 %594 }
 0x170   : > { %v15618_v14 = vpop.xlane.xlu1 %600 }
 0x171   : > { %v15620_v15 = vpop.xlane.xlu0 %598 }
 0x174   : > { %v9553_v16 = vpop.xlane.xlu1 %9552 }
 0x175   : > { %v9551_v17 = vpop.xlane.xlu0 %9550  ;;  %v15623_v20 = vmul.f32 2.0, %v9553_v16 }
 0x176   : > { %v15629_v30 = vmul.f32 2.0, %v9551_v17 }
 0x177   : > { %v9599_v35 = vsub.f32 1.0, %v15623_v20 }
 0x178   : > { %v9557_v31 = vpop.xlane.xlu1 %9556  ;;  %v9598_v53 = vsub.f32 1.0, %v15629_v30 }
 0x179   : > { %v9555_v32 = vpop.xlane.xlu0 %9554  ;;  %v15655_v54 = vmul.f32 2.0, %v9557_v31  ;;  %v9647_v57 = vadd.f32 %v9631_v44, %v9599_v35  ;;  %v9634_v31 = vmul.f32 %v15671_v29, %v15616_v13 }
 0x17a   : > { %v9646_v16 = vadd.f32 %v9630_v62, %v9598_v53  ;;  %v9584_v20 = vmul.f32 2.0, %v9555_v32  ;;  %v15690_v32 = vrot.slane %v15604_v4, %v18593_v51  ;;  %v9745_v51 = vrot.slane %v9710_v58, %v15459_v25 }
 0x17b   : > { %v9601_v17 = vsub.f32 1.0, %v15655_v54  ;;  %v9663_v30 = vmax.f32 %v9647_v57, 1e-15 }
 0x17c   : > { %v9561_v63 = vpop.xlane.xlu1 %9560  ;;  %v9600_v33 = vsub.f32 1.0, %v9584_v20  ;;  %v9662_v55 = vmax.f32 %v9646_v16, 1e-15  ;;  %18690 = vst [vmem:[#allocation35_spill] sm:$0xff] %v15690_v32 }
 0x17d   : > { %v9559_v26 = vpop.xlane.xlu0 %9558  ;;  %v9649_v39 = vadd.f32 %v9633_v1, %v9601_v17  ;;  %v15682_v24 = vmul.f32 2.0, %v9561_v63  ;;  %14324 = vrcp.f32 %v9663_v30 }
 0x17e   : > { %v9586_v19 = vmul.f32 2.0, %v9559_v26  ;;  %v9648_v1 = vadd.f32 %v9632_v40, %v9600_v33  ;;  %v9635_v26 = vmul.f32 %v15690_v32, %v15614_v12  ;;  %14326 = vrcp.f32 %v9662_v55 }
 0x17f   : > { %v9665_v62 = vmax.f32 %v9649_v39, 1e-15  ;;  %v9603_v63 = vsub.f32 1.0, %v15682_v24  ;;  %v9749_v39 = vrot.slane %v9711_v52, %v15459_v25  ;;  %v9615_v24 = vadd.f32 %v9599_v35, %v15606_v6 }
 0x180   : > { %v9565_v54 = vpop.xlane.xlu1 %9564  ;;  %v9602_v20 = vsub.f32 1.0, %v9586_v19  ;;  %v9664_v30 = vmax.f32 %v9648_v1, 1e-15  ;;  %v15707_v19 = vrot.slane %v15604_v4, %v18594_v56  ;;  %v15712_v52 = vrot.slane %v15604_v4, %v18595_v48 }
 0x181   : > { %v9563_v57 = vpop.xlane.xlu0 %9562  ;;  %v15698_v16 = vmul.f32 2.0, %v9565_v54  ;;  %v9651_v40 = vadd.f32 %v9635_v26, %v9603_v63  ;;  %14328 = vrcp.f32 %v9665_v62  ;;  %v9757_v55 = vrot.slane %v9713_v23, %v15459_v25 }
 0x182   : > { %v15700_v43 = vmul.f32 2.0, %v9563_v57  ;;  %v9650_v44 = vadd.f32 %v9634_v31, %v9602_v20  ;;  %18691 = vst [vmem:[#allocation36_spill] sm:$0xff] %v15707_v19  ;;  %18692 = vst [vmem:[#allocation37_spill] sm:$0xff] %v15712_v52  ;;  %14330 = vrcp.f32 %v9664_v30  ;;  %v9637_v31 = vmul.f32 %v15707_v19, %v15618_v14 }
 0x183   : > { %v9667_v58 = vmax.f32 %v9651_v40, 1e-15  ;;  %v9605_v35 = vsub.f32 1.0, %v15698_v16  ;;  %v18600_v62 = vsub.f32 1.0, %v15634_v11  ;;  %v9636_v57 = vmul.f32 %v15712_v52, %v15620_v15 }
 0x184   : > { %v9666_v54 = vmax.f32 %v9650_v44, 1e-15  ;;  %v9614_v1 = vadd.f32 %v9598_v53, %v15602_v2  ;;  %v9604_v26 = vsub.f32 1.0, %v15700_v43  ;;  %v9823_v23 = vmul.f32 %v9749_v39, %v9615_v24 }
 0x185   : > { %v9753_v44 = vrot.slane %v9712_v22, %v15459_v25  ;;  %14332 = vrcp.f32 %v9667_v58  ;;  %v9653_v30 = vadd.f32 %v9637_v31, %v9605_v35  ;;  %v9616_v40 = vadd.f32 %v9600_v33, %v15612_v9  ;;  %v14764_v22 = vld [vmem:[%s15426_s6 + $0x8] sm:$0xff]  ;;  %v14323_v58 = vpop.eup %14322  ;;  %v14765_v31 = vld [vmem:[%s15426_s6] sm:$0xff] }
 0x186   : > { %v9765_v56 = vrot.slane %v9715_v59, %v15459_v25  ;;  %14334 = vrcp.f32 %v9666_v54  ;;  %v9652_v53 = vadd.f32 %v9636_v57, %v9604_v26  ;;  %v9761_v43 = vrot.slane %v9714_v0, %v15459_v25 }
 0x187   : > { %v15737_v39 = vrot.slane %v9717_v37, %v15459_v25  ;;  %v9669_v34 = vmax.f32 %v9653_v30, 1e-15  ;;  %v9839_v24 = vmul.f32 %v14764_v22, %v18600_v62  ;;  %v9822_v33 = vmul.f32 %v9745_v51, %v9614_v1 }
 0x188   : > { %v9617_v59 = vadd.f32 %v9601_v17, %v15610_v8  ;;  %v9769_v0 = vrot.slane %v9716_v27, %v15459_v25  ;;  %v9668_v54 = vmax.f32 %v9652_v53, 1e-15  ;;  %v9618_v49 = vadd.f32 %v9602_v20, %v15616_v13  ;;  %v14766_v17 = vld [vmem:[%s15426_s6 + $0x10] sm:$0xff]  ;;  %v14767_v20 = vld [vmem:[%s15426_s6 + $0x18] sm:$0xff] }
 0x189   : > { %14336 = vrcp.f32 %v9669_v34  ;;  %v9855_v37 = vadd.f32 %v9839_v24, %v9823_v23  ;;  %v18693_v57 = vsub.f32 1.0, %v15642_v42  ;;  %v9824_v22 = vmul.f32 %v9753_v44, %v9616_v40 }
 0x18a   : > { %v14325_v48 = vpop.eup %14324  ;;  %v18598_v51 = vsub.f32 1.0, %v15690_v32  ;;  %14338 = vrcp.f32 %v9668_v54  ;;  %v18694_v1 = vsub.f32 1.0, %v15649_v45  ;;  %v9619_v27 = vadd.f32 %v9603_v63, %v15614_v12  ;;  %v13922_v45 = vld [vmem:[%s15433_s5 + $0x3b8] sm:$0xff]  }
 0x18b   : > { %v9838_v30 = vmul.f32 %v14765_v31, %v18693_v57  ;;  %v15755_v53 = vmul.f32 %v14325_v48, %v9855_v37  ;;  %v9841_v23 = vmul.f32 %v14767_v20, %v18599_v36  ;;  %v533_v34 = vmul.f32 %v14323_v58, %v15661_v60  ;;  %v14327_v40 = vpop.eup %14326 }
 0x18c   : > { %v9840_v46 = vmul.f32 %v14766_v17, %v18694_v1  ;;  %v9825_v24 = vmul.f32 %v9757_v55, %v9617_v59  ;;  %v537_v44 = vand.u32 2147483648, %v15661_v60  ;;  %v9826_v54 = vmul.f32 %v9761_v43, %v9618_v49  ;;  %v15772_v59 = vpop.xlane.xlu0 %602  ;;  %v14768_v17 = vld [vmem:[%s15426_s6 + $0x20] sm:$0xff] }
 0x18d   : > { %18695 = vst [vmem:[#allocation38_spill] sm:$0xff] %v15755_v53  ;;  %v9854_v31 = vadd.f32 %v9838_v30, %v9822_v33  ;;  %v9887_v63 = vmul.f32 %v15755_v53, %v15755_v53  ;;  %v535_v48 = vsel %vm534_vm1, %v15661_v60, %v533_v34  ;;  %v9620_v57 = vadd.f32 %v9604_v26, %v15620_v15 }
 0x18e   : > { %v14329_v37 = vpop.eup %14328  ;;  %v9856_v55 = vadd.f32 %v9840_v46, %v9824_v22  ;;  %v15770_v33 = vsel %vm536_vm2, %v537_v44, %v535_v48  ;;  %v18597_v43 = vsub.f32 1.0, %v15712_v52  ;;  %v9827_v49 = vmul.f32 %v9765_v56, %v9619_v27  ;;  %v14769_v56 = vld [vmem:[%s15426_s6 + $0x28] sm:$0xff]  ;;  %v13859_v52 = vld [vmem:[%s15433_s5 + $0x1f8] sm:$0xff]  }
 0x18f   : > { %v15768_v58 = vmul.f32 %v14327_v40, %v9854_v31  ;;  %v14331_v30 = vpop.eup %14330  ;;  %9904 = vadd.xlane.f32.xlu1 %v9887_v63  ;;  %v18697_v1 = vsub.f32 1.0, %v15671_v29  ;;  %v11159_v20 = vclamps-f32 %v15770_v33, 0.999999  ;;  %v9621_v26 = vadd.f32 %v9605_v35, %v15618_v14 }
 0x190   : > { %v15784_v46 = vmul.f32 %v14331_v30, %v9856_v55  ;;  %v9857_v34 = vadd.f32 %v9841_v23, %v9825_v24  ;;  %v18596_v31 = vsub.f32 1.0, %v15707_v19  ;;  %v9843_v27 = vmul.f32 %v14769_v56, %v18598_v51  ;;  %v15794_v55 = vpop.xlane.xlu0 %606 }
 0x191   : > { %18696 = vst [vmem:[#allocation39_spill] sm:$0xff] %v15768_v58  ;;  %v9842_v60 = vmul.f32 %v14768_v17, %v18697_v1  ;;  %v9886_v22 = vmul.f32 %v15768_v58, %v15768_v58  ;;  %v552_v44 = vsub.f32 1.0, %v11159_v20  ;;  %v9828_v63 = vmul.f32 %v9769_v0, %v9620_v57  ;;  %v14770_v1 = vld [vmem:[%s15426_s6 + $0x30] sm:$0xff]  ;;  %v14771_v57 = vld [vmem:[%s15426_s6 + $0x38] sm:$0xff] }
 0x192   : > { %18698 = vst [vmem:[#allocation40_spill] sm:$0xff] %v15784_v46  ;;  %v14333_v40 = vpop.eup %14332  ;;  %v9888_v16 = vmul.f32 %v15784_v46, %v15784_v46  ;;  %v15792_v35 = vmul.f32 %v14329_v37, %v9857_v34  ;;  %v9829_v24 = vmul.f32 %v15737_v39, %v9621_v26  ;;  %v9859_v17 = vadd.f32 %v9843_v27, %v9827_v49  ;;  %v15811_v34 = vpop.xlane.xlu1 %604 }
 0x193   : > { %9902 = vadd.xlane.f32.xlu0 %v9886_v22  ;;  %v9858_v48 = vadd.f32 %v9842_v60, %v9826_v54  ;;  %v14335_v23 = vpop.eup %14334  ;;  %14340 = vrcp.f32 %v552_v44  ;;  %v9844_v0 = vmul.f32 %v14770_v1, %v18597_v43  ;;  %v9845_v37 = vmul.f32 %v14771_v57, %v18596_v31 }
 0x194   : > { %18699 = vst [vmem:[#allocation41_spill] sm:$0xff] %v15792_v35  ;;  %9906 = vadd.xlane.f32.xlu1 %v9888_v16  ;;  %v9889_v54 = vmul.f32 %v15792_v35, %v15792_v35  ;;  %v15809_v39 = vmul.f32 %v14333_v40, %v9859_v17  ;;  %v15813_v49 = vpop.xlane.xlu0 %610 }
 0x195   : > { %v15797_v30 = vmul.f32 %v14335_v23, %v9858_v48  ;;  %v9860_v26 = vadd.f32 %v9844_v0, %v9828_v63  ;;  %v9861_v44 = vadd.f32 %v9845_v37, %v9829_v24  ;;  %v550_v0 = vadd.f32 1.0, %v11159_v20 }
 0x196   : > { %v14337_v22 = vpop.eup %14336  ;;  %18701 = vst [vmem:[#allocation43_spill] sm:$0xff] %v15809_v39  ;;  %v9891_v16 = vmul.f32 %v15809_v39, %v15809_v39  ;;  %v15823_v40 = vpop.xlane.xlu1 %608  ;;  %v13828_v39 = vld [vmem:[%s15433_s5 + $0xb0] sm:$0xff]  }
 0x197   : > { %18700 = vst [vmem:[#allocation42_spill] sm:$0xff] %v15797_v30  ;;  %v9890_v60 = vmul.f32 %v15797_v30, %v15797_v30  ;;  %v14339_v56 = vpop.eup %14338  ;;  %v15821_v23 = vmul.f32 %v14337_v22, %v9861_v44  ;;  %v13835_v30 = vld [vmem:[%s15433_s5 + $0xd8] sm:$0xff]  }
 0x198   : > { %9908 = vadd.xlane.f32.xlu1 %v9889_v54  ;;  %v15815_v27 = vmul.f32 %v14339_v56, %v9860_v26  ;;  %v15825_v63 = vpop.xlane.xlu0 %614 }
 0x199   : > { %9910 = vadd.xlane.f32.xlu0 %v9890_v60  ;;  %18703 = vst [vmem:[#allocation45_spill] sm:$0xff] %v15821_v23  ;;  %v9893_v17 = vmul.f32 %v15821_v23, %v15821_v23  ;;  %v9721_v60 = vsub.f32 0.0, %v15545_v28  ;;  %v9724_v28 = vsub.f32 0.0, %v15568_v47 }
 0x19a   : > { %18702 = vst [vmem:[#allocation44_spill] sm:$0xff] %v15815_v27  ;;  %v9892_v48 = vmul.f32 %v15815_v27, %v15815_v27  ;;  %v15829_v1 = vpop.xlane.xlu1 %612 }
 0x19b   : > { %v9801_v51 = vrot.slane %v9724_v28, %v15459_v25 }
 0x19c   : > { %9912 = vadd.xlane.f32.xlu1 %v9891_v16  ;;  %v15831_v24 = vpop.xlane.xlu0 %9566  ;;  %v9789_v16 = vrot.slane %v9721_v60, %v15459_v25  ;;  %v9725_v60 = vsub.f32 0.0, %v15572_v50 }
 0x19d   : > { %9914 = vadd.xlane.f32.xlu0 %v9892_v48 }
 0x19e   : > { %v15833_v54 = vpop.xlane.xlu1 %616 }
 0x1a0   : > { %v14341_v57 = vpop.eup %14340  ;;  %9916 = vadd.xlane.f32.xlu1 %v9893_v17  ;;  %v15835_v22 = vpop.xlane.xlu0 %9570 }
 0x1a1   : > { %v555_v37 = vmul.f32 %v14341_v57, %v550_v0 }
 0x1a2   : > { %v15838_v26 = vpop.xlane.xlu1 %9568 }
 0x1a3   : > { %14342 = vlog2.f32 %v555_v37 }
 0x1a4   : > { %v9573_v56 = vpop.xlane.xlu0 %9572  ;;  %14344 = vrcp.f32 %v15770_v33 }
 0x1a5   : > { %v15841_v44 = vmul.f32 2.0, %v9573_v56 }
 0x1a6   : > { %v15845_v48 = vpop.xlane.xlu1 %9574 }
 0x1a7   : > { %v18601_v20 = vsub.f32 1.0, %v15841_v44 }
 0x1a8   : > { %v15847_v17 = vpop.xlane.xlu0 %9576 }
 0x1a9   : > { %v9625_v0 = vadd.f32 %v18601_v20, %v15823_v40 }
 0x1aa   : > { %v9579_v37 = vpop.xlane.xlu1 %9578 }
 0x1ab   : > { %v15853_v57 = vmul.f32 %v9789_v16, %v9625_v0  ;;  %v15855_v33 = vmul.f32 2.0, %v9579_v37  ;;  %v9805_v0 = vrot.slane %v9725_v60, %v15459_v25 }
 0x1ac   : > { %v9581_v31 = vpop.xlane.xlu0 %9580 }
 0x1ad   : > { %v18605_v36 = vsub.f32 1.0, %v15855_v33  ;;  %v15860_v62 = vmul.f32 2.0, %v9581_v31 }
 0x1af   : > { %v9628_v47 = vadd.f32 %v18605_v36, %v15825_v63  ;;  %v18607_v37 = vsub.f32 1.0, %v15860_v62 }
 0x1b0   : > { %v14343_v56 = vpop.eup %14342 }
 0x1b1   : > { %v559_v43 = vmul.f32 0.6931472, %v14343_v56  ;;  %v14345_v16 = vpop.eup %14344  ;;  %v15867_v50 = vmul.f32 %v9801_v51, %v9628_v47  ;;  %v9629_v28 = vadd.f32 %v18607_v37, %v15833_v54  ;;  %v14772_v56 = vld [vmem:[%s15409_s16] sm:$0xff] }
 0x1b3   : > { %v562_v20 = vmul.f32 0.5, %v559_v43  ;;  %v15873_v43 = vmul.f32 %v9805_v0, %v9629_v28 }
 0x1b5   : > { %v565_v4 = vmul.f32 %v14345_v16, %v562_v20 }
 0x1b7   : > { %v568_v31 = vmul.f32 %v14772_v56, %v565_v4  ;;  %v13826_v56 = vld [vmem:[%s15433_s5 + $0xb8] sm:$0xff]  }
 0x1b9   : > { %v1970_v23 = vrot.slane %v568_v31, %v15442_v5  ;;  %v1963_v27 = vcombine.high %v568_v31, %v568_v31  ;;  %v13831_v31 = vld [vmem:[%s15433_s5 + $0xe8] sm:$0xff]  }
 0x1bb   : > { %v1978_v36 = vcombine.high %v1970_v23, %v1970_v23  ;;  %v1986_v58 = vrot.slane %v1970_v23, %v15442_v5 }
 0x1bd   : > { %v2000_v60 = vrot.slane %v1978_v36, %v15442_v5  ;;  %v2008_v20 = vcombine.high %v1986_v58, %v1986_v58  ;;  %v2015_v47 = vrot.slane %v1986_v58, %v15459_v25  ;;  %v18704_v36 = vmov 0.0  }
 0x1bf   : > { %v2010_v51 = vcombine.high %v2000_v60, %v2000_v60  ;;  %v15880_v16 = vrot.slane %v2000_v60, %v15459_v25  ;;  %v15884_v0 = vrot.slane %v2008_v20, %v15459_v25 }
 0x1c1   : > { %v2052_v4 = vpack.c.bf16 %v15880_v16, %v2015_v47  ;;  %v15887_v28 = vrot.slane %v2010_v51, %v15459_v25 }
 0x1c3   : > { %v15890_v23 = vrot.slane %v2052_v4, %v15442_v5  ;;  %v13827_v4 = vld [vmem:[%s15433_s5 + $0xf8] sm:$0xff]  }
 0x1c5   : > { %v15896_v58 = vrot.slane %v15890_v23, %v15442_v5 }
 0x1c7   : > { %v11181_v60 = vpack.i.b16 %v15896_v58, %v15896_v58  ;;  %v2257_v20 = vunpack.i.h.s16 %v15896_v58 }
 0x1c9   : > { %v2324_v51 = vrot.slane %v11181_v60, %v15459_v25  ;;  %v2414_v47 = vpack.i.b16 %v2257_v20, %v2257_v20  ;;  %v13829_v60 = vld [vmem:[%s15433_s5 + $0xf0] sm:$0xff]   ;;  %v1977_v20 = vrot.slane %v1963_v27, %v15442_v5 }
 0x1cb   : > { %12378 = vmatmul.mubr.bf16.vlgmr.msra.gmra.mxu0 %v2324_v51  ;;  %v2418_v37 = vrot.slane %v2414_v47, %v15459_v25  ;;  %v15922_v47 = vrot.slane %v1977_v20, %v15442_v5 }
 0x1cc   : > { %12402 = vmatpush3.bf16.xpose.msra.mxu0 %v13826_v56  ;;  %12417 = vmatprep.mubr.msk.bf16.mxu0 %vm15081_vm0, %v18704_v36  ;;  %v1979_v56 = vcombine.high %v1977_v20, %v1977_v20 }
 0x1cd   : > { %12398 = vmatmul.mubr.bf16.vlgmr.msra.gmra.mxu1 %v2418_v37  ;;  %12403 = vmatprep.subr.bf16.mxu0 %v18704_v36  ;;  %v13830_v37 = vld [vmem:[%s15433_s5 + $0xa8] sm:$0xff]  }
 0x1ce   : > { %12422 = vmatpush3.bf16.xpose.msra.mxu1 %v13827_v4  ;;  %12437 = vmatprep.mubr.msk.bf16.mxu1 %vm15081_vm0, %v18704_v36  ;;  %v15919_v51 = vrot.slane %v1979_v56, %v15442_v5  ;;  %v13833_v4 = vld [vmem:[%s15433_s5 + $0xe0] sm:$0xff]   ;;  %v13834_v56 = vld [vmem:[%s15433_s5 + $0x98] sm:$0xff]  }
 0x1cf   : > { %12423 = vmatprep.subr.bf16.mxu1 %v18704_v36 }
 0x1d0   : > { %v2011_v27 = vcombine.high %v15919_v51, %v15919_v51 }
 0x1d4   : > { %12404 = vmatpush3.bf16.xpose.msra.mxu0 %v13828_v39  ;;  %v13832_v39 = vld [vmem:[%s15433_s5 + $0xa0] sm:$0xff]  }
 0x1d5   : > { %12405 = vmatprep.subr.bf16.mxu0 %v18704_v36 }
 0x1d6   : > { %12424 = vmatpush3.bf16.xpose.msra.mxu1 %v13829_v60  ;;  %v2009_v60 = vcombine.high %v15922_v47, %v15922_v47 }
 0x1d7   : > { %12425 = vmatprep.subr.bf16.mxu1 %v18704_v36 }
 0x1d8   : > { %v15936_v20 = vrot.slane %v2009_v60, %v15459_v25  ;;  %v13839_v60 = vld [vmem:[%s15433_s5 + $0xc8] sm:$0xff]  }
 0x1dc   : > { %12406 = vmatpush3.bf16.xpose.msra.mxu0 %v13830_v37  ;;  %v15933_v37 = vrot.slane %v2011_v27, %v15459_v25  ;;  %v13837_v27 = vld [vmem:[%s15433_s5 + $0xd0] sm:$0xff]  }
 0x1dd   : > { %12407 = vmatprep.subr.bf16.mxu0 %v18704_v36 }
 0x1de   : > { %12426 = vmatpush3.bf16.xpose.msra.mxu1 %v13831_v31 }
 0x1df   : > { %12427 = vmatprep.subr.bf16.mxu1 %v18704_v36 }
 0x1e4   : > { %12408 = vmatpush3.bf16.xpose.msra.mxu0 %v13832_v39  ;;  %v13836_v39 = vld [vmem:[%s15433_s5 + $0x90] sm:$0xff]  }
 0x1e5   : > { %12409 = vmatprep.subr.bf16.mxu0 %v18704_v36 }
 0x1e6   : > { %12428 = vmatpush3.bf16.xpose.msra.mxu1 %v13833_v4  ;;  %v13838_v4 = vld [vmem:[%s15433_s5 + $0x88] sm:$0xff]  }
 0x1e7   : > { %12429 = vmatprep.subr.bf16.mxu1 %v18704_v36 }
 0x1ec   : > { %12410 = vmatpush3.bf16.xpose.msra.mxu0 %v13834_v56  ;;  %v2075_v56 = vcombine.high %v15890_v23, %v15890_v23  ;;  %v13842_v23 = vld [vmem:[%s15433_s5 + $0x138] sm:$0xff]  }
 0x1ed   : > { %12411 = vmatprep.subr.bf16.mxu0 %v18704_v36 }
 0x1ee   : > { %12430 = vmatpush3.bf16.xpose.msra.mxu1 %v13835_v30  ;;  %v13840_v30 = vld [vmem:[%s15433_s5 + $0x80] sm:$0xff]  }
 0x1ef   : > { %12431 = vmatprep.subr.bf16.mxu1 %v18704_v36 }
 0x1f4   : > { %12412 = vmatpush3.bf16.xpose.msra.mxu0 %v13836_v39  ;;  %v15958_v39 = vrot.slane %v2075_v56, %v15442_v5  ;;  %v13843_v56 = vld [vmem:[%s15433_s5 + $0x178] sm:$0xff]  }
 0x1f5   : > { %12413 = vmatprep.subr.bf16.mxu0 %v18704_v36 }
 0x1f6   : > { %12432 = vmatpush3.bf16.xpose.msra.mxu1 %v13837_v27  ;;  %v13841_v27 = vld [vmem:[%s15433_s5 + $0xc0] sm:$0xff]   ;;  %v2259_v31 = vunpack.i.h.s16 %v15958_v39  ;;  %v11198_v35 = vpack.i.b16 %v15958_v39, %v15958_v39 }
 0x1f7   : > { %12433 = vmatprep.subr.bf16.mxu1 %v18704_v36 }
 0x1fc   : > { %12414 = vmatpush3.bf16.xpose.msra.mxu0 %v13838_v4  ;;  %v2602_v4 = vpack.i.b16 %v2259_v31, %v2259_v31  ;;  %v13845_v31 = vld [vmem:[%s15433_s5 + $0x170] sm:$0xff]  }
 0x1fd   : > { %12415 = vmatprep.subr.bf16.mxu0 %v18704_v36 }
 0x1fe   : > { %12434 = vmatpush3.bf16.xpose.msra.mxu1 %v13839_v60  ;;  %v2512_v60 = vrot.slane %v11198_v35, %v15459_v25  ;;  %v13844_v35 = vld [vmem:[%s15433_s5 + $0x130] sm:$0xff]  }
 0x1ff   : > { %12435 = vmatprep.subr.bf16.mxu1 %v18704_v36 }
 0x204   : > { %12416 = vmatpush3.bf16.xpose.msra.mxu0 %v13840_v30  ;;  %v2606_v30 = vrot.slane %v2602_v4, %v15459_v25  ;;  %v13848_v4 = vld [vmem:[%s15433_s5 + $0x120] sm:$0xff]  }
 0x205   : > { %12441 = vmatprep.subr.bf16.mxu0 %v18704_v36 }
 0x206   : > { %12436 = vmatpush3.bf16.xpose.msra.mxu1 %v13841_v27  ;;  %v13846_v27 = vld [vmem:[%s15433_s5 + $0x128] sm:$0xff]  }
 0x207   : > { %12461 = vmatprep.subr.bf16.mxu1 %v18704_v36 }
 0x20b   : > { %12418 = vmatmul.mubr.bf16.vlgmr.msra.gmra.mxu0 %v2512_v60  ;;  %v13849_v60 = vld [vmem:[%s15433_s5 + $0x160] sm:$0xff]  }
 0x20c   : > { %12442 = vmatpush3.bf16.xpose.msra.mxu0 %v13842_v23  ;;  %12457 = vmatprep.mubr.msk.bf16.mxu0 %vm15081_vm0, %v18704_v36  ;;  %v13847_v23 = vld [vmem:[%s15433_s5 + $0x168] sm:$0xff]  }
 0x20d   : > { %12438 = vmatmul.mubr.bf16.vlgmr.msra.gmra.mxu1 %v2606_v30  ;;  %12443 = vmatprep.subr.bf16.mxu0 %v18704_v36  ;;  %v13851_v30 = vld [vmem:[%s15433_s5 + $0x158] sm:$0xff]  }
 0x20e   : > { %12462 = vmatpush3.bf16.xpose.msra.mxu1 %v13843_v56  ;;  %12477 = vmatprep.mubr.msk.bf16.mxu1 %vm15081_vm0, %v18704_v36  ;;  %v13850_v56 = vld [vmem:[%s15433_s5 + $0x118] sm:$0xff]  }
 0x20f   : > { %12463 = vmatprep.subr.bf16.mxu1 %v18704_v36 }
 0x214   : > { %12444 = vmatpush3.bf16.xpose.msra.mxu0 %v13844_v35  ;;  %v618_v35 = vmax.f32 %v15602_v2, 1e-15  ;;  %v13856_v2 = vld [vmem:[%s15433_s5 + $0x100] sm:$0xff]  }
 0x215   : > { %12445 = vmatprep.subr.bf16.mxu0 %v18704_v36 }
 0x216   : > { %12464 = vmatpush3.bf16.xpose.msra.mxu1 %v13845_v31  ;;  %v13852_v31 = vld [vmem:[%s15433_s5 + $0x110] sm:$0xff]   ;;  %14346 = vrsqrt.f32 %v618_v35  ;;  %vm636_vm3 = vcmp.eq.f32.partialorder %v618_v35, inf  ;;  %vm638_vm4 = vcmp.eq.f32.partialorder %v618_v35, 0.0  ;;  %v639_v46 = vand.u32 2147483648, %v618_v35 }
 0x217   : > { %12465 = vmatprep.subr.bf16.mxu1 %v18704_v36 }
 0x21c   : > { %12446 = vmatpush3.bf16.xpose.msra.mxu0 %v13846_v27  ;;  %v13853_v27 = vld [vmem:[%s15433_s5 + $0x150] sm:$0xff]  }
 0x21d   : > { %12447 = vmatprep.subr.bf16.mxu0 %v18704_v36 }
 0x21e   : > { %12466 = vmatpush3.bf16.xpose.msra.mxu1 %v13847_v23  ;;  %v13854_v23 = vld [vmem:[%s15433_s5 + $0x108] sm:$0xff]  }
 0x21f   : > { %12467 = vmatprep.subr.bf16.mxu1 %v18704_v36 }
 0x224   : > { %12448 = vmatpush3.bf16.xpose.msra.mxu0 %v13848_v4  ;;  %v13855_v4 = vld [vmem:[%s15433_s5 + $0x148] sm:$0xff]  }
 0x225   : > { %12449 = vmatprep.subr.bf16.mxu0 %v18704_v36 }
 0x226   : > { %12468 = vmatpush3.bf16.xpose.msra.mxu1 %v13849_v60  ;;  %v14347_v60 = vpop.eup %14346 }
 0x227   : > { %12469 = vmatprep.subr.bf16.mxu1 %v18704_v36 }
 0x22c   : > { %12450 = vmatpush3.bf16.xpose.msra.mxu0 %v13850_v56  ;;  %v2105_v56 = vcombine.high %v15896_v58, %v15896_v58 }
 0x22d   : > { %12451 = vmatprep.subr.bf16.mxu0 %v18704_v36 }
 0x22e   : > { %12470 = vmatpush3.bf16.xpose.msra.mxu1 %v13851_v30  ;;  %v13857_v30 = vld [vmem:[%s15433_s5 + $0x140] sm:$0xff]  }
 0x22f   : > { %12471 = vmatprep.subr.bf16.mxu1 %v18704_v36 }
 0x234   : > { %12452 = vmatpush3.bf16.xpose.msra.mxu0 %v13852_v31  ;;  %v635_v31 = vmul.f32 %v14347_v60, %v618_v35 }
 0x235   : > { %12453 = vmatprep.subr.bf16.mxu0 %v18704_v36 }
 0x236   : > { %12472 = vmatpush3.bf16.xpose.msra.mxu1 %v13853_v27  ;;  %v2261_v27 = vunpack.i.h.s16 %v2105_v56  ;;  %v637_v53 = vsel %vm636_vm3, %v618_v35, %v635_v31  ;;  %v13860_v35 = vld [vmem:[%s15433_s5 + $0x1b0] sm:$0xff]   ;;  %v13865_v31 = vld [vmem:[%s15433_s5 + $0x1e0] sm:$0xff]  }
 0x237   : > { %12473 = vmatprep.subr.bf16.mxu1 %v18704_v36  ;;  %v640_v42 = vsel %vm638_vm4, %v639_v46, %v637_v53  ;;  %v13861_v53 = vld [vmem:[%s15433_s5 + $0x1f0] sm:$0xff]   ;;  %v13862_v46 = vld [vmem:[%s15433_s5 + $0x1a8] sm:$0xff]  }
 0x238   : > { %v2790_v19 = vpack.i.b16 %v2261_v27, %v2261_v27 }
 0x23a   : > { %v2794_v60 = vrot.slane %v2790_v19, %v15459_v25 }
 0x23c   : > { %12454 = vmatpush3.bf16.xpose.msra.mxu0 %v13854_v23  ;;  %v11215_v23 = vpack.i.b16 %v2105_v56, %v2105_v56 }
 0x23d   : > { %12455 = vmatprep.subr.bf16.mxu0 %v18704_v36 }
 0x23e   : > { %12474 = vmatpush3.bf16.xpose.msra.mxu1 %v13855_v4  ;;  %v13858_v4 = vld [vmem:[%s15433_s5 + $0x1b8] sm:$0xff]   ;;  %v2700_v58 = vrot.slane %v11215_v23, %v15459_v25 }
 0x23f   : > { %12475 = vmatprep.subr.bf16.mxu1 %v18704_v36 }
 0x244   : > { %12456 = vmatpush3.bf16.xpose.msra.mxu0 %v13856_v2  ;;  %v11161_v2 = vclamps-f32 %v640_v42, 0.999999 }
 0x245   : > { %12481 = vmatprep.subr.bf16.mxu0 %v18704_v36 }
 0x246   : > { %12476 = vmatpush3.bf16.xpose.msra.mxu1 %v13857_v30  ;;  %v794_v19 = vsub.f32 1.0, %v11161_v2  ;;  %v778_v56 = vadd.f32 1.0, %v11161_v2  ;;  %v13864_v30 = vld [vmem:[%s15433_s5 + $0x1a0] sm:$0xff]   ;;  %v13869_v2 = vld [vmem:[%s15433_s5 + $0x1d0] sm:$0xff]  }
 0x247   : > { %12501 = vmatprep.subr.bf16.mxu1 %v18704_v36 }
 0x248   : > { %14348 = vrcp.f32 %v794_v19  ;;  %v13870_v19 = vld [vmem:[%s15433_s5 + $0x188] sm:$0xff]  }
 0x24b   : > { %12458 = vmatmul.mubr.bf16.vlgmr.msra.gmra.mxu0 %v2700_v58  ;;  %v13867_v58 = vld [vmem:[%s15433_s5 + $0x1d8] sm:$0xff]  }
 0x24c   : > { %12482 = vmatpush3.bf16.xpose.msra.mxu0 %v13858_v4  ;;  %12497 = vmatprep.mubr.msk.bf16.mxu0 %vm15081_vm0, %v18704_v36  ;;  %v13866_v4 = vld [vmem:[%s15433_s5 + $0x198] sm:$0xff]  }
 0x24d   : > { %12478 = vmatmul.mubr.bf16.vlgmr.msra.gmra.mxu1 %v2794_v60  ;;  %12483 = vmatprep.subr.bf16.mxu0 %v18704_v36  ;;  %v13868_v60 = vld [vmem:[%s15433_s5 + $0x190] sm:$0xff]  }
 0x24e   : > { %12502 = vmatpush3.bf16.xpose.msra.mxu1 %v13859_v52  ;;  %12517 = vmatprep.mubr.msk.bf16.mxu1 %vm15081_vm0, %v18704_v36  ;;  %v13863_v52 = vld [vmem:[%s15433_s5 + $0x1e8] sm:$0xff]  }
 0x24f   : > { %12503 = vmatprep.subr.bf16.mxu1 %v18704_v36 }
 0x254   : > { %12484 = vmatpush3.bf16.xpose.msra.mxu0 %v13860_v35 }
 0x255   : > { %12485 = vmatprep.subr.bf16.mxu0 %v18704_v36  ;;  %v14349_v27 = vpop.eup %14348 }
 0x256   : > { %12504 = vmatpush3.bf16.xpose.msra.mxu1 %v13861_v53  ;;  %v811_v23 = vmul.f32 %v14349_v27, %v778_v56  ;;  %v2107_v56 = vcombine.high %v15958_v39, %v15958_v39 }
 0x257   : > { %12505 = vmatprep.subr.bf16.mxu1 %v18704_v36 }
 0x258   : > { %14350 = vlog2.f32 %v811_v23  ;;  %v2263_v23 = vunpack.i.h.s16 %v2107_v56 }
 0x259   : > { %14352 = vrcp.f32 %v640_v42 }
 0x25c   : > { %12486 = vmatpush3.bf16.xpose.msra.mxu0 %v13862_v46  ;;  %v13871_v46 = vld [vmem:[%s15433_s5 + $0x1c8] sm:$0xff]  }
 0x25d   : > { %12487 = vmatprep.subr.bf16.mxu0 %v18704_v36 }
 0x25e   : > { %12506 = vmatpush3.bf16.xpose.msra.mxu1 %v13863_v52 }
 0x25f   : > { %12507 = vmatprep.subr.bf16.mxu1 %v18704_v36 }
 0x264   : > { %12488 = vmatpush3.bf16.xpose.msra.mxu0 %v13864_v30  ;;  %v13872_v30 = vld [vmem:[%s15433_s5 + $0x180] sm:$0xff]  }
 0x265   : > { %12489 = vmatprep.subr.bf16.mxu0 %v18704_v36  ;;  %v14351_v35 = vpop.eup %14350 }
 0x266   : > { %12508 = vmatpush3.bf16.xpose.msra.mxu1 %v13865_v31  ;;  %v843_v53 = vmul.f32 0.6931472, %v14351_v35  ;;  %v14353_v42 = vpop.eup %14352  ;;  %v13873_v31 = vld [vmem:[%s15433_s5 + $0x1c0] sm:$0xff]   ;;  %v13874_v35 = vld [vmem:[%s15433_s5 + $0x238] sm:$0xff]  }
 0x267   : > { %12509 = vmatprep.subr.bf16.mxu1 %v18704_v36 }
 0x268   : > { %v874_v52 = vmul.f32 0.5, %v843_v53  ;;  %v13875_v53 = vld [vmem:[%s15433_s5 + $0x278] sm:$0xff]  }
 0x26a   : > { %v891_v27 = vmul.f32 %v14353_v42, %v874_v52 }
 0x26c   : > { %12490 = vmatpush3.bf16.xpose.msra.mxu0 %v13866_v4  ;;  %v11232_v4 = vpack.i.b16 %v2107_v56, %v2107_v56 }
 0x26d   : > { %12491 = vmatprep.subr.bf16.mxu0 %v18704_v36 }
 0x26e   : > { %12510 = vmatpush3.bf16.xpose.msra.mxu1 %v13867_v58  ;;  %v14773_v58 = vld [vmem:[%s15426_s6] sm:$0xff] }
 0x26f   : > { %12511 = vmatprep.subr.bf16.mxu1 %v18704_v36 }
 0x274   : > { %12492 = vmatpush3.bf16.xpose.msra.mxu0 %v13868_v60  ;;  %v16047_v60 = vmul.f32 %v14773_v58, %v891_v27  ;;  %v13876_v58 = vld [vmem:[%s15433_s5 + $0x230] sm:$0xff]  }
 0x275   : > { %12493 = vmatprep.subr.bf16.mxu0 %v18704_v36 }
 0x276   : > { %12512 = vmatpush3.bf16.xpose.msra.mxu1 %v13869_v2  ;;  %v2978_v2 = vpack.i.b16 %v2263_v23, %v2263_v23  ;;  %v8344_v39 = vrot.slane %v16047_v60, 1 }
 0x277   : > { %12513 = vmatprep.subr.bf16.mxu1 %v18704_v36 }
 0x278   : > { %v2982_v52 = vrot.slane %v2978_v2, %v15459_v25 }
 0x27c   : > { %12494 = vmatpush3.bf16.xpose.msra.mxu0 %v13870_v19  ;;  %v2888_v19 = vrot.slane %v11232_v4, %v15459_v25 }
 0x27d   : > { %12495 = vmatprep.subr.bf16.mxu0 %v18704_v36 }
 0x27e   : > { %12514 = vmatpush3.bf16.xpose.msra.mxu1 %v13871_v46 }
 0x27f   : > { %12515 = vmatprep.subr.bf16.mxu1 %v18704_v36 }
 0x284   : > { %12496 = vmatpush3.bf16.xpose.msra.mxu0 %v13872_v30 }
 0x285   : > { %12521 = vmatprep.subr.bf16.mxu0 %v18704_v36 }
 0x286   : > { %12516 = vmatpush3.bf16.xpose.msra.mxu1 %v13873_v31 }
 0x287   : > { %12541 = vmatprep.subr.bf16.mxu1 %v18704_v36 }
 0x28b   : > { %12498 = vmatmul.mubr.bf16.vlgmr.msra.gmra.mxu0 %v2888_v19  ;;  %v2408_v46 = vpop.f32.mrf.mxu0 }
 0x28c   : > { %12522 = vmatpush3.bf16.xpose.msra.mxu0 %v13874_v35  ;;  %12537 = vmatprep.mubr.msk.bf16.mxu0 %vm15081_vm0, %v18704_v36  ;;  %v8464_v23 = vmul.f32 %v2408_v46, %v16047_v60  ;;  %v13878_v46 = vld [vmem:[%s15433_s5 + $0x228] sm:$0xff]  }
 0x28d   : > { %12518 = vmatmul.mubr.bf16.vlgmr.msra.gmra.mxu1 %v2982_v52  ;;  %v12379_v42 = vpop.f32.mrf.mxu0  ;;  %v2502_v56 = vpop.f32.mrf.mxu1  ;;  %12523 = vmatprep.subr.bf16.mxu0 %v18704_v36  ;;  %v13879_v52 = vld [vmem:[%s15433_s5 + $0x268] sm:$0xff]  }
 0x28e   : > { %v8465_v30 = vmul.f32 %v8344_v39, %v2502_v56  ;;  %12542 = vmatpush3.bf16.xpose.msra.mxu1 %v13875_v53  ;;  %12557 = vmatprep.mubr.msk.bf16.mxu1 %vm15081_vm0, %v18704_v36  ;;  %v13877_v39 = vld [vmem:[%s15433_s5 + $0x270] sm:$0xff]   ;;  %v13880_v42 = vld [vmem:[%s15433_s5 + $0x220] sm:$0xff]  }
 0x28f   : > { %v2411_v31 = vpop.f32.mrf.mxu0  ;;  %v12399_v27 = vpop.f32.mrf.mxu1  ;;  %12543 = vmatprep.subr.bf16.mxu1 %v18704_v36  ;;  %v13881_v56 = vld [vmem:[%s15433_s5 + $0x260] sm:$0xff]  }
 0x290   : > { %v8592_v4 = vrot.slane %v8465_v30, 7  ;;  %v13882_v30 = vld [vmem:[%s15433_s5 + $0x218] sm:$0xff]   ;;  %v13884_v27 = vld [vmem:[%s15433_s5 + $0x210] sm:$0xff]  }
 0x291   : > { %v12380_v2 = vpop.f32.mrf.mxu0  ;;  %v2505_v35 = vpop.f32.mrf.mxu1  ;;  %v13883_v31 = vld [vmem:[%s15433_s5 + $0x258] sm:$0xff]  }
 0x292   : > { %v16064_v19 = vsel %vm8593_vm5, %v8592_v4, %v8464_v23  ;;  %v13885_v23 = vld [vmem:[%s15433_s5 + $0x250] sm:$0xff]   ;;  %v11177_v4 = vpack.c.bf16 %v15880_v16, %v15880_v16  ;;  %v13887_v2 = vld [vmem:[%s15433_s5 + $0x248] sm:$0xff]  }
 0x293   : > { %v12400_v53 = vpop.f32.mrf.mxu1 }
 0x294   : > { %12524 = vmatpush3.bf16.xpose.msra.mxu0 %v13876_v58  ;;  %v13886_v58 = vld [vmem:[%s15433_s5 + $0x208] sm:$0xff]   ;;  %v16090_v35 = vrot.slane %v11177_v4, %v15442_v5  ;;  %v13888_v53 = vld [vmem:[%s15433_s5 + $0x200] sm:$0xff]  }
 0x295   : > { %12525 = vmatprep.subr.bf16.mxu0 %v18704_v36 }
 0x296   : > { %12544 = vmatpush3.bf16.xpose.msra.mxu1 %v13877_v39  ;;  %v16096_v39 = vrot.slane %v16090_v35, %v15442_v5 }
 0x297   : > { %12545 = vmatprep.subr.bf16.mxu1 %v18704_v36 }
 0x298   : > { %v2265_v16 = vunpack.i.h.s16 %v16096_v39 }
 0x29c   : > { %12526 = vmatpush3.bf16.xpose.msra.mxu0 %v13878_v46  ;;  %v13889_v46 = vld [vmem:[%s15433_s5 + $0x240] sm:$0xff]  }
 0x29d   : > { %12527 = vmatprep.subr.bf16.mxu0 %v18704_v36 }
 0x29e   : > { %12546 = vmatpush3.bf16.xpose.msra.mxu1 %v13879_v52  ;;  %v11249_v52 = vpack.i.b16 %v16096_v39, %v16096_v39 }
 0x29f   : > { %12547 = vmatprep.subr.bf16.mxu1 %v18704_v36 }
 0x2a4   : > { %12528 = vmatpush3.bf16.xpose.msra.mxu0 %v13880_v42  ;;  %v3166_v42 = vpack.i.b16 %v2265_v16, %v2265_v16 }
 0x2a5   : > { %12529 = vmatprep.subr.bf16.mxu0 %v18704_v36 }
 0x2a6   : > { %12548 = vmatpush3.bf16.xpose.msra.mxu1 %v13881_v56  ;;  %v8345_v56 = vrot.slane %v16047_v60, 2 }
 0x2a7   : > { %12549 = vmatprep.subr.bf16.mxu1 %v18704_v36 }
 0x2ac   : > { %12530 = vmatpush3.bf16.xpose.msra.mxu0 %v13882_v30  ;;  %v13890_v30 = vld [vmem:[%s15433_s5 + $0x2b8] sm:$0xff]  }
 0x2ad   : > { %12531 = vmatprep.subr.bf16.mxu0 %v18704_v36 }
 0x2ae   : > { %12550 = vmatpush3.bf16.xpose.msra.mxu1 %v13883_v31  ;;  %v3076_v31 = vrot.slane %v11249_v52, %v15459_v25 }
 0x2af   : > { %12551 = vmatprep.subr.bf16.mxu1 %v18704_v36 }
 0x2b4   : > { %12532 = vmatpush3.bf16.xpose.msra.mxu0 %v13884_v27  ;;  %v8346_v27 = vrot.slane %v16047_v60, 3 }
 0x2b5   : > { %12533 = vmatprep.subr.bf16.mxu0 %v18704_v36 }
 0x2b6   : > { %12552 = vmatpush3.bf16.xpose.msra.mxu1 %v13885_v23  ;;  %v13891_v23 = vld [vmem:[%s15433_s5 + $0x2f8] sm:$0xff]  }
 0x2b7   : > { %12553 = vmatprep.subr.bf16.mxu1 %v18704_v36 }
 0x2bc   : > { %12534 = vmatpush3.bf16.xpose.msra.mxu0 %v13886_v58  ;;  %v3170_v58 = vrot.slane %v3166_v42, %v15459_v25 }
 0x2bd   : > { %12535 = vmatprep.subr.bf16.mxu0 %v18704_v36 }
 0x2be   : > { %12554 = vmatpush3.bf16.xpose.msra.mxu1 %v13887_v2 }
 0x2bf   : > { %12555 = vmatprep.subr.bf16.mxu1 %v18704_v36 }
 0x2c4   : > { %12536 = vmatpush3.bf16.xpose.msra.mxu0 %v13888_v53 }
 0x2c5   : > { %12561 = vmatprep.subr.bf16.mxu0 %v18704_v36 }
 0x2c6   : > { %12556 = vmatpush3.bf16.xpose.msra.mxu1 %v13889_v46 }
 0x2c7   : > { %12581 = vmatprep.subr.bf16.mxu1 %v18704_v36 }
 0x2cb   : > { %v2596_v4 = vpop.f32.mrf.mxu0  ;;  %12538 = vmatmul.mubr.bf16.vlgmr.msra.gmra.mxu0 %v3076_v31 }
 0x2cc   : > { %v8466_v2 = vmul.f32 %v8345_v56, %v2596_v4  ;;  %12562 = vmatpush3.bf16.xpose.msra.mxu0 %v13890_v30  ;;  %12577 = vmatprep.mubr.msk.bf16.mxu0 %vm15081_vm0, %v18704_v36  ;;  %v13892_v4 = vld [vmem:[%s15433_s5 + $0x2b0] sm:$0xff]  }
 0x2cd   : > { %v12419_v53 = vpop.f32.mrf.mxu0  ;;  %v2690_v46 = vpop.f32.mrf.mxu1  ;;  %12558 = vmatmul.mubr.bf16.vlgmr.msra.gmra.mxu1 %v3170_v58  ;;  %12563 = vmatprep.subr.bf16.mxu0 %v18704_v36 }
 0x2ce   : > { %v8595_v16 = vrot.slane %v8466_v2, 6  ;;  %v8467_v52 = vmul.f32 %v8346_v27, %v2690_v46  ;;  %12582 = vmatpush3.bf16.xpose.msra.mxu1 %v13891_v23  ;;  %12597 = vmatprep.mubr.msk.bf16.mxu1 %vm15081_vm0, %v18704_v36  ;;  %v13893_v2 = vld [vmem:[%s15433_s5 + $0x2f0] sm:$0xff]   ;;  %v13895_v46 = vld [vmem:[%s15433_s5 + $0x2e8] sm:$0xff]  }
 0x2cf   : > { %v2599_v42 = vpop.f32.mrf.mxu0  ;;  %v12439_v56 = vpop.f32.mrf.mxu1  ;;  %12583 = vmatprep.subr.bf16.mxu1 %v18704_v36 }
 0x2d0   : > { %v8597_v30 = vsel %vm8596_vm6, %v8595_v16, %v16064_v19  ;;  %v8598_v31 = vrot.slane %v8467_v52, 5  ;;  %v13894_v19 = vld [vmem:[%s15433_s5 + $0x2a8] sm:$0xff]   ;;  %v13896_v16 = vld [vmem:[%s15433_s5 + $0x2a0] sm:$0xff]   ;;  %v13898_v42 = vld [vmem:[%s15433_s5 + $0x298] sm:$0xff]  }
 0x2d1   : > { %v12420_v58 = vpop.f32.mrf.mxu0  ;;  %v2693_v27 = vpop.f32.mrf.mxu1  ;;  %v13897_v52 = vld [vmem:[%s15433_s5 + $0x2e0] sm:$0xff]   ;;  %v13899_v56 = vld [vmem:[%s15433_s5 + $0x2d8] sm:$0xff]  }
 0x2d2   : > { %v16121_v23 = vsel %vm8599_vm7, %v8598_v31, %v8597_v30  ;;  %v13900_v30 = vld [vmem:[%s15433_s5 + $0x290] sm:$0xff]   ;;  %v13903_v58 = vld [vmem:[%s15433_s5 + $0x2c8] sm:$0xff]   ;;  %v2076_v27 = vcombine.high %v16090_v35, %v16090_v35 }
 0x2d3   : > { %v12440_v53 = vpop.f32.mrf.mxu1  ;;  %v13901_v31 = vld [vmem:[%s15433_s5 + $0x2d0] sm:$0xff]  }
 0x2d4   : > { %12564 = vmatpush3.bf16.xpose.msra.mxu0 %v13892_v4  ;;  %v13902_v4 = vld [vmem:[%s15433_s5 + $0x288] sm:$0xff]   ;;  %v13904_v53 = vld [vmem:[%s15433_s5 + $0x280] sm:$0xff]  }
 0x2d5   : > { %12565 = vmatprep.subr.bf16.mxu0 %v18704_v36 }
 0x2d6   : > { %12584 = vmatpush3.bf16.xpose.msra.mxu1 %v13893_v2  ;;  %v16149_v2 = vrot.slane %v2076_v27, %v15442_v5 }
 0x2d7   : > { %12585 = vmatprep.subr.bf16.mxu1 %v18704_v36 }
 0x2dc   : > { %12566 = vmatpush3.bf16.xpose.msra.mxu0 %v13894_v19  ;;  %v13905_v19 = vld [vmem:[%s15433_s5 + $0x2c0] sm:$0xff]  }
 0x2dd   : > { %12567 = vmatprep.subr.bf16.mxu0 %v18704_v36 }
 0x2de   : > { %12586 = vmatpush3.bf16.xpose.msra.mxu1 %v13895_v46  ;;  %v2267_v46 = vunpack.i.h.s16 %v16149_v2 }
 0x2df   : > { %12587 = vmatprep.subr.bf16.mxu1 %v18704_v36 }
 0x2e0   : > { %v3354_v35 = vpack.i.b16 %v2267_v46, %v2267_v46 }
 0x2e4   : > { %12568 = vmatpush3.bf16.xpose.msra.mxu0 %v13896_v16  ;;  %v11266_v16 = vpack.i.b16 %v16149_v2, %v16149_v2 }
 0x2e5   : > { %12569 = vmatprep.subr.bf16.mxu0 %v18704_v36 }
 0x2e6   : > { %12588 = vmatpush3.bf16.xpose.msra.mxu1 %v13897_v52  ;;  %v13906_v52 = vld [vmem:[%s15433_s5 + $0x338] sm:$0xff]  }
 0x2e7   : > { %12589 = vmatprep.subr.bf16.mxu1 %v18704_v36 }
 0x2ec   : > { %12570 = vmatpush3.bf16.xpose.msra.mxu0 %v13898_v42  ;;  %v3264_v42 = vrot.slane %v11266_v16, %v15459_v25 }
 0x2ed   : > { %12571 = vmatprep.subr.bf16.mxu0 %v18704_v36 }
 0x2ee   : > { %12590 = vmatpush3.bf16.xpose.msra.mxu1 %v13899_v56  ;;  %v13907_v56 = vld [vmem:[%s15433_s5 + $0x378] sm:$0xff]  }
 0x2ef   : > { %12591 = vmatprep.subr.bf16.mxu1 %v18704_v36 }
 0x2f4   : > { %12572 = vmatpush3.bf16.xpose.msra.mxu0 %v13900_v30 }
 0x2f5   : > { %12573 = vmatprep.subr.bf16.mxu0 %v18704_v36 }
 0x2f6   : > { %12592 = vmatpush3.bf16.xpose.msra.mxu1 %v13901_v31  ;;  %v3358_v31 = vrot.slane %v3354_v35, %v15459_v25  ;;  %v13909_v35 = vld [vmem:[%s15433_s5 + $0x370] sm:$0xff]  }
 0x2f7   : > { %12593 = vmatprep.subr.bf16.mxu1 %v18704_v36 }
 0x2fc   : > { %12574 = vmatpush3.bf16.xpose.msra.mxu0 %v13902_v4 }
 0x2fd   : > { %12575 = vmatprep.subr.bf16.mxu0 %v18704_v36 }
 0x2fe   : > { %12594 = vmatpush3.bf16.xpose.msra.mxu1 %v13903_v58 }
 0x2ff   : > { %12595 = vmatprep.subr.bf16.mxu1 %v18704_v36 }
 0x304   : > { %12576 = vmatpush3.bf16.xpose.msra.mxu0 %v13904_v53 }
 0x305   : > { %12601 = vmatprep.subr.bf16.mxu0 %v18704_v36 }
 0x306   : > { %12596 = vmatpush3.bf16.xpose.msra.mxu1 %v13905_v19  ;;  %v13908_v19 = vld [vmem:[%s15433_s5 + $0x330] sm:$0xff]  }
 0x307   : > { %12621 = vmatprep.subr.bf16.mxu1 %v18704_v36 }
 0x30b   : > { %v16161_v30 = vpop.f32.mrf.mxu0  ;;  %12578 = vmatmul.mubr.bf16.vlgmr.msra.gmra.mxu0 %v3264_v42  ;;  %v13910_v42 = vld [vmem:[%s15433_s5 + $0x328] sm:$0xff]  }
 0x30c   : > { %12602 = vmatpush3.bf16.xpose.msra.mxu0 %v13906_v52  ;;  %12617 = vmatprep.mubr.msk.bf16.mxu0 %vm15081_vm0, %v18704_v36 }
 0x30d   : > { %v12459_v4 = vpop.f32.mrf.mxu0  ;;  %v16166_v58 = vpop.f32.mrf.mxu1  ;;  %12598 = vmatmul.mubr.bf16.vlgmr.msra.gmra.mxu1 %v3358_v31  ;;  %12603 = vmatprep.subr.bf16.mxu0 %v18704_v36  ;;  %v13912_v31 = vld [vmem:[%s15433_s5 + $0x320] sm:$0xff]  }
 0x30e   : > { %12622 = vmatpush3.bf16.xpose.msra.mxu1 %v13907_v56  ;;  %12637 = vmatprep.mubr.msk.bf16.mxu1 %vm15081_vm0, %v18704_v36  ;;  %v13911_v56 = vld [vmem:[%s15433_s5 + $0x368] sm:$0xff]   ;;  %v13913_v4 = vld [vmem:[%s15433_s5 + $0x360] sm:$0xff]  }
 0x30f   : > { %v2787_v27 = vpop.f32.mrf.mxu0  ;;  %v12479_v53 = vpop.f32.mrf.mxu1  ;;  %12623 = vmatprep.subr.bf16.mxu1 %v18704_v36 }
 0x310   : > { %v13914_v27 = vld [vmem:[%s15433_s5 + $0x318] sm:$0xff]  }
 0x311   : > { %v12460_v46 = vpop.f32.mrf.mxu0  ;;  %v2881_v16 = vpop.f32.mrf.mxu1  ;;  %v13915_v53 = vld [vmem:[%s15433_s5 + $0x358] sm:$0xff]  }
 0x312   : > { %v13916_v46 = vld [vmem:[%s15433_s5 + $0x310] sm:$0xff]  }
 0x313   : > { %v12480_v52 = vpop.f32.mrf.mxu1  ;;  %v13917_v16 = vld [vmem:[%s15433_s5 + $0x350] sm:$0xff]  }
 0x314   : > { %12604 = vmatpush3.bf16.xpose.msra.mxu0 %v13908_v19  ;;  %v619_v19 = vmax.f32 %v15606_v6, 1e-15  ;;  %v13919_v52 = vld [vmem:[%s15433_s5 + $0x348] sm:$0xff]   ;;  %v2106_v6 = vcombine.high %v16096_v39, %v16096_v39 }
 0x315   : > { %12605 = vmatprep.subr.bf16.mxu0 %v18704_v36 }
 0x316   : > { %12624 = vmatpush3.bf16.xpose.msra.mxu1 %v13909_v35  ;;  %14354 = vrsqrt.f32 %v619_v19  ;;  %v13918_v35 = vld [vmem:[%s15433_s5 + $0x308] sm:$0xff]   ;;  %vm643_vm8 = vcmp.eq.f32.partialorder %v619_v19, inf  ;;  %v646_v39 = vand.u32 2147483648, %v619_v19  ;;  %vm645_vm9 = vcmp.eq.f32.partialorder %v619_v19, 0.0 }
 0x317   : > { %12625 = vmatprep.subr.bf16.mxu1 %v18704_v36 }
 0x31c   : > { %12606 = vmatpush3.bf16.xpose.msra.mxu0 %v13910_v42  ;;  %v8347_v42 = vrot.slane %v16047_v60, 4 }
 0x31d   : > { %12607 = vmatprep.subr.bf16.mxu0 %v18704_v36 }
 0x31e   : > { %12626 = vmatpush3.bf16.xpose.msra.mxu1 %v13911_v56  ;;  %v13920_v56 = vld [vmem:[%s15433_s5 + $0x300] sm:$0xff]  }
 0x31f   : > { %12627 = vmatprep.subr.bf16.mxu1 %v18704_v36 }
 0x324   : > { %12608 = vmatpush3.bf16.xpose.msra.mxu0 %v13912_v31  ;;  %v14355_v31 = vpop.eup %14354 }
 0x325   : > { %12609 = vmatprep.subr.bf16.mxu0 %v18704_v36 }
 0x326   : > { %12628 = vmatpush3.bf16.xpose.msra.mxu1 %v13913_v4  ;;  %v13921_v4 = vld [vmem:[%s15433_s5 + $0x340] sm:$0xff]  }
 0x327   : > { %12629 = vmatprep.subr.bf16.mxu1 %v18704_v36 }
 0x32c   : > { %12610 = vmatpush3.bf16.xpose.msra.mxu0 %v13914_v27  ;;  %v8348_v27 = vrot.slane %v16047_v60, 5 }
 0x32d   : > { %12611 = vmatprep.subr.bf16.mxu0 %v18704_v36 }
 0x32e   : > { %12630 = vmatpush3.bf16.xpose.msra.mxu1 %v13915_v53  ;;  %v2269_v53 = vunpack.i.h.s16 %v2106_v6 }
 0x32f   : > { %12631 = vmatprep.subr.bf16.mxu1 %v18704_v36 }
 0x330   : > { %v3542_v32 = vpack.i.b16 %v2269_v53, %v2269_v53 }
 0x334   : > { %12612 = vmatpush3.bf16.xpose.msra.mxu0 %v13916_v46  ;;  %v642_v46 = vmul.f32 %v14355_v31, %v619_v19  ;;  %v8349_v31 = vrot.slane %v16047_v60, 6 }
 0x335   : > { %12613 = vmatprep.subr.bf16.mxu0 %v18704_v36 }
 0x336   : > { %12632 = vmatpush3.bf16.xpose.msra.mxu1 %v13917_v16  ;;  %v8468_v16 = vmul.f32 %v8347_v42, %v16161_v30  ;;  %v644_v29 = vsel %vm643_vm8, %v619_v19, %v642_v46  ;;  %v13923_v42 = vld [vmem:[%s15433_s5 + $0x3f8] sm:$0xff]  }
 0x337   : > { %12633 = vmatprep.subr.bf16.mxu1 %v18704_v36 }
 0x338   : > { %v8601_v61 = vrot.slane %v8468_v16, 4 }
 0x33c   : > { %12614 = vmatpush3.bf16.xpose.msra.mxu0 %v13918_v35  ;;  %v11283_v35 = vpack.i.b16 %v2106_v6, %v2106_v6  ;;  %v8350_v6 = vrot.slane %v16047_v60, 7 }
 0x33d   : > { %12615 = vmatprep.subr.bf16.mxu0 %v18704_v36 }
 0x33e   : > { %12634 = vmatpush3.bf16.xpose.msra.mxu1 %v13919_v52  ;;  %v8469_v52 = vmul.f32 %v8348_v27, %v16166_v58  ;;  %v3452_v30 = vrot.slane %v11283_v35, %v15459_v25  ;;  %v3546_v58 = vrot.slane %v3542_v32, %v15459_v25  ;;  %v8603_v27 = vsel %vm8602_vm10, %v8601_v61, %v16121_v23  ;;  %v13924_v35 = vld [vmem:[%s15433_s5 + $0x3b0] sm:$0xff]  }
 0x33f   : > { %12635 = vmatprep.subr.bf16.mxu1 %v18704_v36 }
 0x344   : > { %12616 = vmatpush3.bf16.xpose.msra.mxu0 %v13920_v56  ;;  %v647_v56 = vsel %vm645_vm9, %v646_v39, %v644_v29 }
 0x345   : > { %12641 = vmatprep.subr.bf16.mxu0 %v18704_v36  ;;  %v11162_v29 = vclamps-f32 %v647_v56, 0.999999 }
 0x346   : > { %12636 = vmatpush3.bf16.xpose.msra.mxu1 %v13921_v4  ;;  %v8604_v4 = vrot.slane %v8469_v52, 3 }
 0x347   : > { %12661 = vmatprep.subr.bf16.mxu1 %v18704_v36 }
 0x348   : > { %v8606_v61 = vsel %vm8605_vm11, %v8604_v4, %v8603_v27  ;;  %v13926_v4 = vld [vmem:[%s15433_s5 + $0x3a8] sm:$0xff]   ;;  %v13928_v27 = vld [vmem:[%s15433_s5 + $0x3a0] sm:$0xff]  }
 0x34b   : > { %v2972_v11 = vpop.f32.mrf.mxu0  ;;  %12618 = vmatmul.mubr.bf16.vlgmr.msra.gmra.mxu0 %v3452_v30 }
 0x34c   : > { %v8470_v19 = vmul.f32 %v8349_v31, %v2972_v11  ;;  %12642 = vmatpush3.bf16.xpose.msra.mxu0 %v13922_v45  ;;  %12657 = vmatprep.mubr.msk.bf16.mxu0 %vm15081_vm0, %v18704_v36  ;;  %v795_v31 = vsub.f32 1.0, %v11162_v29 }
 0x34d   : > { %v12499_v53 = vpop.f32.mrf.mxu0  ;;  %v3066_v46 = vpop.f32.mrf.mxu1  ;;  %12638 = vmatmul.mubr.bf16.vlgmr.msra.gmra.mxu1 %v3546_v58  ;;  %12643 = vmatprep.subr.bf16.mxu0 %v18704_v36  ;;  %v13927_v58 = vld [vmem:[%s15433_s5 + $0x3e8] sm:$0xff]  }
 0x34e   : > { %v8607_v60 = vrot.slane %v8470_v19, 2  ;;  %v8471_v32 = vmul.f32 %v8350_v6, %v3066_v46  ;;  %12662 = vmatpush3.bf16.xpose.msra.mxu1 %v13923_v42  ;;  %12677 = vmatprep.mubr.msk.bf16.mxu1 %vm15081_vm0, %v18704_v36  ;;  %v13925_v6 = vld [vmem:[%s15433_s5 + $0x3f0] sm:$0xff]   ;;  %14356 = vrcp.f32 %v795_v31  ;;  %v779_v19 = vadd.f32 1.0, %v11162_v29  ;;  %v13929_v53 = vld [vmem:[%s15433_s5 + $0x3e0] sm:$0xff]  }
 0x34f   : > { %v2975_v11 = vpop.f32.mrf.mxu0  ;;  %v12519_v45 = vpop.f32.mrf.mxu1  ;;  %12663 = vmatprep.subr.bf16.mxu1 %v18704_v36  ;;  %v13932_v29 = vld [vmem:[%s15433_s5 + $0x390] sm:$0xff]   ;;  %v13936_v31 = vld [vmem:[%s15433_s5 + $0x380] sm:$0xff]  }
 0x350   : > { %v8610_v23 = vrot.slane %v8471_v32, 1  ;;  %v8609_v16 = vsel %vm8608_vm12, %v8607_v60, %v8606_v61  ;;  %v13930_v32 = vld [vmem:[%s15433_s5 + $0x398] sm:$0xff]   ;;  %v13933_v45 = vld [vmem:[%s15433_s5 + $0x3d0] sm:$0xff]  }
 0x351   : > { %v12500_v39 = vpop.f32.mrf.mxu0  ;;  %v3069_v52 = vpop.f32.mrf.mxu1  ;;  %v13931_v11 = vld [vmem:[%s15433_s5 + $0x3d8] sm:$0xff]  }
 0x352   : > { %v8612_v30 = vsel %vm8611_vm13, %v8610_v23, %v8609_v16  ;;  %v13934_v23 = vld [vmem:[%s15433_s5 + $0x388] sm:$0xff]   ;;  %v2108_v52 = vcombine.high %v16149_v2, %v16149_v2 }
 0x353   : > { %v12520_v42 = vpop.f32.mrf.mxu1  ;;  %8719 = vadd.xlane.f32.xlu0 %v8612_v30  ;;  %v13937_v30 = vld [vmem:[%s15433_s5 + $0x3c0] sm:$0xff]  }
 0x354   : > { %12644 = vmatpush3.bf16.xpose.msra.mxu0 %v13924_v35  ;;  %v13935_v35 = vld [vmem:[%s15433_s5 + $0x3c8] sm:$0xff]   ;;  %v2271_v42 = vunpack.i.h.s16 %v2108_v52 }
 0x355   : > { %12645 = vmatprep.subr.bf16.mxu0 %v18704_v36 }
 0x356   : > { %12664 = vmatpush3.bf16.xpose.msra.mxu1 %v13925_v6 }
 0x357   : > { %12665 = vmatprep.subr.bf16.mxu1 %v18704_v36 }
 0x35b   : > { %v14357_v46 = vpop.eup %14356 }
 0x35c   : > { %12646 = vmatpush3.bf16.xpose.msra.mxu0 %v13926_v4  ;;  %v813_v60 = vmul.f32 %v14357_v46, %v779_v19  ;;  %v11300_v4 = vpack.i.b16 %v2108_v52, %v2108_v52  ;;  %v3730_v19 = vpack.i.b16 %v2271_v42, %v2271_v42 }
 0x35d   : > { %12647 = vmatprep.subr.bf16.mxu0 %v18704_v36 }
 0x35e   : > { %12666 = vmatpush3.bf16.xpose.msra.mxu1 %v13927_v58  ;;  %14358 = vlog2.f32 %v813_v60  ;;  %v14774_v58 = vld [vmem:[%s15426_s6 + $0x8] sm:$0xff]  ;;  %v3640_v46 = vrot.slane %v11300_v4, %v15459_v25  ;;  %v13939_v60 = vld [vmem:[%s15433_s5 + $0x478] sm:$0xff]  }
 0x35f   : > { %12667 = vmatprep.subr.bf16.mxu1 %v18704_v36  ;;  %14360 = vrcp.f32 %v647_v56  ;;  %v13942_v4 = vld [vmem:[%s15433_s5 + $0x428] sm:$0xff]  }
 0x364   : > { %12648 = vmatpush3.bf16.xpose.msra.mxu0 %v13928_v27 }
 0x365   : > { %12649 = vmatprep.subr.bf16.mxu0 %v18704_v36 }
 0x366   : > { %12668 = vmatpush3.bf16.xpose.msra.mxu1 %v13929_v53  ;;  %v13938_v53 = vld [vmem:[%s15433_s5 + $0x438] sm:$0xff]  }
 0x367   : > { %12669 = vmatprep.subr.bf16.mxu1 %v18704_v36 }
 0x36b   : > { %v14359_v61 = vpop.eup %14358 }
 0x36c   : > { %12650 = vmatpush3.bf16.xpose.msra.mxu0 %v13930_v32  ;;  %v845_v16 = vmul.f32 0.6931472, %v14359_v61  ;;  %v14361_v56 = vpop.eup %14360 }
 0x36d   : > { %12651 = vmatprep.subr.bf16.mxu0 %v18704_v36 }
 0x36e   : > { %12670 = vmatpush3.bf16.xpose.msra.mxu1 %v13931_v11  ;;  %v875_v39 = vmul.f32 0.5, %v845_v16  ;;  %v3734_v11 = vrot.slane %v3730_v19, %v15459_v25  ;;  %v13944_v19 = vld [vmem:[%s15433_s5 + $0x420] sm:$0xff]  }
 0x36f   : > { %12671 = vmatprep.subr.bf16.mxu1 %v18704_v36 }
 0x370   : > { %v893_v6 = vmul.f32 %v14361_v56, %v875_v39  ;;  %v13940_v56 = vld [vmem:[%s15433_s5 + $0x430] sm:$0xff]  }
 0x372   : > { %v16254_v27 = vmul.f32 %v14774_v58, %v893_v6  ;;  %v13941_v6 = vld [vmem:[%s15433_s5 + $0x470] sm:$0xff]   ;;  %v13943_v58 = vld [vmem:[%s15433_s5 + $0x468] sm:$0xff]  }
 0x374   : > { %12652 = vmatpush3.bf16.xpose.msra.mxu0 %v13932_v29  ;;  %v8351_v2 = vrot.slane %v16254_v27, 1 }
 0x375   : > { %12653 = vmatprep.subr.bf16.mxu0 %v18704_v36 }
 0x376   : > { %12672 = vmatpush3.bf16.xpose.msra.mxu1 %v13933_v45 }
 0x377   : > { %12673 = vmatprep.subr.bf16.mxu1 %v18704_v36 }
 0x37c   : > { %12654 = vmatpush3.bf16.xpose.msra.mxu0 %v13934_v23 }
 0x37d   : > { %12655 = vmatprep.subr.bf16.mxu0 %v18704_v36 }
 0x37e   : > { %12674 = vmatpush3.bf16.xpose.msra.mxu1 %v13935_v35 }
 0x37f   : > { %12675 = vmatprep.subr.bf16.mxu1 %v18704_v36 }
 0x384   : > { %12656 = vmatpush3.bf16.xpose.msra.mxu0 %v13936_v31 }
 0x385   : > { %12681 = vmatprep.subr.bf16.mxu0 %v18704_v36 }
 0x386   : > { %12676 = vmatpush3.bf16.xpose.msra.mxu1 %v13937_v30 }
 0x387   : > { %12701 = vmatprep.subr.bf16.mxu1 %v18704_v36 }
 0x38b   : > { %v3160_v32 = vpop.f32.mrf.mxu0  ;;  %12658 = vmatmul.mubr.bf16.vlgmr.msra.gmra.mxu0 %v3640_v46  ;;  %v13946_v46 = vld [vmem:[%s15433_s5 + $0x418] sm:$0xff]  }
 0x38c   : > { %12682 = vmatpush3.bf16.xpose.msra.mxu0 %v13938_v53  ;;  %12697 = vmatprep.mubr.msk.bf16.mxu0 %vm15081_vm0, %v18704_v36  ;;  %v8472_v35 = vmul.f32 %v3160_v32, %v16254_v27  ;;  %v13945_v53 = vld [vmem:[%s15433_s5 + $0x460] sm:$0xff]   ;;  %v13949_v32 = vld [vmem:[%s15433_s5 + $0x450] sm:$0xff]  }
 0x38d   : > { %v12539_v29 = vpop.f32.mrf.mxu0  ;;  %v3254_v45 = vpop.f32.mrf.mxu1  ;;  %12678 = vmatmul.mubr.bf16.vlgmr.msra.gmra.mxu1 %v3734_v11  ;;  %12683 = vmatprep.subr.bf16.mxu0 %v18704_v36  ;;  %v13950_v11 = vld [vmem:[%s15433_s5 + $0x408] sm:$0xff]  }
 0x38e   : > { %v8473_v61 = vmul.f32 %v8351_v2, %v3254_v45  ;;  %12702 = vmatpush3.bf16.xpose.msra.mxu1 %v13939_v60  ;;  %12717 = vmatprep.mubr.msk.bf16.mxu1 %vm15081_vm0, %v18704_v36  ;;  %v13947_v2 = vld [vmem:[%s15433_s5 + $0x458] sm:$0xff]   ;;  %v13948_v60 = vld [vmem:[%s15433_s5 + $0x410] sm:$0xff]   ;;  %v13951_v29 = vld [vmem:[%s15433_s5 + $0x448] sm:$0xff]   ;;  %v18705_v45 = vpack.c.bf16 %v15887_v28, %v15884_v0 }
 0x38f   : > { %v3163_v23 = vpop.f32.mrf.mxu0  ;;  %v12559_v16 = vpop.f32.mrf.mxu1  ;;  %12703 = vmatprep.subr.bf16.mxu1 %v18704_v36 }
 0x390   : > { %v8613_v39 = vrot.slane %v8473_v61, 7  ;;  %v16298_v61 = vrot.slane %v18705_v45, %v15442_v5  ;;  %v13952_v16 = vld [vmem:[%s15433_s5 + $0x400] sm:$0xff]  }
 0x391   : > { %v12540_v52 = vpop.f32.mrf.mxu0  ;;  %v3257_v31 = vpop.f32.mrf.mxu1 }
 0x392   : > { %v16271_v30 = vsel %vm8593_vm5, %v8613_v39, %v8472_v35  ;;  %v16304_v23 = vrot.slane %v16298_v61, %v15442_v5  ;;  %v13953_v35 = vld [vmem:[%s15433_s5 + $0x440] sm:$0xff]   ;;  %v8352_v52 = vrot.slane %v16254_v27, 2  ;;  %v13954_v31 = vld [vmem:[%s15433_s5 + $0x4b8] sm:$0xff]  }
 0x393   : > { %v12560_v42 = vpop.f32.mrf.mxu1 }
 0x394   : > { %12684 = vmatpush3.bf16.xpose.msra.mxu0 %v13940_v56  ;;  %v2273_v39 = vunpack.i.h.s16 %v16304_v23  ;;  %v11317_v0 = vpack.i.b16 %v16304_v23, %v16304_v23  ;;  %v8353_v42 = vrot.slane %v16254_v27, 3 }
 0x395   : > { %12685 = vmatprep.subr.bf16.mxu0 %v18704_v36 }
 0x396   : > { %12704 = vmatpush3.bf16.xpose.msra.mxu1 %v13941_v6  ;;  %v3918_v56 = vpack.i.b16 %v2273_v39, %v2273_v39  ;;  %v3828_v6 = vrot.slane %v11317_v0, %v15459_v25 }
 0x397   : > { %12705 = vmatprep.subr.bf16.mxu1 %v18704_v36 }
 0x39c   : > { %12686 = vmatpush3.bf16.xpose.msra.mxu0 %v13942_v4  ;;  %v13955_v4 = vld [vmem:[%s15433_s5 + $0x4f8] sm:$0xff]  }
 0x39d   : > { %12687 = vmatprep.subr.bf16.mxu0 %v18704_v36 }
 0x39e   : > { %12706 = vmatpush3.bf16.xpose.msra.mxu1 %v13943_v58 }
 0x39f   : > { %12707 = vmatprep.subr.bf16.mxu1 %v18704_v36 }
 0x3a4   : > { %12688 = vmatpush3.bf16.xpose.msra.mxu0 %v13944_v19  ;;  %v3922_v19 = vrot.slane %v3918_v56, %v15459_v25 }
 0x3a5   : > { %12689 = vmatprep.subr.bf16.mxu0 %v18704_v36 }
 0x3a6   : > { %12708 = vmatpush3.bf16.xpose.msra.mxu1 %v13945_v53 }
 0x3a7   : > { %12709 = vmatprep.subr.bf16.mxu1 %v18704_v36 }
 0x3ac   : > { %12690 = vmatpush3.bf16.xpose.msra.mxu0 %v13946_v46 }
 0x3ad   : > { %12691 = vmatprep.subr.bf16.mxu0 %v18704_v36 }
 0x3ae   : > { %12710 = vmatpush3.bf16.xpose.msra.mxu1 %v13947_v2 }
 0x3af   : > { %12711 = vmatprep.subr.bf16.mxu1 %v18704_v36 }
 0x3b4   : > { %12692 = vmatpush3.bf16.xpose.msra.mxu0 %v13948_v60 }
 0x3b5   : > { %12693 = vmatprep.subr.bf16.mxu0 %v18704_v36 }
 0x3b6   : > { %12712 = vmatpush3.bf16.xpose.msra.mxu1 %v13949_v32 }
 0x3b7   : > { %12713 = vmatprep.subr.bf16.mxu1 %v18704_v36 }
 0x3bc   : > { %12694 = vmatpush3.bf16.xpose.msra.mxu0 %v13950_v11 }
 0x3bd   : > { %12695 = vmatprep.subr.bf16.mxu0 %v18704_v36 }
 0x3be   : > { %12714 = vmatpush3.bf16.xpose.msra.mxu1 %v13951_v29 }
 0x3bf   : > { %12715 = vmatprep.subr.bf16.mxu1 %v18704_v36 }
 0x3c4   : > { %12696 = vmatpush3.bf16.xpose.msra.mxu0 %v13952_v16 }
 0x3c5   : > { %12721 = vmatprep.subr.bf16.mxu0 %v18704_v36 }
 0x3c6   : > { %12716 = vmatpush3.bf16.xpose.msra.mxu1 %v13953_v35  ;;  %v13956_v35 = vld [vmem:[%s15433_s5 + $0x4b0] sm:$0xff]  }
 0x3c7   : > { %12741 = vmatprep.subr.bf16.mxu1 %v18704_v36 }
 0x3cb   : > { %v3348_v58 = vpop.f32.mrf.mxu0  ;;  %12698 = vmatmul.mubr.bf16.vlgmr.msra.gmra.mxu0 %v3828_v6  ;;  %v13959_v6 = vld [vmem:[%s15433_s5 + $0x4e8] sm:$0xff]  }
 0x3cc   : > { %v8474_v53 = vmul.f32 %v8352_v52, %v3348_v58  ;;  %12722 = vmatpush3.bf16.xpose.msra.mxu0 %v13954_v31  ;;  %12737 = vmatprep.mubr.msk.bf16.mxu0 %vm15081_vm0, %v18704_v36  ;;  %v13957_v52 = vld [vmem:[%s15433_s5 + $0x4f0] sm:$0xff]   ;;  %v13962_v58 = vld [vmem:[%s15433_s5 + $0x498] sm:$0xff]  }
 0x3cd   : > { %v12579_v46 = vpop.f32.mrf.mxu0  ;;  %v3442_v2 = vpop.f32.mrf.mxu1  ;;  %12718 = vmatmul.mubr.bf16.vlgmr.msra.gmra.mxu1 %v3922_v19  ;;  %12723 = vmatprep.subr.bf16.mxu0 %v18704_v36  ;;  %v13963_v19 = vld [vmem:[%s15433_s5 + $0x4d8] sm:$0xff]  }
 0x3ce   : > { %v8615_v60 = vrot.slane %v8474_v53, 6  ;;  %v8475_v32 = vmul.f32 %v8353_v42, %v3442_v2  ;;  %12742 = vmatpush3.bf16.xpose.msra.mxu1 %v13955_v4  ;;  %12757 = vmatprep.mubr.msk.bf16.mxu1 %vm15081_vm0, %v18704_v36  ;;  %v13960_v42 = vld [vmem:[%s15433_s5 + $0x4a0] sm:$0xff]   ;;  %v13964_v53 = vld [vmem:[%s15433_s5 + $0x490] sm:$0xff]   ;;  %v13966_v2 = vld [vmem:[%s15433_s5 + $0x488] sm:$0xff]  }
 0x3cf   : > { %v3351_v11 = vpop.f32.mrf.mxu0  ;;  %v12599_v29 = vpop.f32.mrf.mxu1  ;;  %12743 = vmatprep.subr.bf16.mxu1 %v18704_v36  ;;  %v13961_v4 = vld [vmem:[%s15433_s5 + $0x4e0] sm:$0xff]   ;;  %v13965_v46 = vld [vmem:[%s15433_s5 + $0x4d0] sm:$0xff]  }
 0x3d0   : > { %v8616_v45 = vsel %vm8596_vm6, %v8615_v60, %v16271_v30  ;;  %v8617_v16 = vrot.slane %v8475_v32, 5  ;;  %v13958_v30 = vld [vmem:[%s15433_s5 + $0x4a8] sm:$0xff]   ;;  %v2124_v32 = vcombine.high %v16298_v61, %v16298_v61  ;;  %v13968_v29 = vld [vmem:[%s15433_s5 + $0x480] sm:$0xff]  }
 0x3d1   : > { %v12580_v39 = vpop.f32.mrf.mxu0  ;;  %v3445_v0 = vpop.f32.mrf.mxu1  ;;  %v13967_v60 = vld [vmem:[%s15433_s5 + $0x4c8] sm:$0xff]  }
 0x3d2   : > { %v16329_v56 = vsel %vm8599_vm7, %v8617_v16, %v8616_v45  ;;  %v16357_v11 = vrot.slane %v2124_v32, %v15442_v5  ;;  %v13969_v45 = vld [vmem:[%s15433_s5 + $0x4c0] sm:$0xff]   ;;  %v13970_v39 = vld [vmem:[%s15433_s5 + $0x538] sm:$0xff]   ;;  %v13974_v32 = vld [vmem:[%s15433_s5 + $0x528] sm:$0xff]  }
 0x3d3   : > { %v12600_v31 = vpop.f32.mrf.mxu1 }
 0x3d4   : > { %12724 = vmatpush3.bf16.xpose.msra.mxu0 %v13956_v35  ;;  %v2275_v16 = vunpack.i.h.s16 %v16357_v11  ;;  %v11334_v35 = vpack.i.b16 %v16357_v11, %v16357_v11 }
 0x3d5   : > { %12725 = vmatprep.subr.bf16.mxu0 %v18704_v36 }
 0x3d6   : > { %12744 = vmatpush3.bf16.xpose.msra.mxu1 %v13957_v52  ;;  %v4106_v61 = vpack.i.b16 %v2275_v16, %v2275_v16  ;;  %v4016_v0 = vrot.slane %v11334_v35, %v15459_v25  ;;  %v13971_v52 = vld [vmem:[%s15433_s5 + $0x578] sm:$0xff]   ;;  %v13977_v16 = vld [vmem:[%s15433_s5 + $0x560] sm:$0xff]  }
 0x3d7   : > { %12745 = vmatprep.subr.bf16.mxu1 %v18704_v36  ;;  %v13978_v35 = vld [vmem:[%s15433_s5 + $0x518] sm:$0xff]  }
 0x3dc   : > { %12726 = vmatpush3.bf16.xpose.msra.mxu0 %v13958_v30  ;;  %v4110_v30 = vrot.slane %v4106_v61, %v15459_v25  ;;  %v13979_v61 = vld [vmem:[%s15433_s5 + $0x558] sm:$0xff]  }
 0x3dd   : > { %12727 = vmatprep.subr.bf16.mxu0 %v18704_v36 }
 0x3de   : > { %12746 = vmatpush3.bf16.xpose.msra.mxu1 %v13959_v6 }
 0x3df   : > { %12747 = vmatprep.subr.bf16.mxu1 %v18704_v36 }
 0x3e4   : > { %12728 = vmatpush3.bf16.xpose.msra.mxu0 %v13960_v42 }
 0x3e5   : > { %12729 = vmatprep.subr.bf16.mxu0 %v18704_v36 }
 0x3e6   : > { %12748 = vmatpush3.bf16.xpose.msra.mxu1 %v13961_v4 }
 0x3e7   : > { %12749 = vmatprep.subr.bf16.mxu1 %v18704_v36 }
 0x3ec   : > { %12730 = vmatpush3.bf16.xpose.msra.mxu0 %v13962_v58 }
 0x3ed   : > { %12731 = vmatprep.subr.bf16.mxu0 %v18704_v36 }
 0x3ee   : > { %12750 = vmatpush3.bf16.xpose.msra.mxu1 %v13963_v19  ;;  %v13972_v19 = vld [vmem:[%s15433_s5 + $0x530] sm:$0xff]  }
 0x3ef   : > { %12751 = vmatprep.subr.bf16.mxu1 %v18704_v36 }
 0x3f4   : > { %12732 = vmatpush3.bf16.xpose.msra.mxu0 %v13964_v53 }
 0x3f5   : > { %12733 = vmatprep.subr.bf16.mxu0 %v18704_v36 }
 0x3f6   : > { %12752 = vmatpush3.bf16.xpose.msra.mxu1 %v13965_v46 }
 0x3f7   : > { %12753 = vmatprep.subr.bf16.mxu1 %v18704_v36 }
 0x3fc   : > { %12734 = vmatpush3.bf16.xpose.msra.mxu0 %v13966_v2  ;;  %v13973_v2 = vld [vmem:[%s15433_s5 + $0x570] sm:$0xff]  }
 0x3fd   : > { %12735 = vmatprep.subr.bf16.mxu0 %v18704_v36 }
 0x3fe   : > { %12754 = vmatpush3.bf16.xpose.msra.mxu1 %v13967_v60 }
 0x3ff   : > { %12755 = vmatprep.subr.bf16.mxu1 %v18704_v36 }
 0x404   : > { %12736 = vmatpush3.bf16.xpose.msra.mxu0 %v13968_v29  ;;  %v13975_v29 = vld [vmem:[%s15433_s5 + $0x568] sm:$0xff]  }
 0x405   : > { %12761 = vmatprep.subr.bf16.mxu0 %v18704_v36 }
 0x406   : > { %12756 = vmatpush3.bf16.xpose.msra.mxu1 %v13969_v45  ;;  %v13976_v45 = vld [vmem:[%s15433_s5 + $0x520] sm:$0xff]  }
 0x407   : > { %12781 = vmatprep.subr.bf16.mxu1 %v18704_v36 }
 0x40b   : > { %v16369_v31 = vpop.f32.mrf.mxu0  ;;  %12738 = vmatmul.mubr.bf16.vlgmr.msra.gmra.mxu0 %v4016_v0  ;;  %v13980_v0 = vld [vmem:[%s15433_s5 + $0x510] sm:$0xff]  }
 0x40c   : > { %12762 = vmatpush3.bf16.xpose.msra.mxu0 %v13970_v39  ;;  %12777 = vmatprep.mubr.msk.bf16.mxu0 %vm15081_vm0, %v18704_v36  ;;  %v620_v39 = vmax.f32 %v15612_v9, 1e-15  ;;  %v2154_v9 = vcombine.high %v16304_v23, %v16304_v23 }
 0x40d   : > { %v12619_v6 = vpop.f32.mrf.mxu0  ;;  %v16374_v42 = vpop.f32.mrf.mxu1  ;;  %12758 = vmatmul.mubr.bf16.vlgmr.msra.gmra.mxu1 %v4110_v30  ;;  %12763 = vmatprep.subr.bf16.mxu0 %v18704_v36  ;;  %v13982_v30 = vld [vmem:[%s15433_s5 + $0x508] sm:$0xff]  }
 0x40e   : > { %12782 = vmatpush3.bf16.xpose.msra.mxu1 %v13971_v52  ;;  %12797 = vmatprep.mubr.msk.bf16.mxu1 %vm15081_vm0, %v18704_v36  ;;  %v13981_v52 = vld [vmem:[%s15433_s5 + $0x550] sm:$0xff]   ;;  %14362 = vrsqrt.f32 %v620_v39  ;;  %v13983_v6 = vld [vmem:[%s15433_s5 + $0x548] sm:$0xff]   ;;  %vm650_vm14 = vcmp.eq.f32.partialorder %v620_v39, inf  ;;  %v653_v23 = vand.u32 2147483648, %v620_v39  ;;  %vm652_vm15 = vcmp.eq.f32.partialorder %v620_v39, 0.0 }
 0x40f   : > { %v3539_v4 = vpop.f32.mrf.mxu0  ;;  %v12639_v58 = vpop.f32.mrf.mxu1  ;;  %12783 = vmatprep.subr.bf16.mxu1 %v18704_v36 }
 0x410   : > { %v8354_v4 = vrot.slane %v16254_v27, 4  ;;  %v13984_v58 = vld [vmem:[%s15433_s5 + $0x500] sm:$0xff]  }
 0x411   : > { %v12620_v53 = vpop.f32.mrf.mxu0  ;;  %v3633_v46 = vpop.f32.mrf.mxu1 }
 0x412   : > { %v13985_v53 = vld [vmem:[%s15433_s5 + $0x540] sm:$0xff]   ;;  %v8355_v46 = vrot.slane %v16254_v27, 5 }
 0x413   : > { %v12640_v60 = vpop.f32.mrf.mxu1 }
 0x414   : > { %12764 = vmatpush3.bf16.xpose.msra.mxu0 %v13972_v19 }
 0x415   : > { %12765 = vmatprep.subr.bf16.mxu0 %v18704_v36 }
 0x416   : > { %12784 = vmatpush3.bf16.xpose.msra.mxu1 %v13973_v2  ;;  %v2277_v2 = vunpack.i.h.s16 %v2154_v9 }
 0x417   : > { %12785 = vmatprep.subr.bf16.mxu1 %v18704_v36 }
 0x41b   : > { %v14363_v19 = vpop.eup %14362 }
 0x41c   : > { %12766 = vmatpush3.bf16.xpose.msra.mxu0 %v13974_v32  ;;  %v649_v60 = vmul.f32 %v14363_v19, %v620_v39  ;;  %v8476_v32 = vmul.f32 %v8354_v4, %v16369_v31 }
 0x41d   : > { %12767 = vmatprep.subr.bf16.mxu0 %v18704_v36 }
 0x41e   : > { %12786 = vmatpush3.bf16.xpose.msra.mxu1 %v13975_v29  ;;  %v11351_v29 = vpack.i.b16 %v2154_v9, %v2154_v9 }
 0x41f   : > { %12787 = vmatprep.subr.bf16.mxu1 %v18704_v36 }
 0x420   : > { %v4204_v31 = vrot.slane %v11351_v29, %v15459_v25 }
 0x424   : > { %12768 = vmatpush3.bf16.xpose.msra.mxu0 %v13976_v45  ;;  %v8477_v45 = vmul.f32 %v8355_v46, %v16374_v42 }
 0x425   : > { %12769 = vmatprep.subr.bf16.mxu0 %v18704_v36 }
 0x426   : > { %12788 = vmatpush3.bf16.xpose.msra.mxu1 %v13977_v16  ;;  %v4294_v16 = vpack.i.b16 %v2277_v2, %v2277_v2  ;;  %v8621_v4 = vrot.slane %v8477_v45, 3 }
 0x427   : > { %12789 = vmatprep.subr.bf16.mxu1 %v18704_v36 }
 0x428   : > { %v4298_v42 = vrot.slane %v4294_v16, %v15459_v25  ;;  %v13988_v16 = vld [vmem:[%s15433_s5 + $0x5b0] sm:$0xff]  }
 0x42c   : > { %12770 = vmatpush3.bf16.xpose.msra.mxu0 %v13978_v35  ;;  %v651_v35 = vsel %vm650_vm14, %v620_v39, %v649_v60 }
 0x42d   : > { %12771 = vmatprep.subr.bf16.mxu0 %v18704_v36  ;;  %v654_v9 = vsel %vm652_vm15, %v653_v23, %v651_v35 }
 0x42e   : > { %12790 = vmatpush3.bf16.xpose.msra.mxu1 %v13979_v61  ;;  %v8619_v61 = vrot.slane %v8476_v32, 4 }
 0x42f   : > { %12791 = vmatprep.subr.bf16.mxu1 %v18704_v36 }
 0x430   : > { %v8620_v19 = vsel %vm8602_vm10, %v8619_v61, %v16329_v56 }
 0x431   : > { %v8622_v29 = vsel %vm8605_vm11, %v8621_v4, %v8620_v19  ;;  %v13991_v4 = vld [vmem:[%s15433_s5 + $0x5e8] sm:$0xff]   ;;  %v13993_v19 = vld [vmem:[%s15433_s5 + $0x5e0] sm:$0xff]  }
 0x434   : > { %12772 = vmatpush3.bf16.xpose.msra.mxu0 %v13980_v0  ;;  %v8356_v0 = vrot.slane %v16254_v27, 6 }
 0x435   : > { %12773 = vmatprep.subr.bf16.mxu0 %v18704_v36 }
 0x436   : > { %12792 = vmatpush3.bf16.xpose.msra.mxu1 %v13981_v52  ;;  %v13986_v52 = vld [vmem:[%s15433_s5 + $0x5b8] sm:$0xff]  }
 0x437   : > { %12793 = vmatprep.subr.bf16.mxu1 %v18704_v36 }
 0x43c   : > { %12774 = vmatpush3.bf16.xpose.msra.mxu0 %v13982_v30  ;;  %v8357_v30 = vrot.slane %v16254_v27, 7  ;;  %v11163_v27 = vclamps-f32 %v654_v9, 0.999999 }
 0x43d   : > { %12775 = vmatprep.subr.bf16.mxu0 %v18704_v36 }
 0x43e   : > { %12794 = vmatpush3.bf16.xpose.msra.mxu1 %v13983_v6  ;;  %v13987_v6 = vld [vmem:[%s15433_s5 + $0x5f8] sm:$0xff]  }
 0x43f   : > { %12795 = vmatprep.subr.bf16.mxu1 %v18704_v36 }
 0x444   : > { %12776 = vmatpush3.bf16.xpose.msra.mxu0 %v13984_v58 }
 0x445   : > { %12801 = vmatprep.subr.bf16.mxu0 %v18704_v36 }
 0x446   : > { %12796 = vmatpush3.bf16.xpose.msra.mxu1 %v13985_v53 }
 0x447   : > { %12821 = vmatprep.subr.bf16.mxu1 %v18704_v36 }
 0x44b   : > { %v3724_v58 = vpop.f32.mrf.mxu0  ;;  %12778 = vmatmul.mubr.bf16.vlgmr.msra.gmra.mxu0 %v4204_v31  ;;  %v13989_v31 = vld [vmem:[%s15433_s5 + $0x5f0] sm:$0xff]  }
 0x44c   : > { %v8478_v53 = vmul.f32 %v8356_v0, %v3724_v58  ;;  %12802 = vmatpush3.bf16.xpose.msra.mxu0 %v13986_v52  ;;  %12817 = vmatprep.mubr.msk.bf16.mxu0 %vm15081_vm0, %v18704_v36  ;;  %v796_v0 = vsub.f32 1.0, %v11163_v27  ;;  %v13992_v58 = vld [vmem:[%s15433_s5 + $0x5a0] sm:$0xff]  }
 0x44d   : > { %v12659_v39 = vpop.f32.mrf.mxu0  ;;  %v3818_v46 = vpop.f32.mrf.mxu1  ;;  %12798 = vmatmul.mubr.bf16.vlgmr.msra.gmra.mxu1 %v4298_v42  ;;  %12803 = vmatprep.subr.bf16.mxu0 %v18704_v36  ;;  %v780_v42 = vadd.f32 1.0, %v11163_v27  ;;  %v13996_v27 = vld [vmem:[%s15433_s5 + $0x590] sm:$0xff]  }
 0x44e   : > { %v8623_v2 = vrot.slane %v8478_v53, 2  ;;  %v8479_v60 = vmul.f32 %v8357_v30, %v3818_v46  ;;  %12822 = vmatpush3.bf16.xpose.msra.mxu1 %v13987_v6  ;;  %12837 = vmatprep.mubr.msk.bf16.mxu1 %vm15081_vm0, %v18704_v36  ;;  %14364 = vrcp.f32 %v796_v0  ;;  %v13990_v6 = vld [vmem:[%s15433_s5 + $0x5a8] sm:$0xff]   ;;  %v13994_v46 = vld [vmem:[%s15433_s5 + $0x598] sm:$0xff]  }
 0x44f   : > { %v3727_v56 = vpop.f32.mrf.mxu0  ;;  %v12679_v32 = vpop.f32.mrf.mxu1  ;;  %12823 = vmatprep.subr.bf16.mxu1 %v18704_v36 }
 0x450   : > { %v8625_v23 = vrot.slane %v8479_v60, 1  ;;  %v8624_v45 = vsel %vm8608_vm12, %v8623_v2, %v8622_v29  ;;  %v13995_v2 = vld [vmem:[%s15433_s5 + $0x5d8] sm:$0xff]   ;;  %v13997_v60 = vld [vmem:[%s15433_s5 + $0x5d0] sm:$0xff]   ;;  %v13998_v32 = vld [vmem:[%s15433_s5 + $0x588] sm:$0xff]  }
 0x451   : > { %v12660_v35 = vpop.f32.mrf.mxu0  ;;  %v3821_v61 = vpop.f32.mrf.mxu1 }
 0x452   : > { %v8626_v52 = vsel %vm8611_vm13, %v8625_v23, %v8624_v45  ;;  %v13999_v23 = vld [vmem:[%s15433_s5 + $0x5c8] sm:$0xff]   ;;  %v14000_v35 = vld [vmem:[%s15433_s5 + $0x580] sm:$0xff]  }
 0x453   : > { %v12680_v30 = vpop.f32.mrf.mxu1  ;;  %8721 = vadd.xlane.f32.xlu1 %v8626_v52  ;;  %v14001_v61 = vld [vmem:[%s15433_s5 + $0x5c0] sm:$0xff]  }
 0x454   : > { %12804 = vmatpush3.bf16.xpose.msra.mxu0 %v13988_v16  ;;  %v2156_v16 = vcombine.high %v16357_v11, %v16357_v11  ;;  %v14775_v30 = vld [vmem:[%s15426_s6 + $0x10] sm:$0xff] }
 0x455   : > { %12805 = vmatprep.subr.bf16.mxu0 %v18704_v36 }
 0x456   : > { %12824 = vmatpush3.bf16.xpose.msra.mxu1 %v13989_v31  ;;  %v2279_v52 = vunpack.i.h.s16 %v2156_v16  ;;  %v11368_v31 = vpack.i.b16 %v2156_v16, %v2156_v16 }
 0x457   : > { %12825 = vmatprep.subr.bf16.mxu1 %v18704_v36 }
 0x45b   : > { %v14365_v53 = vpop.eup %14364 }
 0x45c   : > { %12806 = vmatpush3.bf16.xpose.msra.mxu0 %v13990_v6  ;;  %v815_v39 = vmul.f32 %v14365_v53, %v780_v42  ;;  %v4392_v42 = vrot.slane %v11368_v31, %v15459_v25  ;;  %v14008_v31 = vld [vmem:[%s15433_s5 + $0x620] sm:$0xff]  }
 0x45d   : > { %12807 = vmatprep.subr.bf16.mxu0 %v18704_v36 }
 0x45e   : > { %12826 = vmatpush3.bf16.xpose.msra.mxu1 %v13991_v4  ;;  %14366 = vlog2.f32 %v815_v39  ;;  %v4482_v4 = vpack.i.b16 %v2279_v52, %v2279_v52  ;;  %v14007_v52 = vld [vmem:[%s15433_s5 + $0x668] sm:$0xff]  }
 0x45f   : > { %12827 = vmatprep.subr.bf16.mxu1 %v18704_v36  ;;  %14368 = vrcp.f32 %v654_v9 }
 0x460   : > { %v4486_v39 = vrot.slane %v4482_v4, %v15459_v25  ;;  %v14010_v4 = vld [vmem:[%s15433_s5 + $0x618] sm:$0xff]  }
 0x464   : > { %12808 = vmatpush3.bf16.xpose.msra.mxu0 %v13992_v58  ;;  %v14002_v58 = vld [vmem:[%s15433_s5 + $0x638] sm:$0xff]  }
 0x465   : > { %12809 = vmatprep.subr.bf16.mxu0 %v18704_v36 }
 0x466   : > { %12828 = vmatpush3.bf16.xpose.msra.mxu1 %v13993_v19  ;;  %v14003_v19 = vld [vmem:[%s15433_s5 + $0x678] sm:$0xff]  }
 0x467   : > { %12829 = vmatprep.subr.bf16.mxu1 %v18704_v36 }
 0x46b   : > { %v14367_v56 = vpop.eup %14366 }
 0x46c   : > { %12810 = vmatpush3.bf16.xpose.msra.mxu0 %v13994_v46  ;;  %v847_v29 = vmul.f32 0.6931472, %v14367_v56  ;;  %v14369_v9 = vpop.eup %14368 }
 0x46d   : > { %12811 = vmatprep.subr.bf16.mxu0 %v18704_v36 }
 0x46e   : > { %12830 = vmatpush3.bf16.xpose.msra.mxu1 %v13995_v2  ;;  %v876_v45 = vmul.f32 0.5, %v847_v29 }
 0x46f   : > { %12831 = vmatprep.subr.bf16.mxu1 %v18704_v36 }
 0x470   : > { %v895_v0 = vmul.f32 %v14369_v9, %v876_v45 }
 0x472   : > { %v16462_v6 = vmul.f32 %v14775_v30, %v895_v0  ;;  %v14006_v0 = vld [vmem:[%s15433_s5 + $0x628] sm:$0xff]   ;;  %v14009_v30 = vld [vmem:[%s15433_s5 + $0x660] sm:$0xff]  }
 0x474   : > { %12812 = vmatpush3.bf16.xpose.msra.mxu0 %v13996_v27  ;;  %v8358_v11 = vrot.slane %v16462_v6, 1 }
 0x475   : > { %12813 = vmatprep.subr.bf16.mxu0 %v18704_v36 }
 0x476   : > { %12832 = vmatpush3.bf16.xpose.msra.mxu1 %v13997_v60 }
 0x477   : > { %12833 = vmatprep.subr.bf16.mxu1 %v18704_v36 }
 0x47c   : > { %12814 = vmatpush3.bf16.xpose.msra.mxu0 %v13998_v32 }
 0x47d   : > { %12815 = vmatprep.subr.bf16.mxu0 %v18704_v36 }
 0x47e   : > { %12834 = vmatpush3.bf16.xpose.msra.mxu1 %v13999_v23  ;;  %v14004_v23 = vld [vmem:[%s15433_s5 + $0x630] sm:$0xff]  }
 0x47f   : > { %12835 = vmatprep.subr.bf16.mxu1 %v18704_v36 }
 0x484   : > { %12816 = vmatpush3.bf16.xpose.msra.mxu0 %v14000_v35  ;;  %v14005_v35 = vld [vmem:[%s15433_s5 + $0x670] sm:$0xff]  }
 0x485   : > { %12841 = vmatprep.subr.bf16.mxu0 %v18704_v36 }
 0x486   : > { %12836 = vmatpush3.bf16.xpose.msra.mxu1 %v14001_v61 }
 0x487   : > { %12861 = vmatprep.subr.bf16.mxu1 %v18704_v36 }
 0x48b   : > { %v3912_v53 = vpop.f32.mrf.mxu0  ;;  %12818 = vmatmul.mubr.bf16.vlgmr.msra.gmra.mxu0 %v4392_v42  ;;  %v14012_v42 = vld [vmem:[%s15433_s5 + $0x610] sm:$0xff]  }
 0x48c   : > { %v8480_v46 = vmul.f32 %v3912_v53, %v16462_v6  ;;  %12842 = vmatpush3.bf16.xpose.msra.mxu0 %v14002_v58  ;;  %12857 = vmatprep.mubr.msk.bf16.mxu0 %vm15081_vm0, %v18704_v36  ;;  %v14011_v58 = vld [vmem:[%s15433_s5 + $0x658] sm:$0xff]   ;;  %v14014_v53 = vld [vmem:[%s15433_s5 + $0x608] sm:$0xff]  }
 0x48d   : > { %v12699_v2 = vpop.f32.mrf.mxu0  ;;  %v4006_v27 = vpop.f32.mrf.mxu1  ;;  %12838 = vmatmul.mubr.bf16.vlgmr.msra.gmra.mxu1 %v4486_v39  ;;  %12843 = vmatprep.subr.bf16.mxu0 %v18704_v36  ;;  %v14015_v39 = vld [vmem:[%s15433_s5 + $0x648] sm:$0xff]  }
 0x48e   : > { %v8481_v60 = vmul.f32 %v8358_v11, %v4006_v27  ;;  %12862 = vmatpush3.bf16.xpose.msra.mxu1 %v14003_v19  ;;  %12877 = vmatprep.mubr.msk.bf16.mxu1 %vm15081_vm0, %v18704_v36  ;;  %v14013_v11 = vld [vmem:[%s15433_s5 + $0x650] sm:$0xff]   ;;  %v11178_v19 = vpack.c.bf16 %v15887_v28, %v15887_v28  ;;  %v14016_v27 = vld [vmem:[%s15433_s5 + $0x600] sm:$0xff]  }
 0x48f   : > { %v3915_v56 = vpop.f32.mrf.mxu0  ;;  %v12719_v32 = vpop.f32.mrf.mxu1  ;;  %12863 = vmatprep.subr.bf16.mxu1 %v18704_v36 }
 0x490   : > { %v8627_v29 = vrot.slane %v8481_v60, 7  ;;  %v14017_v60 = vld [vmem:[%s15433_s5 + $0x640] sm:$0xff]  }
 0x491   : > { %v12700_v45 = vpop.f32.mrf.mxu0  ;;  %v4009_v9 = vpop.f32.mrf.mxu1 }
 0x492   : > { %v16479_v16 = vsel %vm8593_vm5, %v8627_v29, %v8480_v46  ;;  %v16505_v46 = vrot.slane %v11178_v19, %v15442_v5  ;;  %v8359_v29 = vrot.slane %v16462_v6, 2  ;;  %v8360_v9 = vrot.slane %v16462_v6, 3 }
 0x493   : > { %v12720_v61 = vpop.f32.mrf.mxu1 }
 0x494   : > { %12844 = vmatpush3.bf16.xpose.msra.mxu0 %v14004_v23  ;;  %v16511_v2 = vrot.slane %v16505_v46, %v15442_v5  ;;  %v14018_v23 = vld [vmem:[%s15433_s5 + $0x6b8] sm:$0xff]  }
 0x495   : > { %12845 = vmatprep.subr.bf16.mxu0 %v18704_v36 }
 0x496   : > { %12864 = vmatpush3.bf16.xpose.msra.mxu1 %v14005_v35  ;;  %v2281_v28 = vunpack.i.h.s16 %v16511_v2  ;;  %v11385_v56 = vpack.i.b16 %v16511_v2, %v16511_v2  ;;  %v14019_v35 = vld [vmem:[%s15433_s5 + $0x6f8] sm:$0xff]  }
 0x497   : > { %12865 = vmatprep.subr.bf16.mxu1 %v18704_v36 }
 0x498   : > { %v4670_v32 = vpack.i.b16 %v2281_v28, %v2281_v28  ;;  %v4580_v45 = vrot.slane %v11385_v56, %v15459_v25  ;;  %v14021_v56 = vld [vmem:[%s15433_s5 + $0x6f0] sm:$0xff]  }
 0x49c   : > { %12846 = vmatpush3.bf16.xpose.msra.mxu0 %v14006_v0  ;;  %v4674_v0 = vrot.slane %v4670_v32, %v15459_v25 }
 0x49d   : > { %12847 = vmatprep.subr.bf16.mxu0 %v18704_v36 }
 0x49e   : > { %12866 = vmatpush3.bf16.xpose.msra.mxu1 %v14007_v52 }
 0x49f   : > { %12867 = vmatprep.subr.bf16.mxu1 %v18704_v36 }
 0x4a4   : > { %12848 = vmatpush3.bf16.xpose.msra.mxu0 %v14008_v31 }
 0x4a5   : > { %12849 = vmatprep.subr.bf16.mxu0 %v18704_v36 }
 0x4a6   : > { %12868 = vmatpush3.bf16.xpose.msra.mxu1 %v14009_v30 }
 0x4a7   : > { %12869 = vmatprep.subr.bf16.mxu1 %v18704_v36 }
 0x4ac   : > { %12850 = vmatpush3.bf16.xpose.msra.mxu0 %v14010_v4 }
 0x4ad   : > { %12851 = vmatprep.subr.bf16.mxu0 %v18704_v36 }
 0x4ae   : > { %12870 = vmatpush3.bf16.xpose.msra.mxu1 %v14011_v58 }
 0x4af   : > { %12871 = vmatprep.subr.bf16.mxu1 %v18704_v36 }
 0x4b4   : > { %12852 = vmatpush3.bf16.xpose.msra.mxu0 %v14012_v42 }
 0x4b5   : > { %12853 = vmatprep.subr.bf16.mxu0 %v18704_v36 }
 0x4b6   : > { %12872 = vmatpush3.bf16.xpose.msra.mxu1 %v14013_v11 }
 0x4b7   : > { %12873 = vmatprep.subr.bf16.mxu1 %v18704_v36 }
 0x4bc   : > { %12854 = vmatpush3.bf16.xpose.msra.mxu0 %v14014_v53 }
 0x4bd   : > { %12855 = vmatprep.subr.bf16.mxu0 %v18704_v36 }
 0x4be   : > { %12874 = vmatpush3.bf16.xpose.msra.mxu1 %v14015_v39  ;;  %v14020_v39 = vld [vmem:[%s15433_s5 + $0x6b0] sm:$0xff]  }
 0x4bf   : > { %12875 = vmatprep.subr.bf16.mxu1 %v18704_v36 }
 0x4c4   : > { %12856 = vmatpush3.bf16.xpose.msra.mxu0 %v14016_v27 }
 0x4c5   : > { %12881 = vmatprep.subr.bf16.mxu0 %v18704_v36 }
 0x4c6   : > { %12876 = vmatpush3.bf16.xpose.msra.mxu1 %v14017_v60 }
 0x4c7   : > { %12901 = vmatprep.subr.bf16.mxu1 %v18704_v36 }
 0x4cb   : > { %v4100_v61 = vpop.f32.mrf.mxu0  ;;  %12858 = vmatmul.mubr.bf16.vlgmr.msra.gmra.mxu0 %v4580_v45  ;;  %v14025_v45 = vld [vmem:[%s15433_s5 + $0x6e0] sm:$0xff]  }
 0x4cc   : > { %v8482_v52 = vmul.f32 %v8359_v29, %v4100_v61  ;;  %12882 = vmatpush3.bf16.xpose.msra.mxu0 %v14018_v23  ;;  %12897 = vmatprep.mubr.msk.bf16.mxu0 %vm15081_vm0, %v18704_v36  ;;  %v14023_v29 = vld [vmem:[%s15433_s5 + $0x6e8] sm:$0xff]   ;;  %v14024_v23 = vld [vmem:[%s15433_s5 + $0x6a0] sm:$0xff]   ;;  %v14028_v61 = vld [vmem:[%s15433_s5 + $0x690] sm:$0xff]  }
 0x4cd   : > { %v12739_v31 = vpop.f32.mrf.mxu0  ;;  %v4194_v30 = vpop.f32.mrf.mxu1  ;;  %12878 = vmatmul.mubr.bf16.vlgmr.msra.gmra.mxu1 %v4674_v0  ;;  %12883 = vmatprep.subr.bf16.mxu0 %v18704_v36  ;;  %v14029_v0 = vld [vmem:[%s15433_s5 + $0x6d0] sm:$0xff]  }
 0x4ce   : > { %v8629_v4 = vrot.slane %v8482_v52, 6  ;;  %v8483_v58 = vmul.f32 %v8360_v9, %v4194_v30  ;;  %12902 = vmatpush3.bf16.xpose.msra.mxu1 %v14019_v35  ;;  %12917 = vmatprep.mubr.msk.bf16.mxu1 %vm15081_vm0, %v18704_v36  ;;  %v14026_v9 = vld [vmem:[%s15433_s5 + $0x698] sm:$0xff]   ;;  %v14030_v52 = vld [vmem:[%s15433_s5 + $0x688] sm:$0xff]   ;;  %v2125_v30 = vcombine.high %v16505_v46, %v16505_v46 }
 0x4cf   : > { %v4103_v42 = vpop.f32.mrf.mxu0  ;;  %v12759_v11 = vpop.f32.mrf.mxu1  ;;  %12903 = vmatprep.subr.bf16.mxu1 %v18704_v36  ;;  %v14027_v35 = vld [vmem:[%s15433_s5 + $0x6d8] sm:$0xff]   ;;  %v14031_v31 = vld [vmem:[%s15433_s5 + $0x6c8] sm:$0xff]  }
 0x4d0   : > { %v8630_v19 = vsel %vm8596_vm6, %v8629_v4, %v16479_v16  ;;  %v8631_v53 = vrot.slane %v8483_v58, 5  ;;  %v14022_v16 = vld [vmem:[%s15433_s5 + $0x6a8] sm:$0xff]   ;;  %v16564_v4 = vrot.slane %v2125_v30, %v15442_v5  ;;  %v14032_v58 = vld [vmem:[%s15433_s5 + $0x680] sm:$0xff]   ;;  %v14036_v30 = vld [vmem:[%s15433_s5 + $0x730] sm:$0xff]  }
 0x4d1   : > { %v12740_v27 = vpop.f32.mrf.mxu0  ;;  %v4197_v60 = vpop.f32.mrf.mxu1  ;;  %v14033_v42 = vld [vmem:[%s15433_s5 + $0x6c0] sm:$0xff]  }
 0x4d2   : > { %v16536_v28 = vsel %vm8599_vm7, %v8631_v53, %v8630_v19  ;;  %v2283_v11 = vunpack.i.h.s16 %v16564_v4  ;;  %v11402_v19 = vpack.i.b16 %v16564_v4, %v16564_v4  ;;  %v8361_v53 = vrot.slane %v16462_v6, 4 }
 0x4d3   : > { %v12760_v32 = vpop.f32.mrf.mxu1  ;;  %v8362_v60 = vrot.slane %v16462_v6, 5 }
 0x4d4   : > { %12884 = vmatpush3.bf16.xpose.msra.mxu0 %v14020_v39  ;;  %v4858_v46 = vpack.i.b16 %v2283_v11, %v2283_v11  ;;  %v14034_v39 = vld [vmem:[%s15433_s5 + $0x738] sm:$0xff]   ;;  %v4768_v27 = vrot.slane %v11402_v19, %v15459_v25  ;;  %v14037_v11 = vld [vmem:[%s15433_s5 + $0x770] sm:$0xff]  }
 0x4d5   : > { %12885 = vmatprep.subr.bf16.mxu0 %v18704_v36 }
 0x4d6   : > { %12904 = vmatpush3.bf16.xpose.msra.mxu1 %v14021_v56  ;;  %v14035_v56 = vld [vmem:[%s15433_s5 + $0x778] sm:$0xff]  }
 0x4d7   : > { %12905 = vmatprep.subr.bf16.mxu1 %v18704_v36 }
 0x4dc   : > { %12886 = vmatpush3.bf16.xpose.msra.mxu0 %v14022_v16  ;;  %v4862_v16 = vrot.slane %v4858_v46, %v15459_v25 }
 0x4dd   : > { %12887 = vmatprep.subr.bf16.mxu0 %v18704_v36 }
 0x4de   : > { %12906 = vmatpush3.bf16.xpose.msra.mxu1 %v14023_v29 }
 0x4df   : > { %12907 = vmatprep.subr.bf16.mxu1 %v18704_v36 }
 0x4e4   : > { %12888 = vmatpush3.bf16.xpose.msra.mxu0 %v14024_v23 }
 0x4e5   : > { %12889 = vmatprep.subr.bf16.mxu0 %v18704_v36 }
 0x4e6   : > { %12908 = vmatpush3.bf16.xpose.msra.mxu1 %v14025_v45 }
 0x4e7   : > { %12909 = vmatprep.subr.bf16.mxu1 %v18704_v36 }
 0x4ec   : > { %12890 = vmatpush3.bf16.xpose.msra.mxu0 %v14026_v9 }
 0x4ed   : > { %12891 = vmatprep.subr.bf16.mxu0 %v18704_v36 }
 0x4ee   : > { %12910 = vmatpush3.bf16.xpose.msra.mxu1 %v14027_v35 }
 0x4ef   : > { %12911 = vmatprep.subr.bf16.mxu1 %v18704_v36 }
 0x4f4   : > { %12892 = vmatpush3.bf16.xpose.msra.mxu0 %v14028_v61 }
 0x4f5   : > { %12893 = vmatprep.subr.bf16.mxu0 %v18704_v36 }
 0x4f6   : > { %12912 = vmatpush3.bf16.xpose.msra.mxu1 %v14029_v0 }
 0x4f7   : > { %12913 = vmatprep.subr.bf16.mxu1 %v18704_v36 }
 0x4fc   : > { %12894 = vmatpush3.bf16.xpose.msra.mxu0 %v14030_v52 }
 0x4fd   : > { %12895 = vmatprep.subr.bf16.mxu0 %v18704_v36 }
 0x4fe   : > { %12914 = vmatpush3.bf16.xpose.msra.mxu1 %v14031_v31 }
 0x4ff   : > { %12915 = vmatprep.subr.bf16.mxu1 %v18704_v36 }
 0x504   : > { %12896 = vmatpush3.bf16.xpose.msra.mxu0 %v14032_v58 }
 0x505   : > { %12921 = vmatprep.subr.bf16.mxu0 %v18704_v36 }
 0x506   : > { %12916 = vmatpush3.bf16.xpose.msra.mxu1 %v14033_v42 }
 0x507   : > { %12941 = vmatprep.subr.bf16.mxu1 %v18704_v36 }
 0x50b   : > { %v4288_v32 = vpop.f32.mrf.mxu0  ;;  %12898 = vmatmul.mubr.bf16.vlgmr.msra.gmra.mxu0 %v4768_v27  ;;  %v14041_v27 = vld [vmem:[%s15433_s5 + $0x760] sm:$0xff]  }
 0x50c   : > { %v8484_v29 = vmul.f32 %v8361_v53, %v4288_v32  ;;  %12922 = vmatpush3.bf16.xpose.msra.mxu0 %v14034_v39  ;;  %12937 = vmatprep.mubr.msk.bf16.mxu0 %vm15081_vm0, %v18704_v36  ;;  %v14039_v53 = vld [vmem:[%s15433_s5 + $0x768] sm:$0xff]   ;;  %v14040_v39 = vld [vmem:[%s15433_s5 + $0x720] sm:$0xff]   ;;  %v621_v32 = vmax.f32 %v15610_v8, 1e-15  ;;  %v2155_v8 = vcombine.high %v16511_v2, %v16511_v2  ;;  %v8363_v2 = vrot.slane %v16462_v6, 6 }
 0x50d   : > { %v12779_v23 = vpop.f32.mrf.mxu0  ;;  %v4382_v45 = vpop.f32.mrf.mxu1  ;;  %12918 = vmatmul.mubr.bf16.vlgmr.msra.gmra.mxu1 %v4862_v16  ;;  %12923 = vmatprep.subr.bf16.mxu0 %v18704_v36  ;;  %v14044_v16 = vld [vmem:[%s15433_s5 + $0x710] sm:$0xff]  }
 0x50e   : > { %v8633_v9 = vrot.slane %v8484_v29, 4  ;;  %v8485_v35 = vmul.f32 %v8362_v60, %v4382_v45  ;;  %12942 = vmatpush3.bf16.xpose.msra.mxu1 %v14035_v56  ;;  %12957 = vmatprep.mubr.msk.bf16.mxu1 %vm15081_vm0, %v18704_v36  ;;  %v14042_v60 = vld [vmem:[%s15433_s5 + $0x718] sm:$0xff]   ;;  %v14045_v29 = vld [vmem:[%s15433_s5 + $0x750] sm:$0xff]   ;;  %14370 = vrsqrt.f32 %v621_v32  ;;  %v14046_v23 = vld [vmem:[%s15433_s5 + $0x708] sm:$0xff]   ;;  %vm657_vm1 = vcmp.eq.f32.partialorder %v621_v32, inf }
 0x50f   : > { %v4291_v61 = vpop.f32.mrf.mxu0  ;;  %v12799_v0 = vpop.f32.mrf.mxu1  ;;  %12943 = vmatprep.subr.bf16.mxu1 %v18704_v36  ;;  %v14043_v56 = vld [vmem:[%s15433_s5 + $0x758] sm:$0xff]   ;;  %v14047_v45 = vld [vmem:[%s15433_s5 + $0x748] sm:$0xff]   ;;  %vm659_vm2 = vcmp.eq.f32.partialorder %v621_v32, 0.0 }
 0x510   : > { %v8634_v52 = vsel %vm8602_vm10, %v8633_v9, %v16536_v28  ;;  %v8635_v31 = vrot.slane %v8485_v35, 3  ;;  %v14038_v28 = vld [vmem:[%s15433_s5 + $0x728] sm:$0xff]   ;;  %v14048_v9 = vld [vmem:[%s15433_s5 + $0x700] sm:$0xff]   ;;  %v2285_v0 = vunpack.i.h.s16 %v2155_v8 }
 0x511   : > { %v12780_v58 = vpop.f32.mrf.mxu0  ;;  %v4385_v42 = vpop.f32.mrf.mxu1  ;;  %v14049_v61 = vld [vmem:[%s15433_s5 + $0x740] sm:$0xff]  }
 0x512   : > { %v16590_v19 = vsel %vm8605_vm11, %v8635_v31, %v8634_v52  ;;  %v11419_v31 = vpack.i.b16 %v2155_v8, %v2155_v8  ;;  %v5046_v58 = vpack.i.b16 %v2285_v0, %v2285_v0 }
 0x513   : > { %v12800_v46 = vpop.f32.mrf.mxu1 }
 0x514   : > { %12924 = vmatpush3.bf16.xpose.msra.mxu0 %v14036_v30  ;;  %v660_v30 = vand.u32 2147483648, %v621_v32  ;;  %v4956_v46 = vrot.slane %v11419_v31, %v15459_v25 }
 0x515   : > { %12925 = vmatprep.subr.bf16.mxu0 %v18704_v36 }
 0x516   : > { %12944 = vmatpush3.bf16.xpose.msra.mxu1 %v14037_v11  ;;  %v14050_v11 = vld [vmem:[%s15433_s5 + $0x7b8] sm:$0xff]  }
 0x517   : > { %12945 = vmatprep.subr.bf16.mxu1 %v18704_v36 }
 0x51b   : > { %v14371_v35 = vpop.eup %14370 }
 0x51c   : > { %12926 = vmatpush3.bf16.xpose.msra.mxu0 %v14038_v28  ;;  %v656_v52 = vmul.f32 %v14371_v35, %v621_v32  ;;  %v8364_v28 = vrot.slane %v16462_v6, 7 }
 0x51d   : > { %12927 = vmatprep.subr.bf16.mxu0 %v18704_v36 }
 0x51e   : > { %12946 = vmatpush3.bf16.xpose.msra.mxu1 %v14039_v53  ;;  %v658_v42 = vsel %vm657_vm1, %v621_v32, %v656_v52  ;;  %v14051_v53 = vld [vmem:[%s15433_s5 + $0x7f8] sm:$0xff]  }
 0x51f   : > { %12947 = vmatprep.subr.bf16.mxu1 %v18704_v36 }
 0x524   : > { %12928 = vmatpush3.bf16.xpose.msra.mxu0 %v14040_v39  ;;  %v661_v39 = vsel %vm659_vm2, %v660_v30, %v658_v42 }
 0x525   : > { %12929 = vmatprep.subr.bf16.mxu0 %v18704_v36 }
 0x526   : > { %12948 = vmatpush3.bf16.xpose.msra.mxu1 %v14041_v27 }
 0x527   : > { %12949 = vmatprep.subr.bf16.mxu1 %v18704_v36 }
 0x52c   : > { %12930 = vmatpush3.bf16.xpose.msra.mxu0 %v14042_v60  ;;  %v5050_v60 = vrot.slane %v5046_v58, %v15459_v25  ;;  %v14053_v58 = vld [vmem:[%s15433_s5 + $0x7f0] sm:$0xff]  }
 0x52d   : > { %12931 = vmatprep.subr.bf16.mxu0 %v18704_v36 }
 0x52e   : > { %12950 = vmatpush3.bf16.xpose.msra.mxu1 %v14043_v56 }
 0x52f   : > { %12951 = vmatprep.subr.bf16.mxu1 %v18704_v36 }
 0x534   : > { %12932 = vmatpush3.bf16.xpose.msra.mxu0 %v14044_v16 }
 0x535   : > { %12933 = vmatprep.subr.bf16.mxu0 %v18704_v36 }
 0x536   : > { %12952 = vmatpush3.bf16.xpose.msra.mxu1 %v14045_v29  ;;  %v11164_v29 = vclamps-f32 %v661_v39, 0.999999 }
 0x537   : > { %12953 = vmatprep.subr.bf16.mxu1 %v18704_v36 }
 0x538   : > { %v797_v31 = vsub.f32 1.0, %v11164_v29 }
 0x53a   : > { %14372 = vrcp.f32 %v797_v31 }
 0x53c   : > { %12934 = vmatpush3.bf16.xpose.msra.mxu0 %v14046_v23 }
 0x53d   : > { %12935 = vmatprep.subr.bf16.mxu0 %v18704_v36 }
 0x53e   : > { %12954 = vmatpush3.bf16.xpose.msra.mxu1 %v14047_v45 }
 0x53f   : > { %12955 = vmatprep.subr.bf16.mxu1 %v18704_v36 }
 0x544   : > { %12936 = vmatpush3.bf16.xpose.msra.mxu0 %v14048_v9 }
 0x545   : > { %12961 = vmatprep.subr.bf16.mxu0 %v18704_v36 }
 0x546   : > { %12956 = vmatpush3.bf16.xpose.msra.mxu1 %v14049_v61  ;;  %v14052_v61 = vld [vmem:[%s15433_s5 + $0x7b0] sm:$0xff]  }
 0x547   : > { %12981 = vmatprep.subr.bf16.mxu1 %v18704_v36 }
 0x54b   : > { %v4476_v27 = vpop.f32.mrf.mxu0  ;;  %12938 = vmatmul.mubr.bf16.vlgmr.msra.gmra.mxu0 %v4956_v46  ;;  %v781_v46 = vadd.f32 1.0, %v11164_v29 }
 0x54c   : > { %v8486_v56 = vmul.f32 %v8363_v2, %v4476_v27  ;;  %12962 = vmatpush3.bf16.xpose.msra.mxu0 %v14050_v11  ;;  %12977 = vmatprep.mubr.msk.bf16.mxu0 %vm15081_vm0, %v18704_v36  ;;  %v14055_v2 = vld [vmem:[%s15433_s5 + $0x7e8] sm:$0xff]   ;;  %v14056_v11 = vld [vmem:[%s15433_s5 + $0x7a0] sm:$0xff]  }
 0x54d   : > { %v12819_v32 = vpop.f32.mrf.mxu0  ;;  %v4570_v16 = vpop.f32.mrf.mxu1  ;;  %12958 = vmatmul.mubr.bf16.vlgmr.msra.gmra.mxu1 %v5050_v60  ;;  %12963 = vmatprep.subr.bf16.mxu0 %v18704_v36  ;;  %v14058_v60 = vld [vmem:[%s15433_s5 + $0x798] sm:$0xff]  }
 0x54e   : > { %v8637_v6 = vrot.slane %v8486_v56, 2  ;;  %v8487_v23 = vmul.f32 %v8364_v28, %v4570_v16  ;;  %12982 = vmatpush3.bf16.xpose.msra.mxu1 %v14051_v53  ;;  %12997 = vmatprep.mubr.msk.bf16.mxu1 %vm15081_vm0, %v18704_v36  ;;  %v14057_v28 = vld [vmem:[%s15433_s5 + $0x7e0] sm:$0xff]   ;;  %v14373_v53 = vpop.eup %14372  ;;  %v14059_v56 = vld [vmem:[%s15433_s5 + $0x7d8] sm:$0xff]   ;;  %v14060_v32 = vld [vmem:[%s15433_s5 + $0x790] sm:$0xff]  }
 0x54f   : > { %v4479_v45 = vpop.f32.mrf.mxu0  ;;  %v12839_v8 = vpop.f32.mrf.mxu1  ;;  %12983 = vmatprep.subr.bf16.mxu1 %v18704_v36  ;;  %v817_v27 = vmul.f32 %v14373_v53, %v781_v46  ;;  %v14061_v16 = vld [vmem:[%s15433_s5 + $0x7d0] sm:$0xff]  }
 0x550   : > { %v8639_v9 = vrot.slane %v8487_v23, 1  ;;  %v8638_v35 = vsel %vm8608_vm12, %v8637_v6, %v16590_v19  ;;  %v14054_v19 = vld [vmem:[%s15433_s5 + $0x7a8] sm:$0xff]  }
 0x551   : > { %v12820_v0 = vpop.f32.mrf.mxu0  ;;  %v4573_v52 = vpop.f32.mrf.mxu1  ;;  %14374 = vlog2.f32 %v817_v27  ;;  %v14062_v6 = vld [vmem:[%s15433_s5 + $0x788] sm:$0xff]  }
 0x552   : > { %v8640_v30 = vsel %vm8611_vm13, %v8639_v9, %v8638_v35  ;;  %14376 = vrcp.f32 %v661_v39  ;;  %v14063_v45 = vld [vmem:[%s15433_s5 + $0x7c8] sm:$0xff]   ;;  %v2157_v9 = vcombine.high %v16564_v4, %v16564_v4  ;;  %v14064_v35 = vld [vmem:[%s15433_s5 + $0x780] sm:$0xff]  }
 0x553   : > { %v12840_v42 = vpop.f32.mrf.mxu1  ;;  %8723 = vadd.xlane.f32.xlu0 %v8640_v30  ;;  %v14776_v30 = vld [vmem:[%s15426_s6 + $0x18] sm:$0xff] }
 0x554   : > { %12964 = vmatpush3.bf16.xpose.msra.mxu0 %v14052_v61  ;;  %v14065_v61 = vld [vmem:[%s15433_s5 + $0x7c0] sm:$0xff]   ;;  %v2287_v52 = vunpack.i.h.s16 %v2157_v9  ;;  %v11436_v31 = vpack.i.b16 %v2157_v9, %v2157_v9 }
 0x555   : > { %12965 = vmatprep.subr.bf16.mxu0 %v18704_v36 }
 0x556   : > { %12984 = vmatpush3.bf16.xpose.msra.mxu1 %v14053_v58  ;;  %v5234_v42 = vpack.i.b16 %v2287_v52, %v2287_v52  ;;  %v14073_v52 = vld [vmem:[%s15433_s5 + $0x860] sm:$0xff]  }
 0x557   : > { %12985 = vmatprep.subr.bf16.mxu1 %v18704_v36 }
 0x55c   : > { %12966 = vmatpush3.bf16.xpose.msra.mxu0 %v14054_v19  ;;  %v14066_v19 = vld [vmem:[%s15433_s5 + $0x838] sm:$0xff]  }
 0x55d   : > { %12967 = vmatprep.subr.bf16.mxu0 %v18704_v36 }
 0x55e   : > { %12986 = vmatpush3.bf16.xpose.msra.mxu1 %v14055_v2  ;;  %v14375_v29 = vpop.eup %14374  ;;  %v5144_v2 = vrot.slane %v11436_v31, %v15459_v25  ;;  %v14074_v31 = vld [vmem:[%s15433_s5 + $0x818] sm:$0xff]  }
 0x55f   : > { %12987 = vmatprep.subr.bf16.mxu1 %v18704_v36  ;;  %v849_v23 = vmul.f32 0.6931472, %v14375_v29  ;;  %v14377_v39 = vpop.eup %14376 }
 0x561   : > { %v877_v8 = vmul.f32 0.5, %v849_v23 }
 0x563   : > { %v897_v0 = vmul.f32 %v14377_v39, %v877_v8  ;;  %v14069_v39 = vld [vmem:[%s15433_s5 + $0x870] sm:$0xff]  }
 0x564   : > { %12968 = vmatpush3.bf16.xpose.msra.mxu0 %v14056_v11  ;;  %v14067_v11 = vld [vmem:[%s15433_s5 + $0x878] sm:$0xff]  }
 0x565   : > { %12969 = vmatprep.subr.bf16.mxu0 %v18704_v36  ;;  %v16666_v58 = vmul.f32 %v14776_v30, %v897_v0  ;;  %v14072_v0 = vld [vmem:[%s15433_s5 + $0x820] sm:$0xff]   ;;  %v14075_v30 = vld [vmem:[%s15433_s5 + $0x858] sm:$0xff]  }
 0x566   : > { %12988 = vmatpush3.bf16.xpose.msra.mxu1 %v14057_v28  ;;  %v5238_v28 = vrot.slane %v5234_v42, %v15459_v25  ;;  %v14076_v42 = vld [vmem:[%s15433_s5 + $0x810] sm:$0xff]  }
 0x567   : > { %12989 = vmatprep.subr.bf16.mxu1 %v18704_v36  ;;  %v8365_v4 = vrot.slane %v16666_v58, 1 }
 0x56c   : > { %12970 = vmatpush3.bf16.xpose.msra.mxu0 %v14058_v60 }
 0x56d   : > { %12971 = vmatprep.subr.bf16.mxu0 %v18704_v36 }
 0x56e   : > { %12990 = vmatpush3.bf16.xpose.msra.mxu1 %v14059_v56 }
 0x56f   : > { %12991 = vmatprep.subr.bf16.mxu1 %v18704_v36 }
 0x574   : > { %12972 = vmatpush3.bf16.xpose.msra.mxu0 %v14060_v32 }
 0x575   : > { %12973 = vmatprep.subr.bf16.mxu0 %v18704_v36 }
 0x576   : > { %12992 = vmatpush3.bf16.xpose.msra.mxu1 %v14061_v16 }
 0x577   : > { %12993 = vmatprep.subr.bf16.mxu1 %v18704_v36 }
 0x57c   : > { %12974 = vmatpush3.bf16.xpose.msra.mxu0 %v14062_v6  ;;  %v14068_v6 = vld [vmem:[%s15433_s5 + $0x830] sm:$0xff]  }
 0x57d   : > { %12975 = vmatprep.subr.bf16.mxu0 %v18704_v36 }
 0x57e   : > { %12994 = vmatpush3.bf16.xpose.msra.mxu1 %v14063_v45 }
 0x57f   : > { %12995 = vmatprep.subr.bf16.mxu1 %v18704_v36 }
 0x584   : > { %12976 = vmatpush3.bf16.xpose.msra.mxu0 %v14064_v35  ;;  %v14070_v35 = vld [vmem:[%s15433_s5 + $0x828] sm:$0xff]  }
 0x585   : > { %13001 = vmatprep.subr.bf16.mxu0 %v18704_v36 }
 0x586   : > { %12996 = vmatpush3.bf16.xpose.msra.mxu1 %v14065_v61  ;;  %v14071_v61 = vld [vmem:[%s15433_s5 + $0x868] sm:$0xff]  }
 0x587   : > { %13021 = vmatprep.subr.bf16.mxu1 %v18704_v36 }
 0x58b   : > { %v4664_v46 = vpop.f32.mrf.mxu0  ;;  %12978 = vmatmul.mubr.bf16.vlgmr.msra.gmra.mxu0 %v5144_v2  ;;  %v16704_v2 = vrot.slane %v15919_v51, %v15459_v25 }
 0x58c   : > { %13002 = vmatpush3.bf16.xpose.msra.mxu0 %v14066_v19  ;;  %13017 = vmatprep.mubr.msk.bf16.mxu0 %vm15081_vm0, %v18704_v36  ;;  %v8488_v16 = vmul.f32 %v4664_v46, %v16666_v58  ;;  %v14077_v19 = vld [vmem:[%s15433_s5 + $0x850] sm:$0xff]   ;;  %v14078_v46 = vld [vmem:[%s15433_s5 + $0x808] sm:$0xff]  }
 0x58d   : > { %v12859_v53 = vpop.f32.mrf.mxu0  ;;  %v4758_v27 = vpop.f32.mrf.mxu1  ;;  %12998 = vmatmul.mubr.bf16.vlgmr.msra.gmra.mxu1 %v5238_v28  ;;  %13003 = vmatprep.subr.bf16.mxu0 %v18704_v36  ;;  %v14079_v28 = vld [vmem:[%s15433_s5 + $0x848] sm:$0xff]  }
 0x58e   : > { %v8489_v60 = vmul.f32 %v8365_v4, %v4758_v27  ;;  %13022 = vmatpush3.bf16.xpose.msra.mxu1 %v14067_v11  ;;  %13037 = vmatprep.mubr.msk.bf16.mxu1 %vm15081_vm0, %v18704_v36  ;;  %v2031_v4 = vrot.slane %v15922_v47, %v15459_v25  ;;  %v14080_v47 = vld [vmem:[%s15433_s5 + $0x800] sm:$0xff]  }
 0x58f   : > { %v4667_v56 = vpop.f32.mrf.mxu0  ;;  %v12879_v32 = vpop.f32.mrf.mxu1  ;;  %13023 = vmatprep.subr.bf16.mxu1 %v18704_v36  ;;  %v14081_v27 = vld [vmem:[%s15433_s5 + $0x840] sm:$0xff]  }
 0x590   : > { %v8641_v29 = vrot.slane %v8489_v60, 7  ;;  %v2054_v11 = vpack.c.bf16 %v16704_v2, %v2031_v4 }
 0x591   : > { %v12860_v23 = vpop.f32.mrf.mxu0  ;;  %v4761_v45 = vpop.f32.mrf.mxu1 }
 0x592   : > { %v16683_v8 = vsel %vm8593_vm5, %v8641_v29, %v8488_v16  ;;  %v16714_v53 = vrot.slane %v2054_v11, %v15442_v5  ;;  %v8366_v16 = vrot.slane %v16666_v58, 2  ;;  %v14082_v29 = vld [vmem:[%s15433_s5 + $0x8b8] sm:$0xff]   ;;  %v8367_v23 = vrot.slane %v16666_v58, 3  ;;  %v14084_v11 = vld [vmem:[%s15433_s5 + $0x8b0] sm:$0xff]  }
 0x593   : > { %v12880_v9 = vpop.f32.mrf.mxu1  ;;  %v14083_v45 = vld [vmem:[%s15433_s5 + $0x8f8] sm:$0xff]  }
 0x594   : > { %13004 = vmatpush3.bf16.xpose.msra.mxu0 %v14068_v6  ;;  %v16720_v51 = vrot.slane %v16714_v53, %v15442_v5 }
 0x595   : > { %13005 = vmatprep.subr.bf16.mxu0 %v18704_v36 }
 0x596   : > { %13024 = vmatpush3.bf16.xpose.msra.mxu1 %v14069_v39  ;;  %v2289_v60 = vunpack.i.h.s16 %v16720_v51  ;;  %v11453_v56 = vpack.i.b16 %v16720_v51, %v16720_v51 }
 0x597   : > { %13025 = vmatprep.subr.bf16.mxu1 %v18704_v36 }
 0x598   : > { %v5422_v32 = vpack.i.b16 %v2289_v60, %v2289_v60  ;;  %v5332_v6 = vrot.slane %v11453_v56, %v15459_v25  ;;  %v14087_v56 = vld [vmem:[%s15433_s5 + $0x8e8] sm:$0xff]  }
 0x59a   : > { %v5426_v9 = vrot.slane %v5422_v32, %v15459_v25  ;;  %v14088_v32 = vld [vmem:[%s15433_s5 + $0x8a0] sm:$0xff]  }
 0x59c   : > { %13006 = vmatpush3.bf16.xpose.msra.mxu0 %v14070_v35 }
 0x59d   : > { %13007 = vmatprep.subr.bf16.mxu0 %v18704_v36 }
 0x59e   : > { %13026 = vmatpush3.bf16.xpose.msra.mxu1 %v14071_v61 }
 0x59f   : > { %13027 = vmatprep.subr.bf16.mxu1 %v18704_v36 }
 0x5a4   : > { %13008 = vmatpush3.bf16.xpose.msra.mxu0 %v14072_v0 }
 0x5a5   : > { %13009 = vmatprep.subr.bf16.mxu0 %v18704_v36 }
 0x5a6   : > { %13028 = vmatpush3.bf16.xpose.msra.mxu1 %v14073_v52 }
 0x5a7   : > { %13029 = vmatprep.subr.bf16.mxu1 %v18704_v36 }
 0x5ac   : > { %13010 = vmatpush3.bf16.xpose.msra.mxu0 %v14074_v31 }
 0x5ad   : > { %13011 = vmatprep.subr.bf16.mxu0 %v18704_v36 }
 0x5ae   : > { %13030 = vmatpush3.bf16.xpose.msra.mxu1 %v14075_v30 }
 0x5af   : > { %13031 = vmatprep.subr.bf16.mxu1 %v18704_v36 }
 0x5b4   : > { %13012 = vmatpush3.bf16.xpose.msra.mxu0 %v14076_v42 }
 0x5b5   : > { %13013 = vmatprep.subr.bf16.mxu0 %v18704_v36 }
 0x5b6   : > { %13032 = vmatpush3.bf16.xpose.msra.mxu1 %v14077_v19 }
 0x5b7   : > { %13033 = vmatprep.subr.bf16.mxu1 %v18704_v36 }
 0x5bc   : > { %13014 = vmatpush3.bf16.xpose.msra.mxu0 %v14078_v46 }
 0x5bd   : > { %13015 = vmatprep.subr.bf16.mxu0 %v18704_v36 }
 0x5be   : > { %13034 = vmatpush3.bf16.xpose.msra.mxu1 %v14079_v28 }
 0x5bf   : > { %13035 = vmatprep.subr.bf16.mxu1 %v18704_v36 }
 0x5c4   : > { %13016 = vmatpush3.bf16.xpose.msra.mxu0 %v14080_v47 }
 0x5c5   : > { %13041 = vmatprep.subr.bf16.mxu0 %v18704_v36 }
 0x5c6   : > { %13036 = vmatpush3.bf16.xpose.msra.mxu1 %v14081_v27  ;;  %v14085_v27 = vld [vmem:[%s15433_s5 + $0x8f0] sm:$0xff]  }
 0x5c7   : > { %13061 = vmatprep.subr.bf16.mxu1 %v18704_v36 }
 0x5cb   : > { %v4852_v39 = vpop.f32.mrf.mxu0  ;;  %13018 = vmatmul.mubr.bf16.vlgmr.msra.gmra.mxu0 %v5332_v6  ;;  %v14091_v6 = vld [vmem:[%s15433_s5 + $0x8d8] sm:$0xff]  }
 0x5cc   : > { %v8490_v35 = vmul.f32 %v8366_v16, %v4852_v39  ;;  %13042 = vmatpush3.bf16.xpose.msra.mxu0 %v14082_v29  ;;  %13057 = vmatprep.mubr.msk.bf16.mxu0 %vm15081_vm0, %v18704_v36  ;;  %v14089_v16 = vld [vmem:[%s15433_s5 + $0x8e0] sm:$0xff]   ;;  %v14090_v29 = vld [vmem:[%s15433_s5 + $0x898] sm:$0xff]   ;;  %v14094_v39 = vld [vmem:[%s15433_s5 + $0x888] sm:$0xff]  }
 0x5cd   : > { %v12899_v61 = vpop.f32.mrf.mxu0  ;;  %v4946_v0 = vpop.f32.mrf.mxu1  ;;  %13038 = vmatmul.mubr.bf16.vlgmr.msra.gmra.mxu1 %v5426_v9  ;;  %13043 = vmatprep.subr.bf16.mxu0 %v18704_v36  ;;  %v14095_v9 = vld [vmem:[%s15433_s5 + $0x8c8] sm:$0xff]  }
 0x5ce   : > { %v8643_v52 = vrot.slane %v8490_v35, 6  ;;  %v8491_v31 = vmul.f32 %v8367_v23, %v4946_v0  ;;  %13062 = vmatpush3.bf16.xpose.msra.mxu1 %v14083_v45  ;;  %13077 = vmatprep.mubr.msk.bf16.mxu1 %vm15081_vm0, %v18704_v36  ;;  %v14092_v23 = vld [vmem:[%s15433_s5 + $0x890] sm:$0xff]   ;;  %v2173_v35 = vcombine.high %v16714_v53, %v16714_v53  ;;  %v14096_v0 = vld [vmem:[%s15433_s5 + $0x880] sm:$0xff]  }
 0x5cf   : > { %v4855_v30 = vpop.f32.mrf.mxu0  ;;  %v12919_v42 = vpop.f32.mrf.mxu1  ;;  %13063 = vmatprep.subr.bf16.mxu1 %v18704_v36  ;;  %v14093_v45 = vld [vmem:[%s15433_s5 + $0x8d0] sm:$0xff]  }
 0x5d0   : > { %v8644_v19 = vsel %vm8596_vm6, %v8643_v52, %v16683_v8  ;;  %v8645_v4 = vrot.slane %v8491_v31, 5  ;;  %v14086_v8 = vld [vmem:[%s15433_s5 + $0x8a8] sm:$0xff]   ;;  %v16773_v61 = vrot.slane %v2173_v35, %v15442_v5  ;;  %v14097_v52 = vld [vmem:[%s15433_s5 + $0x8c0] sm:$0xff]   ;;  %v14098_v42 = vld [vmem:[%s15433_s5 + $0x938] sm:$0xff]  }
 0x5d1   : > { %v12900_v46 = vpop.f32.mrf.mxu0  ;;  %v4949_v28 = vpop.f32.mrf.mxu1  ;;  %v14106_v35 = vld [vmem:[%s15433_s5 + $0x918] sm:$0xff]  }
 0x5d2   : > { %v16745_v47 = vsel %vm8599_vm7, %v8645_v4, %v8644_v19  ;;  %v2291_v31 = vunpack.i.h.s16 %v16773_v61  ;;  %v11470_v30 = vpack.i.b16 %v16773_v61, %v16773_v61  ;;  %v14099_v4 = vld [vmem:[%s15433_s5 + $0x978] sm:$0xff]  }
 0x5d3   : > { %v12920_v60 = vpop.f32.mrf.mxu1 }
 0x5d4   : > { %13044 = vmatpush3.bf16.xpose.msra.mxu0 %v14084_v11  ;;  %v5610_v53 = vpack.i.b16 %v2291_v31, %v2291_v31  ;;  %v5520_v19 = vrot.slane %v11470_v30, %v15459_v25  ;;  %v14108_v31 = vld [vmem:[%s15433_s5 + $0x910] sm:$0xff]  }
 0x5d5   : > { %13045 = vmatprep.subr.bf16.mxu0 %v18704_v36  ;;  %v14109_v30 = vld [vmem:[%s15433_s5 + $0x950] sm:$0xff]  }
 0x5d6   : > { %13064 = vmatpush3.bf16.xpose.msra.mxu1 %v14085_v27  ;;  %v5614_v46 = vrot.slane %v5610_v53, %v15459_v25  ;;  %v14110_v53 = vld [vmem:[%s15433_s5 + $0x908] sm:$0xff]  }
 0x5d7   : > { %13065 = vmatprep.subr.bf16.mxu1 %v18704_v36 }
 0x5dc   : > { %13046 = vmatpush3.bf16.xpose.msra.mxu0 %v14086_v8 }
 0x5dd   : > { %13047 = vmatprep.subr.bf16.mxu0 %v18704_v36 }
 0x5de   : > { %13066 = vmatpush3.bf16.xpose.msra.mxu1 %v14087_v56  ;;  %v14100_v56 = vld [vmem:[%s15433_s5 + $0x930] sm:$0xff]  }
 0x5df   : > { %13067 = vmatprep.subr.bf16.mxu1 %v18704_v36 }
 0x5e4   : > { %13048 = vmatpush3.bf16.xpose.msra.mxu0 %v14088_v32 }
 0x5e5   : > { %13049 = vmatprep.subr.bf16.mxu0 %v18704_v36 }
 0x5e6   : > { %13068 = vmatpush3.bf16.xpose.msra.mxu1 %v14089_v16 }
 0x5e7   : > { %13069 = vmatprep.subr.bf16.mxu1 %v18704_v36 }
 0x5ec   : > { %13050 = vmatpush3.bf16.xpose.msra.mxu0 %v14090_v29  ;;  %v14101_v29 = vld [vmem:[%s15433_s5 + $0x970] sm:$0xff]  }
 0x5ed   : > { %13051 = vmatprep.subr.bf16.mxu0 %v18704_v36 }
 0x5ee   : > { %13070 = vmatpush3.bf16.xpose.msra.mxu1 %v14091_v6 }
 0x5ef   : > { %13071 = vmatprep.subr.bf16.mxu1 %v18704_v36 }
 0x5f4   : > { %13052 = vmatpush3.bf16.xpose.msra.mxu0 %v14092_v23  ;;  %v14102_v23 = vld [vmem:[%s15433_s5 + $0x928] sm:$0xff]  }
 0x5f5   : > { %13053 = vmatprep.subr.bf16.mxu0 %v18704_v36 }
 0x5f6   : > { %13072 = vmatpush3.bf16.xpose.msra.mxu1 %v14093_v45  ;;  %v14103_v45 = vld [vmem:[%s15433_s5 + $0x968] sm:$0xff]  }
 0x5f7   : > { %13073 = vmatprep.subr.bf16.mxu1 %v18704_v36 }
 0x5fc   : > { %13054 = vmatpush3.bf16.xpose.msra.mxu0 %v14094_v39  ;;  %v14104_v39 = vld [vmem:[%s15433_s5 + $0x920] sm:$0xff]  }
 0x5fd   : > { %13055 = vmatprep.subr.bf16.mxu0 %v18704_v36 }
 0x5fe   : > { %13074 = vmatpush3.bf16.xpose.msra.mxu1 %v14095_v9  ;;  %v14105_v9 = vld [vmem:[%s15433_s5 + $0x960] sm:$0xff]  }
 0x5ff   : > { %13075 = vmatprep.subr.bf16.mxu1 %v18704_v36 }
 0x604   : > { %13056 = vmatpush3.bf16.xpose.msra.mxu0 %v14096_v0  ;;  %v14107_v0 = vld [vmem:[%s15433_s5 + $0x958] sm:$0xff]  }
 0x605   : > { %13081 = vmatprep.subr.bf16.mxu0 %v18704_v36 }
 0x606   : > { %13076 = vmatpush3.bf16.xpose.msra.mxu1 %v14097_v52  ;;  %v622_v52 = vmax.f32 %v15616_v13, 1e-15  ;;  %v2203_v13 = vcombine.high %v16720_v51, %v16720_v51 }
 0x607   : > { %13101 = vmatprep.subr.bf16.mxu1 %v18704_v36 }
 0x608   : > { %14378 = vrsqrt.f32 %v622_v52  ;;  %vm664_vm3 = vcmp.eq.f32.partialorder %v622_v52, inf  ;;  %v667_v51 = vand.u32 2147483648, %v622_v52  ;;  %vm666_vm4 = vcmp.eq.f32.partialorder %v622_v52, 0.0 }
 0x60b   : > { %v16785_v11 = vpop.f32.mrf.mxu0  ;;  %13058 = vmatmul.mubr.bf16.vlgmr.msra.gmra.mxu0 %v5520_v19  ;;  %v8368_v19 = vrot.slane %v16666_v58, 4 }
 0x60c   : > { %13082 = vmatpush3.bf16.xpose.msra.mxu0 %v14098_v42  ;;  %13097 = vmatprep.mubr.msk.bf16.mxu0 %vm15081_vm0, %v18704_v36  ;;  %v14111_v42 = vld [vmem:[%s15433_s5 + $0x948] sm:$0xff]  }
 0x60d   : > { %v12939_v28 = vpop.f32.mrf.mxu0  ;;  %v16790_v27 = vpop.f32.mrf.mxu1  ;;  %13078 = vmatmul.mubr.bf16.vlgmr.msra.gmra.mxu1 %v5614_v46  ;;  %13083 = vmatprep.subr.bf16.mxu0 %v18704_v36 }
 0x60e   : > { %13102 = vmatpush3.bf16.xpose.msra.mxu1 %v14099_v4  ;;  %13117 = vmatprep.mubr.msk.bf16.mxu1 %vm15081_vm0, %v18704_v36  ;;  %v14112_v4 = vld [vmem:[%s15433_s5 + $0x900] sm:$0xff]  }
 0x60f   : > { %v5043_v60 = vpop.f32.mrf.mxu0  ;;  %v12959_v8 = vpop.f32.mrf.mxu1  ;;  %13103 = vmatprep.subr.bf16.mxu1 %v18704_v36  ;;  %v14113_v28 = vld [vmem:[%s15433_s5 + $0x940] sm:$0xff]  }
 0x610   : > { %v8369_v60 = vrot.slane %v16666_v58, 5  ;;  %v2293_v8 = vunpack.i.h.s16 %v2203_v13 }
 0x611   : > { %v12940_v32 = vpop.f32.mrf.mxu0  ;;  %v5137_v16 = vpop.f32.mrf.mxu1 }
 0x612   : > { %v8492_v32 = vmul.f32 %v8368_v19, %v16785_v11  ;;  %v11487_v16 = vpack.i.b16 %v2203_v13, %v2203_v13 }
 0x613   : > { %v12960_v6 = vpop.f32.mrf.mxu1 }
 0x614   : > { %13084 = vmatpush3.bf16.xpose.msra.mxu0 %v14100_v56  ;;  %v5798_v6 = vpack.i.b16 %v2293_v8, %v2293_v8  ;;  %v5708_v11 = vrot.slane %v11487_v16, %v15459_v25 }
 0x615   : > { %13085 = vmatprep.subr.bf16.mxu0 %v18704_v36  ;;  %v14379_v46 = vpop.eup %14378 }
 0x616   : > { %13104 = vmatpush3.bf16.xpose.msra.mxu1 %v14101_v29  ;;  %v663_v56 = vmul.f32 %v14379_v46, %v622_v52  ;;  %v8493_v29 = vmul.f32 %v8369_v60, %v16790_v27  ;;  %v5802_v27 = vrot.slane %v5798_v6, %v15459_v25 }
 0x617   : > { %13105 = vmatprep.subr.bf16.mxu1 %v18704_v36 }
 0x61c   : > { %13086 = vmatpush3.bf16.xpose.msra.mxu0 %v14102_v23  ;;  %v665_v23 = vsel %vm664_vm3, %v622_v52, %v663_v56 }
 0x61d   : > { %13087 = vmatprep.subr.bf16.mxu0 %v18704_v36 }
 0x61e   : > { %13106 = vmatpush3.bf16.xpose.msra.mxu1 %v14103_v45  ;;  %v8647_v45 = vrot.slane %v8492_v32, 4  ;;  %v14116_v32 = vld [vmem:[%s15433_s5 + $0x9b0] sm:$0xff]  }
 0x61f   : > { %13107 = vmatprep.subr.bf16.mxu1 %v18704_v36 }
 0x624   : > { %13088 = vmatpush3.bf16.xpose.msra.mxu0 %v14104_v39  ;;  %v8370_v39 = vrot.slane %v16666_v58, 6 }
 0x625   : > { %13089 = vmatprep.subr.bf16.mxu0 %v18704_v36 }
 0x626   : > { %13108 = vmatpush3.bf16.xpose.msra.mxu1 %v14105_v9  ;;  %v14114_v9 = vld [vmem:[%s15433_s5 + $0x9b8] sm:$0xff]  }
 0x627   : > { %13109 = vmatprep.subr.bf16.mxu1 %v18704_v36 }
 0x62c   : > { %13090 = vmatpush3.bf16.xpose.msra.mxu0 %v14106_v35  ;;  %v8371_v35 = vrot.slane %v16666_v58, 7 }
 0x62d   : > { %13091 = vmatprep.subr.bf16.mxu0 %v18704_v36 }
 0x62e   : > { %13110 = vmatpush3.bf16.xpose.msra.mxu1 %v14107_v0  ;;  %v14115_v0 = vld [vmem:[%s15433_s5 + $0x9f8] sm:$0xff]  }
 0x62f   : > { %13111 = vmatprep.subr.bf16.mxu1 %v18704_v36 }
 0x634   : > { %13092 = vmatpush3.bf16.xpose.msra.mxu0 %v14108_v31  ;;  %v668_v31 = vsel %vm666_vm4, %v667_v51, %v665_v23  ;;  %v14117_v23 = vld [vmem:[%s15433_s5 + $0x9f0] sm:$0xff]  }
 0x635   : > { %13093 = vmatprep.subr.bf16.mxu0 %v18704_v36  ;;  %v11165_v58 = vclamps-f32 %v668_v31, 0.999999 }
 0x636   : > { %13112 = vmatpush3.bf16.xpose.msra.mxu1 %v14109_v30  ;;  %v8649_v30 = vrot.slane %v8493_v29, 3 }
 0x637   : > { %13113 = vmatprep.subr.bf16.mxu1 %v18704_v36  ;;  %v798_v29 = vsub.f32 1.0, %v11165_v58 }
 0x639   : > { %14380 = vrcp.f32 %v798_v29 }
 0x63c   : > { %13094 = vmatpush3.bf16.xpose.msra.mxu0 %v14110_v53 }
 0x63d   : > { %13095 = vmatprep.subr.bf16.mxu0 %v18704_v36 }
 0x63e   : > { %13114 = vmatpush3.bf16.xpose.msra.mxu1 %v14111_v42  ;;  %v8648_v42 = vsel %vm8602_vm10, %v8647_v45, %v16745_v47 }
 0x63f   : > { %13115 = vmatprep.subr.bf16.mxu1 %v18704_v36  ;;  %v8650_v60 = vsel %vm8605_vm11, %v8649_v30, %v8648_v42  ;;  %v14123_v42 = vld [vmem:[%s15433_s5 + $0x9d8] sm:$0xff]  }
 0x644   : > { %13096 = vmatpush3.bf16.xpose.msra.mxu0 %v14112_v4 }
 0x645   : > { %13121 = vmatprep.subr.bf16.mxu0 %v18704_v36 }
 0x646   : > { %13116 = vmatpush3.bf16.xpose.msra.mxu1 %v14113_v28  ;;  %v14381_v30 = vpop.eup %14380 }
 0x647   : > { %13141 = vmatprep.subr.bf16.mxu1 %v18704_v36 }
 0x64b   : > { %v5228_v53 = vpop.f32.mrf.mxu0  ;;  %13098 = vmatmul.mubr.bf16.vlgmr.msra.gmra.mxu0 %v5708_v11  ;;  %v14120_v11 = vld [vmem:[%s15433_s5 + $0x9a0] sm:$0xff]  }
 0x64c   : > { %v8494_v13 = vmul.f32 %v8370_v39, %v5228_v53  ;;  %13122 = vmatpush3.bf16.xpose.msra.mxu0 %v14114_v9  ;;  %13137 = vmatprep.mubr.msk.bf16.mxu0 %vm15081_vm0, %v18704_v36  ;;  %v14118_v39 = vld [vmem:[%s15433_s5 + $0x9a8] sm:$0xff]  }
 0x64d   : > { %v12979_v52 = vpop.f32.mrf.mxu0  ;;  %v5322_v19 = vpop.f32.mrf.mxu1  ;;  %13118 = vmatmul.mubr.bf16.vlgmr.msra.gmra.mxu1 %v5802_v27  ;;  %13123 = vmatprep.subr.bf16.mxu0 %v18704_v36  ;;  %v14119_v9 = vld [vmem:[%s15433_s5 + $0x9e8] sm:$0xff]   ;;  %v14122_v27 = vld [vmem:[%s15433_s5 + $0x998] sm:$0xff]  }
 0x64e   : > { %v8651_v4 = vrot.slane %v8494_v13, 2  ;;  %v8495_v46 = vmul.f32 %v8371_v35, %v5322_v19  ;;  %13142 = vmatpush3.bf16.xpose.msra.mxu1 %v14115_v0  ;;  %13157 = vmatprep.mubr.msk.bf16.mxu1 %vm15081_vm0, %v18704_v36  ;;  %v782_v35 = vadd.f32 1.0, %v11165_v58  ;;  %v14121_v0 = vld [vmem:[%s15433_s5 + $0x9e0] sm:$0xff]   ;;  %v14124_v13 = vld [vmem:[%s15433_s5 + $0x990] sm:$0xff]   ;;  %v14126_v58 = vld [vmem:[%s15433_s5 + $0x988] sm:$0xff]  }
 0x64f   : > { %v5231_v47 = vpop.f32.mrf.mxu0  ;;  %v12999_v28 = vpop.f32.mrf.mxu1  ;;  %13143 = vmatprep.subr.bf16.mxu1 %v18704_v36  ;;  %v14125_v52 = vld [vmem:[%s15433_s5 + $0x9d0] sm:$0xff]  }
 0x650   : > { %v8653_v8 = vrot.slane %v8495_v46, 1  ;;  %v8652_v56 = vsel %vm8608_vm12, %v8651_v4, %v8650_v60  ;;  %v819_v53 = vmul.f32 %v14381_v30, %v782_v35  ;;  %v14127_v46 = vld [vmem:[%s15433_s5 + $0x9c8] sm:$0xff]   ;;  %v2205_v28 = vcombine.high %v16773_v61, %v16773_v61  ;;  %v14128_v60 = vld [vmem:[%s15433_s5 + $0x980] sm:$0xff]  }
 0x651   : > { %v12980_v16 = vpop.f32.mrf.mxu0  ;;  %v5325_v51 = vpop.f32.mrf.mxu1 }
 0x652   : > { %v8654_v6 = vsel %vm8611_vm13, %v8653_v8, %v8652_v56  ;;  %14382 = vlog2.f32 %v819_v53  ;;  %v14129_v8 = vld [vmem:[%s15433_s5 + $0x9c0] sm:$0xff]   ;;  %v11504_v16 = vpack.i.b16 %v2205_v28, %v2205_v28 }
 0x653   : > { %v13000_v45 = vpop.f32.mrf.mxu1  ;;  %8725 = vadd.xlane.f32.xlu1 %v8654_v6  ;;  %14384 = vrcp.f32 %v668_v31  ;;  %v14777_v51 = vld [vmem:[%s15426_s6 + $0x20] sm:$0xff] }
 0x654   : > { %13124 = vmatpush3.bf16.xpose.msra.mxu0 %v14116_v32  ;;  %v2295_v32 = vunpack.i.h.s16 %v2205_v28  ;;  %v5896_v45 = vrot.slane %v11504_v16, %v15459_v25  ;;  %v14135_v28 = vld [vmem:[%s15433_s5 + $0xa68] sm:$0xff]   ;;  %v14140_v16 = vld [vmem:[%s15433_s5 + $0xa10] sm:$0xff]  }
 0x655   : > { %13125 = vmatprep.subr.bf16.mxu0 %v18704_v36 }
 0x656   : > { %13144 = vmatpush3.bf16.xpose.msra.mxu1 %v14117_v23  ;;  %v5986_v6 = vpack.i.b16 %v2295_v32, %v2295_v32  ;;  %v14130_v23 = vld [vmem:[%s15433_s5 + $0xa38] sm:$0xff]  }
 0x657   : > { %13145 = vmatprep.subr.bf16.mxu1 %v18704_v36  ;;  %v14139_v32 = vld [vmem:[%s15433_s5 + $0xa58] sm:$0xff]  }
 0x65c   : > { %13126 = vmatpush3.bf16.xpose.msra.mxu0 %v14118_v39  ;;  %v14131_v39 = vld [vmem:[%s15433_s5 + $0xa78] sm:$0xff]  }
 0x65d   : > { %13127 = vmatprep.subr.bf16.mxu0 %v18704_v36 }
 0x65e   : > { %13146 = vmatpush3.bf16.xpose.msra.mxu1 %v14119_v9 }
 0x65f   : > { %13147 = vmatprep.subr.bf16.mxu1 %v18704_v36  ;;  %v14383_v19 = vpop.eup %14382 }
 0x660   : > { %v851_v4 = vmul.f32 0.6931472, %v14383_v19  ;;  %v14385_v31 = vpop.eup %14384 }
 0x662   : > { %v878_v47 = vmul.f32 0.5, %v851_v4 }
 0x664   : > { %13128 = vmatpush3.bf16.xpose.msra.mxu0 %v14120_v11  ;;  %v899_v56 = vmul.f32 %v14385_v31, %v878_v47  ;;  %v5990_v11 = vrot.slane %v5986_v6, %v15459_v25  ;;  %v14134_v31 = vld [vmem:[%s15433_s5 + $0xa28] sm:$0xff]   ;;  %v11179_v6 = vpack.c.bf16 %v16704_v2, %v16704_v2 }
 0x665   : > { %13129 = vmatprep.subr.bf16.mxu0 %v18704_v36 }
 0x666   : > { %13148 = vmatpush3.bf16.xpose.msra.mxu1 %v14121_v0  ;;  %v16878_v29 = vmul.f32 %v14777_v51, %v899_v56  ;;  %v14138_v56 = vld [vmem:[%s15433_s5 + $0xa18] sm:$0xff]   ;;  %v14141_v51 = vld [vmem:[%s15433_s5 + $0xa50] sm:$0xff]  }
 0x667   : > { %13149 = vmatprep.subr.bf16.mxu1 %v18704_v36 }
 0x668   : > { %v8372_v61 = vrot.slane %v16878_v29, 1 }
 0x66c   : > { %13130 = vmatpush3.bf16.xpose.msra.mxu0 %v14122_v27 }
 0x66d   : > { %13131 = vmatprep.subr.bf16.mxu0 %v18704_v36 }
 0x66e   : > { %13150 = vmatpush3.bf16.xpose.msra.mxu1 %v14123_v42 }
 0x66f   : > { %13151 = vmatprep.subr.bf16.mxu1 %v18704_v36 }
 0x674   : > { %13132 = vmatpush3.bf16.xpose.msra.mxu0 %v14124_v13 }
 0x675   : > { %13133 = vmatprep.subr.bf16.mxu0 %v18704_v36 }
 0x676   : > { %13152 = vmatpush3.bf16.xpose.msra.mxu1 %v14125_v52  ;;  %v14132_v52 = vld [vmem:[%s15433_s5 + $0xa30] sm:$0xff]  }
 0x677   : > { %13153 = vmatprep.subr.bf16.mxu1 %v18704_v36 }
 0x67c   : > { %13134 = vmatpush3.bf16.xpose.msra.mxu0 %v14126_v58 }
 0x67d   : > { %13135 = vmatprep.subr.bf16.mxu0 %v18704_v36 }
 0x67e   : > { %13154 = vmatpush3.bf16.xpose.msra.mxu1 %v14127_v46  ;;  %v14133_v46 = vld [vmem:[%s15433_s5 + $0xa70] sm:$0xff]  }
 0x67f   : > { %13155 = vmatprep.subr.bf16.mxu1 %v18704_v36 }
 0x684   : > { %13136 = vmatpush3.bf16.xpose.msra.mxu0 %v14128_v60  ;;  %v14136_v60 = vld [vmem:[%s15433_s5 + $0xa20] sm:$0xff]  }
 0x685   : > { %13161 = vmatprep.subr.bf16.mxu0 %v18704_v36 }
 0x686   : > { %13156 = vmatpush3.bf16.xpose.msra.mxu1 %v14129_v8  ;;  %v14137_v8 = vld [vmem:[%s15433_s5 + $0xa60] sm:$0xff]  }
 0x687   : > { %13181 = vmatprep.subr.bf16.mxu1 %v18704_v36 }
 0x68b   : > { %v5416_v9 = vpop.f32.mrf.mxu0  ;;  %13138 = vmatmul.mubr.bf16.vlgmr.msra.gmra.mxu0 %v5896_v45  ;;  %v14143_v45 = vld [vmem:[%s15433_s5 + $0xa48] sm:$0xff]  }
 0x68c   : > { %v8496_v35 = vmul.f32 %v5416_v9, %v16878_v29  ;;  %13162 = vmatpush3.bf16.xpose.msra.mxu0 %v14130_v23  ;;  %13177 = vmatprep.mubr.msk.bf16.mxu0 %vm15081_vm0, %v18704_v36  ;;  %v14142_v23 = vld [vmem:[%s15433_s5 + $0xa08] sm:$0xff]   ;;  %v14144_v9 = vld [vmem:[%s15433_s5 + $0xa00] sm:$0xff]  }
 0x68d   : > { %v13019_v0 = vpop.f32.mrf.mxu0  ;;  %v5510_v30 = vpop.f32.mrf.mxu1  ;;  %13158 = vmatmul.mubr.bf16.vlgmr.msra.gmra.mxu1 %v5990_v11  ;;  %13163 = vmatprep.subr.bf16.mxu0 %v18704_v36  ;;  %v14145_v11 = vld [vmem:[%s15433_s5 + $0xa40] sm:$0xff]  }
 0x68e   : > { %v8497_v53 = vmul.f32 %v8372_v61, %v5510_v30  ;;  %13182 = vmatpush3.bf16.xpose.msra.mxu1 %v14131_v39  ;;  %13197 = vmatprep.mubr.msk.bf16.mxu1 %vm15081_vm0, %v18704_v36  ;;  %v16921_v61 = vrot.slane %v11179_v6, %v15442_v5  ;;  %v8373_v30 = vrot.slane %v16878_v29, 2 }
 0x68f   : > { %v5419_v27 = vpop.f32.mrf.mxu0  ;;  %v13039_v42 = vpop.f32.mrf.mxu1  ;;  %13183 = vmatprep.subr.bf16.mxu1 %v18704_v36 }
 0x690   : > { %v8655_v13 = vrot.slane %v8497_v53, 7  ;;  %v16927_v39 = vrot.slane %v16921_v61, %v15442_v5  ;;  %v14146_v53 = vld [vmem:[%s15433_s5 + $0xab8] sm:$0xff]   ;;  %v8374_v42 = vrot.slane %v16878_v29, 3 }
 0x691   : > { %v13020_v19 = vpop.f32.mrf.mxu0  ;;  %v5513_v58 = vpop.f32.mrf.mxu1 }
 0x692   : > { %v16895_v4 = vsel %vm8593_vm5, %v8655_v13, %v8496_v35  ;;  %v2297_v2 = vunpack.i.h.s16 %v16927_v39  ;;  %v11521_v35 = vpack.i.b16 %v16927_v39, %v16927_v39  ;;  %v14147_v13 = vld [vmem:[%s15433_s5 + $0xaf8] sm:$0xff]  }
 0x693   : > { %v13040_v47 = vpop.f32.mrf.mxu1 }
 0x694   : > { %13164 = vmatpush3.bf16.xpose.msra.mxu0 %v14132_v52  ;;  %v6174_v0 = vpack.i.b16 %v2297_v2, %v2297_v2  ;;  %v6084_v27 = vrot.slane %v11521_v35, %v15459_v25  ;;  %v14152_v2 = vld [vmem:[%s15433_s5 + $0xaa0] sm:$0xff]  }
 0x695   : > { %13165 = vmatprep.subr.bf16.mxu0 %v18704_v36  ;;  %v14153_v35 = vld [vmem:[%s15433_s5 + $0xae0] sm:$0xff]  }
 0x696   : > { %13184 = vmatpush3.bf16.xpose.msra.mxu1 %v14133_v46  ;;  %v6178_v19 = vrot.slane %v6174_v0, %v15459_v25  ;;  %v14154_v0 = vld [vmem:[%s15433_s5 + $0xa98] sm:$0xff]  }
 0x697   : > { %13185 = vmatprep.subr.bf16.mxu1 %v18704_v36 }
 0x69c   : > { %13166 = vmatpush3.bf16.xpose.msra.mxu0 %v14134_v31 }
 0x69d   : > { %13167 = vmatprep.subr.bf16.mxu0 %v18704_v36 }
 0x69e   : > { %13186 = vmatpush3.bf16.xpose.msra.mxu1 %v14135_v28 }
 0x69f   : > { %13187 = vmatprep.subr.bf16.mxu1 %v18704_v36 }
 0x6a4   : > { %13168 = vmatpush3.bf16.xpose.msra.mxu0 %v14136_v60 }
 0x6a5   : > { %13169 = vmatprep.subr.bf16.mxu0 %v18704_v36 }
 0x6a6   : > { %13188 = vmatpush3.bf16.xpose.msra.mxu1 %v14137_v8 }
 0x6a7   : > { %13189 = vmatprep.subr.bf16.mxu1 %v18704_v36 }
 0x6ac   : > { %13170 = vmatpush3.bf16.xpose.msra.mxu0 %v14138_v56 }
 0x6ad   : > { %13171 = vmatprep.subr.bf16.mxu0 %v18704_v36 }
 0x6ae   : > { %13190 = vmatpush3.bf16.xpose.msra.mxu1 %v14139_v32 }
 0x6af   : > { %13191 = vmatprep.subr.bf16.mxu1 %v18704_v36 }
 0x6b4   : > { %13172 = vmatpush3.bf16.xpose.msra.mxu0 %v14140_v16  ;;  %v14148_v16 = vld [vmem:[%s15433_s5 + $0xab0] sm:$0xff]  }
 0x6b5   : > { %13173 = vmatprep.subr.bf16.mxu0 %v18704_v36 }
 0x6b6   : > { %13192 = vmatpush3.bf16.xpose.msra.mxu1 %v14141_v51 }
 0x6b7   : > { %13193 = vmatprep.subr.bf16.mxu1 %v18704_v36 }
 0x6bc   : > { %13174 = vmatpush3.bf16.xpose.msra.mxu0 %v14142_v23 }
 0x6bd   : > { %13175 = vmatprep.subr.bf16.mxu0 %v18704_v36 }
 0x6be   : > { %13194 = vmatpush3.bf16.xpose.msra.mxu1 %v14143_v45  ;;  %v14149_v45 = vld [vmem:[%s15433_s5 + $0xaf0] sm:$0xff]  }
 0x6bf   : > { %13195 = vmatprep.subr.bf16.mxu1 %v18704_v36 }
 0x6c4   : > { %13176 = vmatpush3.bf16.xpose.msra.mxu0 %v14144_v9 }
 0x6c5   : > { %13201 = vmatprep.subr.bf16.mxu0 %v18704_v36 }
 0x6c6   : > { %13196 = vmatpush3.bf16.xpose.msra.mxu1 %v14145_v11  ;;  %v14151_v11 = vld [vmem:[%s15433_s5 + $0xae8] sm:$0xff]  }
 0x6c7   : > { %13221 = vmatprep.subr.bf16.mxu1 %v18704_v36 }
 0x6cb   : > { %v5604_v52 = vpop.f32.mrf.mxu0  ;;  %13178 = vmatmul.mubr.bf16.vlgmr.msra.gmra.mxu0 %v6084_v27  ;;  %v14157_v27 = vld [vmem:[%s15433_s5 + $0xad0] sm:$0xff]  }
 0x6cc   : > { %v8498_v58 = vmul.f32 %v8373_v30, %v5604_v52  ;;  %13202 = vmatpush3.bf16.xpose.msra.mxu0 %v14146_v53  ;;  %13217 = vmatprep.mubr.msk.bf16.mxu0 %vm15081_vm0, %v18704_v36  ;;  %v14155_v30 = vld [vmem:[%s15433_s5 + $0xad8] sm:$0xff]   ;;  %v14156_v53 = vld [vmem:[%s15433_s5 + $0xa90] sm:$0xff]   ;;  %v2174_v52 = vcombine.high %v16921_v61, %v16921_v61 }
 0x6cd   : > { %v13059_v46 = vpop.f32.mrf.mxu0  ;;  %v5698_v47 = vpop.f32.mrf.mxu1  ;;  %13198 = vmatmul.mubr.bf16.vlgmr.msra.gmra.mxu1 %v6178_v19  ;;  %13203 = vmatprep.subr.bf16.mxu0 %v18704_v36 }
 0x6ce   : > { %v8657_v31 = vrot.slane %v8498_v58, 6  ;;  %v8499_v28 = vmul.f32 %v8374_v42, %v5698_v47  ;;  %13222 = vmatpush3.bf16.xpose.msra.mxu1 %v14147_v13  ;;  %13237 = vmatprep.mubr.msk.bf16.mxu1 %vm15081_vm0, %v18704_v36  ;;  %v14158_v42 = vld [vmem:[%s15433_s5 + $0xa88] sm:$0xff]   ;;  %v16980_v19 = vrot.slane %v2174_v52, %v15442_v5  ;;  %v14160_v58 = vld [vmem:[%s15433_s5 + $0xa80] sm:$0xff]  }
 0x6cf   : > { %v5607_v60 = vpop.f32.mrf.mxu0  ;;  %v13079_v8 = vpop.f32.mrf.mxu1  ;;  %13223 = vmatprep.subr.bf16.mxu1 %v18704_v36  ;;  %v14159_v13 = vld [vmem:[%s15433_s5 + $0xac8] sm:$0xff]   ;;  %v14161_v46 = vld [vmem:[%s15433_s5 + $0xac0] sm:$0xff]  }
 0x6d0   : > { %v8658_v56 = vsel %vm8596_vm6, %v8657_v31, %v16895_v4  ;;  %v8659_v32 = vrot.slane %v8499_v28, 5  ;;  %v14150_v4 = vld [vmem:[%s15433_s5 + $0xaa8] sm:$0xff]   ;;  %v2299_v47 = vunpack.i.h.s16 %v16980_v19  ;;  %v11538_v31 = vpack.i.b16 %v16980_v19, %v16980_v19  ;;  %v14162_v60 = vld [vmem:[%s15433_s5 + $0xb38] sm:$0xff]  }
 0x6d1   : > { %v13060_v51 = vpop.f32.mrf.mxu0  ;;  %v5701_v6 = vpop.f32.mrf.mxu1  ;;  %v8375_v28 = vrot.slane %v16878_v29, 4 }
 0x6d2   : > { %v16952_v23 = vsel %vm8599_vm7, %v8659_v32, %v8658_v56  ;;  %v6362_v61 = vpack.i.b16 %v2299_v47, %v2299_v47  ;;  %v6272_v8 = vrot.slane %v11538_v31, %v15459_v25  ;;  %v8376_v56 = vrot.slane %v16878_v29, 5  ;;  %v14163_v32 = vld [vmem:[%s15433_s5 + $0xb78] sm:$0xff]   ;;  %v14168_v47 = vld [vmem:[%s15433_s5 + $0xb20] sm:$0xff]  }
 0x6d3   : > { %v13080_v9 = vpop.f32.mrf.mxu1  ;;  %v14169_v31 = vld [vmem:[%s15433_s5 + $0xb60] sm:$0xff]  }
 0x6d4   : > { %13204 = vmatpush3.bf16.xpose.msra.mxu0 %v14148_v16  ;;  %v6366_v51 = vrot.slane %v6362_v61, %v15459_v25  ;;  %v14170_v61 = vld [vmem:[%s15433_s5 + $0xb18] sm:$0xff]  }
 0x6d5   : > { %13205 = vmatprep.subr.bf16.mxu0 %v18704_v36 }
 0x6d6   : > { %13224 = vmatpush3.bf16.xpose.msra.mxu1 %v14149_v45 }
 0x6d7   : > { %13225 = vmatprep.subr.bf16.mxu1 %v18704_v36 }
 0x6dc   : > { %13206 = vmatpush3.bf16.xpose.msra.mxu0 %v14150_v4 }
 0x6dd   : > { %13207 = vmatprep.subr.bf16.mxu0 %v18704_v36 }
 0x6de   : > { %13226 = vmatpush3.bf16.xpose.msra.mxu1 %v14151_v11 }
 0x6df   : > { %13227 = vmatprep.subr.bf16.mxu1 %v18704_v36 }
 0x6e4   : > { %13208 = vmatpush3.bf16.xpose.msra.mxu0 %v14152_v2 }
 0x6e5   : > { %13209 = vmatprep.subr.bf16.mxu0 %v18704_v36 }
 0x6e6   : > { %13228 = vmatpush3.bf16.xpose.msra.mxu1 %v14153_v35 }
 0x6e7   : > { %13229 = vmatprep.subr.bf16.mxu1 %v18704_v36 }
 0x6ec   : > { %13210 = vmatpush3.bf16.xpose.msra.mxu0 %v14154_v0 }
 0x6ed   : > { %13211 = vmatprep.subr.bf16.mxu0 %v18704_v36 }
 0x6ee   : > { %13230 = vmatpush3.bf16.xpose.msra.mxu1 %v14155_v30 }
 0x6ef   : > { %13231 = vmatprep.subr.bf16.mxu1 %v18704_v36 }
 0x6f4   : > { %13212 = vmatpush3.bf16.xpose.msra.mxu0 %v14156_v53  ;;  %v14164_v53 = vld [vmem:[%s15433_s5 + $0xb30] sm:$0xff]  }
 0x6f5   : > { %13213 = vmatprep.subr.bf16.mxu0 %v18704_v36 }
 0x6f6   : > { %13232 = vmatpush3.bf16.xpose.msra.mxu1 %v14157_v27 }
 0x6f7   : > { %13233 = vmatprep.subr.bf16.mxu1 %v18704_v36 }
 0x6fc   : > { %13214 = vmatpush3.bf16.xpose.msra.mxu0 %v14158_v42 }
 0x6fd   : > { %13215 = vmatprep.subr.bf16.mxu0 %v18704_v36 }
 0x6fe   : > { %13234 = vmatpush3.bf16.xpose.msra.mxu1 %v14159_v13  ;;  %v14165_v13 = vld [vmem:[%s15433_s5 + $0xb70] sm:$0xff]  }
 0x6ff   : > { %13235 = vmatprep.subr.bf16.mxu1 %v18704_v36 }
 0x704   : > { %13216 = vmatpush3.bf16.xpose.msra.mxu0 %v14160_v58 }
 0x705   : > { %13241 = vmatprep.subr.bf16.mxu0 %v18704_v36 }
 0x706   : > { %13236 = vmatpush3.bf16.xpose.msra.mxu1 %v14161_v46  ;;  %v14167_v46 = vld [vmem:[%s15433_s5 + $0xb68] sm:$0xff]  }
 0x707   : > { %13261 = vmatprep.subr.bf16.mxu1 %v18704_v36 }
 0x70b   : > { %v5792_v16 = vpop.f32.mrf.mxu0  ;;  %13218 = vmatmul.mubr.bf16.vlgmr.msra.gmra.mxu0 %v6272_v8  ;;  %v14172_v8 = vld [vmem:[%s15433_s5 + $0xb10] sm:$0xff]  }
 0x70c   : > { %v8500_v6 = vmul.f32 %v8375_v28, %v5792_v16  ;;  %13242 = vmatpush3.bf16.xpose.msra.mxu0 %v14162_v60  ;;  %13257 = vmatprep.mubr.msk.bf16.mxu0 %vm15081_vm0, %v18704_v36  ;;  %v14171_v28 = vld [vmem:[%s15433_s5 + $0xb58] sm:$0xff]   ;;  %v623_v60 = vmax.f32 %v15614_v12, 1e-15  ;;  %v14175_v16 = vld [vmem:[%s15433_s5 + $0xb48] sm:$0xff]   ;;  %v2204_v12 = vcombine.high %v16927_v39, %v16927_v39  ;;  %v8377_v39 = vrot.slane %v16878_v29, 6 }
 0x70d   : > { %v13099_v45 = vpop.f32.mrf.mxu0  ;;  %v5886_v9 = vpop.f32.mrf.mxu1  ;;  %13238 = vmatmul.mubr.bf16.vlgmr.msra.gmra.mxu1 %v6366_v51  ;;  %13243 = vmatprep.subr.bf16.mxu0 %v18704_v36  ;;  %v14176_v51 = vld [vmem:[%s15433_s5 + $0xb00] sm:$0xff]  }
 0x70e   : > { %v8661_v4 = vrot.slane %v8500_v6, 4  ;;  %v8501_v11 = vmul.f32 %v8376_v56, %v5886_v9  ;;  %13262 = vmatpush3.bf16.xpose.msra.mxu1 %v14163_v32  ;;  %13277 = vmatprep.mubr.msk.bf16.mxu1 %vm15081_vm0, %v18704_v36  ;;  %v14173_v56 = vld [vmem:[%s15433_s5 + $0xb50] sm:$0xff]   ;;  %14386 = vrsqrt.f32 %v623_v60  ;;  %v14174_v32 = vld [vmem:[%s15433_s5 + $0xb08] sm:$0xff]   ;;  %v14177_v45 = vld [vmem:[%s15433_s5 + $0xb40] sm:$0xff]   ;;  %v2301_v9 = vunpack.i.h.s16 %v2204_v12 }
 0x70f   : > { %v5795_v2 = vpop.f32.mrf.mxu0  ;;  %v13119_v35 = vpop.f32.mrf.mxu1  ;;  %13263 = vmatprep.subr.bf16.mxu1 %v18704_v36  ;;  %vm671_vm8 = vcmp.eq.f32.partialorder %v623_v60, inf  ;;  %vm673_vm9 = vcmp.eq.f32.partialorder %v623_v60, 0.0 }
 0x710   : > { %v8662_v0 = vsel %vm8602_vm10, %v8661_v4, %v16952_v23  ;;  %v8663_v30 = vrot.slane %v8501_v11, 3  ;;  %v14166_v23 = vld [vmem:[%s15433_s5 + $0xb28] sm:$0xff]   ;;  %v11555_v11 = vpack.i.b16 %v2204_v12, %v2204_v12  ;;  %v674_v2 = vand.u32 2147483648, %v623_v60 }
 0x711   : > { %v13100_v27 = vpop.f32.mrf.mxu0  ;;  %v5889_v42 = vpop.f32.mrf.mxu1  ;;  %v6550_v35 = vpack.i.b16 %v2301_v9, %v2301_v9  ;;  %v14181_v9 = vld [vmem:[%s15433_s5 + $0xbf0] sm:$0xff]  }
 0x712   : > { %v17006_v52 = vsel %vm8605_vm11, %v8663_v30, %v8662_v0  ;;  %v14178_v30 = vld [vmem:[%s15433_s5 + $0xbb8] sm:$0xff]   ;;  %v8378_v27 = vrot.slane %v16878_v29, 7 }
 0x713   : > { %v13120_v58 = vpop.f32.mrf.mxu1  ;;  %v14179_v42 = vld [vmem:[%s15433_s5 + $0xbf8] sm:$0xff]  }
 0x714   : > { %13244 = vmatpush3.bf16.xpose.msra.mxu0 %v14164_v53  ;;  %v6460_v53 = vrot.slane %v11555_v11, %v15459_v25  ;;  %v14183_v11 = vld [vmem:[%s15433_s5 + $0xbe8] sm:$0xff]  }
 0x715   : > { %13245 = vmatprep.subr.bf16.mxu0 %v18704_v36 }
 0x716   : > { %13264 = vmatpush3.bf16.xpose.msra.mxu1 %v14165_v13 }
 0x717   : > { %13265 = vmatprep.subr.bf16.mxu1 %v18704_v36 }
 0x71b   : > { %v14387_v6 = vpop.eup %14386 }
 0x71c   : > { %13246 = vmatpush3.bf16.xpose.msra.mxu0 %v14166_v23  ;;  %v670_v4 = vmul.f32 %v14387_v6, %v623_v60  ;;  %v6554_v23 = vrot.slane %v6550_v35, %v15459_v25 }
 0x71d   : > { %13247 = vmatprep.subr.bf16.mxu0 %v18704_v36 }
 0x71e   : > { %13266 = vmatpush3.bf16.xpose.msra.mxu1 %v14167_v46  ;;  %v672_v0 = vsel %vm671_vm8, %v623_v60, %v670_v4 }
 0x71f   : > { %13267 = vmatprep.subr.bf16.mxu1 %v18704_v36  ;;  %v675_v13 = vsel %vm673_vm9, %v674_v2, %v672_v0  ;;  %v14184_v2 = vld [vmem:[%s15433_s5 + $0xba0] sm:$0xff]  }
 0x720   : > { %v14185_v0 = vld [vmem:[%s15433_s5 + $0xbe0] sm:$0xff]  }
 0x724   : > { %13248 = vmatpush3.bf16.xpose.msra.mxu0 %v14168_v47 }
 0x725   : > { %13249 = vmatprep.subr.bf16.mxu0 %v18704_v36 }
 0x726   : > { %13268 = vmatpush3.bf16.xpose.msra.mxu1 %v14169_v31 }
 0x727   : > { %13269 = vmatprep.subr.bf16.mxu1 %v18704_v36 }
 0x72c   : > { %13250 = vmatpush3.bf16.xpose.msra.mxu0 %v14170_v61  ;;  %v11166_v61 = vclamps-f32 %v675_v13, 0.999999 }
 0x72d   : > { %13251 = vmatprep.subr.bf16.mxu0 %v18704_v36 }
 0x72e   : > { %13270 = vmatpush3.bf16.xpose.msra.mxu1 %v14171_v28  ;;  %v799_v6 = vsub.f32 1.0, %v11166_v61  ;;  %v783_v35 = vadd.f32 1.0, %v11166_v61 }
 0x72f   : > { %13271 = vmatprep.subr.bf16.mxu1 %v18704_v36 }
 0x730   : > { %14388 = vrcp.f32 %v799_v6  ;;  %v14194_v6 = vld [vmem:[%s15433_s5 + $0xc38] sm:$0xff]  }
 0x734   : > { %13252 = vmatpush3.bf16.xpose.msra.mxu0 %v14172_v8 }
 0x735   : > { %13253 = vmatprep.subr.bf16.mxu0 %v18704_v36 }
 0x736   : > { %13272 = vmatpush3.bf16.xpose.msra.mxu1 %v14173_v56 }
 0x737   : > { %13273 = vmatprep.subr.bf16.mxu1 %v18704_v36 }
 0x73c   : > { %13254 = vmatpush3.bf16.xpose.msra.mxu0 %v14174_v32 }
 0x73d   : > { %13255 = vmatprep.subr.bf16.mxu0 %v18704_v36 }
 0x73e   : > { %13274 = vmatpush3.bf16.xpose.msra.mxu1 %v14175_v16  ;;  %v14180_v16 = vld [vmem:[%s15433_s5 + $0xbb0] sm:$0xff]  }
 0x73f   : > { %13275 = vmatprep.subr.bf16.mxu1 %v18704_v36 }
 0x744   : > { %13256 = vmatpush3.bf16.xpose.msra.mxu0 %v14176_v51 }
 0x745   : > { %13281 = vmatprep.subr.bf16.mxu0 %v18704_v36 }
 0x746   : > { %13276 = vmatpush3.bf16.xpose.msra.mxu1 %v14177_v45 }
 0x747   : > { %13301 = vmatprep.subr.bf16.mxu1 %v18704_v36 }
 0x74b   : > { %v5980_v58 = vpop.f32.mrf.mxu0  ;;  %13258 = vmatmul.mubr.bf16.vlgmr.msra.gmra.mxu0 %v6460_v53  ;;  %v14186_v53 = vld [vmem:[%s15433_s5 + $0xb98] sm:$0xff]  }
 0x74c   : > { %v8502_v46 = vmul.f32 %v8377_v39, %v5980_v58  ;;  %13282 = vmatpush3.bf16.xpose.msra.mxu0 %v14178_v30  ;;  %13297 = vmatprep.mubr.msk.bf16.mxu0 %vm15081_vm0, %v18704_v36  ;;  %v14389_v39 = vpop.eup %14388  ;;  %v14189_v58 = vld [vmem:[%s15433_s5 + $0xbd0] sm:$0xff]  }
 0x74d   : > { %v13139_v47 = vpop.f32.mrf.mxu0  ;;  %v6074_v31 = vpop.f32.mrf.mxu1  ;;  %13278 = vmatmul.mubr.bf16.vlgmr.msra.gmra.mxu1 %v6554_v23  ;;  %13283 = vmatprep.subr.bf16.mxu0 %v18704_v36  ;;  %v821_v30 = vmul.f32 %v14389_v39, %v783_v35 }
 0x74e   : > { %v8665_v29 = vrot.slane %v8502_v46, 2  ;;  %v8503_v28 = vmul.f32 %v8378_v27, %v6074_v31  ;;  %13302 = vmatpush3.bf16.xpose.msra.mxu1 %v14179_v42  ;;  %13317 = vmatprep.mubr.msk.bf16.mxu1 %vm15081_vm0, %v18704_v36  ;;  %v14187_v27 = vld [vmem:[%s15433_s5 + $0xbd8] sm:$0xff]   ;;  %v14188_v42 = vld [vmem:[%s15433_s5 + $0xb90] sm:$0xff]   ;;  %v14190_v46 = vld [vmem:[%s15433_s5 + $0xb88] sm:$0xff]  }
 0x74f   : > { %v5983_v60 = vpop.f32.mrf.mxu0  ;;  %v13159_v8 = vpop.f32.mrf.mxu1  ;;  %13303 = vmatprep.subr.bf16.mxu1 %v18704_v36  ;;  %14390 = vlog2.f32 %v821_v30  ;;  %v14191_v31 = vld [vmem:[%s15433_s5 + $0xbc8] sm:$0xff]  }
 0x750   : > { %v8667_v56 = vrot.slane %v8503_v28, 1  ;;  %v8666_v32 = vsel %vm8608_vm12, %v8665_v29, %v17006_v52  ;;  %v14182_v52 = vld [vmem:[%s15433_s5 + $0xba8] sm:$0xff]   ;;  %14392 = vrcp.f32 %v675_v13  ;;  %v2206_v29 = vcombine.high %v16980_v19, %v16980_v19  ;;  %v14192_v28 = vld [vmem:[%s15433_s5 + $0xb80] sm:$0xff]  }
 0x751   : > { %v13140_v12 = vpop.f32.mrf.mxu0  ;;  %v6077_v51 = vpop.f32.mrf.mxu1  ;;  %v14193_v60 = vld [vmem:[%s15433_s5 + $0xbc0] sm:$0xff]  }
 0x752   : > { %v8668_v45 = vsel %vm8611_vm13, %v8667_v56, %v8666_v32  ;;  %v2303_v56 = vunpack.i.h.s16 %v2206_v29  ;;  %v11572_v32 = vpack.i.b16 %v2206_v29, %v2206_v29  ;;  %v14201_v29 = vld [vmem:[%s15433_s5 + $0xc60] sm:$0xff]  }
 0x753   : > { %v13160_v4 = vpop.f32.mrf.mxu1  ;;  %8727 = vadd.xlane.f32.xlu0 %v8668_v45 }
 0x754   : > { %13284 = vmatpush3.bf16.xpose.msra.mxu0 %v14180_v16  ;;  %v14778_v16 = vld [vmem:[%s15426_s6 + $0x28] sm:$0xff]  ;;  %v6738_v51 = vpack.i.b16 %v2303_v56, %v2303_v56  ;;  %v6648_v45 = vrot.slane %v11572_v32, %v15459_v25  ;;  %v14205_v56 = vld [vmem:[%s15433_s5 + $0xc50] sm:$0xff]  }
 0x755   : > { %13285 = vmatprep.subr.bf16.mxu0 %v18704_v36  ;;  %v14206_v32 = vld [vmem:[%s15433_s5 + $0xc08] sm:$0xff]  }
 0x756   : > { %13304 = vmatpush3.bf16.xpose.msra.mxu1 %v14181_v9  ;;  %v14195_v9 = vld [vmem:[%s15433_s5 + $0xc78] sm:$0xff]  }
 0x757   : > { %13305 = vmatprep.subr.bf16.mxu1 %v18704_v36 }
 0x75c   : > { %13286 = vmatpush3.bf16.xpose.msra.mxu0 %v14182_v52  ;;  %v14391_v23 = vpop.eup %14390  ;;  %v6742_v52 = vrot.slane %v6738_v51, %v15459_v25  ;;  %v18706_v51 = vpack.c.bf16 %v15933_v37, %v15936_v20 }
 0x75d   : > { %13287 = vmatprep.subr.bf16.mxu0 %v18704_v36  ;;  %v853_v47 = vmul.f32 0.6931472, %v14391_v23  ;;  %v14393_v13 = vpop.eup %14392 }
 0x75e   : > { %13306 = vmatpush3.bf16.xpose.msra.mxu1 %v14183_v11 }
 0x75f   : > { %13307 = vmatprep.subr.bf16.mxu1 %v18704_v36  ;;  %v879_v61 = vmul.f32 0.5, %v853_v47 }
 0x761   : > { %v901_v8 = vmul.f32 %v14393_v13, %v879_v61  ;;  %v14199_v61 = vld [vmem:[%s15433_s5 + $0xc68] sm:$0xff]   ;;  %v14200_v13 = vld [vmem:[%s15433_s5 + $0xc20] sm:$0xff]  }
 0x763   : > { %v17082_v12 = vmul.f32 %v14778_v16, %v901_v8  ;;  %v14204_v8 = vld [vmem:[%s15433_s5 + $0xc10] sm:$0xff]   ;;  %v14207_v16 = vld [vmem:[%s15433_s5 + $0xc48] sm:$0xff]  }
 0x764   : > { %13288 = vmatpush3.bf16.xpose.msra.mxu0 %v14184_v2 }
 0x765   : > { %13289 = vmatprep.subr.bf16.mxu0 %v18704_v36  ;;  %v8379_v19 = vrot.slane %v17082_v12, 1 }
 0x766   : > { %13308 = vmatpush3.bf16.xpose.msra.mxu1 %v14185_v0 }
 0x767   : > { %13309 = vmatprep.subr.bf16.mxu1 %v18704_v36 }
 0x76c   : > { %13290 = vmatpush3.bf16.xpose.msra.mxu0 %v14186_v53 }
 0x76d   : > { %13291 = vmatprep.subr.bf16.mxu0 %v18704_v36 }
 0x76e   : > { %13310 = vmatpush3.bf16.xpose.msra.mxu1 %v14187_v27  ;;  %v14196_v27 = vld [vmem:[%s15433_s5 + $0xc30] sm:$0xff]  }
 0x76f   : > { %13311 = vmatprep.subr.bf16.mxu1 %v18704_v36 }
 0x774   : > { %13292 = vmatpush3.bf16.xpose.msra.mxu0 %v14188_v42 }
 0x775   : > { %13293 = vmatprep.subr.bf16.mxu0 %v18704_v36 }
 0x776   : > { %13312 = vmatpush3.bf16.xpose.msra.mxu1 %v14189_v58 }
 0x777   : > { %13313 = vmatprep.subr.bf16.mxu1 %v18704_v36 }
 0x77c   : > { %13294 = vmatpush3.bf16.xpose.msra.mxu0 %v14190_v46  ;;  %v14197_v46 = vld [vmem:[%s15433_s5 + $0xc70] sm:$0xff]  }
 0x77d   : > { %13295 = vmatprep.subr.bf16.mxu0 %v18704_v36 }
 0x77e   : > { %13314 = vmatpush3.bf16.xpose.msra.mxu1 %v14191_v31  ;;  %v14198_v31 = vld [vmem:[%s15433_s5 + $0xc28] sm:$0xff]  }
 0x77f   : > { %13315 = vmatprep.subr.bf16.mxu1 %v18704_v36 }
 0x784   : > { %13296 = vmatpush3.bf16.xpose.msra.mxu0 %v14192_v28  ;;  %v14202_v28 = vld [vmem:[%s15433_s5 + $0xc18] sm:$0xff]  }
 0x785   : > { %13321 = vmatprep.subr.bf16.mxu0 %v18704_v36 }
 0x786   : > { %13316 = vmatpush3.bf16.xpose.msra.mxu1 %v14193_v60  ;;  %v14203_v60 = vld [vmem:[%s15433_s5 + $0xc58] sm:$0xff]  }
 0x787   : > { %13341 = vmatprep.subr.bf16.mxu1 %v18704_v36 }
 0x78b   : > { %v6168_v4 = vpop.f32.mrf.mxu0  ;;  %13298 = vmatmul.mubr.bf16.vlgmr.msra.gmra.mxu0 %v6648_v45 }
 0x78c   : > { %13322 = vmatpush3.bf16.xpose.msra.mxu0 %v14194_v6  ;;  %13337 = vmatprep.mubr.msk.bf16.mxu0 %vm15081_vm0, %v18704_v36  ;;  %v8504_v30 = vmul.f32 %v6168_v4, %v17082_v12  ;;  %v17126_v6 = vrot.slane %v18706_v51, %v15442_v5  ;;  %v14215_v51 = vld [vmem:[%s15433_s5 + $0xce8] sm:$0xff]  }
 0x78d   : > { %v13179_v11 = vpop.f32.mrf.mxu0  ;;  %v6262_v2 = vpop.f32.mrf.mxu1  ;;  %13318 = vmatmul.mubr.bf16.vlgmr.msra.gmra.mxu1 %v6742_v52  ;;  %13323 = vmatprep.subr.bf16.mxu0 %v18704_v36 }
 0x78e   : > { %v8505_v35 = vmul.f32 %v8379_v19, %v6262_v2  ;;  %13342 = vmatpush3.bf16.xpose.msra.mxu1 %v14195_v9  ;;  %13357 = vmatprep.mubr.msk.bf16.mxu1 %vm15081_vm0, %v18704_v36  ;;  %v17132_v45 = vrot.slane %v17126_v6, %v15442_v5  ;;  %v14208_v19 = vld [vmem:[%s15433_s5 + $0xc00] sm:$0xff]   ;;  %v8380_v11 = vrot.slane %v17082_v12, 2  ;;  %v14210_v2 = vld [vmem:[%s15433_s5 + $0xcb8] sm:$0xff]  }
 0x78f   : > { %v6171_v0 = vpop.f32.mrf.mxu0  ;;  %v13199_v39 = vpop.f32.mrf.mxu1  ;;  %13343 = vmatprep.subr.bf16.mxu1 %v18704_v36  ;;  %v14209_v9 = vld [vmem:[%s15433_s5 + $0xc40] sm:$0xff]  }
 0x790   : > { %v8669_v53 = vrot.slane %v8505_v35, 7  ;;  %v2305_v4 = vunpack.i.h.s16 %v17132_v45  ;;  %v11589_v20 = vpack.i.b16 %v17132_v45, %v17132_v45  ;;  %v8381_v0 = vrot.slane %v17082_v12, 3  ;;  %v14211_v39 = vld [vmem:[%s15433_s5 + $0xcf8] sm:$0xff]  }
 0x791   : > { %v13180_v42 = vpop.f32.mrf.mxu0  ;;  %v6265_v58 = vpop.f32.mrf.mxu1 }
 0x792   : > { %v17099_v23 = vsel %vm8593_vm5, %v8669_v53, %v8504_v30  ;;  %v6926_v52 = vpack.i.b16 %v2305_v4, %v2305_v4  ;;  %v6836_v35 = vrot.slane %v11589_v20, %v15459_v25  ;;  %v14218_v4 = vld [vmem:[%s15433_s5 + $0xc98] sm:$0xff]  }
 0x793   : > { %v13200_v47 = vpop.f32.mrf.mxu1  ;;  %v14219_v20 = vld [vmem:[%s15433_s5 + $0xcd8] sm:$0xff]  }
 0x794   : > { %13324 = vmatpush3.bf16.xpose.msra.mxu0 %v14196_v27  ;;  %v6930_v53 = vrot.slane %v6926_v52, %v15459_v25  ;;  %v14220_v52 = vld [vmem:[%s15433_s5 + $0xc90] sm:$0xff]  }
 0x795   : > { %13325 = vmatprep.subr.bf16.mxu0 %v18704_v36 }
 0x796   : > { %13344 = vmatpush3.bf16.xpose.msra.mxu1 %v14197_v46 }
 0x797   : > { %13345 = vmatprep.subr.bf16.mxu1 %v18704_v36 }
 0x79c   : > { %13326 = vmatpush3.bf16.xpose.msra.mxu0 %v14198_v31 }
 0x79d   : > { %13327 = vmatprep.subr.bf16.mxu0 %v18704_v36 }
 0x79e   : > { %13346 = vmatpush3.bf16.xpose.msra.mxu1 %v14199_v61 }
 0x79f   : > { %13347 = vmatprep.subr.bf16.mxu1 %v18704_v36 }
 0x7a4   : > { %13328 = vmatpush3.bf16.xpose.msra.mxu0 %v14200_v13 }
 0x7a5   : > { %13329 = vmatprep.subr.bf16.mxu0 %v18704_v36 }
 0x7a6   : > { %13348 = vmatpush3.bf16.xpose.msra.mxu1 %v14201_v29 }
 0x7a7   : > { %13349 = vmatprep.subr.bf16.mxu1 %v18704_v36 }
 0x7ac   : > { %13330 = vmatpush3.bf16.xpose.msra.mxu0 %v14202_v28  ;;  %v14212_v28 = vld [vmem:[%s15433_s5 + $0xcb0] sm:$0xff]  }
 0x7ad   : > { %13331 = vmatprep.subr.bf16.mxu0 %v18704_v36 }
 0x7ae   : > { %13350 = vmatpush3.bf16.xpose.msra.mxu1 %v14203_v60 }
 0x7af   : > { %13351 = vmatprep.subr.bf16.mxu1 %v18704_v36 }
 0x7b4   : > { %13332 = vmatpush3.bf16.xpose.msra.mxu0 %v14204_v8 }
 0x7b5   : > { %13333 = vmatprep.subr.bf16.mxu0 %v18704_v36 }
 0x7b6   : > { %13352 = vmatpush3.bf16.xpose.msra.mxu1 %v14205_v56 }
 0x7b7   : > { %13353 = vmatprep.subr.bf16.mxu1 %v18704_v36 }
 0x7bc   : > { %13334 = vmatpush3.bf16.xpose.msra.mxu0 %v14206_v32  ;;  %v14213_v32 = vld [vmem:[%s15433_s5 + $0xcf0] sm:$0xff]  }
 0x7bd   : > { %13335 = vmatprep.subr.bf16.mxu0 %v18704_v36 }
 0x7be   : > { %13354 = vmatpush3.bf16.xpose.msra.mxu1 %v14207_v16 }
 0x7bf   : > { %13355 = vmatprep.subr.bf16.mxu1 %v18704_v36 }
 0x7c4   : > { %13336 = vmatpush3.bf16.xpose.msra.mxu0 %v14208_v19  ;;  %v14216_v19 = vld [vmem:[%s15433_s5 + $0xca0] sm:$0xff]  }
 0x7c5   : > { %13361 = vmatprep.subr.bf16.mxu0 %v18704_v36 }
 0x7c6   : > { %13356 = vmatpush3.bf16.xpose.msra.mxu1 %v14209_v9  ;;  %v14217_v9 = vld [vmem:[%s15433_s5 + $0xce0] sm:$0xff]  }
 0x7c7   : > { %13381 = vmatprep.subr.bf16.mxu1 %v18704_v36 }
 0x7cb   : > { %v6356_v30 = vpop.f32.mrf.mxu0  ;;  %13338 = vmatmul.mubr.bf16.vlgmr.msra.gmra.mxu0 %v6836_v35  ;;  %v14223_v35 = vld [vmem:[%s15433_s5 + $0xcc8] sm:$0xff]  }
 0x7cc   : > { %v8506_v27 = vmul.f32 %v8380_v11, %v6356_v30  ;;  %13362 = vmatpush3.bf16.xpose.msra.mxu0 %v14210_v2  ;;  %13377 = vmatprep.mubr.msk.bf16.mxu0 %vm15081_vm0, %v18704_v36  ;;  %v14221_v11 = vld [vmem:[%s15433_s5 + $0xcd0] sm:$0xff]   ;;  %v14222_v2 = vld [vmem:[%s15433_s5 + $0xc88] sm:$0xff]   ;;  %v14224_v30 = vld [vmem:[%s15433_s5 + $0xc80] sm:$0xff]  }
 0x7cd   : > { %v13219_v42 = vpop.f32.mrf.mxu0  ;;  %v6450_v58 = vpop.f32.mrf.mxu1  ;;  %13358 = vmatmul.mubr.bf16.vlgmr.msra.gmra.mxu1 %v6930_v53  ;;  %13363 = vmatprep.subr.bf16.mxu0 %v18704_v36  ;;  %v14225_v53 = vld [vmem:[%s15433_s5 + $0xcc0] sm:$0xff]  }
 0x7ce   : > { %v8671_v46 = vrot.slane %v8506_v27, 6  ;;  %v8507_v47 = vmul.f32 %v8381_v0, %v6450_v58  ;;  %13382 = vmatpush3.bf16.xpose.msra.mxu1 %v14211_v39  ;;  %13397 = vmatprep.mubr.msk.bf16.mxu1 %vm15081_vm0, %v18704_v36  ;;  %v2222_v0 = vcombine.high %v17126_v6, %v17126_v6  ;;  %v14226_v58 = vld [vmem:[%s15433_s5 + $0xd38] sm:$0xff]  }
 0x7cf   : > { %v6359_v31 = vpop.f32.mrf.mxu0  ;;  %v13239_v61 = vpop.f32.mrf.mxu1  ;;  %13383 = vmatprep.subr.bf16.mxu1 %v18704_v36 }
 0x7d0   : > { %v8672_v13 = vsel %vm8596_vm6, %v8671_v46, %v17099_v23  ;;  %v8673_v29 = vrot.slane %v8507_v47, 5  ;;  %v14214_v23 = vld [vmem:[%s15433_s5 + $0xca8] sm:$0xff]   ;;  %v17185_v39 = vrot.slane %v2222_v0, %v15442_v5  ;;  %v14227_v47 = vld [vmem:[%s15433_s5 + $0xd78] sm:$0xff]   ;;  %v14237_v0 = vld [vmem:[%s15433_s5 + $0xd50] sm:$0xff]  }
 0x7d1   : > { %v13220_v60 = vpop.f32.mrf.mxu0  ;;  %v6453_v8 = vpop.f32.mrf.mxu1 }
 0x7d2   : > { %v17157_v56 = vsel %vm8599_vm7, %v8673_v29, %v8672_v13  ;;  %v2307_v27 = vunpack.i.h.s16 %v17185_v39  ;;  %v11606_v42 = vpack.i.b16 %v17185_v39, %v17185_v39  ;;  %v14228_v8 = vld [vmem:[%s15433_s5 + $0xd30] sm:$0xff]  }
 0x7d3   : > { %v13240_v16 = vpop.f32.mrf.mxu1 }
 0x7d4   : > { %13364 = vmatpush3.bf16.xpose.msra.mxu0 %v14212_v28  ;;  %v7114_v6 = vpack.i.b16 %v2307_v27, %v2307_v27  ;;  %v7024_v46 = vrot.slane %v11606_v42, %v15459_v25  ;;  %v8382_v27 = vrot.slane %v17082_v12, 4  ;;  %v14240_v42 = vld [vmem:[%s15433_s5 + $0xd00] sm:$0xff]  }
 0x7d5   : > { %13365 = vmatprep.subr.bf16.mxu0 %v18704_v36 }
 0x7d6   : > { %13384 = vmatpush3.bf16.xpose.msra.mxu1 %v14213_v32  ;;  %v7118_v61 = vrot.slane %v7114_v6, %v15459_v25 }
 0x7d7   : > { %13385 = vmatprep.subr.bf16.mxu1 %v18704_v36 }
 0x7dc   : > { %13366 = vmatpush3.bf16.xpose.msra.mxu0 %v14214_v23  ;;  %v14229_v23 = vld [vmem:[%s15433_s5 + $0xd70] sm:$0xff]  }
 0x7dd   : > { %13367 = vmatprep.subr.bf16.mxu0 %v18704_v36 }
 0x7de   : > { %13386 = vmatpush3.bf16.xpose.msra.mxu1 %v14215_v51 }
 0x7df   : > { %13387 = vmatprep.subr.bf16.mxu1 %v18704_v36 }
 0x7e4   : > { %13368 = vmatpush3.bf16.xpose.msra.mxu0 %v14216_v19  ;;  %v14230_v19 = vld [vmem:[%s15433_s5 + $0xd28] sm:$0xff]  }
 0x7e5   : > { %13369 = vmatprep.subr.bf16.mxu0 %v18704_v36 }
 0x7e6   : > { %13388 = vmatpush3.bf16.xpose.msra.mxu1 %v14217_v9  ;;  %v14231_v9 = vld [vmem:[%s15433_s5 + $0xd68] sm:$0xff]  }
 0x7e7   : > { %13389 = vmatprep.subr.bf16.mxu1 %v18704_v36 }
 0x7ec   : > { %13370 = vmatpush3.bf16.xpose.msra.mxu0 %v14218_v4  ;;  %v14232_v4 = vld [vmem:[%s15433_s5 + $0xd20] sm:$0xff]  }
 0x7ed   : > { %13371 = vmatprep.subr.bf16.mxu0 %v18704_v36 }
 0x7ee   : > { %13390 = vmatpush3.bf16.xpose.msra.mxu1 %v14219_v20  ;;  %v14233_v20 = vld [vmem:[%s15433_s5 + $0xd60] sm:$0xff]  }
 0x7ef   : > { %13391 = vmatprep.subr.bf16.mxu1 %v18704_v36 }
 0x7f4   : > { %13372 = vmatpush3.bf16.xpose.msra.mxu0 %v14220_v52  ;;  %v14234_v52 = vld [vmem:[%s15433_s5 + $0xd18] sm:$0xff]  }
 0x7f5   : > { %13373 = vmatprep.subr.bf16.mxu0 %v18704_v36 }
 0x7f6   : > { %13392 = vmatpush3.bf16.xpose.msra.mxu1 %v14221_v11  ;;  %v14235_v11 = vld [vmem:[%s15433_s5 + $0xd58] sm:$0xff]  }
 0x7f7   : > { %13393 = vmatprep.subr.bf16.mxu1 %v18704_v36 }
 0x7fc   : > { %13374 = vmatpush3.bf16.xpose.msra.mxu0 %v14222_v2  ;;  %v624_v2 = vmax.f32 %v15620_v15, 1e-15  ;;  %v2252_v15 = vcombine.high %v17132_v45, %v17132_v45 }
 0x7fd   : > { %13375 = vmatprep.subr.bf16.mxu0 %v18704_v36 }
 0x7fe   : > { %13394 = vmatpush3.bf16.xpose.msra.mxu1 %v14223_v35  ;;  %v14236_v35 = vld [vmem:[%s15433_s5 + $0xd10] sm:$0xff]   ;;  %14394 = vrsqrt.f32 %v624_v2  ;;  %vm678_vm14 = vcmp.eq.f32.partialorder %v624_v2, inf  ;;  %v681_v45 = vand.u32 2147483648, %v624_v2  ;;  %vm680_vm15 = vcmp.eq.f32.partialorder %v624_v2, 0.0 }
 0x7ff   : > { %13395 = vmatprep.subr.bf16.mxu1 %v18704_v36 }
 0x804   : > { %13376 = vmatpush3.bf16.xpose.msra.mxu0 %v14224_v30  ;;  %v14238_v30 = vld [vmem:[%s15433_s5 + $0xd08] sm:$0xff]  }
 0x805   : > { %13401 = vmatprep.subr.bf16.mxu0 %v18704_v36 }
 0x806   : > { %13396 = vmatpush3.bf16.xpose.msra.mxu1 %v14225_v53  ;;  %v14239_v53 = vld [vmem:[%s15433_s5 + $0xd48] sm:$0xff]  }
 0x807   : > { %13421 = vmatprep.subr.bf16.mxu1 %v18704_v36 }
 0x80b   : > { %v17197_v31 = vpop.f32.mrf.mxu0  ;;  %13378 = vmatmul.mubr.bf16.vlgmr.msra.gmra.mxu0 %v7024_v46  ;;  %v14395_v6 = vpop.eup %14394  ;;  %v8383_v46 = vrot.slane %v17082_v12, 5 }
 0x80c   : > { %13402 = vmatpush3.bf16.xpose.msra.mxu0 %v14226_v58  ;;  %13417 = vmatprep.mubr.msk.bf16.mxu0 %vm15081_vm0, %v18704_v36  ;;  %v14241_v58 = vld [vmem:[%s15433_s5 + $0xd40] sm:$0xff]  }
 0x80d   : > { %v13259_v13 = vpop.f32.mrf.mxu0  ;;  %v17202_v29 = vpop.f32.mrf.mxu1  ;;  %13398 = vmatmul.mubr.bf16.vlgmr.msra.gmra.mxu1 %v7118_v61  ;;  %13403 = vmatprep.subr.bf16.mxu0 %v18704_v36  ;;  %v677_v61 = vmul.f32 %v14395_v6, %v624_v2 }
 0x80e   : > { %13422 = vmatpush3.bf16.xpose.msra.mxu1 %v14227_v47  ;;  %13437 = vmatprep.mubr.msk.bf16.mxu1 %vm15081_vm0, %v18704_v36  ;;  %v2309_v47 = vunpack.i.h.s16 %v2252_v15  ;;  %v8508_v13 = vmul.f32 %v8382_v27, %v17197_v31 }
 0x80f   : > { %v6547_v28 = vpop.f32.mrf.mxu0  ;;  %v13279_v60 = vpop.f32.mrf.mxu1  ;;  %13423 = vmatprep.subr.bf16.mxu1 %v18704_v36 }
 0x810   : > { %v11623_v28 = vpack.i.b16 %v2252_v15, %v2252_v15  ;;  %v8509_v60 = vmul.f32 %v8383_v46, %v17202_v29 }
 0x811   : > { %v13260_v32 = vpop.f32.mrf.mxu0  ;;  %v6641_v16 = vpop.f32.mrf.mxu1 }
 0x812   : > { %v679_v32 = vsel %vm678_vm14, %v624_v2, %v677_v61  ;;  %v8675_v16 = vrot.slane %v8508_v13, 4  ;;  %v7212_v31 = vrot.slane %v11623_v28, %v15459_v25  ;;  %v14245_v28 = vld [vmem:[%s15433_s5 + $0xdf0] sm:$0xff]  }
 0x813   : > { %v13280_v51 = vpop.f32.mrf.mxu1 }
 0x814   : > { %13404 = vmatpush3.bf16.xpose.msra.mxu0 %v14228_v8  ;;  %v7302_v8 = vpack.i.b16 %v2309_v47, %v2309_v47  ;;  %v14242_v51 = vld [vmem:[%s15433_s5 + $0xdb8] sm:$0xff]  }
 0x815   : > { %13405 = vmatprep.subr.bf16.mxu0 %v18704_v36 }
 0x816   : > { %13424 = vmatpush3.bf16.xpose.msra.mxu1 %v14229_v23  ;;  %v8384_v23 = vrot.slane %v17082_v12, 6  ;;  %v7306_v29 = vrot.slane %v7302_v8, %v15459_v25  ;;  %v14247_v8 = vld [vmem:[%s15433_s5 + $0xde8] sm:$0xff]  }
 0x817   : > { %13425 = vmatprep.subr.bf16.mxu1 %v18704_v36 }
 0x81c   : > { %13406 = vmatpush3.bf16.xpose.msra.mxu0 %v14230_v19  ;;  %v8385_v19 = vrot.slane %v17082_v12, 7 }
 0x81d   : > { %13407 = vmatprep.subr.bf16.mxu0 %v18704_v36 }
 0x81e   : > { %13426 = vmatpush3.bf16.xpose.msra.mxu1 %v14231_v9  ;;  %v14243_v9 = vld [vmem:[%s15433_s5 + $0xdf8] sm:$0xff]  }
 0x81f   : > { %13427 = vmatprep.subr.bf16.mxu1 %v18704_v36 }
 0x824   : > { %13408 = vmatpush3.bf16.xpose.msra.mxu0 %v14232_v4  ;;  %v17248_v4 = vsel %vm680_vm15, %v681_v45, %v679_v32  ;;  %v14248_v32 = vld [vmem:[%s15433_s5 + $0xda0] sm:$0xff]  }
 0x825   : > { %13409 = vmatprep.subr.bf16.mxu0 %v18704_v36  ;;  %v11167_v12 = vclamps-f32 %v17248_v4, 0.999999 }
 0x826   : > { %13428 = vmatpush3.bf16.xpose.msra.mxu1 %v14233_v20  ;;  %v8677_v20 = vrot.slane %v8509_v60, 3  ;;  %v14246_v60 = vld [vmem:[%s15433_s5 + $0xda8] sm:$0xff]  }
 0x827   : > { %13429 = vmatprep.subr.bf16.mxu1 %v18704_v36  ;;  %v800_v61 = vsub.f32 1.0, %v11167_v12 }
 0x829   : > { %14396 = vrcp.f32 %v800_v61  ;;  %v14256_v61 = vld [vmem:[%s15433_s5 + $0xd80] sm:$0xff]  }
 0x82c   : > { %13410 = vmatpush3.bf16.xpose.msra.mxu0 %v14234_v52 }
 0x82d   : > { %13411 = vmatprep.subr.bf16.mxu0 %v18704_v36 }
 0x82e   : > { %13430 = vmatpush3.bf16.xpose.msra.mxu1 %v14235_v11  ;;  %v8676_v11 = vsel %vm8602_vm10, %v8675_v16, %v17157_v56  ;;  %v784_v16 = vadd.f32 1.0, %v11167_v12  ;;  %v14253_v12 = vld [vmem:[%s15433_s5 + $0xdd0] sm:$0xff]  }
 0x82f   : > { %13431 = vmatprep.subr.bf16.mxu1 %v18704_v36  ;;  %v8678_v27 = vsel %vm8605_vm11, %v8677_v20, %v8676_v11 }
 0x834   : > { %13412 = vmatpush3.bf16.xpose.msra.mxu0 %v14236_v35 }
 0x835   : > { %13413 = vmatprep.subr.bf16.mxu0 %v18704_v36 }
 0x836   : > { %13432 = vmatpush3.bf16.xpose.msra.mxu1 %v14237_v0 }
 0x837   : > { %13433 = vmatprep.subr.bf16.mxu1 %v18704_v36 }
 0x83c   : > { %13414 = vmatpush3.bf16.xpose.msra.mxu0 %v14238_v30 }
 0x83d   : > { %13415 = vmatprep.subr.bf16.mxu0 %v18704_v36 }
 0x83e   : > { %13434 = vmatpush3.bf16.xpose.msra.mxu1 %v14239_v53 }
 0x83f   : > { %13435 = vmatprep.subr.bf16.mxu1 %v18704_v36 }
 0x844   : > { %13416 = vmatpush3.bf16.xpose.msra.mxu0 %v14240_v42 }
 0x845   : > { %13441 = vmatprep.subr.bf16.mxu0 %v18704_v36 }
 0x846   : > { %13436 = vmatpush3.bf16.xpose.msra.mxu1 %v14241_v58  ;;  %v14244_v58 = vld [vmem:[%s15433_s5 + $0xdb0] sm:$0xff]  }
 0x847   : > { %13461 = vmatprep.subr.bf16.mxu1 %v18704_v36 }
 0x84b   : > { %v6732_v52 = vpop.f32.mrf.mxu0  ;;  %13418 = vmatmul.mubr.bf16.vlgmr.msra.gmra.mxu0 %v7212_v31  ;;  %v18707_v31 = vsub.s32 1, %v15439_v3 }
 0x84c   : > { %v8510_v2 = vmul.f32 %v8384_v23, %v6732_v52  ;;  %13442 = vmatpush3.bf16.xpose.msra.mxu0 %v14242_v51  ;;  %13457 = vmatprep.mubr.msk.bf16.mxu0 %vm15081_vm0, %v18704_v36  ;;  %v14249_v23 = vld [vmem:[%s15433_s5 + $0xde0] sm:$0xff]   ;;  %v14397_v51 = vpop.eup %14396  ;;  %v14250_v52 = vld [vmem:[%s15433_s5 + $0xd98] sm:$0xff]  }
 0x84d   : > { %v13299_v35 = vpop.f32.mrf.mxu0  ;;  %v6826_v0 = vpop.f32.mrf.mxu1  ;;  %13438 = vmatmul.mubr.bf16.vlgmr.msra.gmra.mxu1 %v7306_v29  ;;  %13443 = vmatprep.subr.bf16.mxu0 %v18704_v36  ;;  %v823_v20 = vmul.f32 %v14397_v51, %v784_v16 }
 0x84e   : > { %v8679_v30 = vrot.slane %v8510_v2, 2  ;;  %v8511_v53 = vmul.f32 %v8385_v19, %v6826_v0  ;;  %13462 = vmatpush3.bf16.xpose.msra.mxu1 %v14243_v9  ;;  %13477 = vmatprep.mubr.msk.bf16.mxu1 %vm15081_vm0, %v18704_v36  ;;  %v17276_v19 = vrot.slane %v15608_v7, %v18707_v31  ;;  %v9591_v9 = vmul.f32 2.0, %v15838_v26  ;;  %v14251_v2 = vld [vmem:[%s15433_s5 + $0xdd8] sm:$0xff]   ;;  %v14252_v26 = vld [vmem:[%s15433_s5 + $0xd90] sm:$0xff]  }
 0x84f   : > { %v6735_v56 = vpop.f32.mrf.mxu0  ;;  %v13319_v15 = vpop.f32.mrf.mxu1  ;;  %13463 = vmatprep.subr.bf16.mxu1 %v18704_v36  ;;  %14398 = vlog2.f32 %v823_v20 }
 0x850   : > { %v8681_v42 = vrot.slane %v8511_v53, 1  ;;  %v8680_v6 = vsel %vm8608_vm12, %v8679_v30, %v8678_v27  ;;  %18708 = vst [vmem:[#allocation46_spill] sm:$0xff] %v17276_v19  ;;  %v9639_v29 = vmul.f32 %v17276_v19, %v15811_v34  ;;  %v9607_v11 = vsub.f32 1.0, %v9591_v9  ;;  %v14254_v56 = vld [vmem:[%s15433_s5 + $0xd88] sm:$0xff]  }
 0x851   : > { %v13300_v46 = vpop.f32.mrf.mxu0  ;;  %v6829_v47 = vpop.f32.mrf.mxu1  ;;  %14400 = vrcp.f32 %v17248_v4  ;;  %v9719_v53 = vsub.f32 0.0, %v15537_v21  ;;  %v14255_v27 = vld [vmem:[%s15433_s5 + $0xdc8] sm:$0xff]  }
 0x852   : > { %v8682_v13 = vsel %vm8611_vm13, %v8681_v42, %v8680_v6  ;;  %v9655_v35 = vadd.f32 %v9639_v29, %v9607_v11  ;;  %v9623_v4 = vadd.f32 %v9607_v11, %v15811_v34  ;;  %v18626_v6 = vsub.f32 1.0, %v17276_v19 }
 0x853   : > { %v13320_v45 = vpop.f32.mrf.mxu1  ;;  %8729 = vadd.xlane.f32.xlu1 %v8682_v13  ;;  %v9781_v42 = vrot.slane %v9719_v53, %v15459_v25  ;;  %v2254_v47 = vcombine.high %v17185_v39, %v17185_v39  ;;  %v14779_v13 = vld [vmem:[%s15424_s25 + $0x8] sm:$0xff]  ;;  %v14780_v39 = vld [vmem:[%s15426_s6 + $0x30] sm:$0xff] }
 0x854   : > { %13444 = vmatpush3.bf16.xpose.msra.mxu0 %v14244_v58  ;;  %v9671_v0 = vmax.f32 %v9655_v35, 1e-15 }
 0x855   : > { %13445 = vmatprep.subr.bf16.mxu0 %v18704_v36  ;;  %v9831_v46 = vmul.f32 %v9781_v42, %v9623_v4  ;;  %v14260_v42 = vld [vmem:[%s15433_s5 + $0xe30] sm:$0xff]  }
 0x856   : > { %13464 = vmatpush3.bf16.xpose.msra.mxu1 %v14245_v28  ;;  %14402 = vrcp.f32 %v9671_v0  ;;  %v9847_v28 = vmul.f32 %v14779_v13, %v18626_v6  ;;  %v14263_v13 = vld [vmem:[%s15433_s5 + $0xe68] sm:$0xff]  }
 0x857   : > { %13465 = vmatprep.subr.bf16.mxu1 %v18704_v36 }
 0x858   : > { %v9863_v16 = vadd.f32 %v9847_v28, %v9831_v46  ;;  %v14261_v46 = vld [vmem:[%s15433_s5 + $0xe70] sm:$0xff]   ;;  %v14264_v28 = vld [vmem:[%s15433_s5 + $0xe20] sm:$0xff]  }
 0x85c   : > { %13446 = vmatpush3.bf16.xpose.msra.mxu0 %v14246_v60  ;;  %v14399_v30 = vpop.eup %14398  ;;  %v14257_v60 = vld [vmem:[%s15433_s5 + $0xdc0] sm:$0xff]  }
 0x85d   : > { %13447 = vmatprep.subr.bf16.mxu0 %v18704_v36  ;;  %v855_v15 = vmul.f32 0.6931472, %v14399_v30 }
 0x85e   : > { %13466 = vmatpush3.bf16.xpose.msra.mxu1 %v14247_v8  ;;  %v14401_v21 = vpop.eup %14400 }
 0x85f   : > { %13467 = vmatprep.subr.bf16.mxu1 %v18704_v36  ;;  %v880_v58 = vmul.f32 0.5, %v855_v15 }
 0x861   : > { %v903_v8 = vmul.f32 %v14401_v21, %v880_v58 }
 0x863   : > { %v14403_v45 = vpop.eup %14402  ;;  %v17311_v31 = vmul.f32 %v14780_v39, %v903_v8  ;;  %v14267_v8 = vld [vmem:[%s15433_s5 + $0xe58] sm:$0xff]   ;;  %v14270_v39 = vld [vmem:[%s15433_s5 + $0xe08] sm:$0xff]  }
 0x864   : > { %13448 = vmatpush3.bf16.xpose.msra.mxu0 %v14248_v32  ;;  %v2311_v32 = vunpack.i.h.s16 %v2254_v47  ;;  %v17308_v51 = vmul.f32 %v14403_v45, %v9863_v16  ;;  %v14265_v45 = vld [vmem:[%s15433_s5 + $0xe60] sm:$0xff]   ;;  %v14269_v16 = vld [vmem:[%s15433_s5 + $0xe50] sm:$0xff]  }
 0x865   : > { %13449 = vmatprep.subr.bf16.mxu0 %v18704_v36  ;;  %v8386_v11 = vrot.slane %v17311_v31, 1 }
 0x866   : > { %13468 = vmatpush3.bf16.xpose.msra.mxu1 %v14249_v23  ;;  %v11640_v23 = vpack.i.b16 %v2254_v47, %v2254_v47  ;;  %18709 = vst [vmem:[#allocation47_spill] sm:$0xff] %v17308_v51  ;;  %v7490_v9 = vpack.i.b16 %v2311_v32, %v2311_v32  ;;  %v9895_v20 = vmul.f32 %v17308_v51, %v17308_v51  ;;  %v14268_v32 = vld [vmem:[%s15433_s5 + $0xe10] sm:$0xff]  }
 0x867   : > { %13469 = vmatprep.subr.bf16.mxu1 %v18704_v36 }
 0x868   : > { %v7400_v29 = vrot.slane %v11640_v23, %v15459_v25  ;;  %9920 = vadd.xlane.f32.xlu1 %v9895_v20  ;;  %v11180_v23 = vpack.c.bf16 %v15933_v37, %v15933_v37  ;;  %v18710_v20 = vsub.s32 2, %v15439_v3 }
 0x86c   : > { %13450 = vmatpush3.bf16.xpose.msra.mxu0 %v14250_v52  ;;  %v14258_v52 = vld [vmem:[%s15433_s5 + $0xe38] sm:$0xff]  }
 0x86d   : > { %13451 = vmatprep.subr.bf16.mxu0 %v18704_v36 }
 0x86e   : > { %13470 = vmatpush3.bf16.xpose.msra.mxu1 %v14251_v2  ;;  %v14259_v2 = vld [vmem:[%s15433_s5 + $0xe78] sm:$0xff]  }
 0x86f   : > { %13471 = vmatprep.subr.bf16.mxu1 %v18704_v36 }
 0x874   : > { %13452 = vmatpush3.bf16.xpose.msra.mxu0 %v14252_v26  ;;  %v7494_v26 = vrot.slane %v7490_v9, %v15459_v25  ;;  %v14271_v9 = vld [vmem:[%s15433_s5 + $0xe48] sm:$0xff]  }
 0x875   : > { %13453 = vmatprep.subr.bf16.mxu0 %v18704_v36 }
 0x876   : > { %13472 = vmatpush3.bf16.xpose.msra.mxu1 %v14253_v12 }
 0x877   : > { %13473 = vmatprep.subr.bf16.mxu1 %v18704_v36 }
 0x87c   : > { %13454 = vmatpush3.bf16.xpose.msra.mxu0 %v14254_v56 }
 0x87d   : > { %13455 = vmatprep.subr.bf16.mxu0 %v18704_v36 }
 0x87e   : > { %13474 = vmatpush3.bf16.xpose.msra.mxu1 %v14255_v27 }
 0x87f   : > { %13475 = vmatprep.subr.bf16.mxu1 %v18704_v36 }
 0x884   : > { %13456 = vmatpush3.bf16.xpose.msra.mxu0 %v14256_v61  ;;  %v14262_v61 = vld [vmem:[%s15433_s5 + $0xe28] sm:$0xff]  }
 0x885   : > { %13481 = vmatprep.subr.bf16.mxu0 %v18704_v36 }
 0x886   : > { %13476 = vmatpush3.bf16.xpose.msra.mxu1 %v14257_v60  ;;  %v14266_v60 = vld [vmem:[%s15433_s5 + $0xe18] sm:$0xff]  }
 0x887   : > { %13501 = vmatprep.subr.bf16.mxu1 %v18704_v36 }
 0x88b   : > { %v6920_v35 = vpop.f32.mrf.mxu0  ;;  %13458 = vmatmul.mubr.bf16.vlgmr.msra.gmra.mxu0 %v7400_v29  ;;  %v9592_v29 = vmul.f32 2.0, %v15835_v22  ;;  %v14272_v22 = vld [vmem:[%s15433_s5 + $0xe00] sm:$0xff]  }
 0x88c   : > { %v8512_v0 = vmul.f32 %v6920_v35, %v17311_v31  ;;  %13482 = vmatpush3.bf16.xpose.msra.mxu0 %v14258_v52  ;;  %13497 = vmatprep.mubr.msk.bf16.mxu0 %vm15081_vm0, %v18704_v36  ;;  %v17358_v52 = vrot.slane %v15608_v7, %v18710_v20 }
 0x88d   : > { %v13339_v12 = vpop.f32.mrf.mxu0  ;;  %v7014_v30 = vpop.f32.mrf.mxu1  ;;  %13478 = vmatmul.mubr.bf16.vlgmr.msra.gmra.mxu1 %v7494_v26  ;;  %13483 = vmatprep.subr.bf16.mxu0 %v18704_v36  ;;  %v14273_v26 = vld [vmem:[%s15433_s5 + $0xe40] sm:$0xff]  }
 0x88e   : > { %v8513_v53 = vmul.f32 %v8386_v11, %v7014_v30  ;;  %13502 = vmatpush3.bf16.xpose.msra.mxu1 %v14259_v2  ;;  %13517 = vmatprep.mubr.msk.bf16.mxu1 %vm15081_vm0, %v18704_v36  ;;  %18711 = vst [vmem:[#allocation48_spill] sm:$0xff] %v17358_v52  ;;  %v17362_v11 = vrot.slane %v11180_v23, %v15442_v5  ;;  %v9608_v2 = vsub.f32 1.0, %v9592_v29 }
 0x88f   : > { %v6923_v56 = vpop.f32.mrf.mxu0  ;;  %v13359_v15 = vpop.f32.mrf.mxu1  ;;  %13503 = vmatprep.subr.bf16.mxu1 %v18704_v36  ;;  %v9640_v37 = vmul.f32 %v17358_v52, %v15794_v55 }
 0x890   : > { %v8683_v27 = vrot.slane %v8513_v53, 7  ;;  %v17370_v35 = vrot.slane %v17362_v11, %v15442_v5  ;;  %v8387_v15 = vrot.slane %v17311_v31, 2  ;;  %v9624_v20 = vadd.f32 %v9608_v2, %v15794_v55 }
 0x891   : > { %v13340_v4 = vpop.f32.mrf.mxu0  ;;  %v7017_v58 = vpop.f32.mrf.mxu1 }
 0x892   : > { %v17330_v21 = vsel %vm8593_vm5, %v8683_v27, %v8512_v0  ;;  %v9656_v0 = vadd.f32 %v9640_v37, %v9608_v2  ;;  %v2313_v12 = vunpack.i.h.s16 %v17370_v35  ;;  %v11657_v30 = vpack.i.b16 %v17370_v35, %v17370_v35  ;;  %v14274_v27 = vld [vmem:[%s15433_s5 + $0xeb8] sm:$0xff]   ;;  %v14781_v2 = vld [vmem:[%s15424_s25 + $0x10] sm:$0xff] }
 0x893   : > { %v13360_v47 = vpop.f32.mrf.mxu1  ;;  %v8388_v4 = vrot.slane %v17311_v31, 3  ;;  %v14275_v58 = vld [vmem:[%s15433_s5 + $0xef8] sm:$0xff]  }
 0x894   : > { %13484 = vmatpush3.bf16.xpose.msra.mxu0 %v14260_v42  ;;  %v9672_v53 = vmax.f32 %v9656_v0, 1e-15  ;;  %v7678_v56 = vpack.i.b16 %v2313_v12, %v2313_v12  ;;  %v7588_v42 = vrot.slane %v11657_v30, %v15459_v25  ;;  %v18625_v0 = vsub.f32 1.0, %v17358_v52 }
 0x895   : > { %13485 = vmatprep.subr.bf16.mxu0 %v18704_v36 }
 0x896   : > { %13504 = vmatpush3.bf16.xpose.msra.mxu1 %v14261_v46  ;;  %14404 = vrcp.f32 %v9672_v53  ;;  %v7682_v47 = vrot.slane %v7678_v56, %v15459_v25  ;;  %v9848_v30 = vmul.f32 %v14781_v2, %v18625_v0  ;;  %v14278_v56 = vld [vmem:[%s15433_s5 + $0xea8] sm:$0xff]  }
 0x897   : > { %13505 = vmatprep.subr.bf16.mxu1 %v18704_v36 }
 0x89c   : > { %13486 = vmatpush3.bf16.xpose.msra.mxu0 %v14262_v61 }
 0x89d   : > { %13487 = vmatprep.subr.bf16.mxu0 %v18704_v36 }
 0x89e   : > { %13506 = vmatpush3.bf16.xpose.msra.mxu1 %v14263_v13  ;;  %v9720_v13 = vsub.f32 0.0, %v15531_v18 }
 0x89f   : > { %13507 = vmatprep.subr.bf16.mxu1 %v18704_v36 }
 0x8a3   : > { %v14405_v53 = vpop.eup %14404 }
 0x8a4   : > { %13488 = vmatpush3.bf16.xpose.msra.mxu0 %v14264_v28 }
 0x8a5   : > { %13489 = vmatprep.subr.bf16.mxu0 %v18704_v36 }
 0x8a6   : > { %13508 = vmatpush3.bf16.xpose.msra.mxu1 %v14265_v45 }
 0x8a7   : > { %13509 = vmatprep.subr.bf16.mxu1 %v18704_v36 }
 0x8ac   : > { %13490 = vmatpush3.bf16.xpose.msra.mxu0 %v14266_v60 }
 0x8ad   : > { %13491 = vmatprep.subr.bf16.mxu0 %v18704_v36 }
 0x8ae   : > { %13510 = vmatpush3.bf16.xpose.msra.mxu1 %v14267_v8 }
 0x8af   : > { %13511 = vmatprep.subr.bf16.mxu1 %v18704_v36 }
 0x8b4   : > { %13492 = vmatpush3.bf16.xpose.msra.mxu0 %v14268_v32 }
 0x8b5   : > { %13493 = vmatprep.subr.bf16.mxu0 %v18704_v36 }
 0x8b6   : > { %13512 = vmatpush3.bf16.xpose.msra.mxu1 %v14269_v16 }
 0x8b7   : > { %13513 = vmatprep.subr.bf16.mxu1 %v18704_v36 }
 0x8bc   : > { %13494 = vmatpush3.bf16.xpose.msra.mxu0 %v14270_v39  ;;  %v14276_v39 = vld [vmem:[%s15433_s5 + $0xeb0] sm:$0xff]  }
 0x8bd   : > { %13495 = vmatprep.subr.bf16.mxu0 %v18704_v36 }
 0x8be   : > { %13514 = vmatpush3.bf16.xpose.msra.mxu1 %v14271_v9  ;;  %v9785_v9 = vrot.slane %v9720_v13, %v15459_v25  ;;  %v14285_v13 = vld [vmem:[%s15433_s5 + $0xed0] sm:$0xff]  }
 0x8bf   : > { %13515 = vmatprep.subr.bf16.mxu1 %v18704_v36 }
 0x8c4   : > { %13496 = vmatpush3.bf16.xpose.msra.mxu0 %v14272_v22 }
 0x8c5   : > { %13521 = vmatprep.subr.bf16.mxu0 %v18704_v36 }
 0x8c6   : > { %13516 = vmatpush3.bf16.xpose.msra.mxu1 %v14273_v26  ;;  %v14277_v26 = vld [vmem:[%s15433_s5 + $0xef0] sm:$0xff]  }
 0x8c7   : > { %13541 = vmatprep.subr.bf16.mxu1 %v18704_v36 }
 0x8cb   : > { %v7108_v46 = vpop.f32.mrf.mxu0  ;;  %13498 = vmatmul.mubr.bf16.vlgmr.msra.gmra.mxu0 %v7588_v42 }
 0x8cc   : > { %v8514_v61 = vmul.f32 %v8387_v15, %v7108_v46  ;;  %13522 = vmatpush3.bf16.xpose.msra.mxu0 %v14274_v27  ;;  %13537 = vmatprep.mubr.msk.bf16.mxu0 %vm15081_vm0, %v18704_v36  ;;  %v14279_v27 = vld [vmem:[%s15433_s5 + $0xee8] sm:$0xff]   ;;  %v14282_v46 = vld [vmem:[%s15433_s5 + $0xe98] sm:$0xff]  }
 0x8cd   : > { %v13379_v28 = vpop.f32.mrf.mxu0  ;;  %v7202_v45 = vpop.f32.mrf.mxu1  ;;  %13518 = vmatmul.mubr.bf16.vlgmr.msra.gmra.mxu1 %v7682_v47  ;;  %13523 = vmatprep.subr.bf16.mxu0 %v18704_v36  ;;  %v14283_v47 = vld [vmem:[%s15433_s5 + $0xed8] sm:$0xff]  }
 0x8ce   : > { %v8685_v60 = vrot.slane %v8514_v61, 6  ;;  %v8515_v8 = vmul.f32 %v8388_v4, %v7202_v45  ;;  %13542 = vmatpush3.bf16.xpose.msra.mxu1 %v14275_v58  ;;  %13557 = vmatprep.mubr.msk.bf16.mxu1 %vm15081_vm0, %v18704_v36  ;;  %v14280_v4 = vld [vmem:[%s15433_s5 + $0xea0] sm:$0xff]   ;;  %v14284_v61 = vld [vmem:[%s15433_s5 + $0xe90] sm:$0xff]   ;;  %v14286_v28 = vld [vmem:[%s15433_s5 + $0xe88] sm:$0xff]  }
 0x8cf   : > { %v7111_v32 = vpop.f32.mrf.mxu0  ;;  %v13399_v16 = vpop.f32.mrf.mxu1  ;;  %13543 = vmatprep.subr.bf16.mxu1 %v18704_v36  ;;  %v14281_v58 = vld [vmem:[%s15433_s5 + $0xee0] sm:$0xff]   ;;  %v14287_v45 = vld [vmem:[%s15433_s5 + $0xec8] sm:$0xff]  }
 0x8d0   : > { %v8686_v23 = vsel %vm8596_vm6, %v8685_v60, %v17330_v21  ;;  %v8687_v18 = vrot.slane %v8515_v8, 5  ;;  %v9832_v21 = vmul.f32 %v9785_v9, %v9624_v20  ;;  %v2223_v60 = vcombine.high %v17362_v11, %v17362_v11  ;;  %v14288_v32 = vld [vmem:[%s15433_s5 + $0xe80] sm:$0xff]   ;;  %v14290_v9 = vld [vmem:[%s15433_s5 + $0xf38] sm:$0xff]  }
 0x8d1   : > { %v13380_v29 = vpop.f32.mrf.mxu0  ;;  %v7205_v37 = vpop.f32.mrf.mxu1  ;;  %v14289_v16 = vld [vmem:[%s15433_s5 + $0xec0] sm:$0xff]  }
 0x8d2   : > { %v17398_v22 = vsel %vm8599_vm7, %v8687_v18, %v8686_v23  ;;  %v9864_v15 = vadd.f32 %v9848_v30, %v9832_v21  ;;  %v17432_v8 = vrot.slane %v2223_v60, %v15442_v5  ;;  %v8390_v29 = vrot.slane %v17311_v31, 5  ;;  %v14291_v37 = vld [vmem:[%s15433_s5 + $0xf78] sm:$0xff]   ;;  %v14295_v60 = vld [vmem:[%s15433_s5 + $0xf68] sm:$0xff]  }
 0x8d3   : > { %v13400_v12 = vpop.f32.mrf.mxu1 }
 0x8d4   : > { %13524 = vmatpush3.bf16.xpose.msra.mxu0 %v14276_v39  ;;  %v17409_v42 = vmul.f32 %v14405_v53, %v9864_v15  ;;  %v2315_v23 = vunpack.i.h.s16 %v17432_v8  ;;  %v11674_v18 = vpack.i.b16 %v17432_v8, %v17432_v8  ;;  %v8389_v39 = vrot.slane %v17311_v31, 4 }
 0x8d5   : > { %13525 = vmatprep.subr.bf16.mxu0 %v18704_v36 }
 0x8d6   : > { %13544 = vmatpush3.bf16.xpose.msra.mxu1 %v14277_v26  ;;  %18712 = vst [vmem:[#allocation49_spill] sm:$0xff] %v17409_v42  ;;  %v7866_v11 = vpack.i.b16 %v2315_v23, %v2315_v23  ;;  %v7776_v20 = vrot.slane %v11674_v18, %v15459_v25  ;;  %v14298_v23 = vld [vmem:[%s15433_s5 + $0xf18] sm:$0xff]  }
 0x8d7   : > { %13545 = vmatprep.subr.bf16.mxu1 %v18704_v36  ;;  %v14299_v18 = vld [vmem:[%s15433_s5 + $0xf58] sm:$0xff]  }
 0x8d8   : > { %v7870_v12 = vrot.slane %v7866_v11, %v15459_v25  ;;  %v17475_v11 = vrot.slane %v15608_v7, %v15459_v25 }
 0x8da   : > { %18713 = vst [vmem:[#allocation50_spill] sm:$0xff] %v17475_v11 }
 0x8dc   : > { %13526 = vmatpush3.bf16.xpose.msra.mxu0 %v14278_v56 }
 0x8dd   : > { %13527 = vmatprep.subr.bf16.mxu0 %v18704_v36 }
 0x8de   : > { %13546 = vmatpush3.bf16.xpose.msra.mxu1 %v14279_v27 }
 0x8df   : > { %13547 = vmatprep.subr.bf16.mxu1 %v18704_v36 }
 0x8e4   : > { %13528 = vmatpush3.bf16.xpose.msra.mxu0 %v14280_v4 }
 0x8e5   : > { %13529 = vmatprep.subr.bf16.mxu0 %v18704_v36 }
 0x8e6   : > { %13548 = vmatpush3.bf16.xpose.msra.mxu1 %v14281_v58 }
 0x8e7   : > { %13549 = vmatprep.subr.bf16.mxu1 %v18704_v36 }
 0x8ec   : > { %13530 = vmatpush3.bf16.xpose.msra.mxu0 %v14282_v46  ;;  %v14292_v46 = vld [vmem:[%s15433_s5 + $0xf30] sm:$0xff]  }
 0x8ed   : > { %13531 = vmatprep.subr.bf16.mxu0 %v18704_v36 }
 0x8ee   : > { %13550 = vmatpush3.bf16.xpose.msra.mxu1 %v14283_v47 }
 0x8ef   : > { %13551 = vmatprep.subr.bf16.mxu1 %v18704_v36 }
 0x8f4   : > { %13532 = vmatpush3.bf16.xpose.msra.mxu0 %v14284_v61 }
 0x8f5   : > { %13533 = vmatprep.subr.bf16.mxu0 %v18704_v36 }
 0x8f6   : > { %13552 = vmatpush3.bf16.xpose.msra.mxu1 %v14285_v13  ;;  %v14293_v13 = vld [vmem:[%s15433_s5 + $0xf70] sm:$0xff]  }
 0x8f7   : > { %13553 = vmatprep.subr.bf16.mxu1 %v18704_v36 }
 0x8fc   : > { %13534 = vmatpush3.bf16.xpose.msra.mxu0 %v14286_v28 }
 0x8fd   : > { %13535 = vmatprep.subr.bf16.mxu0 %v18704_v36 }
 0x8fe   : > { %13554 = vmatpush3.bf16.xpose.msra.mxu1 %v14287_v45 }
 0x8ff   : > { %13555 = vmatprep.subr.bf16.mxu1 %v18704_v36 }
 0x904   : > { %13536 = vmatpush3.bf16.xpose.msra.mxu0 %v14288_v32  ;;  %v14296_v32 = vld [vmem:[%s15433_s5 + $0xf20] sm:$0xff]  }
 0x905   : > { %13561 = vmatprep.subr.bf16.mxu0 %v18704_v36 }
 0x906   : > { %13556 = vmatpush3.bf16.xpose.msra.mxu1 %v14289_v16  ;;  %v14297_v16 = vld [vmem:[%s15433_s5 + $0xf60] sm:$0xff]  }
 0x907   : > { %13581 = vmatprep.subr.bf16.mxu1 %v18704_v36 }
 0x90b   : > { %v7296_v26 = vpop.f32.mrf.mxu0  ;;  %13538 = vmatmul.mubr.bf16.vlgmr.msra.gmra.mxu0 %v7776_v20  ;;  %v14300_v20 = vld [vmem:[%s15433_s5 + $0xf10] sm:$0xff]  }
 0x90c   : > { %v8516_v21 = vmul.f32 %v8389_v39, %v7296_v26  ;;  %13562 = vmatpush3.bf16.xpose.msra.mxu0 %v14290_v9  ;;  %13577 = vmatprep.mubr.msk.bf16.mxu0 %vm15081_vm0, %v18704_v36  ;;  %v9590_v39 = vmul.f32 2.0, %v15831_v24  ;;  %v17480_v9 = vmax.f32 %v15618_v14, 1e-15  ;;  %v18716_v24 = vsub.s32 6, %v15439_v3 }
 0x90d   : > { %v13419_v2 = vpop.f32.mrf.mxu0  ;;  %v7390_v30 = vpop.f32.mrf.mxu1  ;;  %13558 = vmatmul.mubr.bf16.vlgmr.msra.gmra.mxu1 %v7870_v12  ;;  %13563 = vmatprep.subr.bf16.mxu0 %v18704_v36  ;;  %v18714_v12 = vsub.s32 3, %v15439_v3 }
 0x90e   : > { %v8689_v53 = vrot.slane %v8516_v21, 4  ;;  %v8517_v56 = vmul.f32 %v8390_v29, %v7390_v30  ;;  %13582 = vmatpush3.bf16.xpose.msra.mxu1 %v14291_v37  ;;  %13597 = vmatprep.mubr.msk.bf16.mxu1 %vm15081_vm0, %v18704_v36  ;;  %v14301_v29 = vld [vmem:[%s15433_s5 + $0xf50] sm:$0xff]   ;;  %v9638_v37 = vmul.f32 %v17475_v11, %v15772_v59  ;;  %v9606_v26 = vsub.f32 1.0, %v9590_v39 }
 0x90f   : > { %v7299_v15 = vpop.f32.mrf.mxu0  ;;  %v13439_v27 = vpop.f32.mrf.mxu1  ;;  %13583 = vmatprep.subr.bf16.mxu1 %v18704_v36  ;;  %14406 = vrsqrt.f32 %v17480_v9  ;;  %v17490_v21 = vrot.slane %v15608_v7, %v18714_v12  ;;  %v17495_v14 = vrot.slane %v15608_v7, %v18716_v24  ;;  %v18718_v2 = vsub.s32 7, %v15439_v3 }
 0x910   : > { %v8690_v4 = vsel %vm8602_vm10, %v8689_v53, %v17398_v22  ;;  %v8691_v58 = vrot.slane %v8517_v56, 3  ;;  %v14294_v22 = vld [vmem:[%s15433_s5 + $0xf28] sm:$0xff]   ;;  %v9654_v53 = vadd.f32 %v9638_v37, %v9606_v26  ;;  %v9622_v37 = vadd.f32 %v9606_v26, %v15772_v59  ;;  %v14782_v26 = vld [vmem:[%s15424_s25] sm:$0xff] }
 0x911   : > { %v13420_v47 = vpop.f32.mrf.mxu0  ;;  %v7393_v61 = vpop.f32.mrf.mxu1  ;;  %18715 = vst [vmem:[#allocation51_spill] sm:$0xff] %v17490_v21  ;;  %18717 = vst [vmem:[#allocation52_spill] sm:$0xff] %v17495_v14  ;;  %v17501_v30 = vrot.slane %v15608_v7, %v18718_v2  ;;  %v9641_v56 = vmul.f32 %v17490_v21, %v15823_v40  ;;  %v14302_v15 = vld [vmem:[%s15433_s5 + $0xf08] sm:$0xff]   ;;  %v9644_v27 = vmul.f32 %v17495_v14, %v15825_v63  ;;  %vm685_vm1 = vcmp.eq.f32.partialorder %v17480_v9, inf }
 0x912   : > { %v17458_v28 = vsel %vm8605_vm11, %v8691_v58, %v8690_v4  ;;  %v14303_v58 = vld [vmem:[%s15433_s5 + $0xf48] sm:$0xff]   ;;  %v18720_v47 = vsub.f32 1.0, %v15841_v44  ;;  %v2253_v44 = vcombine.high %v17370_v35, %v17370_v35  ;;  %v688_v24 = vand.u32 2147483648, %v17480_v9 }
 0x913   : > { %v13440_v45 = vpop.f32.mrf.mxu1  ;;  %18719 = vst [vmem:[#allocation53_spill] sm:$0xff] %v17501_v30  ;;  %v9645_v4 = vmul.f32 %v17501_v30, %v15833_v54  ;;  %vm687_vm2 = vcmp.eq.f32.partialorder %v17480_v9, 0.0 }
 0x914   : > { %13564 = vmatpush3.bf16.xpose.msra.mxu0 %v14292_v46  ;;  %v9670_v46 = vmax.f32 %v9654_v53, 1e-15  ;;  %v9657_v61 = vadd.f32 %v9641_v56, %v18720_v47  ;;  %v11691_v35 = vpack.i.b16 %v2253_v44, %v2253_v44  ;;  %v14307_v47 = vld [vmem:[%s15433_s5 + $0xff8] sm:$0xff]  }
 0x915   : > { %13565 = vmatprep.subr.bf16.mxu0 %v18704_v36 }
 0x916   : > { %13584 = vmatpush3.bf16.xpose.msra.mxu1 %v14293_v13  ;;  %v18721_v13 = vsub.f32 1.0, %v15855_v33  ;;  %14408 = vrcp.f32 %v9670_v46  ;;  %v8392_v46 = vrot.slane %v17311_v31, 7 }
 0x917   : > { %13585 = vmatprep.subr.bf16.mxu1 %v18704_v36 }
 0x918   : > { %v9660_v45 = vadd.f32 %v9644_v27, %v18721_v13  ;;  %v8391_v27 = vrot.slane %v17311_v31, 6 }
 0x91a   : > { %v9676_v39 = vmax.f32 %v9660_v45, 1e-15 }
 0x91c   : > { %13566 = vmatpush3.bf16.xpose.msra.mxu0 %v14294_v22  ;;  %v18722_v22 = vsub.f32 1.0, %v15860_v62 }
 0x91d   : > { %13567 = vmatprep.subr.bf16.mxu0 %v18704_v36 }
 0x91e   : > { %13586 = vmatpush3.bf16.xpose.msra.mxu1 %v14295_v60  ;;  %v9661_v60 = vadd.f32 %v9645_v4, %v18722_v22  ;;  %v14306_v4 = vld [vmem:[%s15433_s5 + $0xfb8] sm:$0xff]  }
 0x91f   : > { %13587 = vmatprep.subr.bf16.mxu1 %v18704_v36 }
 0x920   : > { %v9677_v33 = vmax.f32 %v9661_v60, 1e-15 }
 0x924   : > { %13568 = vmatpush3.bf16.xpose.msra.mxu0 %v14296_v32  ;;  %v9718_v32 = vsub.f32 0.0, %v15522_v10  ;;  %v2317_v10 = vunpack.i.h.s16 %v2253_v44  ;;  %v18623_v44 = vsub.f32 1.0, %v17495_v14 }
 0x925   : > { %13569 = vmatprep.subr.bf16.mxu0 %v18704_v36 }
 0x926   : > { %13588 = vmatpush3.bf16.xpose.msra.mxu1 %v14297_v16  ;;  %v9673_v16 = vmax.f32 %v9657_v61, 1e-15  ;;  %v9777_v62 = vrot.slane %v9718_v32, %v15459_v25  ;;  %v8054_v53 = vpack.i.b16 %v2317_v10, %v2317_v10 }
 0x927   : > { %13589 = vmatprep.subr.bf16.mxu1 %v18704_v36 }
 0x928   : > { %14410 = vrcp.f32 %v9673_v16  ;;  %v9830_v2 = vmul.f32 %v9777_v62, %v9622_v37  ;;  %v8058_v45 = vrot.slane %v8054_v53, %v15459_v25 }
 0x929   : > { %14412 = vrcp.f32 %v9676_v39 }
 0x92a   : > { %14414 = vrcp.f32 %v9677_v33 }
 0x92c   : > { %13570 = vmatpush3.bf16.xpose.msra.mxu0 %v14298_v23  ;;  %v14304_v23 = vld [vmem:[%s15433_s5 + $0xf00] sm:$0xff]  }
 0x92d   : > { %13571 = vmatprep.subr.bf16.mxu0 %v18704_v36 }
 0x92e   : > { %13590 = vmatpush3.bf16.xpose.msra.mxu1 %v14299_v18  ;;  %v14407_v18 = vpop.eup %14406 }
 0x92f   : > { %13591 = vmatprep.subr.bf16.mxu1 %v18704_v36  ;;  %v684_v12 = vmul.f32 %v14407_v18, %v17480_v9  ;;  %v14409_v60 = vpop.eup %14408  ;;  %v18622_v18 = vsub.f32 1.0, %v17501_v30 }
 0x934   : > { %13572 = vmatpush3.bf16.xpose.msra.mxu0 %v14300_v20  ;;  %v14305_v20 = vld [vmem:[%s15433_s5 + $0xf40] sm:$0xff]  }
 0x935   : > { %13573 = vmatprep.subr.bf16.mxu0 %v18704_v36 }
 0x936   : > { %13592 = vmatpush3.bf16.xpose.msra.mxu1 %v14301_v29  ;;  %v18627_v29 = vsub.f32 1.0, %v17475_v11 }
 0x937   : > { %13593 = vmatprep.subr.bf16.mxu1 %v18704_v36 }
 0x938   : > { %v9846_v56 = vmul.f32 %v14782_v26, %v18627_v29  ;;  %v14783_v26 = vld [vmem:[%s15424_s25 + $0x18] sm:$0xff] }
 0x93a   : > { %v9862_v22 = vadd.f32 %v9846_v56, %v9830_v2 }
 0x93c   : > { %13574 = vmatpush3.bf16.xpose.msra.mxu0 %v14302_v15  ;;  %v686_v15 = vsel %vm685_vm1, %v17480_v9, %v684_v12  ;;  %v18624_v9 = vsub.f32 1.0, %v17490_v21  ;;  %v17556_v37 = vmul.f32 %v14409_v60, %v9862_v22 }
 0x93d   : > { %13575 = vmatprep.subr.bf16.mxu0 %v18704_v36  ;;  %v17543_v61 = vsel %vm687_vm2, %v688_v24, %v686_v15  ;;  %v14411_v24 = vpop.eup %14410  ;;  %v14784_v15 = vld [vmem:[%s15424_s25 + $0x30] sm:$0xff] }
 0x93e   : > { %13594 = vmatpush3.bf16.xpose.msra.mxu1 %v14303_v58  ;;  %v7964_v58 = vrot.slane %v11691_v35, %v15459_v25  ;;  %18723 = vst [vmem:[#allocation54_spill] sm:$0xff] %v17556_v37  ;;  %v14308_v35 = vld [vmem:[%s15433_s5 + $0xfb0] sm:$0xff]   ;;  %v9849_v56 = vmul.f32 %v14783_v26, %v18624_v9  ;;  %v9894_v60 = vmul.f32 %v17556_v37, %v17556_v37 }
 0x93f   : > { %13595 = vmatprep.subr.bf16.mxu1 %v18704_v36  ;;  %v14317_v26 = vld [vmem:[%s15433_s5 + $0xfd0] sm:$0xff]  }
 0x944   : > { %13576 = vmatpush3.bf16.xpose.msra.mxu0 %v14304_v23  ;;  %v11168_v23 = vclamps-f32 %v17543_v61, 0.999999 }
 0x945   : > { %13601 = vmatprep.subr.bf16.mxu0 %v18704_v36 }
 0x946   : > { %13596 = vmatpush3.bf16.xpose.msra.mxu1 %v14305_v20 }
 0x947   : > { %13621 = vmatprep.subr.bf16.mxu1 %v18704_v36 }
 0x94b   : > { %v7484_v13 = vpop.f32.mrf.mxu0  ;;  %13578 = vmatmul.mubr.bf16.vlgmr.msra.gmra.mxu0 %v7964_v58  ;;  %v801_v58 = vsub.f32 1.0, %v11168_v23 }
 0x94c   : > { %v8518_v32 = vmul.f32 %v8391_v27, %v7484_v13  ;;  %13602 = vmatpush3.bf16.xpose.msra.mxu0 %v14306_v4  ;;  %13617 = vmatprep.mubr.msk.bf16.mxu0 %vm15081_vm0, %v18704_v36  ;;  %v9852_v27 = vmul.f32 %v14784_v15, %v18623_v44  ;;  %v14413_v4 = vpop.eup %14412  ;;  %v14785_v13 = vld [vmem:[%s15424_s25 + $0x38] sm:$0xff] }
 0x94d   : > { %v13459_v16 = vpop.f32.mrf.mxu0  ;;  %v7578_v31 = vpop.f32.mrf.mxu1  ;;  %13598 = vmatmul.mubr.bf16.vlgmr.msra.gmra.mxu1 %v8058_v45  ;;  %13603 = vmatprep.subr.bf16.mxu0 %v18704_v36  ;;  %14416 = vrcp.f32 %v801_v58  ;;  %v14319_v58 = vld [vmem:[%s15433_s5 + $0xfc8] sm:$0xff]  }
 0x94e   : > { %v8693_v39 = vrot.slane %v8518_v32, 2  ;;  %v8519_v33 = vmul.f32 %v8392_v46, %v7578_v31  ;;  %13622 = vmatpush3.bf16.xpose.msra.mxu1 %v14307_v47  ;;  %13637 = vmatprep.mubr.msk.bf16.mxu1 %vm15081_vm0, %v18704_v36  ;;  %v14309_v47 = vld [vmem:[%s15433_s5 + $0xff0] sm:$0xff]   ;;  %v14415_v45 = vpop.eup %14414  ;;  %v9865_v32 = vadd.f32 %v9849_v56, %v15853_v57  ;;  %v9868_v16 = vadd.f32 %v9852_v27, %v15867_v50  ;;  %v14310_v50 = vld [vmem:[%s15433_s5 + $0xfa8] sm:$0xff]  }
 0x94f   : > { %v7487_v20 = vpop.f32.mrf.mxu0  ;;  %v13479_v62 = vpop.f32.mrf.mxu1  ;;  %13623 = vmatprep.subr.bf16.mxu1 %v18704_v36  ;;  %v9896_v57 = vmul.f32 %v17409_v42, %v17409_v42  ;;  %v531_v56 = vmax.f32 %v15608_v7, 1e-15  ;;  %v14318_v27 = vld [vmem:[%s15433_s5 + $0xf88] sm:$0xff]  }
 0x950   : > { %v8695_v10 = vrot.slane %v8519_v33, 1  ;;  %v8694_v12 = vsel %vm8608_vm12, %v8693_v39, %v17458_v28  ;;  %v9853_v28 = vmul.f32 %v14785_v13, %v18622_v18  ;;  %v17578_v39 = vmul.f32 %v14411_v24, %v9865_v32  ;;  %v14312_v62 = vld [vmem:[%s15433_s5 + $0xfa0] sm:$0xff]  }
 0x951   : > { %v13460_v2 = vpop.f32.mrf.mxu0  ;;  %v7581_v53 = vpop.f32.mrf.mxu1  ;;  %v17580_v33 = vmul.f32 %v14413_v4, %v9868_v16  ;;  %v14320_v13 = vld [vmem:[%s15433_s5 + $0xf80] sm:$0xff]   ;;  %v14786_v16 = vld [vmem:[%s15426_s6 + $0x38] sm:$0xff]  ;;  %vm541_vm3 = vcmp.eq.f32.partialorder %v531_v56, inf  ;;  %vm543_vm4 = vcmp.eq.f32.partialorder %v531_v56, 0.0 }
 0x952   : > { %v8696_v46 = vsel %vm8611_vm13, %v8695_v10, %v8694_v12  ;;  %v9869_v31 = vadd.f32 %v9853_v28, %v15873_v43  ;;  %18724 = vst [vmem:[#allocation55_spill] sm:$0xff] %v17578_v39  ;;  %v14311_v43 = vld [vmem:[%s15433_s5 + $0xfe8] sm:$0xff]   ;;  %v785_v10 = vadd.f32 1.0, %v11168_v23  ;;  %v14313_v12 = vld [vmem:[%s15433_s5 + $0xfe0] sm:$0xff]   ;;  %v14314_v2 = vld [vmem:[%s15433_s5 + $0xf98] sm:$0xff]  }
 0x953   : > { %v13480_v22 = vpop.f32.mrf.mxu1  ;;  %8731 = vadd.xlane.f32.xlu0 %v8696_v46  ;;  %v14315_v53 = vld [vmem:[%s15433_s5 + $0xfd8] sm:$0xff]   ;;  %v14316_v23 = vld [vmem:[%s15433_s5 + $0xf90] sm:$0xff]   ;;  %v14321_v28 = vld [vmem:[%s15433_s5 + $0xfc0] sm:$0xff]  }
 0x954   : > { %13604 = vmatpush3.bf16.xpose.msra.mxu0 %v14308_v35  ;;  %v17582_v20 = vmul.f32 %v14415_v45, %v9869_v31 }
 0x955   : > { %13605 = vmatprep.subr.bf16.mxu0 %v18704_v36 }
 0x956   : > { %13624 = vmatpush3.bf16.xpose.msra.mxu1 %v14309_v47  ;;  %18725 = vst [vmem:[#allocation56_spill] sm:$0xff] %v17582_v20  ;;  %v2255_v47 = vcombine.high %v17432_v8, %v17432_v8 }
 0x957   : > { %9918 = vadd.xlane.f32.xlu0 %v9894_v60  ;;  %13625 = vmatprep.subr.bf16.mxu1 %v18704_v36 }
 0x958   : > { %v2319_v22 = vunpack.i.h.s16 %v2255_v47  ;;  %v11708_v32 = vpack.i.b16 %v2255_v47, %v2255_v47  ;;  %v8748_v47 = vld [vmem:[#allocation11 + $0x68] sm:$0xff] }
 0x95a   : > { %v14417_v35 = vpop.eup %14416  ;;  %v8152_v8 = vrot.slane %v11708_v32, %v15459_v25  ;;  %v8746_v32 = vld [vmem:[#allocation11 + $0x58] sm:$0xff] }
 0x95b   : > { %9922 = vadd.xlane.f32.xlu0 %v9896_v57  ;;  %v825_v24 = vmul.f32 %v14417_v35, %v785_v10  ;;  %v8242_v57 = vpack.i.b16 %v2319_v22, %v2319_v22  ;;  %v544_v10 = vand.u32 2147483648, %v531_v56  ;;  %v8747_v22 = vld [vmem:[#allocation11 + $0x60] sm:$0xff] }
 0x95c   : > { %13606 = vmatpush3.bf16.xpose.msra.mxu0 %v14310_v50 }
 0x95d   : > { %13607 = vmatprep.subr.bf16.mxu0 %v18704_v36  ;;  %14418 = vlog2.f32 %v825_v24  ;;  %v8246_v35 = vrot.slane %v8242_v57, %v15459_v25  ;;  %v8744_v57 = vld [vmem:[#allocation11 + $0x48] sm:$0xff] }
 0x95e   : > { %13626 = vmatpush3.bf16.xpose.msra.mxu1 %v14311_v43  ;;  %14420 = vrcp.f32 %v17543_v61  ;;  %v8750_v43 = vld [vmem:[#allocation11 + $0x78] sm:$0xff] }
 0x95f   : > { %13627 = vmatprep.subr.bf16.mxu1 %v18704_v36  ;;  %14422 = vrsqrt.f32 %v531_v56 }
 0x964   : > { %13608 = vmatpush3.bf16.xpose.msra.mxu0 %v14312_v62 }
 0x965   : > { %13609 = vmatprep.subr.bf16.mxu0 %v18704_v36 }
 0x966   : > { %13628 = vmatpush3.bf16.xpose.msra.mxu1 %v14313_v12 }
 0x967   : > { %13629 = vmatprep.subr.bf16.mxu1 %v18704_v36 }
 0x96a   : > { %v14419_v15 = vpop.eup %14418 }
 0x96b   : > { %v857_v4 = vmul.f32 0.6931472, %v14419_v15  ;;  %v14421_v46 = vpop.eup %14420 }
 0x96c   : > { %13610 = vmatpush3.bf16.xpose.msra.mxu0 %v14314_v2  ;;  %v14423_v60 = vpop.eup %14422 }
 0x96d   : > { %13611 = vmatprep.subr.bf16.mxu0 %v18704_v36  ;;  %v881_v61 = vmul.f32 0.5, %v857_v4  ;;  %v540_v50 = vmul.f32 %v14423_v60, %v531_v56 }
 0x96e   : > { %13630 = vmatpush3.bf16.xpose.msra.mxu1 %v14315_v53 }
 0x96f   : > { %13631 = vmatprep.subr.bf16.mxu1 %v18704_v36  ;;  %v905_v45 = vmul.f32 %v14421_v46, %v881_v61  ;;  %v542_v24 = vsel %vm541_vm3, %v531_v56, %v540_v50  ;;  %v8743_v50 = vld [vmem:[#allocation11 + $0x40] sm:$0xff] }
 0x970   : > { %v545_v15 = vsel %vm543_vm4, %v544_v10, %v542_v24  ;;  %v8739_v24 = vld [vmem:[#allocation11 + $0x20] sm:$0xff] }
 0x971   : > { %v17615_v31 = vmul.f32 %v14786_v16, %v905_v45  ;;  %v8745_v16 = vld [vmem:[#allocation11 + $0x50] sm:$0xff] }
 0x973   : > { %v8393_v62 = vrot.slane %v17615_v31, 1 }
 0x974   : > { %13612 = vmatpush3.bf16.xpose.msra.mxu0 %v14316_v23  ;;  %v8749_v23 = vld [vmem:[#allocation11 + $0x70] sm:$0xff] }
 0x975   : > { %13613 = vmatprep.subr.bf16.mxu0 %v18704_v36 }
 0x976   : > { %13632 = vmatpush3.bf16.xpose.msra.mxu1 %v14317_v26 }
 0x977   : > { %13633 = vmatprep.subr.bf16.mxu1 %v18704_v36 }
 0x97c   : > { %13614 = vmatpush3.bf16.xpose.msra.mxu0 %v14318_v27 }
 0x97d   : > { %13615 = vmatprep.subr.bf16.mxu0 %v18704_v36 }
 0x97e   : > { %13634 = vmatpush3.bf16.xpose.msra.mxu1 %v14319_v58 }
 0x97f   : > { %13635 = vmatprep.subr.bf16.mxu1 %v18704_v36 }
 0x984   : > { %13616 = vmatpush3.bf16.xpose.msra.mxu0 %v14320_v13  ;;  %v11160_v13 = vclamps-f32 %v545_v15, 0.999999 }
 0x985   : > { %13641 = vmatprep.subr.mxu0 %v18704_v36 }
 0x986   : > { %13636 = vmatpush3.bf16.xpose.msra.mxu1 %v14321_v28  ;;  %v553_v60 = vsub.f32 1.0, %v11160_v13 }
 0x987   : > { %13676 = vmatprep.subr.mxu1 %v18704_v36 }
 0x988   : > { %14424 = vrcp.f32 %v553_v60 }
 0x98b   : > { %v7672_v12 = vpop.f32.mrf.mxu0  ;;  %13618 = vmatmul.mubr.bf16.vlgmr.msra.gmra.mxu0 %v8152_v8  ;;  %v551_v8 = vadd.f32 1.0, %v11160_v13  ;;  %v8395_v13 = vrot.slane %v17615_v31, 3 }
 0x98c   : > { %13642 = vmatpush3.xpose.msra.mxu0 %v8750_v43  ;;  %13673 = vmatprep.mubr.msk.f32.mxu0 %vm15081_vm0, %v18704_v36  ;;  %v8520_v58 = vmul.f32 %v7672_v12, %v17615_v31  ;;  %v8741_v12 = vld [vmem:[#allocation11 + $0x30] sm:$0xff] }
 0x98d   : > { %v13499_v2 = vpop.f32.mrf.mxu0  ;;  %v7766_v53 = vpop.f32.mrf.mxu1  ;;  %13638 = vmatmul.mubr.bf16.vlgmr.msra.gmra.mxu1 %v8246_v35  ;;  %13643 = vmatprep.subr.mxu0 %v18704_v36  ;;  %v8740_v35 = vld [vmem:[#allocation11 + $0x28] sm:$0xff] }
 0x98e   : > { %v8521_v26 = vmul.f32 %v8393_v62, %v7766_v53  ;;  %13708 = vmatprep.mubr.msk.f32.mxu1 %vm15081_vm0, %v18704_v36  ;;  %v8742_v62 = vld [vmem:[#allocation11 + $0x38] sm:$0xff]  ;;  %vm8935_vm0 = vcmask 7168  }
 0x98f   : > { %v7675_v27 = vpop.f32.mrf.mxu0  ;;  %v13519_v4 = vpop.f32.mrf.mxu1  ;;  %v8738_v2 = vld [vmem:[#allocation11 + $0x18] sm:$0xff] }
 0x990   : > { %v8697_v56 = vrot.slane %v8521_v26, 7  ;;  %13644 = vmatpush3.xpose.msra.mxu0 %v8749_v23  ;;  %v8737_v23 = vld [vmem:[#allocation11 + $0x10] sm:$0xff]  ;;  %v8736_v27 = vld [vmem:[#allocation11 + $0x8] sm:$0xff] }
 0x991   : > { %v13500_v61 = vpop.f32.mrf.mxu0  ;;  %v7769_v46 = vpop.f32.mrf.mxu1  ;;  %13645 = vmatprep.subr.mxu0 %v18704_v36 }
 0x992   : > { %v17629_v28 = vsel %vm8593_vm5, %v8697_v56, %v8520_v58  ;;  %v8394_v61 = vrot.slane %v17615_v31, 2  ;;  %v14787_v46 = vld [vmem:[%s15417_s15] sm:$0xff] }
 0x993   : > { %v13520_v45 = vpop.f32.mrf.mxu1 }
 0x994   : > { %13646 = vmatpush3.xpose.msra.mxu0 %v8748_v47 }
 0x995   : > { %13647 = vmatprep.subr.mxu0 %v18704_v36  ;;  %v14425_v43 = vpop.eup %14424 }
 0x996   : > { %v557_v10 = vmul.f32 %v14425_v43, %v551_v8 }
 0x998   : > { %13648 = vmatpush3.xpose.msra.mxu0 %v8747_v22  ;;  %14426 = vlog2.f32 %v557_v10 }
 0x999   : > { %13649 = vmatprep.subr.mxu0 %v18704_v36  ;;  %14428 = vrcp.f32 %v545_v15  ;;  %v8735_v15 = vld [vmem:[#allocation11] sm:$0xff] }
 0x99c   : > { %13650 = vmatpush3.xpose.msra.mxu0 %v8746_v32 }
 0x99d   : > { %13651 = vmatprep.subr.mxu0 %v18704_v36 }
 0x9a0   : > { %13652 = vmatpush3.xpose.msra.mxu0 %v8745_v16 }
 0x9a1   : > { %13653 = vmatprep.subr.mxu0 %v18704_v36 }
 0x9a4   : > { %13654 = vmatpush3.xpose.msra.mxu0 %v8744_v57 }
 0x9a5   : > { %13655 = vmatprep.subr.mxu0 %v18704_v36  ;;  %v14427_v53 = vpop.eup %14426 }
 0x9a6   : > { %v561_v26 = vmul.f32 0.6931472, %v14427_v53  ;;  %v14429_v58 = vpop.eup %14428 }
 0x9a8   : > { %13656 = vmatpush3.xpose.msra.mxu0 %v8743_v50  ;;  %v563_v4 = vmul.f32 0.5, %v561_v26 }
 0x9a9   : > { %13657 = vmatprep.subr.mxu0 %v18704_v36 }
 0x9aa   : > { %v567_v56 = vmul.f32 %v14429_v58, %v563_v4 }
 0x9ac   : > { %13658 = vmatpush3.xpose.msra.mxu0 %v8742_v62  ;;  %v569_v47 = vmul.f32 %v14787_v46, %v567_v56  ;;  %v9905_v56 = vpop.xlane.xlu1 %9904  ;;  %v17660_v46 = vmax.f32 %v15794_v55, 1e-15 }
 0x9ad   : > { %13659 = vmatprep.subr.mxu0 %v18704_v36 }
 0x9b0   : > { %13660 = vmatpush3.xpose.msra.mxu0 %v8741_v12 }
 0x9b1   : > { %13661 = vmatprep.subr.mxu0 %v18704_v36 }
 0x9b4   : > { %13662 = vmatpush3.xpose.msra.mxu0 %v8740_v35 }
 0x9b5   : > { %13663 = vmatprep.subr.mxu0 %v18704_v36 }
 0x9b8   : > { %13664 = vmatpush3.xpose.msra.mxu0 %v8739_v24 }
 0x9b9   : > { %13665 = vmatprep.subr.mxu0 %v18704_v36 }
 0x9bc   : > { %13666 = vmatpush3.xpose.msra.mxu0 %v8738_v2 }
 0x9bd   : > { %13667 = vmatprep.subr.mxu0 %v18704_v36 }
 0x9c0   : > { %13668 = vmatpush3.xpose.msra.mxu0 %v8737_v23 }
 0x9c1   : > { %13669 = vmatprep.subr.mxu0 %v18704_v36 }
 0x9c4   : > { %13670 = vmatpush3.xpose.msra.mxu0 %v8736_v27 }
 0x9c5   : > { %13671 = vmatprep.subr.mxu0 %v18704_v36 }
 0x9c8   : > { %13672 = vmatpush3.xpose.msra.mxu0 %v8735_v15 }
 0x9cb   : > { %v7860_v45 = vpop.f32.mrf.mxu0  ;;  %13674 = vmatmul.mubr.f32.vlgmr.msra.gmra.mxu0 %v569_v47  ;;  %v17663_v47 = vmax.f32 %v15811_v34, 1e-15  ;;  %v17677_v34 = vmax.f32 %v9905_v56, 1e-15 }
 0x9cc   : > { %v8522_v22 = vmul.f32 %v8394_v61, %v7860_v45  ;;  %v9907_v61 = vpop.xlane.xlu1 %9906  ;;  %v17666_v45 = vmax.f32 %v15813_v49, 1e-15 }
 0x9cd   : > { %v13539_v60 = vpop.f32.mrf.mxu0  ;;  %v7954_v32 = vpop.f32.mrf.mxu1  ;;  %vm9959_vm8 = vcmp.eq.f32.partialorder %v17677_v34, inf  ;;  %vm9961_vm9 = vcmp.eq.f32.partialorder %v17677_v34, 0.0 }
 0x9ce   : > { %v8699_v16 = vrot.slane %v8522_v22, 6  ;;  %v8523_v57 = vmul.f32 %v8395_v13, %v7954_v32  ;;  %v9903_v13 = vpop.xlane.xlu0 %9902  ;;  %v15082_v22 = vmov 0   ;;  %v17670_v60 = vmax.f32 %v15823_v40, 1e-15 }
 0x9cf   : > { %v7863_v50 = vpop.f32.mrf.mxu0  ;;  %v13559_v8 = vpop.f32.mrf.mxu1  ;;  %13807 = vset.pattern.permute.xlu1 %v15082_v22  ;;  %13806 = vset.pattern.permute.xlu0 %v15082_v22  ;;  %v17684_v40 = vmax.f32 %v9907_v61, 1e-15  ;;  %v9722_v61 = vsub.f32 0.0, %v15555_v38 }
 0x9d0   : > { %v8700_v43 = vsel %vm8596_vm6, %v8699_v16, %v17629_v28  ;;  %v8701_v62 = vrot.slane %v8523_v57, 5  ;;  %v17657_v28 = vmax.f32 %v15772_v59, 1e-15  ;;  %v17674_v59 = vmax.f32 %v15825_v63, 1e-15  ;;  %v9909_v55 = vpop.xlane.xlu1 %9908 }
 0x9d1   : > { %v13540_v10 = vpop.f32.mrf.mxu0  ;;  %v7957_v12 = vpop.f32.mrf.mxu1  ;;  %v17681_v16 = vmax.f32 %v15829_v1, 1e-15  ;;  %v17688_v63 = vmax.f32 %v9909_v55, 1e-15  ;;  %v18726_v57 = vsub.s32 4, %v15439_v3  ;;  %v9594_v8 = vmul.f32 2.0, %v15845_v48 }
 0x9d2   : > { %v17650_v35 = vsel %vm8599_vm7, %v8701_v62, %v8700_v43  ;;  %14430 = vrsqrt.f32 %v17657_v28  ;;  %v9911_v32 = vpop.xlane.xlu0 %9910  ;;  %v18727_v10 = vsub.s32 5, %v15439_v3  ;;  %v9793_v9 = vrot.slane %v9722_v61, %v15459_v25 }
 0x9d3   : > { %v13560_v24 = vpop.f32.mrf.mxu1  ;;  %14432 = vrsqrt.f32 %v17660_v46  ;;  %v17693_v50 = vrot.slane %v15608_v7, %v18726_v57  ;;  %v17697_v43 = vmax.f32 %v9911_v32, 1e-15  ;;  %v17722_v57 = vmax.f32 %v15833_v54, 1e-15 }
 0x9d4   : > { %14434 = vrsqrt.f32 %v17663_v47  ;;  %v9913_v62 = vpop.xlane.xlu1 %9912  ;;  %v17702_v12 = vrot.slane %v15608_v7, %v18727_v10  ;;  %v9595_v24 = vmul.f32 2.0, %v15847_v17  ;;  %vm9966_vm14 = vcmp.eq.f32.partialorder %v17684_v40, inf }
 0x9d5   : > { %14436 = vrsqrt.f32 %v17666_v45  ;;  %v9642_v48 = vmul.f32 %v17693_v50, %v15813_v49  ;;  %vm9968_vm15 = vcmp.eq.f32.partialorder %v17684_v40, 0.0  ;;  %vm9973_vm1 = vcmp.eq.f32.partialorder %v17688_v63, inf }
 0x9d6   : > { %14438 = vrsqrt.f32 %v17670_v60  ;;  %18728 = vst [vmem:[#allocation57_spill] sm:$0xff] %v17702_v12  ;;  %v9643_v3 = vmul.f32 %v17702_v12, %v15829_v1  ;;  %vm9975_vm2 = vcmp.eq.f32.partialorder %v17688_v63, 0.0  ;;  %vm9980_vm3 = vcmp.eq.f32.partialorder %v17697_v43, inf }
 0x9d7   : > { %14440 = vrsqrt.f32 %v17674_v59  ;;  %vm9982_vm4 = vcmp.eq.f32.partialorder %v17697_v43, 0.0 }
 0x9d8   : > { %14442 = vrsqrt.f32 %v17677_v34  ;;  %v17719_v55 = vpop.xlane.xlu1 %9916 }
 0x9d9   : > { %14444 = vrsqrt.f32 %v17681_v16  ;;  %18729 = vst [vmem:[#allocation58_spill] sm:$0xff] %v17719_v55 }
 0x9da   : > { %14446 = vrsqrt.f32 %v17684_v40 }
 0x9db   : > { %14448 = vrsqrt.f32 %v17688_v63 }
 0x9dc   : > { %14450 = vrsqrt.f32 %v17697_v43 }
 0x9df   : > { %v14431_v17 = vpop.eup %14430 }
 0x9e0   : > { %v17728_v18 = vmul.f32 %v14431_v17, %v17657_v28 }
 0xa0b   : > { %v17652_v2 = vpop.f32.mrf.mxu0 }
 0xa0d   : > { %v13579_v53 = vpop.f32.mrf.mxu0  ;;  %v17654_v23 = vpop.f32.mrf.mxu1 }
 0xa0e   : > { %v9915_v53 = vpop.xlane.xlu0 %9914 }
 0xa0f   : > { %v8051_v26 = vpop.f32.mrf.mxu0  ;;  %v13599_v27 = vpop.f32.mrf.mxu1 }
 0xa10   : > { %v17707_v26 = vmax.f32 %v9913_v62, 1e-15  ;;  %v9610_v27 = vsub.f32 1.0, %v9594_v8  ;;  %v9723_v8 = vsub.f32 0.0, %v15558_v41  ;;  %v17736_v41 = vpop.xlane.xlu1 %8721 }
 0xa11   : > { %v13580_v4 = vpop.f32.mrf.mxu0  ;;  %v8145_v58 = vpop.f32.mrf.mxu1 }
 0xa12   : > { %v17712_v4 = vmax.f32 %v9915_v53, 1e-15  ;;  %v9611_v58 = vsub.f32 1.0, %v9595_v24  ;;  %14452 = vrsqrt.f32 %v17707_v26  ;;  %v9658_v22 = vadd.f32 %v9642_v48, %v9610_v27  ;;  %v17734_v6 = vpop.xlane.xlu0 %8719 }
 0xa13   : > { %v13600_v15 = vpop.f32.mrf.mxu1  ;;  %v17725_v24 = vmax.f32 %v9903_v13, 1e-15  ;;  %v9626_v54 = vadd.f32 %v9610_v27, %v15813_v49 }
 0xa14   : > { %v14433_v15 = vpop.eup %14432  ;;  %14454 = vrsqrt.f32 %v17712_v4  ;;  %v9659_v62 = vadd.f32 %v9643_v3, %v9611_v58  ;;  %v9674_v0 = vmax.f32 %v9658_v22, 1e-15  ;;  %v9797_v3 = vrot.slane %v9723_v8, %v15459_v25  ;;  %v17862_v25 = vld [vmem:[%s15424_s25 + $0x20] sm:$0xff] }
 0xa15   : > { %v14435_v56 = vpop.eup %14434  ;;  %14456 = vrsqrt.f32 %v17722_v57  ;;  %v9627_v17 = vadd.f32 %v9611_v58, %v15829_v1  ;;  %v17742_v44 = vmul.f32 %v14433_v15, %v17660_v46  ;;  %v8943_v1 = vsel %vm8935_vm0, %v17736_v41, -inf }
 0xa16   : > { %v14437_v32 = vpop.eup %14436  ;;  %v9675_v29 = vmax.f32 %v9659_v62, 1e-15  ;;  %v17745_v61 = vmul.f32 %v14435_v56, %v17663_v47  ;;  %14458 = vrsqrt.f32 %v17725_v24  ;;  %v17763_v8 = vmul.f32 %v9793_v9, %v9626_v54 }
 0xa17   : > { %v14439_v10 = vpop.eup %14438  ;;  %v17749_v49 = vmul.f32 %v14437_v32, %v17666_v45  ;;  %14460 = vrcp.f32 %v9674_v0  ;;  %v17765_v32 = vpop.xlane.xlu0 %8723  ;;  %v8944_v36 = vrot.slane %v8943_v1, 4 }
 0xa18   : > { %v14441_v53 = vpop.eup %14440  ;;  %v17752_v27 = vmul.f32 %v14439_v10, %v17670_v60  ;;  %14462 = vrcp.f32 %v9675_v29  ;;  %v17767_v10 = vmul.f32 %v9797_v3, %v9627_v17  ;;  %v8950_v29 = vsel %vm8935_vm0, %v17765_v32, -inf }
 0xa19   : > { %v14443_v48 = vpop.eup %14442  ;;  %v17758_v15 = vmul.f32 %v14441_v53, %v17674_v59  ;;  %v9962_v53 = vand.u32 2147483648, %v17677_v34  ;;  %v8951_v7 = vrot.slane %v8950_v29, 4 }
 0xa1a   : > { %v14445_v13 = vpop.eup %14444  ;;  %v9958_v22 = vmul.f32 %v14443_v48, %v17677_v34 }
 0xa1b   : > { %v14447_v38 = vpop.eup %14446  ;;  %v17761_v56 = vmul.f32 %v14445_v13, %v17681_v16 }
 0xa1c   : > { %v14449_v58 = vpop.eup %14448  ;;  %v9965_v48 = vmul.f32 %v14447_v38, %v17684_v40  ;;  %v9960_v0 = vsel %vm9959_vm8, %v17677_v34, %v9958_v22  ;;  %v9969_v38 = vand.u32 2147483648, %v17684_v40  ;;  %v9976_v22 = vand.u32 2147483648, %v17688_v63 }
 0xa1d   : > { %v14451_v62 = vpop.eup %14450  ;;  %v9972_v9 = vmul.f32 %v14449_v58, %v17688_v63  ;;  %v8945_v58 = vmax.f32 %v8943_v1, %v8944_v36  ;;  %v17790_v42 = vsel %vm9961_vm9, %v9962_v53, %v9960_v0  ;;  %vm9987_vm8 = vcmp.eq.f32.partialorder %v17707_v26, inf  ;;  %v17805_v1 = vpop.xlane.xlu1 %8725 }
 0xa1e   : > { %v9979_v3 = vmul.f32 %v14451_v62, %v17697_v43  ;;  %v9967_v13 = vsel %vm9966_vm14, %v17684_v40, %v9965_v48  ;;  %v9983_v62 = vand.u32 2147483648, %v17697_v43  ;;  %v8396_v48 = vrot.slane %v17615_v31, 4 }
 0xa1f   : > { %v14453_v54 = vpop.eup %14452  ;;  %v9974_v51 = vsel %vm9973_vm1, %v17688_v63, %v9972_v9  ;;  %v17801_v36 = vsel %vm9968_vm15, %v9969_v38, %v9967_v13  ;;  %vm9989_vm9 = vcmp.eq.f32.partialorder %v17707_v26, 0.0  ;;  %v9990_v34 = vand.u32 2147483648, %v17707_v26 }
 0xa20   : > { %v9981_v37 = vsel %vm9980_vm3, %v17697_v43, %v9979_v3  ;;  %v9986_v30 = vmul.f32 %v14453_v54, %v17707_v26  ;;  %v8524_v53 = vmul.f32 %v8396_v48, %v17652_v2  ;;  %14464 = vrcp.f32 %v17790_v42  ;;  %v17811_v3 = vpop.xlane.xlu0 %8727 }
 0xa21   : > { %v14455_v17 = vpop.eup %14454  ;;  %v8946_v9 = vrot.slane %v8945_v58, 2  ;;  %v8952_v54 = vmax.f32 %v8950_v29, %v8951_v7  ;;  %v8397_v40 = vrot.slane %v17615_v31, 5  ;;  %v17816_v13 = vsel %vm9975_vm2, %v9976_v22, %v9974_v51  ;;  %v17855_v11 = vpop.xlane.xlu1 %8729 }
 0xa22   : > { %v9993_v14 = vmul.f32 %v14455_v17, %v17712_v4  ;;  %v17809_v0 = vpop.eup %14456  ;;  %vm9994_vm14 = vcmp.eq.f32.partialorder %v17712_v4, inf  ;;  %vm9996_vm15 = vcmp.eq.f32.partialorder %v17712_v4, 0.0  ;;  %14466 = vrcp.f32 %v17801_v36 }
 0xa23   : > { %18730 = vst [vmem:[#allocation59_spill] sm:$0xff] %v17809_v0  ;;  %v14459_v38 = vpop.eup %14458  ;;  %v17823_v2 = vsel %vm9982_vm4, %v9983_v62, %v9981_v37  ;;  %v9988_v7 = vsel %vm9987_vm8, %v17707_v26, %v9986_v30  ;;  %v8957_v51 = vsel %vm8935_vm0, %v17805_v1, -inf  ;;  %v8525_v63 = vmul.f32 %v8397_v40, %v17654_v23 }
 0xa24   : > { %v9995_v29 = vsel %vm9994_vm14, %v17712_v4, %v9993_v14  ;;  %v17832_v17 = vpop.eup %14460  ;;  %v9997_v22 = vand.u32 2147483648, %v17712_v4  ;;  %v8964_v43 = vsel %vm8935_vm0, %v17811_v3, -inf  ;;  %v8703_v37 = vrot.slane %v8524_v53, 4 }
 0xa25   : > { %14468 = vrcp.f32 %v17816_v13  ;;  %v17838_v62 = vpop.eup %14462  ;;  %v17841_v30 = vmul.f32 %v14459_v38, %v17725_v24  ;;  %v8947_v14 = vmax.f32 %v8945_v58, %v8946_v9  ;;  %v8953_v48 = vrot.slane %v8952_v54, 2 }
 0xa26   : > { %14470 = vrcp.f32 %v17823_v2  ;;  %v8958_v23 = vrot.slane %v8957_v51, 4  ;;  %v8398_v40 = vrot.slane %v17615_v31, 6  ;;  %v17847_v21 = vsel %vm9989_vm9, %v9990_v34, %v9988_v7 }
 0xa27   : > { %v17851_v53 = vsel %vm9996_vm15, %v9997_v22, %v9995_v29  ;;  %v8965_v52 = vrot.slane %v8964_v43, 4  ;;  %v8705_v19 = vrot.slane %v8525_v63, 3  ;;  %v8704_v55 = vsel %vm8602_vm10, %v8703_v37, %v17650_v35 }
 0xa28   : > { %v8399_v34 = vrot.slane %v17615_v31, 7  ;;  %v8948_v7 = vrot.slane %v8947_v14, 1  ;;  %v8954_v29 = vmax.f32 %v8952_v54, %v8953_v48  ;;  %v18731_v58 = vsub.f32 1.0, %v17693_v50 }
 0xa29   : > { %v8959_v0 = vmax.f32 %v8957_v51, %v8958_v23  ;;  %vm692_vm1 = vcmp.eq.f32.partialorder %v17657_v28, inf  ;;  %v8966_v31 = vmax.f32 %v8964_v43, %v8965_v52  ;;  %v18732_v4 = vsub.f32 1.0, %v17702_v12 }
 0xa2a   : > { %v9850_v9 = vmul.f32 %v17862_v25, %v18731_v58  ;;  %v695_v23 = vand.u32 2147483648, %v17657_v28  ;;  %vm699_vm2 = vcmp.eq.f32.partialorder %v17663_v47, inf  ;;  %v8936_v43 = vsel %vm8935_vm0, %v17734_v6, -inf }
 0xa2b   : > { %vm694_vm3 = vcmp.eq.f32.partialorder %v17657_v28, 0.0  ;;  %vm701_vm4 = vcmp.eq.f32.partialorder %v17663_v47, 0.0  ;;  %vm706_vm8 = vcmp.eq.f32.partialorder %v17660_v46, inf  ;;  %vm708_vm9 = vcmp.eq.f32.partialorder %v17660_v46, 0.0 }
 0xa2c   : > { %vm720_vm14 = vcmp.eq.f32.partialorder %v17666_v45, inf  ;;  %vm722_vm15 = vcmp.eq.f32.partialorder %v17666_v45, 0.0 }
 0xa2d   : > { %v17881_v52 = vpop.eup %14464 }
 0xa4b   : > { %v8236_v38 = vpop.f32.mrf.mxu0 }
 0xa4c   : > { %v8526_v26 = vmul.f32 %v8398_v40, %v8236_v38  ;;  %v8971_v40 = vsel %vm8935_vm0, %v17855_v11, -inf  ;;  %v8706_v38 = vsel %vm8605_vm11, %v8705_v19, %v8704_v55  ;;  %v9866_v55 = vadd.f32 %v9850_v9, %v17763_v8 }
 0xa4d   : > { %v13619_v22 = vpop.f32.mrf.mxu0  ;;  %v8330_v63 = vpop.f32.mrf.mxu1 }
 0xa4e   : > { %v8707_v35 = vrot.slane %v8526_v26, 2  ;;  %v8527_v37 = vmul.f32 %v8399_v34, %v8330_v63  ;;  %v17873_v22 = vld [vmem:[%s15424_s25 + $0x28] sm:$0xff]  ;;  %v693_v34 = vsel %vm692_vm1, %v17657_v28, %v17728_v18  ;;  %v8960_v63 = vrot.slane %v8959_v0, 2 }
 0xa4f   : > { %v8239_v54 = vpop.f32.mrf.mxu0  ;;  %v13639_v48 = vpop.f32.mrf.mxu1  ;;  %v9851_v58 = vmul.f32 %v17873_v22, %v18732_v4  ;;  %v8949_v4 = vmax.f32 %v8947_v14, %v8948_v7  ;;  %v700_v18 = vsel %vm699_vm2, %v17663_v47, %v17745_v61  ;;  %v8967_v28 = vrot.slane %v8966_v31, 2 }
 0xa50   : > { %v8709_v5 = vrot.slane %v8527_v37, 1  ;;  %v8708_v51 = vsel %vm8608_vm12, %v8707_v35, %v8706_v38  ;;  %v17891_v35 = vpop.xlane.xlu0 %8731  ;;  %v702_v54 = vand.u32 2147483648, %v17663_v47  ;;  %v17895_v48 = vpop.eup %14466  ;;  %v8955_v38 = vrot.slane %v8954_v29, 1 }
 0xa51   : > { %v13620_v26 = vpop.f32.mrf.mxu0  ;;  %v8333_v19 = vpop.f32.mrf.mxu1  ;;  %v9867_v14 = vadd.f32 %v9851_v58, %v17767_v10  ;;  %v17903_v9 = vsel %vm694_vm3, %v695_v23, %v693_v34  ;;  %v8937_v61 = vrot.slane %v8936_v43, 4  ;;  %v9049_v10 = vsub.f32 %v17736_v41, %v8949_v4 }
 0xa52   : > { %v8710_v37 = vsel %vm8611_vm13, %v8709_v5, %v8708_v51  ;;  %v8972_v26 = vrot.slane %v8971_v40, 4  ;;  %v17906_v7 = vpop.eup %14468  ;;  %v8978_v51 = vsel %vm8935_vm0, %v17891_v35, -inf  ;;  %v9897_v19 = vmul.f32 %v17578_v39, %v17578_v39 }
 0xa53   : > { %v13640_v8 = vpop.f32.mrf.mxu1  ;;  %8733 = vadd.xlane.f32.xlu1 %v8710_v37  ;;  %v17913_v37 = vmul.f32 %v17832_v17, %v9866_v55  ;;  %v17916_v47 = vpop.eup %14470  ;;  %v8961_v58 = vmax.f32 %v8959_v0, %v8960_v63  ;;  %v17919_v23 = vsel %vm701_vm4, %v702_v54, %v700_v18  ;;  %v8956_v34 = vmax.f32 %v8954_v29, %v8955_v38 }
 0xa54   : > { %v8973_v8 = vmax.f32 %v8971_v40, %v8972_v26  ;;  %v11169_v5 = vclamps-f32 %v17903_v9, 0.999999  ;;  %v709_v39 = vand.u32 2147483648, %v17660_v46  ;;  %v8968_v12 = vmax.f32 %v8966_v31, %v8967_v28 }
 0xa55   : > { %v8979_v17 = vrot.slane %v8978_v51, 4  ;;  %v707_v55 = vsel %vm706_vm8, %v17660_v46, %v17742_v44  ;;  %v9898_v41 = vmul.f32 %v17913_v37, %v17913_v37  ;;  %v17929_v0 = vmul.f32 %v17838_v62, %v9867_v14 }
 0xa56   : > { %v11170_v29 = vclamps-f32 %v17919_v23, 0.999999  ;;  %v8938_v40 = vmax.f32 %v8936_v43, %v8937_v61  ;;  %v9066_v4 = vmul.f32 1.442695, %v9049_v10  ;;  %v8962_v63 = vrot.slane %v8961_v58, 1 }
 0xa57   : > { %9924 = vadd.xlane.f32.xlu1 %v9897_v19  ;;  %v18733_v31 = vclamps-f32 %v17790_v42, 0.999999  ;;  %v8974_v38 = vrot.slane %v8973_v8, 2  ;;  %v802_v44 = vsub.f32 1.0, %v11169_v5  ;;  %v17937_v46 = vsel %vm708_vm9, %v709_v39, %v707_v55 }
 0xa58   : > { %v723_v62 = vand.u32 2147483648, %v17666_v45  ;;  %v8980_v26 = vmax.f32 %v8978_v51, %v8979_v17  ;;  %v721_v18 = vsel %vm720_vm14, %v17666_v45, %v17749_v49  ;;  %vm713_vm1 = vcmp.eq.f32.partialorder %v17670_v60, inf }
 0xa59   : > { %v10111_v54 = vsub.f32 1.0, %v18733_v31  ;;  %v9050_v43 = vsub.f32 %v17765_v32, %v8956_v34  ;;  %v8969_v28 = vrot.slane %v8968_v12, 1  ;;  %v9899_v14 = vmul.f32 %v17929_v0, %v17929_v0 }
 0xa5a   : > { %v803_v39 = vsub.f32 1.0, %v11170_v29  ;;  %v8939_v19 = vrot.slane %v8938_v40, 2  ;;  %v8963_v61 = vmax.f32 %v8961_v58, %v8962_v63  ;;  %v11171_v51 = vclamps-f32 %v17937_v46, 0.999999 }
 0xa5b   : > { %9926 = vadd.xlane.f32.xlu1 %v9898_v41  ;;  %v716_v10 = vand.u32 2147483648, %v17670_v60  ;;  %14472 = vrcp.f32 %v802_v44  ;;  %v17951_v45 = vsel %vm722_vm15, %v723_v62, %v721_v18  ;;  %v714_v49 = vsel %vm713_vm1, %v17670_v60, %v17752_v27 }
 0xa5c   : > { %vm715_vm2 = vcmp.eq.f32.partialorder %v17670_v60, 0.0  ;;  %vm9952_vm3 = vcmp.eq.f32.partialorder %v17725_v24, inf  ;;  %14474 = vpow2.f32 %v9066_v4  ;;  %v8975_v32 = vmax.f32 %v8973_v8, %v8974_v38 }
 0xa5d   : > { %v8981_v34 = vrot.slane %v8980_v26, 2  ;;  %vm727_vm4 = vcmp.eq.f32.partialorder %v17681_v16, inf  ;;  %v9068_v58 = vmul.f32 1.442695, %v9050_v43  ;;  %v8970_v17 = vmax.f32 %v8968_v12, %v8969_v28 }
 0xa5e   : > { %v9900_v55 = vmul.f32 %v17580_v33, %v17580_v33  ;;  %14476 = vrcp.f32 %v803_v39  ;;  %v804_v41 = vsub.f32 1.0, %v11171_v51  ;;  %v11173_v27 = vclamps-f32 %v17951_v45, 0.999999 }
 0xa5f   : > { %9928 = vadd.xlane.f32.xlu1 %v9899_v14  ;;  %v17963_v63 = vsel %vm715_vm2, %v716_v10, %v714_v49  ;;  %v730_v60 = vand.u32 2147483648, %v17681_v16  ;;  %v8940_v4 = vmax.f32 %v8938_v40, %v8939_v19  ;;  %v9051_v8 = vsub.f32 %v17805_v1, %v8963_v61 }
 0xa60   : > { %v728_v12 = vsel %vm727_vm4, %v17681_v16, %v17761_v56  ;;  %vm729_vm8 = vcmp.eq.f32.partialorder %v17681_v16, 0.0  ;;  %v8976_v31 = vrot.slane %v8975_v32, 1  ;;  %v8982_v38 = vmax.f32 %v8980_v26, %v8981_v34 }
 0xa61   : > { %v18734_v44 = vclamps-f32 %v17801_v36, 0.999999  ;;  %v18735_v18 = vclamps-f32 %v17816_v13, 0.999999  ;;  %14478 = vpow2.f32 %v9068_v58  ;;  %v9901_v40 = vmul.f32 %v17582_v20, %v17582_v20 }
 0xa62   : > { %v11172_v1 = vclamps-f32 %v17963_v63, 0.999999  ;;  %vm734_vm9 = vcmp.eq.f32.partialorder %v17674_v59, inf  ;;  %v9052_v56 = vsub.f32 %v17811_v3, %v8970_v17  ;;  %14480 = vrcp.f32 %v804_v41 }
 0xa63   : > { %9930 = vadd.xlane.f32.xlu1 %v9900_v55  ;;  %v10112_v62 = vsub.f32 1.0, %v18734_v44  ;;  %v10113_v43 = vsub.f32 1.0, %v18735_v18  ;;  %v806_v16 = vsub.f32 1.0, %v11173_v27  ;;  %v17981_v26 = vsel %vm729_vm8, %v730_v60, %v728_v12 }
 0xa64   : > { %v8941_v28 = vrot.slane %v8940_v4, 1  ;;  %v9070_v14 = vmul.f32 1.442695, %v9051_v8  ;;  %14482 = vrcp.f32 %v10111_v54  ;;  %v737_v39 = vand.u32 2147483648, %v17674_v59 }
 0xa65   : > { %v8977_v19 = vmax.f32 %v8975_v32, %v8976_v31  ;;  %v8983_v61 = vrot.slane %v8982_v38, 1  ;;  %v735_v10 = vsel %vm734_vm9, %v17674_v59, %v17758_v15  ;;  %vm736_vm14 = vcmp.eq.f32.partialorder %v17674_v59, 0.0 }
 0xa66   : > { %v9953_v3 = vsel %vm9952_vm3, %v17725_v24, %v17841_v30  ;;  %v805_v49 = vsub.f32 1.0, %v11172_v1  ;;  %v11174_v34 = vclamps-f32 %v17981_v26, 0.999999  ;;  %14484 = vrcp.f32 %v10112_v62 }
 0xa67   : > { %9932 = vadd.xlane.f32.xlu1 %v9901_v40  ;;  %v9072_v54 = vmul.f32 1.442695, %v9052_v56  ;;  %14486 = vrcp.f32 %v806_v16  ;;  %v18736_v32 = vclamps-f32 %v17823_v2, 0.999999  ;;  %v11731_v15 = vclamps-f32 %v17851_v53, 0.999999 }
 0xa68   : > { %v8942_v17 = vmax.f32 %v8940_v4, %v8941_v28  ;;  %v786_v59 = vadd.f32 1.0, %v11169_v5  ;;  %v17999_v55 = vsel %vm736_vm14, %v737_v39, %v735_v10  ;;  %14488 = vrcp.f32 %v10113_v43  ;;  %v14473_v30 = vpop.eup %14472 }
 0xa69   : > { %v10114_v58 = vsub.f32 1.0, %v18736_v32  ;;  %14490 = vpow2.f32 %v9070_v14  ;;  %v9053_v41 = vsub.f32 %v17855_v11, %v8977_v19  ;;  %v8984_v60 = vmax.f32 %v8982_v38, %v8983_v61  ;;  %v18004_v31 = vpop.eup %14474 }
 0xa6a   : > { %v18737_v8 = vclamps-f32 %v17847_v21, 0.999999  ;;  %vm9954_vm15 = vcmp.eq.f32.partialorder %v17725_v24, 0.0  ;;  %v787_v4 = vadd.f32 1.0, %v11170_v29  ;;  %14492 = vrcp.f32 %v805_v49 }
 0xa6b   : > { %v807_v5 = vsub.f32 1.0, %v11174_v34  ;;  %v14477_v44 = vpop.eup %14476  ;;  %14494 = vpow2.f32 %v9072_v54  ;;  %v11175_v62 = vclamps-f32 %v17999_v55, 0.999999  ;;  %v10116_v11 = vsub.f32 1.0, %v11731_v15 }
 0xa6c   : > { %v10115_v12 = vsub.f32 1.0, %v18737_v8  ;;  %v18738_v38 = vand.u32 2147483648, %v17725_v24  ;;  %v9048_v43 = vsub.f32 %v17734_v6, %v8942_v17  ;;  %v827_v40 = vmul.f32 %v14473_v30, %v786_v59 }
 0xa6d   : > { %14496 = vrcp.f32 %v10114_v58  ;;  %v9074_v29 = vmul.f32 1.442695, %v9053_v41  ;;  %v9054_v56 = vsub.f32 %v17891_v35, %v8984_v60  ;;  %v9103_v16 = vsel %vm8935_vm0, %v18004_v31, 0.0 }
 0xa6e   : > { %v18016_v18 = vsel %vm9954_vm15, %v18738_v38, %v9953_v3  ;;  %14498 = vrcp.f32 %v10115_v12  ;;  %v829_v28 = vmul.f32 %v14477_v44, %v787_v4  ;;  %v18023_v39 = vpop.eup %14478  ;;  %v788_v24 = vadd.f32 1.0, %v11171_v51 }
 0xa6f   : > { %14500 = vrcp.f32 %v807_v5  ;;  %v11725_v14 = vclamps-f32 %v18016_v18, 0.999999  ;;  %v808_v6 = vsub.f32 1.0, %v11175_v62  ;;  %v14481_v19 = vpop.eup %14480  ;;  %v9064_v61 = vmul.f32 1.442695, %v9048_v43 }
 0xa70   : > { %14502 = vrcp.f32 %v10116_v11  ;;  %v9104_v10 = vrot.slane %v9103_v16, 4  ;;  %v9076_v3 = vmul.f32 1.442695, %v9054_v56  ;;  %v9110_v32 = vsel %vm8935_vm0, %v18023_v39, 0.0 }
 0xa71   : > { %14504 = vlog2.f32 %v827_v40  ;;  %v14483_v35 = vpop.eup %14482  ;;  %v10110_v49 = vsub.f32 1.0, %v11725_v14  ;;  %v831_v51 = vmul.f32 %v14481_v19, %v788_v24  ;;  %v790_v58 = vadd.f32 1.0, %v11173_v27 }
 0xa72   : > { %14506 = vpow2.f32 %v9074_v29  ;;  %v9105_v30 = vadd.f32 %v9104_v10, %v9103_v16  ;;  %v9111_v60 = vrot.slane %v9110_v32, 4  ;;  %v789_v8 = vadd.f32 1.0, %v11172_v1 }
 0xa73   : > { %14508 = vlog2.f32 %v829_v28  ;;  %v14485_v54 = vpop.eup %14484  ;;  %v18739_v5 = vclamps-f32 %v17790_v42, 0.999999  ;;  %v18740_v29 = vclamps-f32 %v17801_v36, 0.999999  ;;  %v791_v42 = vadd.f32 1.0, %v11174_v34 }
 0xa74   : > { %14510 = vrcp.f32 %v808_v6  ;;  %v14487_v17 = vpop.eup %14486  ;;  %v9106_v38 = vrot.slane %v9105_v30, 2  ;;  %v9112_v16 = vadd.f32 %v9111_v60, %v9110_v32  ;;  %v18741_v6 = vclamps-f32 %v17816_v13, 0.999999  ;;  %v18743_v60 = vld [vmem:[#allocation59_spill] sm:$0xff] }
 0xa75   : > { %14512 = vpow2.f32 %v9064_v61  ;;  %v14489_v59 = vpop.eup %14488  ;;  %v835_v4 = vmul.f32 %v14487_v17, %v790_v58  ;;  %v10095_v44 = vadd.f32 1.0, %v18739_v5  ;;  %v10096_v1 = vadd.f32 1.0, %v18740_v29 }
 0xa76   : > { %14514 = vpow2.f32 %v9076_v3  ;;  %v18035_v41 = vpop.eup %14490  ;;  %v10097_v19 = vadd.f32 1.0, %v18741_v6  ;;  %v9107_v3 = vadd.f32 %v9106_v38, %v9105_v30  ;;  %vm741_vm1 = vcmp.eq.f32.partialorder %v17722_v57, inf }
 0xa77   : > { %14516 = vrcp.f32 %v10110_v49  ;;  %v14493_v12 = vpop.eup %14492  ;;  %v9117_v43 = vsel %vm8935_vm0, %v18035_v41, 0.0  ;;  %v10129_v40 = vmul.f32 %v14483_v35, %v10095_v44  ;;  %v10131_v36 = vmul.f32 %v14485_v54, %v10096_v1 }
 0xa78   : > { %14518 = vlog2.f32 %v831_v51  ;;  %v18041_v27 = vpop.eup %14494  ;;  %v833_v28 = vmul.f32 %v14493_v12, %v789_v8  ;;  %v9118_v35 = vrot.slane %v9117_v43, 4  ;;  %v18742_v49 = vclamps-f32 %v17823_v2, 0.999999 }
 0xa79   : > { %14520 = vrcp.f32 %v17903_v9  ;;  %v9124_v9 = vsel %vm8935_vm0, %v18041_v27, 0.0  ;;  %v9113_v51 = vrot.slane %v9112_v16, 2  ;;  %v18062_v8 = vmul.f32 %v18743_v60, %v17722_v57 }
 0xa7a   : > { %v14497_v11 = vpop.eup %14496  ;;  %14522 = vrcp.f32 %v17919_v23  ;;  %v10133_v23 = vmul.f32 %v14489_v59, %v10097_v19  ;;  %v10098_v34 = vadd.f32 1.0, %v18742_v49  ;;  %v9125_v58 = vrot.slane %v9124_v9, 4 }
 0xa7b   : > { %v14499_v56 = vpop.eup %14498  ;;  %14524 = vlog2.f32 %v835_v4  ;;  %v792_v54 = vadd.f32 1.0, %v11175_v62  ;;  %v18744_v59 = vclamps-f32 %v17847_v21, 0.999999  ;;  %v9119_v12 = vadd.f32 %v9118_v35, %v9117_v43 }
 0xa7c   : > { %v14501_v24 = vpop.eup %14500  ;;  %14526 = vrcp.f32 %v17847_v21  ;;  %v10135_v5 = vmul.f32 %v14497_v11, %v10098_v34  ;;  %v9108_v38 = vrot.slane %v9107_v3, 1  ;;  %v9114_v1 = vadd.f32 %v9113_v51, %v9112_v16 }
 0xa7d   : > { %v14503_v61 = vpop.eup %14502  ;;  %14528 = vlog2.f32 %v10129_v40  ;;  %v837_v17 = vmul.f32 %v14501_v24, %v791_v42  ;;  %v10099_v2 = vadd.f32 1.0, %v18744_v59  ;;  %v9126_v62 = vadd.f32 %v9125_v58, %v9124_v9 }
 0xa7e   : > { %v14505_v10 = vpop.eup %14504  ;;  %14530 = vlog2.f32 %v833_v28  ;;  %v10100_v11 = vadd.f32 1.0, %v11731_v15  ;;  %v10094_v42 = vadd.f32 1.0, %v11725_v14  ;;  %v9120_v6 = vrot.slane %v9119_v12, 2 }
 0xa7f   : > { %v18058_v32 = vpop.eup %14506  ;;  %14532 = vrcp.f32 %v17937_v46  ;;  %v859_v4 = vmul.f32 0.6931472, %v14505_v10  ;;  %v10137_v29 = vmul.f32 %v14499_v56, %v10099_v2  ;;  %v9109_v9 = vadd.f32 %v9108_v38, %v9107_v3 }
 0xa80   : > { %v14509_v13 = vpop.eup %14508  ;;  %14534 = vlog2.f32 %v10131_v36  ;;  %v9131_v40 = vsel %vm8935_vm0, %v18058_v32, 0.0  ;;  %v9115_v36 = vrot.slane %v9114_v1, 1  ;;  %v9127_v15 = vrot.slane %v9126_v62, 2 }
 0xa81   : > { %v14511_v30 = vpop.eup %14510  ;;  %14536 = vlog2.f32 %v10133_v23  ;;  %v861_v28 = vmul.f32 0.6931472, %v14509_v13  ;;  %v9132_v19 = vrot.slane %v9131_v40, 4  ;;  %v882_v56 = vmul.f32 0.5, %v859_v4 }
 0xa82   : > { %v18069_v44 = vpop.eup %14512  ;;  %14538 = vlog2.f32 %v837_v17  ;;  %v839_v43 = vmul.f32 %v14511_v30, %v792_v54  ;;  %v10139_v49 = vmul.f32 %v14503_v61, %v10100_v11  ;;  %v9121_v58 = vadd.f32 %v9120_v6, %v9119_v12  ;;  %v18745_v30 = vld [vmem:[#allocation26_spill] sm:$0xff] }
 0xa83   : > { %v18073_v46 = vpop.eup %14514  ;;  %14540 = vrcp.f32 %v17951_v45  ;;  %v18082_v16 = vsel %vm8935_vm0, %v18069_v44, 0.0  ;;  %v883_v10 = vmul.f32 0.5, %v861_v28  ;;  %v9133_v17 = vadd.f32 %v9132_v19, %v9131_v40  ;;  %v14790_v19 = vld [vmem:[%s15424_s25] sm:$0xff] }
 0xa84   : > { %v14517_v21 = vpop.eup %14516  ;;  %14542 = vlog2.f32 %v10135_v5  ;;  %v9138_v45 = vsel %vm8935_vm0, %v18073_v46, 0.0  ;;  %v9097_v3 = vrot.slane %v18082_v16, 4  ;;  %v9128_v5 = vadd.f32 %v9127_v15, %v9126_v62 }
 0xa85   : > { %v14519_v24 = vpop.eup %14518  ;;  %14544 = vlog2.f32 %v10137_v29  ;;  %v18087_v34 = vmul.f32 %v14517_v21, %v10094_v42  ;;  %v9139_v13 = vrot.slane %v9138_v45, 4  ;;  %v9116_v12 = vadd.f32 %v9115_v36, %v9114_v1 }
 0xa86   : > { %v14521_v35 = vpop.eup %14520  ;;  %14546 = vrcp.f32 %v17963_v63  ;;  %v863_v23 = vmul.f32 0.6931472, %v14519_v24  ;;  %v9122_v42 = vrot.slane %v9121_v58, 1  ;;  %v9134_v24 = vrot.slane %v9133_v17, 2 }
 0xa87   : > { %v14523_v14 = vpop.eup %14522  ;;  %14548 = vlog2.f32 %v839_v43  ;;  %v907_v54 = vmul.f32 %v14521_v35, %v882_v56  ;;  %v9140_v6 = vadd.f32 %v9139_v13, %v9138_v45  ;;  %vm743_vm2 = vcmp.eq.f32.partialorder %v17722_v57, 0.0 }
 0xa88   : > { %v14525_v51 = vpop.eup %14524  ;;  %14550 = vrcp.f32 %v9109_v9  ;;  %v909_v38 = vmul.f32 %v14523_v14, %v883_v10  ;;  %v884_v21 = vmul.f32 0.5, %v863_v23  ;;  %v18746_v9 = vld [vmem:[#allocation27_spill] sm:$0xff]  ;;  %v9129_v10 = vrot.slane %v9128_v5, 1  ;;  %v14791_v14 = vld [vmem:[%s15424_s25 + $0x8] sm:$0xff] }
 0xa89   : > { %v18089_v59 = vpop.eup %14526  ;;  %14552 = vrcp.f32 %v17981_v26  ;;  %v867_v43 = vmul.f32 0.6931472, %v14525_v51  ;;  %v930_v56 = vmul.f32 %v14790_v19, %v907_v54  ;;  %v9141_v19 = vrot.slane %v9140_v6, 2 }
 0xa8a   : > { %v14529_v63 = vpop.eup %14528  ;;  %v931_v23 = vmul.f32 %v14791_v14, %v909_v38  ;;  %14554 = vrcp.f32 %v17999_v55 }
 0xa8b   : > { %v8817_v60 = vpop.f32.mrf.mxu0  ;;  %v14531_v40 = vpop.eup %14530  ;;  %14556 = vrcp.f32 %v9116_v12 }
 0xa8c   : > { %v8822_v2 = vcombine.high %v8817_v60, %v8817_v60  ;;  %v8829_v4 = vrot.slane %v8817_v60, %v18745_v30  ;;  %v14533_v11 = vpop.eup %14532  ;;  %v865_v51 = vmul.f32 0.6931472, %v14531_v40  ;;  %14558 = vlog2.f32 %v10139_v49 }
 0xa8d   : > { %v13675_v61 = vpop.f32.mrf.mxu0  ;;  %v14535_v35 = vpop.eup %14534  ;;  %v911_v54 = vmul.f32 %v14533_v11, %v884_v21  ;;  %v9098_v21 = vadd.f32 %v9097_v3, %v18082_v16  ;;  %v9130_v11 = vadd.f32 %v9129_v10, %v9128_v5  ;;  %v744_v10 = vand.u32 2147483648, %v17722_v57 }
 0xa8e   : > { %v8837_v29 = vcombine.high %v8829_v4, %v8829_v4  ;;  %v8845_v28 = vrot.slane %v8829_v4, %v18745_v30  ;;  %v18097_v62 = vrot.slane %v8822_v2, %v18745_v30  ;;  %v18101_v15 = vpop.eup %14536  ;;  %v886_v2 = vmul.f32 0.5, %v867_v43 }
 0xa8f   : > { %v14539_v45 = vpop.eup %14538  ;;  %v9135_v61 = vadd.f32 %v9134_v24, %v9133_v17  ;;  %v10161_v17 = vmul.f32 0.6931472, %v14529_v63  ;;  %v10163_v43 = vmul.f32 0.6931472, %v14535_v35  ;;  %v9099_v5 = vrot.slane %v9098_v21, 2 }
 0xa90   : > { %v8874_v26 = vrot.slane %v8845_v28, %v18746_v9  ;;  %v8859_v1 = vrot.slane %v8837_v29, %v18745_v30  ;;  %v8867_v36 = vcombine.high %v8845_v28, %v8845_v28  ;;  %v14541_v4 = vpop.eup %14540  ;;  %v9123_v29 = vadd.f32 %v9122_v42, %v9121_v58  ;;  %v14792_v58 = vld [vmem:[%s15424_s25 + $0x10] sm:$0xff] }
 0xa91   : > { %v18106_v28 = vpop.eup %14542  ;;  %v18111_v55 = vrot.slane %v18097_v62, %v18745_v30  ;;  %v932_v42 = vmul.f32 %v14792_v58, %v911_v54  ;;  %v915_v24 = vmul.f32 %v14541_v4, %v886_v2  ;;  %v9136_v14 = vrot.slane %v9135_v61, 1 }
 0xa92   : > { %v8911_v13 = vmul.f32 %v8874_v26, %v930_v56  ;;  %v8878_v60 = vrot.slane %v8859_v1, %v18746_v9  ;;  %v8882_v38 = vrot.slane %v8867_v36, %v18746_v9  ;;  %v18113_v40 = vpop.eup %14544  ;;  %v885_v56 = vmul.f32 0.5, %v865_v51 }
 0xa93   : > { %v14547_v12 = vpop.eup %14546  ;;  %v869_v26 = vmul.f32 0.6931472, %v14539_v45  ;;  %14560 = vrcp.f32 %v9123_v29  ;;  %v8838_v49 = vcombine.high %v18097_v62, %v18097_v62  ;;  %v8890_v3 = vrot.slane %v18111_v55, %v18746_v9 }
 0xa94   : > { %8919 = vadd.xlane.f32.xlu1 %v8911_v13  ;;  %v8912_v20 = vmul.f32 %v8878_v60, %v931_v23  ;;  %v14549_v36 = vpop.eup %14548  ;;  %v9142_v23 = vadd.f32 %v9141_v19, %v9140_v6  ;;  %v8913_v16 = vmul.f32 %v8882_v38, %v932_v42  ;;  %v8869_v63 = vcombine.high %v8859_v1, %v8859_v1 }
 0xa95   : > { %v10191_v35 = vmul.f32 0.5, %v10161_v17  ;;  %14562 = vrcp.f32 %v9130_v11  ;;  %v934_v6 = vmul.f32 %v17862_v25, %v915_v24  ;;  %v913_v45 = vmul.f32 %v14547_v12, %v885_v56  ;;  %v14793_v11 = vld [vmem:[%s15424_s25 + $0x18] sm:$0xff]  ;;  %v18747_v56 = vld [vmem:[#allocation30_spill] sm:$0xff] }
 0xa96   : > { %8921 = vadd.xlane.f32.xlu0 %v8912_v20  ;;  %v14551_v20 = vpop.eup %14550  ;;  %v887_v13 = vmul.f32 0.5, %v869_v26  ;;  %v871_v60 = vmul.f32 0.6931472, %v14549_v36  ;;  %v9143_v62 = vrot.slane %v9142_v23, 1  ;;  %v9137_v54 = vadd.f32 %v9136_v14, %v9135_v61 }
 0xa97   : > { %v14553_v51 = vpop.eup %14552  ;;  %v742_v1 = vsel %vm741_vm1, %v17722_v57, %v18062_v8  ;;  %v8915_v2 = vmul.f32 %v8890_v3, %v934_v6  ;;  %v8886_v4 = vrot.slane %v8869_v63, %v18746_v9  ;;  %v18131_v19 = vrot.slane %v8838_v49, %v18745_v30 }
 0xa98   : > { %14564 = vlog2.f32 %v18087_v34  ;;  %v9100_v25 = vadd.f32 %v9099_v5, %v9098_v21  ;;  %v10209_v29 = vmul.f32 %v17881_v52, %v10191_v35  ;;  %v10192_v38 = vmul.f32 0.5, %v10163_v43  ;;  %v14555_v17 = vpop.eup %14554  ;;  %v18749_v35 = vld [vmem:[#allocation32_spill] sm:$0xff] }
 0xa99   : > { %v10165_v61 = vmul.f32 0.6931472, %v18101_v15  ;;  %v933_v8 = vmul.f32 %v14793_v11, %v913_v45  ;;  %v917_v12 = vmul.f32 %v14553_v51, %v887_v13  ;;  %v888_v57 = vmul.f32 0.5, %v871_v60  ;;  %v14557_v24 = vpop.eup %14556 }
 0xa9a   : > { %8923 = vadd.xlane.f32.xlu0 %v8913_v16  ;;  %v18137_v58 = vsel %vm743_vm2, %v744_v10, %v742_v1  ;;  %v9225_v42 = vmul.f32 %v14551_v20, %v18004_v31  ;;  %14566 = vrcp.f32 %v9137_v54  ;;  %v9144_v30 = vadd.f32 %v9143_v62, %v9142_v23  ;;  %v14559_v43 = vpop.eup %14558 }
 0xa9b   : > { %v8914_v34 = vmul.f32 %v8886_v4, %v933_v8  ;;  %v8894_v52 = vrot.slane %v18131_v19, %v18746_v9  ;;  %v8868_v15 = vcombine.high %v18111_v55, %v18111_v55  ;;  %v10167_v21 = vmul.f32 0.6931472, %v18106_v28  ;;  %v18751_v4 = vld [vmem:[#allocation33_spill] sm:$0xff] }
 0xa9c   : > { %v18748_v26 = vsub.f32 1.0, %v18747_v56  ;;  %v10211_v14 = vmul.f32 %v17895_v48, %v10192_v38  ;;  %v10193_v49 = vmul.f32 0.5, %v10165_v61  ;;  %v11176_v31 = vclamps-f32 %v18137_v58, 0.999999 }
 0xa9d   : > { %v9101_v23 = vrot.slane %v9100_v25, 1  ;;  %v935_v16 = vmul.f32 %v17873_v22, %v917_v12  ;;  %v919_v3 = vmul.f32 %v14555_v17, %v888_v57  ;;  %14568 = vrcp.f32 %v17851_v53  ;;  %v14794_v53 = vld [vmem:[%s15424_s25 + $0x30] sm:$0xff] }
 0xa9e   : > { %8927 = vadd.xlane.f32.xlu0 %v8915_v2  ;;  %v10239_v36 = vmul.f32 %v10209_v29, %v18748_v26  ;;  %v9226_v28 = vmul.f32 %v14557_v24, %v18023_v39  ;;  %14570 = vrcp.f32 %v9144_v30  ;;  %v8898_v5 = vrot.slane %v8868_v15, %v18746_v9 }
 0xa9f   : > { %v8916_v20 = vmul.f32 %v8894_v52, %v935_v16  ;;  %v10169_v48 = vmul.f32 0.6931472, %v18113_v40  ;;  %v18750_v10 = vsub.f32 1.0, %v18749_v35  ;;  %v10213_v22 = vmul.f32 %v17906_v7, %v10193_v49  ;;  %v18755_v52 = vld [vmem:[#allocation35_spill] sm:$0xff]  ;;  %v18761_v35 = vld [vmem:[#allocation58_spill] sm:$0xff] }
 0xaa0   : > { %v10255_v55 = vmul.f32 %v10239_v36, %v9225_v42  ;;  %v14561_v63 = vpop.eup %14560  ;;  %v10194_v6 = vmul.f32 0.5, %v10167_v21  ;;  %v809_v45 = vsub.f32 1.0, %v11176_v31  ;;  %v936_v60 = vmul.f32 %v14794_v53, %v919_v3 }
 0xaa1   : > { %v10240_v51 = vmul.f32 %v10211_v14, %v18750_v10  ;;  %v9102_v39 = vadd.f32 %v9101_v23, %v9100_v25  ;;  %v9227_v54 = vmul.f32 %v14561_v63, %v18035_v41  ;;  %v10171_v2 = vmul.f32 0.6931472, %v14559_v43  ;;  %v18753_v41 = vld [vmem:[#allocation34_spill] sm:$0xff]  ;;  %v18757_v14 = vld [vmem:[#allocation37_spill] sm:$0xff] }
 0xaa2   : > { %8925 = vadd.xlane.f32.xlu0 %v8914_v34  ;;  %v14563_v13 = vpop.eup %14562  ;;  %v8917_v1 = vmul.f32 %v8898_v5, %v936_v60  ;;  %14572 = vrcp.f32 %v18016_v18  ;;  %v18752_v29 = vsub.f32 1.0, %v18751_v4  ;;  %v10215_v7 = vmul.f32 %v17916_v47, %v10194_v6 }
 0xaa3   : > { %v10256_v62 = vmul.f32 %v10240_v51, %v9226_v28  ;;  %v10195_v61 = vmul.f32 0.5, %v10169_v48  ;;  %14574 = vrcp.f32 %v809_v45  ;;  %v9228_v25 = vmul.f32 %v14563_v13, %v18041_v27 }
 0xaa4   : > { %v10241_v38 = vmul.f32 %v10213_v22, %v18752_v29  ;;  %14576 = vrcp.f32 %v9102_v39  ;;  %v18754_v8 = vsub.f32 1.0, %v18753_v41  ;;  %v10196_v57 = vmul.f32 0.5, %v10171_v2  ;;  %v9921_v39 = vpop.xlane.xlu1 %9920 }
 0xaa5   : > { %10277 = vperm.xlu1 %13807, %v10255_v55   ;;  %v14565_v40 = vpop.eup %14564  ;;  %v10217_v18 = vmul.f32 %v18089_v59, %v10195_v61  ;;  %v18756_v15 = vsub.f32 1.0, %v18755_v52  ;;  %v18758_v59 = vsub.f32 1.0, %v18757_v14  ;;  %v793_v23 = vadd.f32 1.0, %v11176_v31 }
 0xaa6   : > { %8929 = vadd.xlane.f32.xlu0 %v8916_v20  ;;  %v10257_v17 = vmul.f32 %v10241_v38, %v9227_v54  ;;  %v10242_v12 = vmul.f32 %v10215_v7, %v18754_v8  ;;  %v10159_v34 = vmul.f32 0.6931472, %v14565_v40  ;;  %v18759_v20 = vld [vmem:[#allocation31_spill] sm:$0xff]  ;;  %v9941_v10 = vmax.f32 %v18761_v35, 1e-15 }
 0xaa7   : > { %v14567_v11 = vpop.eup %14566  ;;  %v10243_v21 = vmul.f32 %v10217_v18, %v18756_v15  ;;  %v18760_v5 = vsub.f32 1.0, %v18759_v20  ;;  %v14795_v54 = vld [vmem:[%s15424_s25 + $0x38] sm:$0xff] }
 0xaa8   : > { %v10258_v30 = vmul.f32 %v10242_v12, %v9228_v25  ;;  %v9229_v24 = vmul.f32 %v14567_v11, %v18058_v32  ;;  %v10190_v26 = vmul.f32 0.5, %v10159_v34  ;;  %vm10001_vm3 = vcmp.eq.f32.partialorder %v9941_v10, inf }
 0xaa9   : > { %10282 = vperm.xlu1 %13807, %v10256_v62   ;;  %v10004_v2 = vand.u32 2147483648, %v9941_v10  ;;  %vm10003_vm4 = vcmp.eq.f32.partialorder %v9941_v10, 0.0 }
 0xaaa   : > { %8931 = vadd.xlane.f32.xlu0 %v8917_v1  ;;  %v14569_v42 = vpop.eup %14568  ;;  %v10259_v27 = vmul.f32 %v10243_v21, %v9229_v24 }
 0xaab   : > { %v14571_v47 = vpop.eup %14570  ;;  %v10219_v43 = vmul.f32 %v14569_v42, %v10196_v57 }
 0xaac   : > { %v9230_v56 = vmul.f32 %v14571_v47, %v18073_v46 }
 0xaad   : > { %10287 = vperm.xlu1 %13807, %v10257_v17   ;;  %v10244_v49 = vmul.f32 %v10219_v43, %v18758_v59  ;;  %v9943_v17 = vmax.f32 %v9921_v39, 1e-15 }
 0xaaf   : > { %v14573_v36 = vpop.eup %14572  ;;  %v10260_v32 = vmul.f32 %v10244_v49, %v9230_v56  ;;  %vm10015_vm9 = vcmp.eq.f32.partialorder %v9943_v17, inf  ;;  %vm10017_vm15 = vcmp.eq.f32.partialorder %v9943_v17, 0.0 }
 0xab0   : > { %v14575_v16 = vpop.eup %14574  ;;  %v10207_v55 = vmul.f32 %v14573_v36, %v10190_v26  ;;  %v10018_v26 = vand.u32 2147483648, %v9943_v17 }
 0xab1   : > { %10292 = vperm.xlu1 %13807, %v10258_v30   ;;  %v14577_v3 = vpop.eup %14576  ;;  %v841_v28 = vmul.f32 %v14575_v16, %v793_v23 }
 0xab2   : > { %v9224_v63 = vmul.f32 %v14577_v3, %v18069_v44  ;;  %v10238_v48 = vmul.f32 %v10207_v55, %v18760_v5  ;;  %v8870_v44 = vcombine.high %v18131_v19, %v18131_v19 }
 0xab3   : > { %14578 = vlog2.f32 %v841_v28 }
 0xab4   : > { %v10254_v46 = vmul.f32 %v10238_v48, %v9224_v63  ;;  %14580 = vrsqrt.f32 %v9941_v10  ;;  %v8902_v60 = vrot.slane %v8870_v44, %v18746_v9 }
 0xab5   : > { %10297 = vperm.xlu1 %13807, %v10259_v27   ;;  %14582 = vrcp.f32 %v18137_v58  ;;  %v9919_v58 = vpop.xlane.xlu0 %9918 }
 0xab6   : > { %v9942_v19 = vmax.f32 %v9919_v58, 1e-15 }
 0xab8   : > { %14584 = vrsqrt.f32 %v9942_v19  ;;  %vm10008_vm8 = vcmp.eq.f32.partialorder %v9942_v19, inf  ;;  %v10011_v43 = vand.u32 2147483648, %v9942_v19  ;;  %vm10010_vm14 = vcmp.eq.f32.partialorder %v9942_v19, 0.0 }
 0xab9   : > { %10302 = vperm.xlu1 %13807, %v10260_v32   ;;  %14586 = vrsqrt.f32 %v9943_v17  ;;  %v9923_v57 = vpop.xlane.xlu0 %9922 }
 0xaba   : > { %v9944_v30 = vmax.f32 %v9923_v57, 1e-15 }
 0xabc   : > { %vm10022_vm1 = vcmp.eq.f32.partialorder %v9944_v30, inf  ;;  %vm10024_vm2 = vcmp.eq.f32.partialorder %v9944_v30, 0.0 }
 0xac0   : > { %10272 = vperm.xlu0 %13806, %v10254_v46   ;;  %v14579_v31 = vpop.eup %14578 }
 0xac1   : > { %v873_v51 = vmul.f32 0.6931472, %v14579_v31  ;;  %v14581_v22 = vpop.eup %14580 }
 0xac2   : > { %v14583_v45 = vpop.eup %14582  ;;  %v10000_v13 = vmul.f32 %v14581_v22, %v9941_v10 }
 0xac3   : > { %v889_v6 = vmul.f32 0.5, %v873_v51  ;;  %v10025_v51 = vand.u32 2147483648, %v9944_v30 }
 0xac4   : > { %v10002_v62 = vsel %vm10001_vm3, %v9941_v10, %v10000_v13 }
 0xac5   : > { %v921_v53 = vmul.f32 %v14583_v45, %v889_v6  ;;  %v18182_v29 = vsel %vm10003_vm4, %v10004_v2, %v10002_v62  ;;  %v14585_v47 = vpop.eup %14584 }
 0xac6   : > { %v11732_v61 = vclamps-f32 %v18182_v29, 0.999999  ;;  %v14587_v34 = vpop.eup %14586  ;;  %v10007_v52 = vmul.f32 %v14585_v47, %v9942_v19 }
 0xac7   : > { %v937_v1 = vmul.f32 %v14795_v54, %v921_v53  ;;  %v10014_v21 = vmul.f32 %v14587_v34, %v9943_v17 }
 0xac8   : > { %v10117_v41 = vsub.f32 1.0, %v11732_v61  ;;  %v10101_v27 = vadd.f32 1.0, %v11732_v61  ;;  %v10009_v56 = vsel %vm10008_vm8, %v9942_v19, %v10007_v52 }
 0xac9   : > { %v8918_v40 = vmul.f32 %v8902_v60, %v937_v1  ;;  %v10016_v14 = vsel %vm10015_vm9, %v9943_v17, %v10014_v21  ;;  %v18186_v49 = vsel %vm10010_vm14, %v10011_v43, %v10009_v56 }
 0xaca   : > { %14588 = vrcp.f32 %v10117_v41  ;;  %v18188_v16 = vsel %vm10017_vm15, %v10018_v26, %v10016_v14  ;;  %v11733_v32 = vclamps-f32 %v18186_v49, 0.999999 }
 0xacb   : > { %v11734_v5 = vclamps-f32 %v18188_v16, 0.999999 }
 0xacc   : > { %v10118_v35 = vsub.f32 1.0, %v11733_v32 }
 0xacd   : > { %v10119_v31 = vsub.f32 1.0, %v11734_v5  ;;  %v10103_v17 = vadd.f32 1.0, %v11734_v5 }
 0xad7   : > { %v14589_v15 = vpop.eup %14588 }
 0xad8   : > { %v10141_v36 = vmul.f32 %v14589_v15, %v10101_v27 }
 0xadc   : > { %v8734_v4 = vpop.xlane.xlu1 %8733 }
 0xadd   : > { %v8985_v38 = vsel %vm8935_vm0, %v8734_v4, -inf  ;;  %8933 = vadd.xlane.f32.xlu1 %v8918_v40 }
 0xade   : > { %v8986_v7 = vrot.slane %v8985_v38, 4 }
 0xae0   : > { %v8987_v25 = vmax.f32 %v8985_v38, %v8986_v7  ;;  %v9925_v59 = vpop.xlane.xlu1 %9924 }
 0xae1   : > { %v9945_v63 = vmax.f32 %v9925_v59, 1e-15 }
 0xae2   : > { %v8988_v11 = vrot.slane %v8987_v25, 2 }
 0xae3   : > { %vm10029_vm3 = vcmp.eq.f32.partialorder %v9945_v63, inf  ;;  %vm10031_vm4 = vcmp.eq.f32.partialorder %v9945_v63, 0.0 }
 0xae4   : > { %v8989_v8 = vmax.f32 %v8987_v25, %v8988_v11  ;;  %v9927_v20 = vpop.xlane.xlu1 %9926 }
 0xae5   : > { %v9946_v45 = vmax.f32 %v9927_v20, 1e-15 }
 0xae6   : > { %v8990_v12 = vrot.slane %v8989_v8, 1 }
 0xae7   : > { %vm10036_vm8 = vcmp.eq.f32.partialorder %v9946_v45, inf  ;;  %vm10038_vm9 = vcmp.eq.f32.partialorder %v9946_v45, 0.0 }
 0xae8   : > { %v8991_v18 = vmax.f32 %v8989_v8, %v8990_v12  ;;  %v9929_v44 = vpop.xlane.xlu1 %9928 }
 0xae9   : > { %v18197_v2 = vmax.f32 %v9929_v44, 1e-15 }
 0xaea   : > { %v9055_v42 = vsub.f32 %v8734_v4, %v8991_v18 }
 0xaeb   : > { %vm10043_vm14 = vcmp.eq.f32.partialorder %v18197_v2, inf }
 0xaec   : > { %v9078_v24 = vmul.f32 1.442695, %v9055_v42  ;;  %v9931_v62 = vpop.xlane.xlu1 %9930  ;;  %v10032_v42 = vand.u32 2147483648, %v9945_v63 }
 0xaed   : > { %v18199_v58 = vmax.f32 %v9931_v62, 1e-15 }
 0xaee   : > { %14590 = vpow2.f32 %v9078_v24  ;;  %v18762_v24 = vld [vmem:[#allocation36_spill] sm:$0xff] }
 0xaef   : > { %14592 = vrsqrt.f32 %v9944_v30  ;;  %v18763_v47 = vsub.f32 1.0, %v18762_v24  ;;  %vm10050_vm15 = vcmp.eq.f32.partialorder %v18199_v58, inf }
 0xaf0   : > { %14594 = vlog2.f32 %v10141_v36  ;;  %v18205_v15 = vpop.xlane.xlu1 %9932  ;;  %v10039_v36 = vand.u32 2147483648, %v9946_v45 }
 0xaf1   : > { %14596 = vrsqrt.f32 %v9945_v63 }
 0xaf2   : > { %14598 = vrcp.f32 %v10118_v35 }
 0xaf3   : > { %14600 = vrcp.f32 %v18182_v29  ;;  %v10102_v29 = vadd.f32 1.0, %v11733_v32 }
 0xaf4   : > { %14602 = vrcp.f32 %v10119_v31 }
 0xaf5   : > { %14604 = vrsqrt.f32 %v9946_v45 }
 0xafb   : > { %v14591_v23 = vpop.eup %14590 }
 0xafc   : > { %v9145_v3 = vsel %vm8935_vm0, %v14591_v23, 0.0  ;;  %v14593_v55 = vpop.eup %14592 }
 0xafd   : > { %v9146_v28 = vrot.slane %v9145_v3, 4  ;;  %v10021_v46 = vmul.f32 %v14593_v55, %v9944_v30  ;;  %v14595_v39 = vpop.eup %14594 }
 0xafe   : > { %v10173_v1 = vmul.f32 0.6931472, %v14595_v39  ;;  %v14597_v4 = vpop.eup %14596 }
 0xaff   : > { %v9147_v48 = vadd.f32 %v9146_v28, %v9145_v3  ;;  %v10023_v6 = vsel %vm10022_vm1, %v9944_v30, %v10021_v46  ;;  %v14599_v19 = vpop.eup %14598  ;;  %v10028_v61 = vmul.f32 %v14597_v4, %v9945_v63  ;;  %vm10045_vm1 = vcmp.eq.f32.partialorder %v18197_v2, 0.0 }
 0xb00   : > { %v18194_v60 = vsel %vm10024_vm2, %v10025_v51, %v10023_v6  ;;  %v10197_v38 = vmul.f32 0.5, %v10173_v1  ;;  %v14601_v7 = vpop.eup %14600  ;;  %v10143_v41 = vmul.f32 %v14599_v19, %v10102_v29  ;;  %v10046_v6 = vand.u32 2147483648, %v18197_v2 }
 0xb01   : > { %v9148_v10 = vrot.slane %v9147_v48, 2  ;;  %v11735_v54 = vclamps-f32 %v18194_v60, 0.999999  ;;  %v14603_v25 = vpop.eup %14602  ;;  %v10030_v18 = vsel %vm10029_vm3, %v9945_v63, %v10028_v61  ;;  %vm10052_vm2 = vcmp.eq.f32.partialorder %v18199_v58, 0.0 }
 0xb02   : > { %v10221_v11 = vmul.f32 %v14601_v7, %v10197_v38  ;;  %v14605_v8 = vpop.eup %14604  ;;  %v10145_v57 = vmul.f32 %v14603_v25, %v10103_v17  ;;  %v18207_v43 = vsel %vm10031_vm4, %v10032_v42, %v10030_v18 }
 0xb03   : > { %v9149_v22 = vadd.f32 %v9148_v10, %v9147_v48  ;;  %v10120_v40 = vsub.f32 1.0, %v11735_v54  ;;  %v10035_v52 = vmul.f32 %v14605_v8, %v9946_v45  ;;  %v11736_v56 = vclamps-f32 %v18207_v43, 0.999999 }
 0xb04   : > { %v10245_v34 = vmul.f32 %v10221_v11, %v18763_v47  ;;  %v10104_v3 = vadd.f32 1.0, %v11735_v54 }
 0xb05   : > { %v9150_v13 = vrot.slane %v9149_v22, 1  ;;  %v10037_v27 = vsel %vm10036_vm8, %v9946_v45, %v10035_v52  ;;  %v10121_v48 = vsub.f32 1.0, %v11736_v56 }
 0xb06   : > { %v18216_v63 = vsel %vm10038_vm9, %v10039_v36, %v10037_v27 }
 0xb07   : > { %v9151_v53 = vadd.f32 %v9150_v13, %v9149_v22  ;;  %v11737_v22 = vclamps-f32 %v18216_v63, 0.999999 }
 0xb09   : > { %14606 = vrcp.f32 %v9151_v53  ;;  %v10122_v4 = vsub.f32 1.0, %v11737_v22 }
 0xb0a   : > { %14608 = vrsqrt.f32 %v18197_v2 }
 0xb0b   : > { %14610 = vrsqrt.f32 %v18199_v58 }
 0xb0c   : > { %14612 = vrcp.f32 %v10120_v40  ;;  %v10053_v40 = vand.u32 2147483648, %v18199_v58 }
 0xb0d   : > { %14614 = vlog2.f32 %v10143_v41 }
 0xb0e   : > { %14616 = vlog2.f32 %v10145_v57  ;;  %v18764_v57 = vld [vmem:[#allocation38_spill] sm:$0xff] }
 0xb0f   : > { %14618 = vrcp.f32 %v18188_v16 }
 0xb10   : > { %14620 = vrcp.f32 %v18186_v49 }
 0xb11   : > { %14622 = vrcp.f32 %v18194_v60 }
 0xb12   : > { %14624 = vrcp.f32 %v10121_v48 }
 0xb16   : > { %v14607_v12 = vpop.eup %14606 }
 0xb17   : > { %v9231_v30 = vmul.f32 %v14607_v12, %v14591_v23  ;;  %v14609_v26 = vpop.eup %14608 }
 0xb18   : > { %v14611_v59 = vpop.eup %14610  ;;  %v10042_v20 = vmul.f32 %v14609_v26, %v18197_v2  ;;  %v18258_v26 = vmax.f32 %v18205_v15, 1e-15  ;;  %v18765_v15 = vld [vmem:[#allocation40_spill] sm:$0xff] }
 0xb19   : > { %v10261_v21 = vmul.f32 %v10245_v34, %v9231_v30  ;;  %v14613_v32 = vpop.eup %14612  ;;  %v10049_v46 = vmul.f32 %v14611_v59, %v18199_v58 }
 0xb1a   : > { %v10147_v51 = vmul.f32 %v14613_v32, %v10104_v3  ;;  %v10044_v13 = vsel %vm10043_vm14, %v18197_v2, %v10042_v20  ;;  %v14615_v53 = vpop.eup %14614  ;;  %vm10057_vm3 = vcmp.eq.f32.partialorder %v18258_v26, inf  ;;  %vm10059_vm4 = vcmp.eq.f32.partialorder %v18258_v26, 0.0 }
 0xb1b   : > { %10307 = vperm.xlu1 %13807, %v10261_v21   ;;  %v10051_v60 = vsel %vm10050_vm15, %v18199_v58, %v10049_v46  ;;  %v14617_v38 = vpop.eup %14616  ;;  %v18244_v17 = vsel %vm10045_vm1, %v10046_v6, %v10044_v13  ;;  %v10175_v11 = vmul.f32 0.6931472, %v14615_v53 }
 0xb1c   : > { %14626 = vlog2.f32 %v10147_v51  ;;  %v18248_v2 = vsel %vm10052_vm2, %v10053_v40, %v10051_v60  ;;  %v18251_v30 = vmul.f32 0.6931472, %v14617_v38  ;;  %v11738_v24 = vclamps-f32 %v18244_v17, 0.999999  ;;  %v18265_v3 = vpop.eup %14618 }
 0xb1d   : > { %v18210_v14 = vpop.xlane.xlu1 %8919  ;;  %14628 = vrcp.f32 %v10122_v4  ;;  %v18262_v59 = vmul.f32 0.5, %v10175_v11  ;;  %v18268_v48 = vpop.eup %14620  ;;  %v18766_v11 = vld [vmem:[#allocation41_spill] sm:$0xff] }
 0xb1e   : > { %v8992_v23 = vsel %vm8935_vm0, %v18210_v14, -inf  ;;  %v18273_v51 = vpop.eup %14622 }
 0xb1f   : > { %v8993_v55 = vrot.slane %v8992_v23, 4  ;;  %v18214_v28 = vpop.xlane.xlu0 %8921  ;;  %v14625_v60 = vpop.eup %14624 }
 0xb20   : > { %v8999_v5 = vsel %vm8935_vm0, %v18214_v28, -inf }
 0xb21   : > { %v8994_v35 = vmax.f32 %v8992_v23, %v8993_v55  ;;  %v9000_v10 = vrot.slane %v8999_v5, 4  ;;  %v10278_v31 = vpop.permute.xlu1 %10277  ;;  %v11739_v23 = vclamps-f32 %v18248_v2, 0.999999 }
 0xb22   : > { %v10351_v42 = vmul.f32 %v10278_v31, %v18764_v57  ;;  %v10123_v31 = vsub.f32 1.0, %v11738_v24 }
 0xb23   : > { %v8995_v16 = vrot.slane %v8994_v35, 2  ;;  %v9001_v45 = vmax.f32 %v8999_v5, %v9000_v10  ;;  %v18230_v44 = vpop.xlane.xlu0 %8923  ;;  %v10124_v53 = vsub.f32 1.0, %v11739_v23 }
 0xb24   : > { %v9006_v49 = vsel %vm8935_vm0, %v18230_v44, -inf  ;;  %v10372_v46 = vrot.slane %v10351_v42, 4 }
 0xb25   : > { %v8996_v39 = vmax.f32 %v8994_v35, %v8995_v16  ;;  %v9002_v62 = vrot.slane %v9001_v45, 2  ;;  %v9007_v54 = vrot.slane %v9006_v49, 4  ;;  %v10283_v1 = vpop.permute.xlu1 %10282 }
 0xb26   : > { %v10352_v35 = vmul.f32 %v10283_v1, %v18765_v15  ;;  %v10106_v1 = vadd.f32 1.0, %v11737_v22  ;;  %v10373_v40 = vadd.f32 %v10372_v46, %v10351_v42 }
 0xb27   : > { %v8997_v29 = vrot.slane %v8996_v39, 1  ;;  %v9003_v19 = vmax.f32 %v9001_v45, %v9002_v62  ;;  %v9008_v7 = vmax.f32 %v9006_v49, %v9007_v54  ;;  %v18242_v61 = vpop.xlane.xlu0 %8927  ;;  %v10105_v49 = vadd.f32 1.0, %v11736_v56 }
 0xb28   : > { %v9020_v25 = vsel %vm8935_vm0, %v18242_v61, -inf  ;;  %v10378_v56 = vrot.slane %v10352_v35, 4 }
 0xb29   : > { %v8998_v41 = vmax.f32 %v8996_v39, %v8997_v29  ;;  %v9004_v58 = vrot.slane %v9003_v19, 1  ;;  %v9009_v8 = vrot.slane %v9008_v7, 2  ;;  %v9021_v12 = vrot.slane %v9020_v25, 4  ;;  %v10288_v18 = vpop.permute.xlu1 %10287 }
 0xb2b   : > { %v9056_v47 = vsub.f32 %v18210_v14, %v8998_v41  ;;  %v9005_v34 = vmax.f32 %v9003_v19, %v9004_v58  ;;  %v9010_v52 = vmax.f32 %v9008_v7, %v9009_v8  ;;  %v9022_v21 = vmax.f32 %v9020_v25, %v9021_v12  ;;  %v18255_v27 = vpop.xlane.xlu0 %8925  ;;  %v18767_v58 = vld [vmem:[#allocation42_spill] sm:$0xff]  ;;  %v18291_v12 = vpop.eup %14626 }
 0xb2c   : > { %v9013_v36 = vsel %vm8935_vm0, %v18255_v27, -inf  ;;  %v10353_v41 = vmul.f32 %v10288_v18, %v18766_v11  ;;  %v14629_v18 = vpop.eup %14628 }
 0xb2d   : > { %v9080_v32 = vmul.f32 1.442695, %v9056_v47  ;;  %v9057_v14 = vsub.f32 %v18214_v28, %v9005_v34  ;;  %v9011_v55 = vrot.slane %v9010_v52, 1  ;;  %v9023_v20 = vrot.slane %v9022_v21, 2  ;;  %v10293_v5 = vpop.permute.xlu1 %10292 }
 0xb2e   : > { %v9014_v10 = vrot.slane %v9013_v36, 4  ;;  %v10354_v8 = vmul.f32 %v10293_v5, %v18767_v58  ;;  %v10149_v47 = vmul.f32 %v14625_v60, %v10105_v49  ;;  %v10374_v34 = vrot.slane %v10373_v40, 2 }
 0xb2f   : > { %14630 = vpow2.f32 %v9080_v32  ;;  %v9082_v6 = vmul.f32 1.442695, %v9057_v14  ;;  %v9012_v16 = vmax.f32 %v9010_v52, %v9011_v55  ;;  %v9024_v45 = vmax.f32 %v9022_v21, %v9023_v20  ;;  %v18275_v13 = vpop.xlane.xlu0 %8929  ;;  %v18768_v21 = vld [vmem:[#allocation43_spill] sm:$0xff] }
 0xb30   : > { %14632 = vrsqrt.f32 %v18258_v26  ;;  %v9015_v28 = vmax.f32 %v9013_v36, %v9014_v10  ;;  %v9027_v38 = vsel %vm8935_vm0, %v18275_v13, -inf  ;;  %v10379_v14 = vadd.f32 %v10378_v56, %v10352_v35 }
 0xb31   : > { %14634 = vpow2.f32 %v9082_v6  ;;  %v9058_v39 = vsub.f32 %v18230_v44, %v9012_v16  ;;  %v9025_v62 = vrot.slane %v9024_v45, 1  ;;  %v10298_v54 = vpop.permute.xlu1 %10297  ;;  %v9028_v7 = vrot.slane %v9027_v38, 4 }
 0xb32   : > { %v9016_v4 = vrot.slane %v9015_v28, 2  ;;  %14636 = vrcp.f32 %v10123_v31  ;;  %v10355_v36 = vmul.f32 %v10298_v54, %v18768_v21  ;;  %v10384_v46 = vrot.slane %v10353_v41, 4  ;;  %v18769_v31 = vld [vmem:[#allocation44_spill] sm:$0xff] }
 0xb33   : > { %v9084_v29 = vmul.f32 1.442695, %v9058_v39  ;;  %v9026_v19 = vmax.f32 %v9024_v45, %v9025_v62  ;;  %v18287_v25 = vpop.xlane.xlu0 %8931  ;;  %14638 = vrcp.f32 %v10124_v53  ;;  %v9029_v57 = vmax.f32 %v9027_v38, %v9028_v7 }
 0xb34   : > { %v9017_v44 = vmax.f32 %v9015_v28, %v9016_v4  ;;  %v9034_v32 = vsel %vm8935_vm0, %v18287_v25, -inf  ;;  %v10390_v10 = vrot.slane %v10354_v8, 4  ;;  %v18300_v45 = vadd.f32 1.0, %v11738_v24 }
 0xb35   : > { %14640 = vpow2.f32 %v9084_v29  ;;  %v9060_v22 = vsub.f32 %v18242_v61, %v9026_v19  ;;  %v10303_v42 = vpop.permute.xlu1 %10302  ;;  %v9030_v20 = vrot.slane %v9029_v57, 2  ;;  %v9035_v5 = vrot.slane %v9034_v32, 4 }
 0xb36   : > { %v9018_v52 = vrot.slane %v9017_v44, 1  ;;  %v10356_v61 = vmul.f32 %v10303_v42, %v18769_v31  ;;  %v10396_v49 = vrot.slane %v10355_v36, 4  ;;  %v18303_v35 = vadd.f32 %v10374_v34, %v10373_v40  ;;  %v18770_v40 = vld [vmem:[#allocation39_spill] sm:$0xff] }
 0xb37   : > { %v9088_v55 = vmul.f32 1.442695, %v9060_v22  ;;  %v9031_v6 = vmax.f32 %v9029_v57, %v9030_v20  ;;  %v9036_v16 = vmax.f32 %v9034_v32, %v9035_v5  ;;  %v18305_v54 = vmul.f32 %v14629_v18, %v10106_v1 }
 0xb38   : > { %v9019_v15 = vmax.f32 %v9017_v44, %v9018_v52  ;;  %v10402_v53 = vrot.slane %v10356_v61, 4  ;;  %v10380_v38 = vrot.slane %v10379_v14, 2  ;;  %v10385_v29 = vadd.f32 %v10384_v46, %v10353_v41 }
 0xb39   : > { %14642 = vpow2.f32 %v9088_v55  ;;  %v9032_v60 = vrot.slane %v9031_v6, 1  ;;  %v9037_v39 = vrot.slane %v9036_v16, 2  ;;  %v10391_v19 = vadd.f32 %v10390_v10, %v10354_v8 }
 0xb3a   : > { %v9059_v28 = vsub.f32 %v18255_v27, %v9019_v15  ;;  %14644 = vlog2.f32 %v10149_v47  ;;  %v10397_v1 = vadd.f32 %v10396_v49, %v10355_v36  ;;  %v10403_v57 = vadd.f32 %v10402_v53, %v10356_v61 }
 0xb3b   : > { %v10273_v62 = vpop.permute.xlu0 %10272  ;;  %v9033_v7 = vmax.f32 %v9031_v6, %v9032_v60  ;;  %v9038_v11 = vmax.f32 %v9036_v16, %v9037_v39  ;;  %v10376_v8 = vrot.slane %v18303_v35, 1  ;;  %v10381_v32 = vadd.f32 %v10380_v38, %v10379_v14 }
 0xb3c   : > { %v18307_v4 = vpop.eup %14630  ;;  %v9086_v56 = vmul.f32 1.442695, %v9059_v28  ;;  %v10350_v44 = vmul.f32 %v10273_v62, %v18770_v40  ;;  %v10386_v18 = vrot.slane %v10385_v29, 2  ;;  %v10392_v20 = vrot.slane %v10391_v19, 2 }
 0xb3d   : > { %v18309_v24 = vpop.eup %14632  ;;  %v9152_v27 = vsel %vm8935_vm0, %v18307_v4, 0.0  ;;  %v9061_v47 = vsub.f32 %v18275_v13, %v9033_v7  ;;  %v9039_v34 = vrot.slane %v9038_v11, 1  ;;  %v10398_v61 = vrot.slane %v10397_v1, 2 }
 0xb3e   : > { %v18314_v58 = vpop.eup %14634  ;;  %v9153_v22 = vrot.slane %v9152_v27, 4  ;;  %14646 = vpow2.f32 %v9086_v56  ;;  %v10366_v46 = vrot.slane %v10350_v44, 4  ;;  %v10404_v6 = vrot.slane %v10403_v57, 2 }
 0xb3f   : > { %v18316_v42 = vpop.eup %14636  ;;  %v9159_v41 = vsel %vm8935_vm0, %v18314_v58, 0.0  ;;  %v9090_v5 = vmul.f32 1.442695, %v9061_v47  ;;  %v9040_v36 = vmax.f32 %v9038_v11, %v9039_v34  ;;  %v10382_v60 = vrot.slane %v10381_v32, 1 }
 0xb40   : > { %v9154_v52 = vadd.f32 %v9153_v22, %v9152_v27  ;;  %v9160_v21 = vrot.slane %v9159_v41, 4  ;;  %v18322_v55 = vpop.eup %14638  ;;  %v10367_v14 = vadd.f32 %v10366_v46, %v10350_v44  ;;  %v10387_v39 = vadd.f32 %v10386_v18, %v10385_v29 }
 0xb41   : > { %14648 = vpow2.f32 %v9090_v5  ;;  %v9062_v16 = vsub.f32 %v18287_v25, %v9040_v36  ;;  %v10393_v62 = vadd.f32 %v10392_v20, %v10391_v19  ;;  %v10399_v22 = vadd.f32 %v10398_v61, %v10397_v1 }
 0xb42   : > { %v18324_v15 = vpop.eup %14640  ;;  %v9155_v10 = vrot.slane %v9154_v52, 2  ;;  %v9161_v31 = vadd.f32 %v9160_v21, %v9159_v41  ;;  %v10368_v56 = vrot.slane %v10367_v14, 2  ;;  %v10405_v44 = vadd.f32 %v10404_v6, %v10403_v57 }
 0xb43   : > { %v9166_v13 = vsel %vm8935_vm0, %v18324_v15, 0.0  ;;  %v9092_v38 = vmul.f32 1.442695, %v9062_v16  ;;  %v18336_v21 = vadd.f32 %v10376_v8, %v18303_v35  ;;  %v10388_v18 = vrot.slane %v10387_v39, 1 }
 0xb44   : > { %v9156_v28 = vadd.f32 %v9155_v10, %v9154_v52  ;;  %v9162_v49 = vrot.slane %v9161_v31, 2  ;;  %v9167_v53 = vrot.slane %v9166_v13, 4  ;;  %v10369_v47 = vadd.f32 %v10368_v56, %v10367_v14 }
 0xb45   : > { %14650 = vpow2.f32 %v9092_v38  ;;  %v10394_v20 = vrot.slane %v10393_v62, 1  ;;  %v10400_v57 = vrot.slane %v10399_v22, 1  ;;  %v10406_v61 = vrot.slane %v10405_v44, 1 }
 0xb46   : > { %v18329_v27 = vpop.eup %14642  ;;  %v9157_v7 = vrot.slane %v9156_v28, 1  ;;  %v9163_v11 = vadd.f32 %v9162_v49, %v9161_v31  ;;  %v9168_v40 = vadd.f32 %v9167_v53, %v9166_v13  ;;  %v10370_v5 = vrot.slane %v10369_v47, 1 }
 0xb47   : > { %v18331_v41 = vpop.eup %14644  ;;  %v9180_v25 = vsel %vm8935_vm0, %v18329_v27, 0.0  ;;  %v18340_v31 = vadd.f32 %v10382_v60, %v10381_v32  ;;  %v18346_v8 = vadd.f32 %v10388_v18, %v10387_v39  ;;  %v18352_v49 = vadd.f32 %v10394_v20, %v10393_v62 }
 0xb48   : > { %v9164_v34 = vrot.slane %v9163_v11, 1  ;;  %v9169_v52 = vrot.slane %v9168_v40, 2  ;;  %v9181_v29 = vrot.slane %v9180_v25, 4  ;;  %v9158_v19 = vadd.f32 %v9157_v7, %v9156_v28 }
 0xb49   : > { %v18342_v6 = vadd.f32 %v10370_v5, %v10369_v47  ;;  %v18356_v56 = vadd.f32 %v10400_v57, %v10399_v22  ;;  %v10153_v7 = vmul.f32 %v18316_v42, %v18300_v45  ;;  %v10108_v47 = vadd.f32 1.0, %v11739_v23 }
 0xb4a   : > { %v9170_v36 = vadd.f32 %v9169_v52, %v9168_v40  ;;  %v9182_v1 = vadd.f32 %v9181_v29, %v9180_v25  ;;  %14652 = vrcp.f32 %v9158_v19  ;;  %v9165_v46 = vadd.f32 %v9164_v34, %v9163_v11 }
 0xb4b   : > { %v18338_v10 = vpop.eup %14646  ;;  %v10562_v28 = vsel %vm8593_vm5, %v18336_v21, %v18342_v6  ;;  %v10199_v42 = vmul.f32 0.5, %v18251_v30  ;;  %v10223_v19 = vmul.f32 %v18268_v48, %v18262_v59  ;;  %v10155_v18 = vmul.f32 %v18322_v55, %v10108_v47  ;;  %v18771_v48 = vld [vmem:[#allocation50_spill] sm:$0xff] }
 0xb4c   : > { %v9171_v13 = vrot.slane %v9170_v36, 1  ;;  %v9183_v16 = vrot.slane %v9182_v1, 2  ;;  %v9173_v35 = vsel %vm8935_vm0, %v18338_v10, 0.0  ;;  %14654 = vrcp.f32 %v9165_v46 }
 0xb4d   : > { %v9174_v14 = vrot.slane %v9173_v35, 4  ;;  %14656 = vlog2.f32 %v18305_v54  ;;  %v10563_v53 = vsel %vm8596_vm6, %v18340_v31, %v10562_v28  ;;  %v18364_v54 = vadd.f32 %v10406_v61, %v10405_v44 }
 0xb4e   : > { %v9184_v32 = vadd.f32 %v9183_v16, %v9182_v1  ;;  %v9172_v60 = vadd.f32 %v9171_v13, %v9170_v36  ;;  %v10564_v39 = vsel %vm8599_vm7, %v18346_v8, %v10563_v53  ;;  %v18362_v11 = vpop.eup %14648  ;;  %v10179_v44 = vmul.f32 0.6931472, %v18291_v12 }
 0xb4f   : > { %v9175_v38 = vadd.f32 %v9174_v14, %v9173_v35  ;;  %v10565_v62 = vsel %vm8602_vm10, %v18352_v49, %v10564_v39  ;;  %v9187_v22 = vsel %vm8935_vm0, %v18362_v11, 0.0  ;;  %v10225_v46 = vmul.f32 %v18265_v3, %v10199_v42  ;;  %v18773_v39 = vld [vmem:[#allocation46_spill] sm:$0xff] }
 0xb50   : > { %v9185_v40 = vrot.slane %v9184_v32, 1  ;;  %14658 = vrcp.f32 %v9172_v60  ;;  %v10566_v34 = vsel %vm8605_vm11, %v18356_v56, %v10565_v62  ;;  %v9188_v45 = vrot.slane %v9187_v22, 4 }
 0xb51   : > { %v9176_v25 = vrot.slane %v9175_v38, 2  ;;  %v18378_v52 = vsel %vm8608_vm12, %v18364_v54, %v10566_v34  ;;  %14660 = vlog2.f32 %v10153_v7  ;;  %v18772_v57 = vsub.f32 1.0, %v18771_v48  ;;  %v18777_v48 = vld [vmem:[#allocation51_spill] sm:$0xff] }
 0xb52   : > { %v18383_v23 = vpop.eup %14650  ;;  %v9189_v20 = vadd.f32 %v9188_v45, %v9187_v22  ;;  %14662 = vrcp.f32 %v18207_v43  ;;  %v9186_v5 = vadd.f32 %v9185_v40, %v9184_v32  ;;  %v10200_v61 = vmul.f32 0.5, %v10179_v44  ;;  %v18775_v44 = vld [vmem:[#allocation48_spill] sm:$0xff] }
 0xb53   : > { %v9177_v29 = vadd.f32 %v9176_v25, %v9175_v38  ;;  %v9194_v12 = vsel %vm8935_vm0, %v18383_v23, 0.0  ;;  %14664 = vrcp.f32 %v18216_v63  ;;  %v10246_v55 = vmul.f32 %v10223_v19, %v18772_v57 }
 0xb54   : > { %v9190_v36 = vrot.slane %v9189_v20, 2  ;;  %v9195_v1 = vrot.slane %v9194_v12, 4  ;;  %14666 = vlog2.f32 %v10155_v18  ;;  %v10181_v28 = vmul.f32 0.6931472, %v18331_v41 }
 0xb55   : > { %v9178_v30 = vrot.slane %v9177_v29, 1  ;;  %14668 = vrcp.f32 %v9186_v5  ;;  %v18774_v7 = vsub.f32 1.0, %v18773_v39  ;;  %v10227_v62 = vmul.f32 %v18273_v51, %v10200_v61 }
 0xb56   : > { %v9191_v16 = vadd.f32 %v9190_v36, %v9189_v20  ;;  %v9196_v43 = vadd.f32 %v9195_v1, %v9194_v12  ;;  %v10201_v22 = vmul.f32 0.5, %v10181_v28  ;;  %v10060_v36 = vand.u32 2147483648, %v18258_v26 }
 0xb57   : > { %v14653_v59 = vpop.eup %14652  ;;  %v9179_v13 = vadd.f32 %v9178_v30, %v9177_v29  ;;  %v10247_v40 = vmul.f32 %v10225_v46, %v18774_v7  ;;  %v18776_v29 = vsub.f32 1.0, %v18775_v44  ;;  %v18778_v57 = vsub.f32 1.0, %v18777_v48 }
 0xb58   : > { %v9232_v35 = vmul.f32 %v14653_v59, %v18307_v4  ;;  %v9192_v3 = vrot.slane %v9191_v16, 1  ;;  %v9197_v53 = vrot.slane %v9196_v43, 2 }
 0xb59   : > { %v14655_v14 = vpop.eup %14654  ;;  %14670 = vrcp.f32 %v9179_v13  ;;  %v10248_v19 = vmul.f32 %v10227_v62, %v18776_v29  ;;  %v18782_v29 = vld [vmem:[#allocation52_spill] sm:$0xff] }
 0xb5a   : > { %v14657_v32 = vpop.eup %14656  ;;  %v10262_v63 = vmul.f32 %v10246_v55, %v9232_v35  ;;  %v9233_v60 = vmul.f32 %v14655_v14, %v18314_v58  ;;  %v9198_v38 = vadd.f32 %v9197_v53, %v9196_v43  ;;  %v9193_v25 = vadd.f32 %v9192_v3, %v9191_v16 }
 0xb5b   : > { %v10183_v47 = vmul.f32 0.6931472, %v14657_v32  ;;  %14672 = vrcp.f32 %v18244_v17  ;;  %v10056_v58 = vmul.f32 %v18309_v24, %v18258_v26 }
 0xb5c   : > { %10312 = vperm.xlu0 %13806, %v10262_v63   ;;  %v9199_v41 = vrot.slane %v9198_v38, 1  ;;  %v10263_v34 = vmul.f32 %v10247_v40, %v9233_v60  ;;  %14674 = vrcp.f32 %v9193_v25  ;;  %v18779_v60 = vsub.f32 1.0, %v17693_v50 }
 0xb5d   : > { %v14659_v4 = vpop.eup %14658  ;;  %14676 = vrcp.f32 %v18248_v2  ;;  %v10202_v5 = vmul.f32 0.5, %v10183_v47  ;;  %v10058_v30 = vsel %vm10057_vm3, %v18258_v26, %v10056_v58 }
 0xb5e   : > { %v9234_v45 = vmul.f32 %v14659_v4, %v18324_v15  ;;  %v14661_v42 = vpop.eup %14660  ;;  %v9200_v51 = vadd.f32 %v9199_v41, %v9198_v38  ;;  %v10061_v61 = vsel %vm10059_vm4, %v10060_v36, %v10058_v30  ;;  %vm10840_vm4 = vcmask 1040384  }
 0xb5f   : > { %v14663_v18 = vpop.eup %14662  ;;  %v10185_v12 = vmul.f32 0.6931472, %v14661_v42  ;;  %v11740_v3 = vclamps-f32 %v10061_v61, 0.999999 }
 0xb60   : > { %10317 = vperm.xlu0 %13806, %v10263_v34   ;;  %v10264_v17 = vmul.f32 %v10248_v19, %v9234_v45  ;;  %v10229_v20 = vmul.f32 %v14663_v18, %v10201_v22  ;;  %14678 = vrcp.f32 %v9200_v51  ;;  %v14665_v15 = vpop.eup %14664  ;;  %v18783_v19 = vsub.f32 1.0, %v18782_v29 }
 0xb61   : > { %v14667_v24 = vpop.eup %14666  ;;  %v10231_v55 = vmul.f32 %v14665_v15, %v10202_v5  ;;  %v10203_v43 = vmul.f32 0.5, %v10185_v12  ;;  %v10125_v25 = vsub.f32 1.0, %v11740_v3  ;;  %v10109_v5 = vadd.f32 1.0, %v11740_v3 }
 0xb62   : > { %v14669_v1 = vpop.eup %14668  ;;  %v10249_v2 = vmul.f32 %v10229_v20, %v18778_v57  ;;  %v10187_v35 = vmul.f32 0.6931472, %v14667_v24 }
 0xb63   : > { %v9236_v32 = vmul.f32 %v14669_v1, %v18329_v27  ;;  %v10250_v38 = vmul.f32 %v10231_v55, %v18779_v60  ;;  %v18780_v27 = vld [vmem:[#allocation57_spill] sm:$0xff]  ;;  %14680 = vrcp.f32 %v10125_v25  ;;  %v10466_v60 = vmul.f32 %v18352_v49, %v18352_v49 }
 0xb64   : > { %10322 = vperm.xlu0 %13806, %v10264_v17   ;;  %v10204_v7 = vmul.f32 0.5, %v10187_v35  ;;  %v18781_v41 = vsub.f32 1.0, %v18780_v27  ;;  %v10468_v27 = vmul.f32 %v18364_v54, %v18364_v54 }
 0xb65   : > { %v10266_v62 = vmul.f32 %v10250_v38, %v9236_v32 }
 0xb66   : > { %v14671_v46 = vpop.eup %14670  ;;  %v8934_v59 = vpop.xlane.xlu1 %8933 }
 0xb67   : > { %v9041_v13 = vsel %vm8935_vm0, %v8934_v59, -inf  ;;  %v9235_v16 = vmul.f32 %v14671_v46, %v18338_v10 }
 0xb68   : > { %v9042_v14 = vrot.slane %v9041_v13, 4  ;;  %v14673_v53 = vpop.eup %14672 }
 0xb69   : > { %v10265_v28 = vmul.f32 %v10249_v2, %v9235_v16  ;;  %v14675_v63 = vpop.eup %14674  ;;  %v10233_v39 = vmul.f32 %v14673_v53, %v10203_v43  ;;  %v10463_v2 = vmul.f32 %v18336_v21, %v18336_v21  ;;  %v18784_v43 = vld [vmem:[#allocation45_spill] sm:$0xff] }
 0xb6a   : > { %v9043_v26 = vmax.f32 %v9041_v13, %v9042_v14  ;;  %v9237_v10 = vmul.f32 %v14675_v63, %v18362_v11  ;;  %v14677_v4 = vpop.eup %14676  ;;  %v10464_v14 = vmul.f32 %v18340_v31, %v18340_v31 }
 0xb6b   : > { %10327 = vperm.xlu0 %13806, %v10265_v28   ;;  %v10251_v34 = vmul.f32 %v10233_v39, %v18781_v41  ;;  %v10235_v45 = vmul.f32 %v14677_v4, %v10204_v7  ;;  %v10467_v7 = vmul.f32 %v18356_v56, %v18356_v56 }
 0xb6c   : > { %v9044_v40 = vrot.slane %v9043_v26, 2 }
 0xb6d   : > { %v14679_v47 = vpop.eup %14678  ;;  %v10267_v42 = vmul.f32 %v10251_v34, %v9237_v10  ;;  %v10252_v51 = vmul.f32 %v10235_v45, %v18783_v19  ;;  %v18785_v10 = vld [vmem:[#allocation53_spill] sm:$0xff]  ;;  %v18788_v19 = vld [vmem:[#allocation47_spill] sm:$0xff] }
 0xb6e   : > { %v9045_v22 = vmax.f32 %v9043_v26, %v9044_v40  ;;  %v9238_v50 = vmul.f32 %v14679_v47, %v18383_v23 }
 0xb6f   : > { %10332 = vperm.xlu0 %13806, %v10266_v62  }
 0xb70   : > { %v9046_v58 = vrot.slane %v9045_v22, 1  ;;  %v10268_v18 = vmul.f32 %v10252_v51, %v9238_v50  ;;  %v14681_v20 = vpop.eup %14680 }
 0xb71   : > { %v10157_v15 = vmul.f32 %v14681_v20, %v10109_v5 }
 0xb72   : > { %v9047_v44 = vmax.f32 %v9045_v22, %v9046_v58  ;;  %v18787_v58 = vld [vmem:[#allocation54_spill] sm:$0xff] }
 0xb73   : > { %10337 = vperm.xlu0 %13806, %v10267_v42  }
 0xb74   : > { %v9063_v11 = vsub.f32 %v8934_v59, %v9047_v44  ;;  %v10462_v59 = vmul.f32 %v18342_v6, %v18342_v6  ;;  %v10465_v6 = vmul.f32 %v18346_v8, %v18346_v8  ;;  %v18786_v8 = vsub.f32 1.0, %v18785_v10 }
 0xb76   : > { %v9094_v17 = vmul.f32 1.442695, %v9063_v11  ;;  %v10494_v16 = vsel %vm8593_vm5, %v10463_v2, %v10462_v59 }
 0xb77   : > { %10342 = vperm.xlu0 %13806, %v10268_v18   ;;  %v10495_v32 = vsel %vm8596_vm6, %v10464_v14, %v10494_v16 }
 0xb78   : > { %14682 = vpow2.f32 %v9094_v17  ;;  %v10496_v63 = vsel %vm8599_vm7, %v10465_v6, %v10495_v32 }
 0xb79   : > { %14684 = vlog2.f32 %v10157_v15  ;;  %v10497_v31 = vsel %vm8602_vm10, %v10466_v60, %v10496_v63 }
 0xb7a   : > { %14686 = vrcp.f32 %v10061_v61  ;;  %v10498_v47 = vsel %vm8605_vm11, %v10467_v7, %v10497_v31 }
 0xb7b   : > { %v10499_v56 = vsel %vm8608_vm12, %v10468_v27, %v10498_v47 }
 0xb85   : > { %v14683_v30 = vpop.eup %14682 }
 0xb86   : > { %v9201_v12 = vsel %vm8935_vm0, %v14683_v30, 0.0  ;;  %v14685_v57 = vpop.eup %14684 }
 0xb87   : > { %v9202_v24 = vrot.slane %v9201_v12, 4  ;;  %v10189_v55 = vmul.f32 0.6931472, %v14685_v57  ;;  %v14687_v53 = vpop.eup %14686 }
 0xb89   : > { %v9203_v23 = vadd.f32 %v9202_v24, %v9201_v12  ;;  %v10205_v61 = vmul.f32 0.5, %v10189_v55 }
 0xb8b   : > { %v9204_v36 = vrot.slane %v9203_v23, 2  ;;  %v10237_v21 = vmul.f32 %v14687_v53, %v10205_v61 }
 0xb8d   : > { %v9205_v1 = vadd.f32 %v9204_v36, %v9203_v23  ;;  %v10253_v25 = vmul.f32 %v10237_v21, %v18786_v8 }
 0xb8f   : > { %v9206_v46 = vrot.slane %v9205_v1, 1 }
 0xb91   : > { %v9207_v48 = vadd.f32 %v9206_v46, %v9205_v1 }
 0xb93   : > { %14688 = vrcp.f32 %v9207_v48  ;;  %v18790_v48 = vld [vmem:[#allocation55_spill] sm:$0xff] }
 0xb96   : > { %v10308_v13 = vpop.permute.xlu1 %10307 }
 0xb97   : > { %v10357_v35 = vmul.f32 %v10308_v13, %v18784_v43 }
 0xb99   : > { %v10408_v28 = vrot.slane %v10357_v35, 4 }
 0xb9b   : > { %v10409_v3 = vadd.f32 %v10408_v28, %v10357_v35 }
 0xb9d   : > { %v10410_v26 = vrot.slane %v10409_v3, 2 }
 0xb9f   : > { %v10411_v38 = vadd.f32 %v10410_v26, %v10409_v3 }
 0xba0   : > { %v14689_v39 = vpop.eup %14688 }
 0xba1   : > { %v10412_v40 = vrot.slane %v10411_v38, 1  ;;  %v9239_v62 = vmul.f32 %v14689_v39, %v14683_v30 }
 0xba3   : > { %v10413_v4 = vadd.f32 %v10412_v40, %v10411_v38  ;;  %v10269_v22 = vmul.f32 %v10253_v25, %v9239_v62 }
 0xba5   : > { %10347 = vperm.xlu0 %13806, %v10269_v22   ;;  %v10469_v49 = vmul.f32 %v10413_v4, %v10413_v4  ;;  %v18447_v41 = vsel %vm8611_vm13, %v10413_v4, %v18378_v52  ;;  %v18789_v52 = vld [vmem:[#allocation49_spill] sm:$0xff] }
 0xba7   : > { %v10500_v34 = vsel %vm8611_vm13, %v10469_v49, %v10499_v56 }
 0xba8   : > { %10510 = vadd.xlane.f32.xlu1 %v10500_v34 }
 0xbd7   : > { %v10313_v45 = vpop.permute.xlu0 %10312 }
 0xbd8   : > { %v10358_v42 = vmul.f32 %v10313_v45, %v18787_v58 }
 0xbda   : > { %v10414_v50 = vrot.slane %v10358_v42, 4 }
 0xbdb   : > { %v10318_v44 = vpop.permute.xlu0 %10317 }
 0xbdc   : > { %v10415_v29 = vadd.f32 %v10414_v50, %v10358_v42  ;;  %v10359_v51 = vmul.f32 %v10318_v44, %v18788_v19 }
 0xbde   : > { %v10416_v54 = vrot.slane %v10415_v29, 2  ;;  %v10420_v11 = vrot.slane %v10359_v51, 4 }
 0xbdf   : > { %v10323_v18 = vpop.permute.xlu0 %10322 }
 0xbe0   : > { %v10417_v17 = vadd.f32 %v10416_v54, %v10415_v29  ;;  %v10421_v20 = vadd.f32 %v10420_v11, %v10359_v51  ;;  %v10360_v5 = vmul.f32 %v10323_v18, %v18789_v52  ;;  %v18791_v29 = vld [vmem:[#allocation56_spill] sm:$0xff] }
 0xbe2   : > { %v10422_v15 = vrot.slane %v10421_v20, 2  ;;  %v10426_v30 = vrot.slane %v10360_v5, 4  ;;  %v10418_v12 = vrot.slane %v10417_v17, 1 }
 0xbe4   : > { %v10423_v24 = vadd.f32 %v10422_v15, %v10421_v20  ;;  %v10427_v23 = vadd.f32 %v10426_v30, %v10360_v5  ;;  %v10419_v59 = vadd.f32 %v10418_v12, %v10417_v17 }
 0xbe6   : > { %v10424_v36 = vrot.slane %v10423_v24, 1  ;;  %v10428_v1 = vrot.slane %v10427_v23, 2  ;;  %v10328_v46 = vpop.permute.xlu0 %10327  ;;  %v10470_v20 = vmul.f32 %v10419_v59, %v10419_v59 }
 0xbe7   : > { %v10361_v57 = vmul.f32 %v10328_v46, %v18790_v48 }
 0xbe8   : > { %v10425_v2 = vadd.f32 %v10424_v36, %v10423_v24  ;;  %v10429_v55 = vadd.f32 %v10428_v1, %v10427_v23  ;;  %v18792_v23 = vld [vmem:[#allocation28_spill] sm:$0xff] }
 0xbe9   : > { %v10432_v13 = vrot.slane %v10361_v57, 4  ;;  %v18467_v36 = vsub.f32 1.0, %v18792_v23 }
 0xbea   : > { %v10569_v16 = vsel %vm8593_vm5, %v10425_v2, %v10419_v59  ;;  %v10430_v43 = vrot.slane %v10429_v55, 1  ;;  %v10333_v35 = vpop.permute.xlu0 %10332  ;;  %v10471_v11 = vmul.f32 %v10425_v2, %v10425_v2 }
 0xbeb   : > { %v10433_v14 = vadd.f32 %v10432_v13, %v10361_v57  ;;  %v10362_v28 = vmul.f32 %v10333_v35, %v17913_v37  ;;  %14690 = vrcp.f32 %v18467_v36 }
 0xbec   : > { %v10431_v61 = vadd.f32 %v10430_v43, %v10429_v55  ;;  %v10501_v30 = vsel %vm8593_vm5, %v10471_v11, %v10470_v20 }
 0xbed   : > { %v10434_v32 = vrot.slane %v10433_v14, 2  ;;  %v10438_v6 = vrot.slane %v10362_v28, 4 }
 0xbee   : > { %v10570_v3 = vsel %vm8596_vm6, %v10431_v61, %v10569_v16  ;;  %v10338_v53 = vpop.permute.xlu0 %10337  ;;  %v10472_v17 = vmul.f32 %v10431_v61, %v10431_v61 }
 0xbef   : > { %v10435_v26 = vadd.f32 %v10434_v32, %v10433_v14  ;;  %v10439_v21 = vadd.f32 %v10438_v6, %v10362_v28  ;;  %v10363_v63 = vmul.f32 %v10338_v53, %v17929_v0 }
 0xbf0   : > { %v10502_v46 = vsel %vm8596_vm6, %v10472_v17, %v10501_v30 }
 0xbf1   : > { %v10436_v60 = vrot.slane %v10435_v26, 1  ;;  %v10440_v38 = vrot.slane %v10439_v21, 2  ;;  %v10444_v39 = vrot.slane %v10363_v63, 4 }
 0xbf2   : > { %v10343_v31 = vpop.permute.xlu0 %10342 }
 0xbf3   : > { %v10437_v7 = vadd.f32 %v10436_v60, %v10435_v26  ;;  %v10441_v40 = vadd.f32 %v10440_v38, %v10439_v21  ;;  %v10445_v62 = vadd.f32 %v10444_v39, %v10363_v63  ;;  %v10364_v10 = vmul.f32 %v10343_v31, %v17580_v33 }
 0xbf5   : > { %v10571_v37 = vsel %vm8599_vm7, %v10437_v7, %v10570_v3  ;;  %v10442_v8 = vrot.slane %v10441_v40, 1  ;;  %v10446_v25 = vrot.slane %v10445_v62, 2  ;;  %v10450_v4 = vrot.slane %v10364_v10, 4 }
 0xbf6   : > { %v10473_v52 = vmul.f32 %v10437_v7, %v10437_v7  ;;  %v18479_v7 = vld [vmem:[%s15409_s16] sm:$0xff]  ;;  %s15083_s16 = smov [#allocation14]  }
 0xbf7   : > { %v10443_v22 = vadd.f32 %v10442_v8, %v10441_v40  ;;  %v10447_v47 = vadd.f32 %v10446_v25, %v10445_v62  ;;  %v10451_v27 = vadd.f32 %v10450_v4, %v10364_v10  ;;  %v18793_v10 = vld [vmem:[#allocation29_spill] sm:$0xff]  ;;  %s14994_s8 = sshll.u32 %s15083_s16, 4  ;;  %s14995_s8 = int_to_ptr.vmem [resolvable:$false] %s14994_s8 }
 0xbf8   : > { %v10503_v57 = vsel %vm8599_vm7, %v10473_v52, %v10502_v46  ;;  %v14691_v28 = vpop.eup %14690  ;;  %s14996_s9 = scalar_lea.vmem %s14995_s8, 256  ;;  %p14997_p13 = scmp.lt.s32.totalorder %s10957_s27, %s14995_s8 }
 0xbf9   : > { %v10572_v49 = vsel %vm8602_vm10, %v10443_v22, %v10571_v37  ;;  %v10448_v0 = vrot.slane %v10447_v47, 1  ;;  %v10452_v56 = vrot.slane %v10451_v27, 2  ;;  %v10474_v15 = vmul.f32 %v10443_v22, %v10443_v22  ;;  %p14998_p1 = scmp.lt.s32.totalorder %s14996_s9, %s14990_s17 }
 0xbfa   : > { %v10533_v61 = vmul.f32 2.0, %v14691_v28  ;;  %v10531_v37 = vsub.f32 1.0, %v18793_v10 }
 0xbfb   : > { %v10449_v34 = vadd.f32 %v10448_v0, %v10447_v47  ;;  %v10453_v45 = vadd.f32 %v10452_v56, %v10451_v27  ;;  %v10504_v2 = vsel %vm8602_vm10, %v10474_v15, %v10503_v57  ;;  %p14999_p4 = por %p14998_p1, %p14997_p13 }
 0xbfc   : > { %v10536_v53 = vmul.f32 0.5, %v10533_v61 }
 0xbfd   : > { %v10573_v58 = vsel %vm8605_vm11, %v10449_v34, %v10572_v49  ;;  %v10454_v42 = vrot.slane %v10453_v45, 1  ;;  %v10475_v12 = vmul.f32 %v10449_v34, %v10449_v34  ;;  %p15000_p6 = pnand %p14999_p4, %p14993_p2 }
 0xbff   : > { %v10455_v50 = vadd.f32 %v10454_v42, %v10453_v45  ;;  %v10505_v59 = vsel %vm8605_vm11, %v10475_v12, %v10504_v2 }
 0xc01   : > { %v10574_v33 = vsel %vm8608_vm12, %v10455_v50, %v10573_v58  ;;  %v10476_v1 = vmul.f32 %v10455_v50, %v10455_v50 }
 0xc03   : > { %v10506_v16 = vsel %vm8608_vm12, %v10476_v1, %v10505_v59 }
 0xc20   : > { %v10348_v44 = vpop.permute.xlu0 %10347 }
 0xc21   : > { %v10365_v19 = vmul.f32 %v10348_v44, %v18791_v29 }
 0xc23   : > { %v10456_v51 = vrot.slane %v10365_v19, 4 }
 0xc25   : > { %v10457_v54 = vadd.f32 %v10456_v51, %v10365_v19 }
 0xc27   : > { %v10458_v18 = vrot.slane %v10457_v54, 2 }
 0xc29   : > { %v10459_v5 = vadd.f32 %v10458_v18, %v10457_v54 }
 0xc2b   : > { %v10460_v24 = vrot.slane %v10459_v5, 1 }
 0xc2d   : > { %v10461_v48 = vadd.f32 %v10460_v24, %v10459_v5 }
 0xc2f   : > { %v10477_v55 = vmul.f32 %v10461_v48, %v10461_v48  ;;  %v10575_v13 = vsel %vm8611_vm13, %v10461_v48, %v10574_v33  ;;  %v14797_v33 = vld [vmem:[%s15417_s15] sm:$0xff] }
 0xc31   : > { %v10511_v43 = vpop.xlane.xlu1 %10510  ;;  %v10507_v35 = vsel %vm8611_vm13, %v10477_v55, %v10506_v16 }
 0xc32   : > { %v10514_v14 = vmax.f32 %v10511_v43, 1e-15  ;;  %10512 = vadd.xlane.f32.xlu0 %v10507_v35 }
 0xc34   : > { %14692 = vrsqrt.f32 %v10514_v14  ;;  %vm10518_vm5 = vcmp.eq.f32.partialorder %v10514_v14, inf  ;;  %v10521_v3 = vand.u32 2147483648, %v10514_v14  ;;  %vm10520_vm6 = vcmp.eq.f32.partialorder %v10514_v14, 0.0 }
 0xc41   : > { %v14693_v32 = vpop.eup %14692 }
 0xc42   : > { %v10517_v6 = vmul.f32 %v14693_v32, %v10514_v14 }
 0xc44   : > { %v10519_v26 = vsel %vm10518_vm5, %v10514_v14, %v10517_v6 }
 0xc45   : > { %v10522_v21 = vsel %vm10520_vm6, %v10521_v3, %v10519_v26 }
 0xc46   : > { %v10538_v63 = vmul.f32 %v10536_v53, %v10522_v21  ;;  %14694 = vrcp.f32 %v10522_v21 }
 0xc48   : > { %14696 = vtanh.f32 %v10538_v63 }
 0xc49   : > { %14698 = vrcp.f32 %v10531_v37 }
 0xc53   : > { %v14695_v60 = vpop.eup %14694 }
 0xc55   : > { %v14697_v38 = vpop.eup %14696 }
 0xc56   : > { %v10543_v39 = vmul.f32 %v14697_v38, %v14695_v60  ;;  %v14699_v4 = vpop.eup %14698 }
 0xc57   : > { %v10535_v22 = vmul.f32 2.0, %v14699_v4  ;;  %v10712_v4 = vld [vmem:[#allocation13 + $0x68] sm:$0xff] }
 0xc58   : > { %v10578_v31 = vmul.f32 %v18447_v41, %v10543_v39 }
 0xc59   : > { %v10537_v49 = vmul.f32 0.5, %v10535_v22  ;;  %v10711_v22 = vld [vmem:[#allocation13 + $0x60] sm:$0xff] }
 0xc5a   : > { %v10586_v40 = vmul.f32 %v18479_v7, %v10578_v31  ;;  %v10580_v62 = vmul.f32 %v10578_v31, %v10578_v31  ;;  %v10600_v5 = vmul.f32 %v10578_v31, %v18467_v36 }
 0xc5c   : > { %10588 = vadd.xlane.f32.xlu1 %v10586_v40 }
 0xc60   : > { %10582 = vadd.xlane.f32.xlu1 %v10580_v62 }
 0xcbb   : > { %v10513_v8 = vpop.xlane.xlu0 %10512 }
 0xcbc   : > { %v10515_v25 = vmax.f32 %v10513_v8, 1e-15 }
 0xcbe   : > { %14700 = vrsqrt.f32 %v10515_v25  ;;  %vm10525_vm7 = vcmp.eq.f32.partialorder %v10515_v25, inf  ;;  %v10528_v27 = vand.u32 2147483648, %v10515_v25  ;;  %vm10527_vm10 = vcmp.eq.f32.partialorder %v10515_v25, 0.0 }
 0xccb   : > { %v14701_v47 = vpop.eup %14700 }
 0xccc   : > { %v10524_v41 = vmul.f32 %v14701_v47, %v10515_v25  ;;  %v10710_v47 = vld [vmem:[#allocation13 + $0x58] sm:$0xff] }
 0xcce   : > { %v10526_v0 = vsel %vm10525_vm7, %v10515_v25, %v10524_v41  ;;  %v10713_v25 = vld [vmem:[#allocation13 + $0x70] sm:$0xff] }
 0xccf   : > { %v10529_v56 = vsel %vm10527_vm10, %v10528_v27, %v10526_v0  ;;  %v10709_v41 = vld [vmem:[#allocation13 + $0x50] sm:$0xff]  ;;  %v10708_v27 = vld [vmem:[#allocation13 + $0x48] sm:$0xff]  ;;  %v10706_v0 = vld [vmem:[#allocation13 + $0x38] sm:$0xff] }
 0xcd0   : > { %v10539_v34 = vmul.f32 %v10537_v49, %v10529_v56  ;;  %14702 = vrcp.f32 %v10529_v56  ;;  %v10707_v49 = vld [vmem:[#allocation13 + $0x40] sm:$0xff]  ;;  %v10705_v56 = vld [vmem:[#allocation13 + $0x30] sm:$0xff] }
 0xcd2   : > { %14704 = vtanh.f32 %v10539_v34 }
 0xcdd   : > { %v14703_v45 = vpop.eup %14702 }
 0xcdf   : > { %v14705_v58 = vpop.eup %14704 }
 0xce0   : > { %v10545_v42 = vmul.f32 %v14705_v58, %v14703_v45 }
 0xce2   : > { %v10579_v50 = vmul.f32 %v10575_v13, %v10545_v42 }
 0xce4   : > { %v10587_v44 = vmul.f32 %v14797_v33, %v10579_v50  ;;  %v10581_v1 = vmul.f32 %v10579_v50, %v10579_v50  ;;  %v10601_v53 = vmul.f32 %v10579_v50, %v10531_v37  ;;  %v18794_v37 = vmov 0.0  }
 0xce5   : > { %v10589_v29 = vpop.xlane.xlu1 %10588 }
 0xce6   : > { %v10592_v19 = vmul.f32 2.0, %v10589_v29  ;;  %10590 = vadd.xlane.f32.xlu1 %v10587_v44 }
 0xce8   : > { %v10594_v54 = vadd.f32 1.0, %v10592_v19 }
 0xce9   : > { %v10583_v51 = vpop.xlane.xlu1 %10582 }
 0xcea   : > { %v10604_v11 = vmul.f32 %v10583_v51, %v18792_v23  ;;  %v10596_v20 = vadd.f32 %v10594_v54, %v10583_v51 }
 0xcec   : > { %v10606_v18 = vadd.f32 %v10604_v11, %v10594_v54  ;;  %v10598_v52 = vmul.f32 %v18479_v7, %v10596_v20 }
 0xcee   : > { %v10608_v17 = vmax.f32 %v10606_v18, 1e-15  ;;  %v10602_v15 = vadd.f32 %v10600_v5, %v10598_v52 }
 0xcf0   : > { %14706 = vrcp.f32 %v10608_v17 }
 0xcfd   : > { %v14707_v30 = vpop.eup %14706 }
 0xcfe   : > { %v10614_v12 = vmul.f32 %v14707_v30, %v10602_v15 }
 0xd00   : > { %v10616_v24 = vmul.f32 %v10614_v12, %v10614_v12 }
 0xd02   : > { %10618 = vadd.xlane.f32.xlu1 %v10616_v24 }
 0xd06   : > { %10584 = vadd.xlane.f32.xlu1 %v10581_v1 }
 0xd6f   : > { %v10591_v46 = vpop.xlane.xlu1 %10590 }
 0xd70   : > { %v10593_v57 = vmul.f32 2.0, %v10591_v46 }
 0xd72   : > { %v10595_v59 = vadd.f32 1.0, %v10593_v57 }
 0xd8b   : > { %v10619_v48 = vpop.xlane.xlu1 %10618 }
 0xd8c   : > { %v10622_v2 = vmax.f32 %v10619_v48, 1e-15 }
 0xd8e   : > { %14708 = vrsqrt.f32 %v10622_v2  ;;  %vm10626_vm11 = vcmp.eq.f32.partialorder %v10622_v2, inf  ;;  %v10629_v61 = vand.u32 2147483648, %v10622_v2  ;;  %vm10628_vm12 = vcmp.eq.f32.partialorder %v10622_v2, 0.0 }
 0xd8f   : > { %v10585_v55 = vpop.xlane.xlu1 %10584 }
 0xd90   : > { %v10605_v13 = vmul.f32 %v10585_v55, %v18793_v10  ;;  %v10597_v35 = vadd.f32 %v10595_v59, %v10585_v55  ;;  %v10714_v10 = vld [vmem:[#allocation13 + $0x78] sm:$0xff]  ;;  %v10704_v55 = vld [vmem:[#allocation13 + $0x28] sm:$0xff] }
 0xd91   : > { %13677 = vmatpush3.xpose.msra.mxu1 %v10714_v10 }
 0xd92   : > { %v10607_v16 = vadd.f32 %v10605_v13, %v10595_v59  ;;  %v10599_v32 = vmul.f32 %v14797_v33, %v10597_v35  ;;  %13678 = vmatprep.subr.mxu1 %v18794_v37  ;;  %v10701_v59 = vld [vmem:[#allocation13 + $0x10] sm:$0xff]  ;;  %v10700_v13 = vld [vmem:[#allocation13 + $0x8] sm:$0xff] }
 0xd94   : > { %v10609_v43 = vmax.f32 %v10607_v16, 1e-15  ;;  %v10603_v26 = vadd.f32 %v10601_v53, %v10599_v32  ;;  %v10699_v16 = vld [vmem:[#allocation13] sm:$0xff] }
 0xd95   : > { %13679 = vmatpush3.xpose.msra.mxu1 %v10713_v25 }
 0xd96   : > { %14710 = vrcp.f32 %v10609_v43  ;;  %13680 = vmatprep.subr.mxu1 %v18794_v37 }
 0xd99   : > { %13681 = vmatpush3.xpose.msra.mxu1 %v10712_v4 }
 0xd9a   : > { %13682 = vmatprep.subr.mxu1 %v18794_v37 }
 0xd9b   : > { %v14709_v14 = vpop.eup %14708 }
 0xd9c   : > { %v10625_v28 = vmul.f32 %v14709_v14, %v10622_v2 }
 0xd9d   : > { %13683 = vmatpush3.xpose.msra.mxu1 %v10711_v22 }
 0xd9e   : > { %v10627_v6 = vsel %vm10626_vm11, %v10622_v2, %v10625_v28  ;;  %13684 = vmatprep.subr.mxu1 %v18794_v37 }
 0xd9f   : > { %v10630_v3 = vsel %vm10628_vm12, %v10629_v61, %v10627_v6 }
 0xda0   : > { %14712 = vrcp.f32 %v10630_v3  ;;  %vm10638_vm13 = vcmp.gt.f32.partialorder %v10630_v3, 0.99999 }
 0xda1   : > { %13685 = vmatpush3.xpose.msra.mxu1 %v10710_v47 }
 0xda2   : > { %13686 = vmatprep.subr.mxu1 %v18794_v37 }
 0xda3   : > { %v14711_v21 = vpop.eup %14710 }
 0xda4   : > { %v18492_v63 = vmul.f32 %v14711_v21, %v10603_v26 }
 0xda5   : > { %13687 = vmatpush3.xpose.msra.mxu1 %v10709_v41 }
 0xda6   : > { %v10617_v60 = vmul.f32 %v18492_v63, %v18492_v63  ;;  %13688 = vmatprep.subr.mxu1 %v18794_v37 }
 0xda8   : > { %10620 = vadd.xlane.f32.xlu1 %v10617_v60 }
 0xda9   : > { %13689 = vmatpush3.xpose.msra.mxu1 %v10708_v27 }
 0xdaa   : > { %13690 = vmatprep.subr.mxu1 %v18794_v37 }
 0xdad   : > { %v14713_v38 = vpop.eup %14712  ;;  %13691 = vmatpush3.xpose.msra.mxu1 %v10707_v49 }
 0xdae   : > { %v10641_v39 = vmul.f32 0.99999, %v14713_v38  ;;  %13692 = vmatprep.subr.mxu1 %v18794_v37 }
 0xdb0   : > { %v10644_v31 = vsel %vm10638_vm13, %v10641_v39, 1.0 }
 0xdb1   : > { %v10646_v40 = vmul.f32 %v10644_v31, %v10614_v12  ;;  %13693 = vmatpush3.xpose.msra.mxu1 %v10706_v0 }
 0xdb2   : > { %13694 = vmatprep.subr.mxu1 %v18794_v37 }
 0xdb3   : > { %v10651_v62 = vmul.f32 %v18479_v7, %v10646_v40  ;;  %v10648_v8 = vmul.f32 %v10646_v40, %v10646_v40  ;;  %v10658_v15 = vmul.f32 %v10646_v40, %v18467_v36  ;;  %v10702_v36 = vld [vmem:[#allocation13 + $0x18] sm:$0xff] }
 0xdb5   : > { %10652 = vadd.xlane.f32.xlu1 %v10651_v62  ;;  %13695 = vmatpush3.xpose.msra.mxu1 %v10705_v56 }
 0xdb6   : > { %13696 = vmatprep.subr.mxu1 %v18794_v37 }
 0xdb9   : > { %10649 = vadd.xlane.f32.xlu1 %v10648_v8  ;;  %13697 = vmatpush3.xpose.msra.mxu1 %v10704_v55 }
 0xdba   : > { %13698 = vmatprep.subr.mxu1 %v18794_v37 }
 0xe31   : > { %v10621_v34 = vpop.xlane.xlu1 %10620 }
 0xe32   : > { %v10623_v45 = vmax.f32 %v10621_v34, 1e-15 }
 0xe34   : > { %14714 = vrsqrt.f32 %v10623_v45  ;;  %vm10633_vm0 = vcmp.eq.f32.partialorder %v10623_v45, inf  ;;  %v10636_v51 = vand.u32 2147483648, %v10623_v45  ;;  %vm10635_vm8 = vcmp.eq.f32.partialorder %v10623_v45, 0.0 }
 0xe3e   : > { %v10653_v58 = vpop.xlane.xlu1 %10652 }
 0xe3f   : > { %v10654_v42 = vmul.f32 2.0, %v10653_v58 }
 0xe41   : > { %v14715_v50 = vpop.eup %14714  ;;  %v10655_v29 = vadd.f32 1.0, %v10654_v42 }
 0xe42   : > { %v10650_v33 = vpop.xlane.xlu1 %10649  ;;  %v10632_v44 = vmul.f32 %v14715_v50, %v10623_v45 }
 0xe43   : > { %v10660_v19 = vmul.f32 %v10650_v33, %v18792_v23  ;;  %v10656_v20 = vadd.f32 %v10655_v29, %v10650_v33 }
 0xe44   : > { %v10634_v54 = vsel %vm10633_vm0, %v10623_v45, %v10632_v44 }
 0xe45   : > { %v10661_v11 = vadd.f32 %v10660_v19, %v10655_v29  ;;  %v10637_v18 = vsel %vm10635_vm8, %v10636_v51, %v10634_v54  ;;  %v10657_v52 = vmul.f32 %v18479_v7, %v10656_v20  ;;  %v10703_v7 = vld [vmem:[#allocation13 + $0x20] sm:$0xff] }
 0xe46   : > { %14716 = vrcp.f32 %v10637_v18  ;;  %vm10639_vm9 = vcmp.gt.f32.partialorder %v10637_v18, 0.99999  ;;  %13699 = vmatpush3.xpose.msra.mxu1 %v10703_v7 }
 0xe47   : > { %v10662_v17 = vmax.f32 %v10661_v11, 1e-15  ;;  %v10659_v12 = vadd.f32 %v10658_v15, %v10657_v52  ;;  %13700 = vmatprep.subr.mxu1 %v18794_v37 }
 0xe49   : > { %14718 = vrcp.f32 %v10662_v17 }
 0xe4a   : > { %13701 = vmatpush3.xpose.msra.mxu1 %v10702_v36 }
 0xe4b   : > { %13702 = vmatprep.subr.mxu1 %v18794_v37 }
 0xe4e   : > { %13703 = vmatpush3.xpose.msra.mxu1 %v10701_v59 }
 0xe4f   : > { %13704 = vmatprep.subr.mxu1 %v18794_v37 }
 0xe52   : > { %13705 = vmatpush3.xpose.msra.mxu1 %v10700_v13 }
 0xe53   : > { %v14717_v5 = vpop.eup %14716  ;;  %13706 = vmatprep.subr.mxu1 %v18794_v37 }
 0xe54   : > { %v10643_v30 = vmul.f32 0.99999, %v14717_v5 }
 0xe56   : > { %v14719_v24 = vpop.eup %14718  ;;  %v10645_v23 = vsel %vm10639_vm9, %v10643_v30, 1.0  ;;  %13707 = vmatpush3.xpose.msra.mxu1 %v10699_v16 }
 0xe57   : > { %v10647_v1 = vmul.f32 %v10645_v23, %v18492_v63  ;;  %v10665_v46 = vmul.f32 %v14719_v24, %v10659_v12 }
 0xe59   : > { %v10672_v48 = vmul.f32 %v10665_v46, %v10647_v1  ;;  %v10666_v57 = vmul.f32 %v10665_v46, %v10665_v46  ;;  %v10669_v2 = vmul.f32 %v10647_v1, %v10647_v1 }
 0xe5b   : > { %10673 = vadd.xlane.f32.xlu0 %v10672_v48  ;;  %10667 = vadd.xlane.f32.xlu1 %v10666_v57 }
 0xe5f   : > { %10670 = vadd.xlane.f32.xlu0 %v10669_v2 }
 0xee4   : > { %v10674_v43 = vpop.xlane.xlu0 %10673  ;;  %v10668_v14 = vpop.xlane.xlu1 %10667 }
 0xee5   : > { %v10675_v35 = vmul.f32 2.0, %v10674_v43  ;;  %v10679_v26 = vsub.f32 1.0, %v10668_v14 }
 0xee7   : > { %v10676_v61 = vadd.f32 1.0, %v10675_v35  ;;  %v10680_v63 = vmul.f32 %v10679_v26, %v10647_v1  ;;  %v10835_v1 = vld [vmem:[%s18563_s7] sm:$0x1] }
 0xee8   : > { %v10671_v28 = vpop.xlane.xlu0 %10670  ;;  %v10848_v35 = vrot.slane %v10835_v1, %v18746_v9 }
 0xee9   : > { %v10682_v32 = vmul.f32 %v10671_v28, %v10668_v14  ;;  %v10677_v53 = vadd.f32 %v10676_v61, %v10671_v28 }
 0xeeb   : > { %v10683_v6 = vadd.f32 %v10682_v32, %v10676_v61  ;;  %v10678_v21 = vmul.f32 %v10677_v53, %v10665_v46  ;;  %v10839_v46 = vmul.f32 %v10835_v1, %v10835_v1 }
 0xeed   : > { %v10684_v3 = vmax.f32 %v10683_v6, 1e-15  ;;  %v10681_v60 = vadd.f32 %v10680_v63, %v10678_v21  ;;  %v10841_v48 = vsel %vm10840_vm4, %v10839_v46, 0.0 }
 0xeef   : > { %14720 = vrcp.f32 %v10684_v3 }
 0xefc   : > { %v14721_v38 = vpop.eup %14720 }
 0xefd   : > { %v10687_v39 = vmul.f32 %v14721_v38, %v10681_v60 }
 0xeff   : > { %13709 = vmatmul.mubr.f32.vlgmr.msra.gmra.mxu1 %v10687_v39  ;;  %v10688_v31 = vmul.f32 %v10687_v39, %v10687_v39 }
 0xf01   : > { %10689 = vadd.xlane.f32.xlu1 %v10688_v31 }
 0xf8a   : > { %v10690_v37 = vpop.xlane.xlu1 %10689 }
 0xf8b   : > { %v10691_v25 = vmax.f32 %v10690_v37, 1e-15 }
 0xf8d   : > { %14722 = vrsqrt.f32 %v10691_v25  ;;  %vm10694_vm14 = vcmp.eq.f32.partialorder %v10691_v25, inf  ;;  %v10697_v41 = vand.u32 2147483648, %v10691_v25  ;;  %vm10696_vm15 = vcmp.eq.f32.partialorder %v10691_v25, 0.0 }
 0xf9a   : > { %v14723_v4 = vpop.eup %14722 }
 0xf9b   : > { %v10693_v22 = vmul.f32 %v14723_v4, %v10691_v25 }
 0xf9d   : > { %v10695_v47 = vsel %vm10694_vm14, %v10691_v25, %v10693_v22 }
 0xf9e   : > { %v10698_v27 = vsel %vm10696_vm15, %v10697_v41, %v10695_v47 }
 0xf9f   : > { %v11741_v49 = vclamps-f32 %v10698_v27, 0.999999 }
 0xfa1   : > { %v10801_v0 = vsub.f32 1.0, %v11741_v49  ;;  %v10800_v34 = vadd.f32 1.0, %v11741_v49 }
 0xfa3   : > { %14724 = vrcp.f32 %v10801_v0 }
 0xfb0   : > { %v14725_v56 = vpop.eup %14724 }
 0xfb1   : > { %v10803_v45 = vmul.f32 %v14725_v56, %v10800_v34 }
 0xfb3   : > { %14726 = vlog2.f32 %v10803_v45 }
 0xfbf   : > { %v10781_v40 = vpop.f32.mrf.mxu1 }
 0xfc0   : > { %v10812_v62 = vand.u32 2147483647, %v10781_v40  ;;  %v10785_v8 = vmul.f32 %v10781_v40, %v10781_v40  ;;  %v14727_v50 = vpop.eup %14726 }
 0xfc1   : > { %v13710_v10 = vpop.f32.mrf.mxu1  ;;  %v10805_v29 = vmul.f32 0.6931472, %v14727_v50 }
 0xfc2   : > { %10786 = vadd.xlane.f32.xlu0 %v10785_v8  ;;  %10813 = vadd.xlane.f32.xlu1 %v10812_v62 }
 0xfc3   : > { %v10806_v17 = vmul.f32 0.5, %v10805_v29 }
 0xfc6   : > { %10842 = vadd.xlane.f32.xlu1 %v10841_v48 }
0x104b   : > { %v10787_v58 = vpop.xlane.xlu0 %10786  ;;  %v10814_v30 = vpop.xlane.xlu1 %10813 }
0x104c   : > { %v10788_v42 = vmax.f32 %v10787_v58, 1e-15  ;;  %vm10815_vm3 = vcmp.eq.f32.partialorder %v10814_v30, 0.0 }
0x104e   : > { %14728 = vrsqrt.f32 %v10788_v42  ;;  %vm10791_vm1 = vcmp.eq.f32.partialorder %v10788_v42, inf  ;;  %v10794_v19 = vand.u32 2147483648, %v10788_v42  ;;  %vm10793_vm2 = vcmp.eq.f32.partialorder %v10788_v42, 0.0 }
0x104f   : > { %14730 = vrcp.f32 %v10698_v27  ;;  %v10843_v6 = vpop.xlane.xlu1 %10842 }
0x1050   : > { %v10858_v3 = vrot.slane %v10843_v6, %v18746_v9 }
0x105b   : > { %v14729_v33 = vpop.eup %14728 }
0x105c   : > { %v10790_v44 = vmul.f32 %v14729_v33, %v10788_v42  ;;  %v14731_v54 = vpop.eup %14730 }
0x105e   : > { %v10792_v51 = vsel %vm10791_vm1, %v10788_v42, %v10790_v44 }
0x105f   : > { %v10795_v11 = vsel %vm10793_vm2, %v10794_v19, %v10792_v51 }
0x1060   : > { %v10797_v18 = vmul.f32 %v14731_v54, %v10795_v11  ;;  %14732 = vrcp.f32 %v10795_v11 }
0x1062   : > { %v10807_v20 = vmul.f32 %v10806_v17, %v10797_v18 }
0x1064   : > { %14734 = vtanh.f32 %v10807_v20 }
0x106d   : > { %v14733_v52 = vpop.eup %14732 }
0x1071   : > { %v14735_v5 = vpop.eup %14734 }
0x1072   : > { %v10810_v15 = vmul.f32 %v14735_v5, %v14733_v52 }
0x1074   : > { %v10811_v12 = vmul.f32 %v10810_v15, %v10781_v40 }
0x1076   : > { %v10818_v24 = vsel %vm10815_vm3, 0.0, %v10811_v12 }
0x1077   : > { %v10819_v23 = vmul.f32 %v10818_v24, %v10818_v24 }
0x1079   : > { %10820 = vadd.xlane.f32.xlu0 %v10819_v23 }
0x1102   : > { %v10821_v57 = vpop.xlane.xlu0 %10820 }
0x1103   : > { %v10822_v2 = vmax.f32 %v10821_v57, 1e-15 }
0x1105   : > { %14736 = vrsqrt.f32 %v10822_v2  ;;  %vm10825_vm5 = vcmp.eq.f32.partialorder %v10822_v2, inf  ;;  %v10828_v36 = vand.u32 2147483648, %v10822_v2  ;;  %vm10827_vm6 = vcmp.eq.f32.partialorder %v10822_v2, 0.0 }
0x1112   : > { %v14737_v55 = vpop.eup %14736 }
0x1113   : > { %v10824_v7 = vmul.f32 %v14737_v55, %v10822_v2 }
0x1115   : > { %v10826_v59 = vsel %vm10825_vm5, %v10822_v2, %v10824_v7 }
0x1116   : > { %v10829_v13 = vsel %vm10827_vm6, %v10828_v36, %v10826_v59 }
0x1117   : > { %14738 = vrcp.f32 %v10829_v13  ;;  %vm10830_vm7 = vcmp.gt.f32.partialorder %v10829_v13, 0.99999 }
0x1124   : > { %v14739_v16 = vpop.eup %14738 }
0x1125   : > { %v10832_v43 = vmul.f32 0.99999, %v14739_v16 }
0x1127   : > { %v10833_v14 = vsel %vm10830_vm7, %v10832_v43, 1.0 }
0x1128   : > { %v10834_v28 = vmul.f32 %v10833_v14, %v10818_v24 }
0x112a   : > { %v10850_v61 = vmul.f32 %v10848_v35, %v10834_v28  ;;  %v10836_v32 = vmul.f32 %v10834_v28, %v10834_v28 }
0x112c   : > { %10851 = vadd.xlane.f32.xlu0 %v10850_v61  ;;  %10837 = vadd.xlane.f32.xlu1 %v10836_v32 }
0x11b5   : > { %v10852_v53 = vpop.xlane.xlu0 %10851  ;;  %v10838_v26 = vpop.xlane.xlu1 %10837 }
0x11b6   : > { %v10853_v21 = vmul.f32 2.0, %v10852_v53  ;;  %v10864_v60 = vmul.f32 %v10858_v3, %v10838_v26  ;;  %v10861_v40 = vsub.f32 1.0, %v10838_v26 }
0x11b8   : > { %v10854_v63 = vadd.f32 1.0, %v10853_v21  ;;  %v10862_v8 = vmul.f32 %v10861_v40, %v10848_v35 }
0x11ba   : > { %v10865_v38 = vadd.f32 %v10864_v60, %v10854_v63  ;;  %v10859_v31 = vadd.f32 %v10858_v3, %v10854_v63 }
0x11bc   : > { %v10866_v39 = vmax.f32 %v10865_v38, 1e-15  ;;  %v10860_v62 = vmul.f32 %v10859_v31, %v10834_v28 }
0x11be   : > { %14740 = vrcp.f32 %v10866_v39  ;;  %v10863_v10 = vadd.f32 %v10862_v8, %v10860_v62 }
0x11cb   : > { %v14741_v37 = vpop.eup %14740 }
0x11cc   : > { %v10869_v25 = vmul.f32 %v14741_v37, %v10863_v10 }
0x11ce   : > { %v10870_v4 = vmul.f32 %v10869_v25, %v10869_v25 }
0x11d0   : > { %10871 = vadd.xlane.f32.xlu0 %v10870_v4 }
0x1259   : > { %v10872_v22 = vpop.xlane.xlu0 %10871 }
0x125a   : > { %v10873_v47 = vmax.f32 %v10872_v22, 1e-15 }
0x125c   : > { %14742 = vrsqrt.f32 %v10873_v47  ;;  %vm10876_vm10 = vcmp.eq.f32.partialorder %v10873_v47, inf  ;;  %v10879_v27 = vand.u32 2147483648, %v10873_v47  ;;  %vm10878_vm11 = vcmp.eq.f32.partialorder %v10873_v47, 0.0 }
0x1269   : > { %v14743_v9 = vpop.eup %14742 }
0x126a   : > { %v10875_v41 = vmul.f32 %v14743_v9, %v10873_v47 }
0x126c   : > { %v10877_v49 = vsel %vm10876_vm10, %v10873_v47, %v10875_v41 }
0x126d   : > { %v10880_v0 = vsel %vm10878_vm11, %v10879_v27, %v10877_v49 }
0x126e   : > { %14744 = vrcp.f32 %v10880_v0  ;;  %vm10881_vm12 = vcmp.gt.f32.partialorder %v10880_v0, 0.99999 }
0x127b   : > { %v14745_v56 = vpop.eup %14744 }
0x127c   : > { %v10883_v34 = vmul.f32 0.99999, %v14745_v56 }
0x127e   : > { %v10884_v45 = vsel %vm10881_vm12, %v10883_v34, 1.0 }
0x127f   : > { %v10885_v58 = vmul.f32 %v10884_v45, %v10869_v25 }
0x1281   : > { %v10886_v42 = vmul.f32 %v10885_v58, %v10885_v58 }
0x1283   : > { %10887 = vadd.xlane.f32.xlu1 %v10886_v42 }
0x130c   : > { %v10888_v50 = vpop.xlane.xlu1 %10887 }
0x130d   : > { %v10889_v33 = vmax.f32 %v10888_v50, 1e-15 }
0x130f   : > { %14746 = vrsqrt.f32 %v10889_v33  ;;  %vm10892_vm13 = vcmp.eq.f32.partialorder %v10889_v33, inf  ;;  %v10895_v19 = vand.u32 2147483648, %v10889_v33  ;;  %vm10894_vm0 = vcmp.eq.f32.partialorder %v10889_v33, 0.0 }
0x131c   : > { %v14747_v44 = vpop.eup %14746 }
0x131d   : > { %v10891_v29 = vmul.f32 %v14747_v44, %v10889_v33 }
0x131f   : > { %v10893_v51 = vsel %vm10892_vm13, %v10889_v33, %v10891_v29 }
0x1320   : > { %v10896_v54 = vsel %vm10894_vm0, %v10895_v19, %v10893_v51 }
0x1321   : > { %v11742_v11 = vclamps-f32 %v10896_v54, 0.999999 }
0x1323   : > { %v10900_v18 = vsub.f32 1.0, %v11742_v11  ;;  %v10899_v17 = vadd.f32 1.0, %v11742_v11 }
0x1325   : > { %14748 = vrcp.f32 %v10900_v18 }
0x1332   : > { %v14749_v20 = vpop.eup %14748 }
0x1333   : > { %v10902_v52 = vmul.f32 %v14749_v20, %v10899_v17 }
0x1335   : > { %14750 = vlog2.f32 %v10902_v52 }
0x1336   : > { %14752 = vrcp.f32 %v10896_v54 }
0x1342   : > { %v14751_v5 = vpop.eup %14750 }
0x1343   : > { %v10904_v15 = vmul.f32 0.6931472, %v14751_v5  ;;  %v14753_v12 = vpop.eup %14752 }
0x1345   : > { %v10905_v30 = vmul.f32 0.5, %v10904_v15 }
0x1347   : > { %v10907_v24 = vmul.f32 %v14753_v12, %v10905_v30 }
0x1349   : > { %v10908_v23 = vmul.f32 %v10907_v24, %v10885_v58 }
0x134b   : > { %v10909_v1 = vmax.f32 %v10908_v23, 0.0 }
0x134d   : > { %v10910_v46 = vmul.f32 %v10909_v1, %v10909_v1 }
0x134f   : > { %10911 = vadd.xlane.f32.xlu0 %v10910_v46 }
0x13d8   : > { %v10912_v48 = vpop.xlane.xlu0 %10911 }
0x13d9   : > { %v10913_v57 = vmax.f32 %v10912_v48, 1e-15 }
0x13db   : > { %14754 = vrsqrt.f32 %v10913_v57  ;;  %vm10916_vm8 = vcmp.eq.f32.partialorder %v10913_v57, inf  ;;  %v10919_v7 = vand.u32 2147483648, %v10913_v57  ;;  %vm10918_vm9 = vcmp.eq.f32.partialorder %v10913_v57, 0.0 }
0x13e8   : > { %v14755_v2 = vpop.eup %14754 }
0x13e9   : > { %v10915_v55 = vmul.f32 %v14755_v2, %v10913_v57 }
0x13eb   : > { %v10917_v36 = vsel %vm10916_vm8, %v10913_v57, %v10915_v55 }
0x13ec   : > { %v10920_v59 = vsel %vm10918_vm9, %v10919_v7, %v10917_v36 }
0x13ed   : > { %14756 = vtanh.f32 %v10920_v59 }
0x13ee   : > { %14758 = vrcp.f32 %v10920_v59 }
0x13fa   : > { %v14757_v13 = vpop.eup %14756 }
0x13fb   : > { %v14759_v16 = vpop.eup %14758 }
0x13fc   : > { %v10923_v43 = vmul.f32 %v14759_v16, %v14757_v13 }
0x13fe   : > { %v10924_v35 = vmul.f32 %v10923_v43, %v10909_v1 }
0x1400   : > { %v10925_v14 = vmul.f32 %v10924_v35, %v10924_v35 }
0x1402   : > { %10926 = vadd.xlane.f32.xlu1 %v10925_v14 }
0x148b   : > { %v10927_v28 = vpop.xlane.xlu1 %10926 }
0x148c   : > { %v10928_v61 = vmax.f32 %v10927_v28, 1e-15 }
0x148e   : > { %14760 = vrsqrt.f32 %v10928_v61  ;;  %vm10931_vm14 = vcmp.eq.f32.partialorder %v10928_v61, inf  ;;  %v10934_v3 = vand.u32 2147483648, %v10928_v61  ;;  %vm10933_vm15 = vcmp.eq.f32.partialorder %v10928_v61, 0.0 }
0x149b   : > { %v14761_v32 = vpop.eup %14760 }
0x149c   : > { %v10930_v6 = vmul.f32 %v14761_v32, %v10928_v61 }
0x149e   : > { %v10932_v53 = vsel %vm10931_vm14, %v10928_v61, %v10930_v6 }
0x149f   : > { %v10935_v26 = vsel %vm10933_vm15, %v10934_v3, %v10932_v53 }
0x14a0   : > { %14762 = vrcp.f32 %v10935_v26  ;;  %vm10936_vm1 = vcmp.gt.f32.partialorder %v10935_v26, 0.99999 }
0x14ad   : > { %v14763_v21 = vpop.eup %14762 }
0x14ae   : > { %v10938_v63 = vmul.f32 0.99999, %v14763_v21 }
0x14b0   : > { %v10939_v60 = vsel %vm10936_vm1, %v10938_v63, 1.0 }
0x14b1   : > { %v10940_v38 = vmul.f32 %v10939_v60, %v10924_v35 }
0x14b3   : > { %10941 = vst [vmem:[%s501_s26] sm:$0xff] %v10940_v38 }
0x14b4   : > { %15003 = shalt.err (!%p15000_p6)
}
0x14b5   : > { %s15004_s1 = scalar_lea.hbm %s10954_s23, 128  ;;  %s15008_s15 = scalar_lea.hbm %s18796_s14, 512 }
0x14b6   : > { %p15005_p8 = scmp.ne.s32.totalorder %s10954_s23, %s15004_s1  ;;  %p15009_p11 = scmp.lt.s32.totalorder %s10954_s23, %s18796_s14 }
0x14b7   : > { %p15010_p9 = scmp.lt.s32.totalorder %s15008_s15, %s15004_s1 }
0x14b8   : > { %p15006_p10 = pnand %p15005_p8, %p18797_p3 }
0x14b9   : > { %p15011_p7 = por %p15010_p9, %p15009_p11 }
0x14ba   : > { %p15007_p12 = pneg %p15006_p10 }
0x14bc   : > { %p15012_p0 = pnand %p15011_p7, %p15007_p12 }
0x14be   : > { %15015 = shalt.err (!%p15012_p0)
}
0x14bf   : > { %13729 = dma.vmem_to_hbm [thread:$0]  (%p18797_p3), %s10957_s27, 128, %s10954_s23, %s10943_s21  }
0x14c0 PF: > { %s18798_s20 = sld [smem:[#allocation20_spill]]  ;;  %p13763_p5 = scmp.ge.s32.totalorder %s15066_s30, 2 }
0x14c1   : > { %s18799_s6 = sld [smem:[#allocation22_spill]] }
0x14c6   : > { %s10968_s19 = sand.u32 1, %s18798_s20  }
0x14c7   : > { %p18800_p2 = scmp.ne.s32.totalorder %s18799_s6, 0  ;;  %s10969_s5 = scalar_lea.sflag [#allocation4], %s10968_s19 }
0x14c9   : > { %p13755_p13 = pnand %p13763_p5, %p18800_p2 }
0x14cb   : > { %p13756_p1 = pneg %p13755_p13 }
0x14cd   : > { %15049 = dma.done.wait (%p13756_p1), %s10969_s5, 128  }
0x14ce   : > { %15051 = vsyncadd (%p13756_p1), %s10969_s5, 4294967168  ;;  %s18801_s30 = sld [smem:[#allocation23_spill]]  ;;  %s18804_s27 = smov %s15058_s28 }
0x14cf   : > { %s18802_s11 = sld [smem:[#allocation21_spill]] }
0x14d0   : > { %s18803_s29 = sld [smem:[#allocation24_spill]] }
0x14d4   : > { %p28_p4 = scmp.ge.s32.totalorder %s18801_s30, 6  }
0x14d5   : > { %s18805_s28 = smov %s18802_s11 }
0x14d6   :  { %30 = sbr.rel (!%p28_p4) target bundleno = 16 (0x10), region = 153 }
0x14db   :  { %10974 = vsyncpa [#allocation3], 1 }
0x14dc   :  { %10976 = vsyncpa [#allocation3 + $0x1], 1 }
0x14dd   :  { %10977 = vsyncpa [#allocation6], 1 }
0x14de   :  { %10979 = vsyncpa [#allocation6 + $0x1], 1 }
0x14df   :  { %10980 = vsyncpa [#allocation9], 1 }
0x14e0   :  { %10982 = vsyncpa [#allocation9 + $0x1], 1 }
0x14e1   :  { %10983 = vsyncpa [#allocation12], 1 }
0x14e2   :  { %10984 = vsyncpa [#allocation4], 1 }
0x14e3   :  { %10986 = vsyncpa [#allocation4 + $0x1], 1 }

</bundles_post_ra>
